<compile_context>
chip_gen: v5e
topology: v5e:2x2
jax: 0.10.0
libtpu: 0.0.40
codegen_flags: <defaults>
</compile_context>

<pallas_src>
import jax
import jax.numpy as jnp
import numpy as np
from jax.experimental import pallas as pl
from jax.experimental.pallas import tpu as pltpu

C_IN, C_OUT, K, STRIDE, PAD = 1, 5, 3, 2, 1
H_IN, W_IN = 128, 16

HO = (H_IN - 1) * STRIDE - 2 * PAD + K        # 255  (output H, on lanes in-kernel)
WO = (W_IN - 1) * STRIDE - 2 * PAD + K        # 31   (output W, on sublanes in-kernel)
PAD_EFF = K - 1 - PAD                          # 1
LANE = 128
N_HALF = 2                                     # ceil(HO / 128)
WO_PAD = 32                                    # sublane-padded accumulator rows
HP = N_HALF * LANE + (K - 1)                   # 258: padded lane extent of dilated slab
WP = 40                                        # padded sublane extent (mult of 8, >= 33)


def _convt_relu_sigmoid_kernel(w_ref, b_ref, x_ref, o_ref):
    # w_ref: SMEM (C_OUT*K*K,)  flipped weights, flat index = c*9 + dj*3 + di
    #        (dj = W/sublane tap, di = H/lane tap)
    # b_ref: SMEM (C_OUT,)
    # x_ref: VMEM (WP, HP)      dilated + padded input; W on sublanes, H on lanes
    # o_ref: VMEM (1, C_OUT, HO, WO)  NCHW output, written directly (no wrapper transpose)
    for half in range(N_HALF):                     # static unroll: 128-lane H halves
        lane0 = half * LANE
        # bias folded into accumulator init (saves the epilogue adds)
        accs = [jnp.full((WO_PAD, LANE), b_ref[c], jnp.float32)
                for c in range(C_OUT)]
        # each shifted slice is materialized once and FMA'd into all 5 channels
        for dj in range(K):                        # sublane (W) tap
            for di in range(K):                    # lane (H) tap
                sl = x_ref[dj:dj + WO_PAD, lane0 + di:lane0 + di + LANE]
                for c in range(C_OUT):
                    accs[c] = accs[c] + w_ref[c * K * K + dj * K + di] * sl
        rows = min(LANE, HO - lane0)               # 128 then 127 (static)
        for c in range(C_OUT):
            a = jnp.maximum(accs[c], 0.0)          # relu (bias already included)
            s = 0.5 * jnp.tanh(0.5 * a) + 0.5      # sigmoid via EUP tanh (free slot)
            st = jnp.transpose(s)                  # (LANE, WO_PAD) in-register transpose
            o_ref[0, c, lane0:lane0 + rows, :] = st[:rows, :WO]


@jax.jit
def model_forward(x_nchw, weight, bias):
    """ConvTranspose2d(1, 5, 3, padding=1, stride=2) -> relu -> sigmoid (NCHW)."""
    n, c_in, h, w = x_nchw.shape
    assert n == 1 and c_in == C_IN and h == H_IN and w == W_IN

    # Single lax.pad with interior padding builds the transposed (W-major)
    # dilated + padded slab, already padded out to (WP, HP) = (40, 258) so the
    # kernel sees clean sublane/lane tile extents.
    x2d_t = x_nchw[0, 0].astype(jnp.float32).T                   # (W_IN, H_IN)
    w_hi = WP - (PAD_EFF + (W_IN - 1) * STRIDE + 1)              # 8
    h_hi = HP - (PAD_EFF + (H_IN - 1) * STRIDE + 1)              # 2
    xd_t = jax.lax.pad(
        x2d_t, jnp.float32(0),
        ((PAD_EFF, w_hi, STRIDE - 1), (PAD_EFF, h_hi, STRIDE - 1)))

    # ConvTranspose2d weight is (C_IN, C_OUT, kH, kW); flip spatially for
    # correlation, swap kH/kW (kernel correlates over (W, H)), flatten for SMEM.
    w_flip = weight[0, :, ::-1, ::-1]                            # (C_OUT, kH, kW)
    w_flat = jnp.transpose(w_flip, (0, 2, 1)).reshape(C_OUT * K * K).astype(jnp.float32)
    b_flat = bias.reshape(C_OUT).astype(jnp.float32)

    # Kernel emits NCHW directly -> no post-transpose, no extra HBM round-trip.
    return pl.pallas_call(
        _convt_relu_sigmoid_kernel,
        out_shape=jax.ShapeDtypeStruct((1, C_OUT, HO, WO), jnp.float32),
        in_specs=[
            pl.BlockSpec(memory_space=pltpu.MemorySpace.SMEM),
            pl.BlockSpec(memory_space=pltpu.MemorySpace.SMEM),
            pl.BlockSpec(memory_space=pltpu.MemorySpace.VMEM),
        ],
        out_specs=pl.BlockSpec(memory_space=pltpu.MemorySpace.VMEM),
    )(w_flat, b_flat, xd_t)


def reference(x_nchw, weight, bias):
    w_flip = weight[:, :, ::-1, ::-1]                            # (C_IN, C_OUT, K, K)
    w_oihw = jnp.transpose(w_flip, (1, 0, 2, 3))                 # (C_OUT, C_IN, K, K)
    y = jax.lax.conv_general_dilated(
        x_nchw, w_oihw, window_strides=(1, 1),
        padding=[(K - 1 - PAD, K - 1 - PAD)] * 2,
        lhs_dilation=(STRIDE, STRIDE),
        dimension_numbers=("NCHW", "OIHW", "NCHW"))
    y = y + bias.reshape(1, C_OUT, 1, 1)
    return jax.nn.sigmoid(jnp.maximum(y, 0.0))


if __name__ == "__main__":
    key = jax.random.PRNGKey(0)
    k_x, k_w, k_b = jax.random.split(key, 3)

    # input consistent with the module: x1 = torch.randn(1, 1, 128, 16)
    x = jax.random.normal(k_x, (1, 1, H_IN, W_IN), dtype=jnp.float32)

    # deterministic parameter init (PyTorch-style uniform bound 1/sqrt(C_IN*K*K))
    bound = 1.0 / np.sqrt(C_IN * K * K)
    weight = jax.random.uniform(k_w, (C_IN, C_OUT, K, K), jnp.float32, -bound, bound)
    bias = jax.random.uniform(k_b, (C_OUT,), jnp.float32, -bound, bound)

    out = jax.block_until_ready(model_forward(x, weight, bias))
    ref = jax.block_until_ready(reference(x, weight, bias))

    assert out.shape == (1, C_OUT, 255, 31), out.shape
    np.testing.assert_allclose(np.asarray(out), np.asarray(ref), rtol=1e-5, atol=1e-5)
    print("KERNEL_OK")
</pallas_src>

<mosaic_0001>
module attributes {stable_mosaic.version = 11 : i64} {
  func.func @_convt_relu_sigmoid_kernel(%arg0: memref<45xf32, #tpu.memory_space<smem>>, %arg1: memref<5xf32, #tpu.memory_space<smem>>, %arg2: memref<40x258xf32, #tpu.memory_space<vmem>>, %arg3: memref<1x5x255x31xf32, #tpu.memory_space<vmem>>) attributes {dimension_semantics = [], scalar_prefetch = 0 : i64, scratch_operands = 0 : i64, tpu.core_type = #tpu.core_type<tc>} {
    %c0 = arith.constant 0 : index
    %0 = memref.load %arg1[%c0] : memref<5xf32, #tpu.memory_space<smem>>
    %1 = vector.broadcast %0 : f32 to vector<32x128xf32>
    %c1 = arith.constant 1 : index
    %2 = memref.load %arg1[%c1] : memref<5xf32, #tpu.memory_space<smem>>
    %3 = vector.broadcast %2 : f32 to vector<32x128xf32>
    %c2 = arith.constant 2 : index
    %4 = memref.load %arg1[%c2] : memref<5xf32, #tpu.memory_space<smem>>
    %5 = vector.broadcast %4 : f32 to vector<32x128xf32>
    %c3 = arith.constant 3 : index
    %6 = memref.load %arg1[%c3] : memref<5xf32, #tpu.memory_space<smem>>
    %7 = vector.broadcast %6 : f32 to vector<32x128xf32>
    %c4 = arith.constant 4 : index
    %8 = memref.load %arg1[%c4] : memref<5xf32, #tpu.memory_space<smem>>
    %9 = vector.broadcast %8 : f32 to vector<32x128xf32>
    %c0_0 = arith.constant 0 : index
    %c0_1 = arith.constant 0 : index
    %10 = vector.load %arg2[%c0_0, %c0_1] : memref<40x258xf32, #tpu.memory_space<vmem>>, vector<32x128xf32>
    %c0_2 = arith.constant 0 : index
    %11 = memref.load %arg0[%c0_2] : memref<45xf32, #tpu.memory_space<smem>>
    %12 = vector.broadcast %11 : f32 to vector<32x128xf32>
    %13 = arith.mulf %12, %10 : vector<32x128xf32>
    %14 = arith.addf %1, %13 : vector<32x128xf32>
    %c9 = arith.constant 9 : index
    %15 = memref.load %arg0[%c9] : memref<45xf32, #tpu.memory_space<smem>>
    %16 = vector.broadcast %15 : f32 to vector<32x128xf32>
    %17 = arith.mulf %16, %10 : vector<32x128xf32>
    %18 = arith.addf %3, %17 : vector<32x128xf32>
    %c18 = arith.constant 18 : index
    %19 = memref.load %arg0[%c18] : memref<45xf32, #tpu.memory_space<smem>>
    %20 = vector.broadcast %19 : f32 to vector<32x128xf32>
    %21 = arith.mulf %20, %10 : vector<32x128xf32>
    %22 = arith.addf %5, %21 : vector<32x128xf32>
    %c27 = arith.constant 27 : index
    %23 = memref.load %arg0[%c27] : memref<45xf32, #tpu.memory_space<smem>>
    %24 = vector.broadcast %23 : f32 to vector<32x128xf32>
    %25 = arith.mulf %24, %10 : vector<32x128xf32>
    %26 = arith.addf %7, %25 : vector<32x128xf32>
    %c36 = arith.constant 36 : index
    %27 = memref.load %arg0[%c36] : memref<45xf32, #tpu.memory_space<smem>>
    %28 = vector.broadcast %27 : f32 to vector<32x128xf32>
    %29 = arith.mulf %28, %10 : vector<32x128xf32>
    %30 = arith.addf %9, %29 : vector<32x128xf32>
    %c0_3 = arith.constant 0 : index
    %c1_4 = arith.constant 1 : index
    %31 = vector.load %arg2[%c0_3, %c1_4] : memref<40x258xf32, #tpu.memory_space<vmem>>, vector<32x128xf32>
    %c1_5 = arith.constant 1 : index
    %32 = memref.load %arg0[%c1_5] : memref<45xf32, #tpu.memory_space<smem>>
    %33 = vector.broadcast %32 : f32 to vector<32x128xf32>
    %34 = arith.mulf %33, %31 : vector<32x128xf32>
    %35 = arith.addf %14, %34 : vector<32x128xf32>
    %c10 = arith.constant 10 : index
    %36 = memref.load %arg0[%c10] : memref<45xf32, #tpu.memory_space<smem>>
    %37 = vector.broadcast %36 : f32 to vector<32x128xf32>
    %38 = arith.mulf %37, %31 : vector<32x128xf32>
    %39 = arith.addf %18, %38 : vector<32x128xf32>
    %c19 = arith.constant 19 : index
    %40 = memref.load %arg0[%c19] : memref<45xf32, #tpu.memory_space<smem>>
    %41 = vector.broadcast %40 : f32 to vector<32x128xf32>
    %42 = arith.mulf %41, %31 : vector<32x128xf32>
    %43 = arith.addf %22, %42 : vector<32x128xf32>
    %c28 = arith.constant 28 : index
    %44 = memref.load %arg0[%c28] : memref<45xf32, #tpu.memory_space<smem>>
    %45 = vector.broadcast %44 : f32 to vector<32x128xf32>
    %46 = arith.mulf %45, %31 : vector<32x128xf32>
    %47 = arith.addf %26, %46 : vector<32x128xf32>
    %c37 = arith.constant 37 : index
    %48 = memref.load %arg0[%c37] : memref<45xf32, #tpu.memory_space<smem>>
    %49 = vector.broadcast %48 : f32 to vector<32x128xf32>
    %50 = arith.mulf %49, %31 : vector<32x128xf32>
    %51 = arith.addf %30, %50 : vector<32x128xf32>
    %c0_6 = arith.constant 0 : index
    %c2_7 = arith.constant 2 : index
    %52 = vector.load %arg2[%c0_6, %c2_7] : memref<40x258xf32, #tpu.memory_space<vmem>>, vector<32x128xf32>
    %c2_8 = arith.constant 2 : index
    %53 = memref.load %arg0[%c2_8] : memref<45xf32, #tpu.memory_space<smem>>
    %54 = vector.broadcast %53 : f32 to vector<32x128xf32>
    %55 = arith.mulf %54, %52 : vector<32x128xf32>
    %56 = arith.addf %35, %55 : vector<32x128xf32>
    %c11 = arith.constant 11 : index
    %57 = memref.load %arg0[%c11] : memref<45xf32, #tpu.memory_space<smem>>
    %58 = vector.broadcast %57 : f32 to vector<32x128xf32>
    %59 = arith.mulf %58, %52 : vector<32x128xf32>
    %60 = arith.addf %39, %59 : vector<32x128xf32>
    %c20 = arith.constant 20 : index
    %61 = memref.load %arg0[%c20] : memref<45xf32, #tpu.memory_space<smem>>
    %62 = vector.broadcast %61 : f32 to vector<32x128xf32>
    %63 = arith.mulf %62, %52 : vector<32x128xf32>
    %64 = arith.addf %43, %63 : vector<32x128xf32>
    %c29 = arith.constant 29 : index
    %65 = memref.load %arg0[%c29] : memref<45xf32, #tpu.memory_space<smem>>
    %66 = vector.broadcast %65 : f32 to vector<32x128xf32>
    %67 = arith.mulf %66, %52 : vector<32x128xf32>
    %68 = arith.addf %47, %67 : vector<32x128xf32>
    %c38 = arith.constant 38 : index
    %69 = memref.load %arg0[%c38] : memref<45xf32, #tpu.memory_space<smem>>
    %70 = vector.broadcast %69 : f32 to vector<32x128xf32>
    %71 = arith.mulf %70, %52 : vector<32x128xf32>
    %72 = arith.addf %51, %71 : vector<32x128xf32>
    %c1_9 = arith.constant 1 : index
    %c0_10 = arith.constant 0 : index
    %73 = vector.load %arg2[%c1_9, %c0_10] : memref<40x258xf32, #tpu.memory_space<vmem>>, vector<32x128xf32>
    %c3_11 = arith.constant 3 : index
    %74 = memref.load %arg0[%c3_11] : memref<45xf32, #tpu.memory_space<smem>>
    %75 = vector.broadcast %74 : f32 to vector<32x128xf32>
    %76 = arith.mulf %75, %73 : vector<32x128xf32>
    %77 = arith.addf %56, %76 : vector<32x128xf32>
    %c12 = arith.constant 12 : index
    %78 = memref.load %arg0[%c12] : memref<45xf32, #tpu.memory_space<smem>>
    %79 = vector.broadcast %78 : f32 to vector<32x128xf32>
    %80 = arith.mulf %79, %73 : vector<32x128xf32>
    %81 = arith.addf %60, %80 : vector<32x128xf32>
    %c21 = arith.constant 21 : index
    %82 = memref.load %arg0[%c21] : memref<45xf32, #tpu.memory_space<smem>>
    %83 = vector.broadcast %82 : f32 to vector<32x128xf32>
    %84 = arith.mulf %83, %73 : vector<32x128xf32>
    %85 = arith.addf %64, %84 : vector<32x128xf32>
    %c30 = arith.constant 30 : index
    %86 = memref.load %arg0[%c30] : memref<45xf32, #tpu.memory_space<smem>>
    %87 = vector.broadcast %86 : f32 to vector<32x128xf32>
    %88 = arith.mulf %87, %73 : vector<32x128xf32>
    %89 = arith.addf %68, %88 : vector<32x128xf32>
    %c39 = arith.constant 39 : index
    %90 = memref.load %arg0[%c39] : memref<45xf32, #tpu.memory_space<smem>>
    %91 = vector.broadcast %90 : f32 to vector<32x128xf32>
    %92 = arith.mulf %91, %73 : vector<32x128xf32>
    %93 = arith.addf %72, %92 : vector<32x128xf32>
    %c1_12 = arith.constant 1 : index
    %c1_13 = arith.constant 1 : index
    %94 = vector.load %arg2[%c1_12, %c1_13] : memref<40x258xf32, #tpu.memory_space<vmem>>, vector<32x128xf32>
    %c4_14 = arith.constant 4 : index
    %95 = memref.load %arg0[%c4_14] : memref<45xf32, #tpu.memory_space<smem>>
    %96 = vector.broadcast %95 : f32 to vector<32x128xf32>
    %97 = arith.mulf %96, %94 : vector<32x128xf32>
    %98 = arith.addf %77, %97 : vector<32x128xf32>
    %c13 = arith.constant 13 : index
    %99 = memref.load %arg0[%c13] : memref<45xf32, #tpu.memory_space<smem>>
    %100 = vector.broadcast %99 : f32 to vector<32x128xf32>
    %101 = arith.mulf %100, %94 : vector<32x128xf32>
    %102 = arith.addf %81, %101 : vector<32x128xf32>
    %c22 = arith.constant 22 : index
    %103 = memref.load %arg0[%c22] : memref<45xf32, #tpu.memory_space<smem>>
    %104 = vector.broadcast %103 : f32 to vector<32x128xf32>
    %105 = arith.mulf %104, %94 : vector<32x128xf32>
    %106 = arith.addf %85, %105 : vector<32x128xf32>
    %c31 = arith.constant 31 : index
    %107 = memref.load %arg0[%c31] : memref<45xf32, #tpu.memory_space<smem>>
    %108 = vector.broadcast %107 : f32 to vector<32x128xf32>
    %109 = arith.mulf %108, %94 : vector<32x128xf32>
    %110 = arith.addf %89, %109 : vector<32x128xf32>
    %c40 = arith.constant 40 : index
    %111 = memref.load %arg0[%c40] : memref<45xf32, #tpu.memory_space<smem>>
    %112 = vector.broadcast %111 : f32 to vector<32x128xf32>
    %113 = arith.mulf %112, %94 : vector<32x128xf32>
    %114 = arith.addf %93, %113 : vector<32x128xf32>
    %c1_15 = arith.constant 1 : index
    %c2_16 = arith.constant 2 : index
    %115 = vector.load %arg2[%c1_15, %c2_16] : memref<40x258xf32, #tpu.memory_space<vmem>>, vector<32x128xf32>
    %c5 = arith.constant 5 : index
    %116 = memref.load %arg0[%c5] : memref<45xf32, #tpu.memory_space<smem>>
    %117 = vector.broadcast %116 : f32 to vector<32x128xf32>
    %118 = arith.mulf %117, %115 : vector<32x128xf32>
    %119 = arith.addf %98, %118 : vector<32x128xf32>
    %c14 = arith.constant 14 : index
    %120 = memref.load %arg0[%c14] : memref<45xf32, #tpu.memory_space<smem>>
    %121 = vector.broadcast %120 : f32 to vector<32x128xf32>
    %122 = arith.mulf %121, %115 : vector<32x128xf32>
    %123 = arith.addf %102, %122 : vector<32x128xf32>
    %c23 = arith.constant 23 : index
    %124 = memref.load %arg0[%c23] : memref<45xf32, #tpu.memory_space<smem>>
    %125 = vector.broadcast %124 : f32 to vector<32x128xf32>
    %126 = arith.mulf %125, %115 : vector<32x128xf32>
    %127 = arith.addf %106, %126 : vector<32x128xf32>
    %c32 = arith.constant 32 : index
    %128 = memref.load %arg0[%c32] : memref<45xf32, #tpu.memory_space<smem>>
    %129 = vector.broadcast %128 : f32 to vector<32x128xf32>
    %130 = arith.mulf %129, %115 : vector<32x128xf32>
    %131 = arith.addf %110, %130 : vector<32x128xf32>
    %c41 = arith.constant 41 : index
    %132 = memref.load %arg0[%c41] : memref<45xf32, #tpu.memory_space<smem>>
    %133 = vector.broadcast %132 : f32 to vector<32x128xf32>
    %134 = arith.mulf %133, %115 : vector<32x128xf32>
    %135 = arith.addf %114, %134 : vector<32x128xf32>
    %c2_17 = arith.constant 2 : index
    %c0_18 = arith.constant 0 : index
    %136 = vector.load %arg2[%c2_17, %c0_18] : memref<40x258xf32, #tpu.memory_space<vmem>>, vector<32x128xf32>
    %c6 = arith.constant 6 : index
    %137 = memref.load %arg0[%c6] : memref<45xf32, #tpu.memory_space<smem>>
    %138 = vector.broadcast %137 : f32 to vector<32x128xf32>
    %139 = arith.mulf %138, %136 : vector<32x128xf32>
    %140 = arith.addf %119, %139 : vector<32x128xf32>
    %c15 = arith.constant 15 : index
    %141 = memref.load %arg0[%c15] : memref<45xf32, #tpu.memory_space<smem>>
    %142 = vector.broadcast %141 : f32 to vector<32x128xf32>
    %143 = arith.mulf %142, %136 : vector<32x128xf32>
    %144 = arith.addf %123, %143 : vector<32x128xf32>
    %c24 = arith.constant 24 : index
    %145 = memref.load %arg0[%c24] : memref<45xf32, #tpu.memory_space<smem>>
    %146 = vector.broadcast %145 : f32 to vector<32x128xf32>
    %147 = arith.mulf %146, %136 : vector<32x128xf32>
    %148 = arith.addf %127, %147 : vector<32x128xf32>
    %c33 = arith.constant 33 : index
    %149 = memref.load %arg0[%c33] : memref<45xf32, #tpu.memory_space<smem>>
    %150 = vector.broadcast %149 : f32 to vector<32x128xf32>
    %151 = arith.mulf %150, %136 : vector<32x128xf32>
    %152 = arith.addf %131, %151 : vector<32x128xf32>
    %c42 = arith.constant 42 : index
    %153 = memref.load %arg0[%c42] : memref<45xf32, #tpu.memory_space<smem>>
    %154 = vector.broadcast %153 : f32 to vector<32x128xf32>
    %155 = arith.mulf %154, %136 : vector<32x128xf32>
    %156 = arith.addf %135, %155 : vector<32x128xf32>
    %c2_19 = arith.constant 2 : index
    %c1_20 = arith.constant 1 : index
    %157 = vector.load %arg2[%c2_19, %c1_20] : memref<40x258xf32, #tpu.memory_space<vmem>>, vector<32x128xf32>
    %c7 = arith.constant 7 : index
    %158 = memref.load %arg0[%c7] : memref<45xf32, #tpu.memory_space<smem>>
    %159 = vector.broadcast %158 : f32 to vector<32x128xf32>
    %160 = arith.mulf %159, %157 : vector<32x128xf32>
    %161 = arith.addf %140, %160 : vector<32x128xf32>
    %c16 = arith.constant 16 : index
    %162 = memref.load %arg0[%c16] : memref<45xf32, #tpu.memory_space<smem>>
    %163 = vector.broadcast %162 : f32 to vector<32x128xf32>
    %164 = arith.mulf %163, %157 : vector<32x128xf32>
    %165 = arith.addf %144, %164 : vector<32x128xf32>
    %c25 = arith.constant 25 : index
    %166 = memref.load %arg0[%c25] : memref<45xf32, #tpu.memory_space<smem>>
    %167 = vector.broadcast %166 : f32 to vector<32x128xf32>
    %168 = arith.mulf %167, %157 : vector<32x128xf32>
    %169 = arith.addf %148, %168 : vector<32x128xf32>
    %c34 = arith.constant 34 : index
    %170 = memref.load %arg0[%c34] : memref<45xf32, #tpu.memory_space<smem>>
    %171 = vector.broadcast %170 : f32 to vector<32x128xf32>
    %172 = arith.mulf %171, %157 : vector<32x128xf32>
    %173 = arith.addf %152, %172 : vector<32x128xf32>
    %c43 = arith.constant 43 : index
    %174 = memref.load %arg0[%c43] : memref<45xf32, #tpu.memory_space<smem>>
    %175 = vector.broadcast %174 : f32 to vector<32x128xf32>
    %176 = arith.mulf %175, %157 : vector<32x128xf32>
    %177 = arith.addf %156, %176 : vector<32x128xf32>
    %c2_21 = arith.constant 2 : index
    %c2_22 = arith.constant 2 : index
    %178 = vector.load %arg2[%c2_21, %c2_22] : memref<40x258xf32, #tpu.memory_space<vmem>>, vector<32x128xf32>
    %c8 = arith.constant 8 : index
    %179 = memref.load %arg0[%c8] : memref<45xf32, #tpu.memory_space<smem>>
    %180 = vector.broadcast %179 : f32 to vector<32x128xf32>
    %181 = arith.mulf %180, %178 : vector<32x128xf32>
    %182 = arith.addf %161, %181 : vector<32x128xf32>
    %c17 = arith.constant 17 : index
    %183 = memref.load %arg0[%c17] : memref<45xf32, #tpu.memory_space<smem>>
    %184 = vector.broadcast %183 : f32 to vector<32x128xf32>
    %185 = arith.mulf %184, %178 : vector<32x128xf32>
    %186 = arith.addf %165, %185 : vector<32x128xf32>
    %c26 = arith.constant 26 : index
    %187 = memref.load %arg0[%c26] : memref<45xf32, #tpu.memory_space<smem>>
    %188 = vector.broadcast %187 : f32 to vector<32x128xf32>
    %189 = arith.mulf %188, %178 : vector<32x128xf32>
    %190 = arith.addf %169, %189 : vector<32x128xf32>
    %c35 = arith.constant 35 : index
    %191 = memref.load %arg0[%c35] : memref<45xf32, #tpu.memory_space<smem>>
    %192 = vector.broadcast %191 : f32 to vector<32x128xf32>
    %193 = arith.mulf %192, %178 : vector<32x128xf32>
    %194 = arith.addf %173, %193 : vector<32x128xf32>
    %c44 = arith.constant 44 : index
    %195 = memref.load %arg0[%c44] : memref<45xf32, #tpu.memory_space<smem>>
    %196 = vector.broadcast %195 : f32 to vector<32x128xf32>
    %197 = arith.mulf %196, %178 : vector<32x128xf32>
    %198 = arith.addf %177, %197 : vector<32x128xf32>
    %cst = arith.constant 0.000000e+00 : f32
    %199 = vector.broadcast %cst : f32 to vector<32x128xf32>
    %200 = arith.maximumf %182, %199 : vector<32x128xf32>
    %cst_23 = arith.constant 5.000000e-01 : f32
    %201 = vector.broadcast %cst_23 : f32 to vector<32x128xf32>
    %202 = arith.mulf %201, %200 : vector<32x128xf32>
    %203 = math.tanh %202 : vector<32x128xf32>
    %cst_24 = arith.constant 5.000000e-01 : f32
    %204 = vector.broadcast %cst_24 : f32 to vector<32x128xf32>
    %205 = arith.mulf %204, %203 : vector<32x128xf32>
    %cst_25 = arith.constant 5.000000e-01 : f32
    %206 = vector.broadcast %cst_25 : f32 to vector<32x128xf32>
    %207 = arith.addf %205, %206 : vector<32x128xf32>
    %208 = tpu.transpose %207, [1, 0] : vector<32x128xf32> -> vector<128x32xf32>
    %209 = vector.extract_strided_slice %208 {offsets = [0, 0], sizes = [128, 31], strides = [1, 1]} : vector<128x32xf32> to vector<128x31xf32>
    %c0_26 = arith.constant 0 : index
    %c0_27 = arith.constant 0 : index
    %c0_28 = arith.constant 0 : index
    %c0_29 = arith.constant 0 : index
    %210 = vector.load %arg3[%c0_26, %c0_27, %c0_28, %c0_29] : memref<1x5x255x31xf32, #tpu.memory_space<vmem>>, vector<1x1x128x31xf32>
    %211 = vector.shape_cast %210 : vector<1x1x128x31xf32> to vector<128x31xf32>
    %212 = vector.shape_cast %209 : vector<128x31xf32> to vector<1x1x128x31xf32>
    tpu.vector_store %arg3[%c0_26, %c0_27, %c0_28, %c0_29], %212 {strides = array<i32>} : memref<1x5x255x31xf32, #tpu.memory_space<vmem>>, vector<1x1x128x31xf32>,
    %cst_30 = arith.constant 0.000000e+00 : f32
    %213 = vector.broadcast %cst_30 : f32 to vector<32x128xf32>
    %214 = arith.maximumf %186, %213 : vector<32x128xf32>
    %cst_31 = arith.constant 5.000000e-01 : f32
    %215 = vector.broadcast %cst_31 : f32 to vector<32x128xf32>
    %216 = arith.mulf %215, %214 : vector<32x128xf32>
    %217 = math.tanh %216 : vector<32x128xf32>
    %cst_32 = arith.constant 5.000000e-01 : f32
    %218 = vector.broadcast %cst_32 : f32 to vector<32x128xf32>
    %219 = arith.mulf %218, %217 : vector<32x128xf32>
    %cst_33 = arith.constant 5.000000e-01 : f32
    %220 = vector.broadcast %cst_33 : f32 to vector<32x128xf32>
    %221 = arith.addf %219, %220 : vector<32x128xf32>
    %222 = tpu.transpose %221, [1, 0] : vector<32x128xf32> -> vector<128x32xf32>
    %223 = vector.extract_strided_slice %222 {offsets = [0, 0], sizes = [128, 31], strides = [1, 1]} : vector<128x32xf32> to vector<128x31xf32>
    %c0_34 = arith.constant 0 : index
    %c1_35 = arith.constant 1 : index
    %c0_36 = arith.constant 0 : index
    %c0_37 = arith.constant 0 : index
    %224 = vector.load %arg3[%c0_34, %c1_35, %c0_36, %c0_37] : memref<1x5x255x31xf32, #tpu.memory_space<vmem>>, vector<1x1x128x31xf32>
    %225 = vector.shape_cast %224 : vector<1x1x128x31xf32> to vector<128x31xf32>
    %226 = vector.shape_cast %223 : vector<128x31xf32> to vector<1x1x128x31xf32>
    tpu.vector_store %arg3[%c0_34, %c1_35, %c0_36, %c0_37], %226 {strides = array<i32>} : memref<1x5x255x31xf32, #tpu.memory_space<vmem>>, vector<1x1x128x31xf32>,
    %cst_38 = arith.constant 0.000000e+00 : f32
    %227 = vector.broadcast %cst_38 : f32 to vector<32x128xf32>
    %228 = arith.maximumf %190, %227 : vector<32x128xf32>
    %cst_39 = arith.constant 5.000000e-01 : f32
    %229 = vector.broadcast %cst_39 : f32 to vector<32x128xf32>
    %230 = arith.mulf %229, %228 : vector<32x128xf32>
    %231 = math.tanh %230 : vector<32x128xf32>
    %cst_40 = arith.constant 5.000000e-01 : f32
    %232 = vector.broadcast %cst_40 : f32 to vector<32x128xf32>
    %233 = arith.mulf %232, %231 : vector<32x128xf32>
    %cst_41 = arith.constant 5.000000e-01 : f32
    %234 = vector.broadcast %cst_41 : f32 to vector<32x128xf32>
    %235 = arith.addf %233, %234 : vector<32x128xf32>
    %236 = tpu.transpose %235, [1, 0] : vector<32x128xf32> -> vector<128x32xf32>
    %237 = vector.extract_strided_slice %236 {offsets = [0, 0], sizes = [128, 31], strides = [1, 1]} : vector<128x32xf32> to vector<128x31xf32>
    %c0_42 = arith.constant 0 : index
    %c2_43 = arith.constant 2 : index
    %c0_44 = arith.constant 0 : index
    %c0_45 = arith.constant 0 : index
    %238 = vector.load %arg3[%c0_42, %c2_43, %c0_44, %c0_45] : memref<1x5x255x31xf32, #tpu.memory_space<vmem>>, vector<1x1x128x31xf32>
    %239 = vector.shape_cast %238 : vector<1x1x128x31xf32> to vector<128x31xf32>
    %240 = vector.shape_cast %237 : vector<128x31xf32> to vector<1x1x128x31xf32>
    tpu.vector_store %arg3[%c0_42, %c2_43, %c0_44, %c0_45], %240 {strides = array<i32>} : memref<1x5x255x31xf32, #tpu.memory_space<vmem>>, vector<1x1x128x31xf32>,
    %cst_46 = arith.constant 0.000000e+00 : f32
    %241 = vector.broadcast %cst_46 : f32 to vector<32x128xf32>
    %242 = arith.maximumf %194, %241 : vector<32x128xf32>
    %cst_47 = arith.constant 5.000000e-01 : f32
    %243 = vector.broadcast %cst_47 : f32 to vector<32x128xf32>
    %244 = arith.mulf %243, %242 : vector<32x128xf32>
    %245 = math.tanh %244 : vector<32x128xf32>
    %cst_48 = arith.constant 5.000000e-01 : f32
    %246 = vector.broadcast %cst_48 : f32 to vector<32x128xf32>
    %247 = arith.mulf %246, %245 : vector<32x128xf32>
    %cst_49 = arith.constant 5.000000e-01 : f32
    %248 = vector.broadcast %cst_49 : f32 to vector<32x128xf32>
    %249 = arith.addf %247, %248 : vector<32x128xf32>
    %250 = tpu.transpose %249, [1, 0] : vector<32x128xf32> -> vector<128x32xf32>
    %251 = vector.extract_strided_slice %250 {offsets = [0, 0], sizes = [128, 31], strides = [1, 1]} : vector<128x32xf32> to vector<128x31xf32>
    %c0_50 = arith.constant 0 : index
    %c3_51 = arith.constant 3 : index
    %c0_52 = arith.constant 0 : index
    %c0_53 = arith.constant 0 : index
    %252 = vector.load %arg3[%c0_50, %c3_51, %c0_52, %c0_53] : memref<1x5x255x31xf32, #tpu.memory_space<vmem>>, vector<1x1x128x31xf32>
    %253 = vector.shape_cast %252 : vector<1x1x128x31xf32> to vector<128x31xf32>
    %254 = vector.shape_cast %251 : vector<128x31xf32> to vector<1x1x128x31xf32>
    tpu.vector_store %arg3[%c0_50, %c3_51, %c0_52, %c0_53], %254 {strides = array<i32>} : memref<1x5x255x31xf32, #tpu.memory_space<vmem>>, vector<1x1x128x31xf32>,
    %cst_54 = arith.constant 0.000000e+00 : f32
    %255 = vector.broadcast %cst_54 : f32 to vector<32x128xf32>
    %256 = arith.maximumf %198, %255 : vector<32x128xf32>
    %cst_55 = arith.constant 5.000000e-01 : f32
    %257 = vector.broadcast %cst_55 : f32 to vector<32x128xf32>
    %258 = arith.mulf %257, %256 : vector<32x128xf32>
    %259 = math.tanh %258 : vector<32x128xf32>
    %cst_56 = arith.constant 5.000000e-01 : f32
    %260 = vector.broadcast %cst_56 : f32 to vector<32x128xf32>
    %261 = arith.mulf %260, %259 : vector<32x128xf32>
    %cst_57 = arith.constant 5.000000e-01 : f32
    %262 = vector.broadcast %cst_57 : f32 to vector<32x128xf32>
    %263 = arith.addf %261, %262 : vector<32x128xf32>
    %264 = tpu.transpose %263, [1, 0] : vector<32x128xf32> -> vector<128x32xf32>
    %265 = vector.extract_strided_slice %264 {offsets = [0, 0], sizes = [128, 31], strides = [1, 1]} : vector<128x32xf32> to vector<128x31xf32>
    %c0_58 = arith.constant 0 : index
    %c4_59 = arith.constant 4 : index
    %c0_60 = arith.constant 0 : index
    %c0_61 = arith.constant 0 : index
    %266 = vector.load %arg3[%c0_58, %c4_59, %c0_60, %c0_61] : memref<1x5x255x31xf32, #tpu.memory_space<vmem>>, vector<1x1x128x31xf32>
    %267 = vector.shape_cast %266 : vector<1x1x128x31xf32> to vector<128x31xf32>
    %268 = vector.shape_cast %265 : vector<128x31xf32> to vector<1x1x128x31xf32>
    tpu.vector_store %arg3[%c0_58, %c4_59, %c0_60, %c0_61], %268 {strides = array<i32>} : memref<1x5x255x31xf32, #tpu.memory_space<vmem>>, vector<1x1x128x31xf32>,
    %c0_62 = arith.constant 0 : index
    %269 = memref.load %arg1[%c0_62] : memref<5xf32, #tpu.memory_space<smem>>
    %270 = vector.broadcast %269 : f32 to vector<32x128xf32>
    %c1_63 = arith.constant 1 : index
    %271 = memref.load %arg1[%c1_63] : memref<5xf32, #tpu.memory_space<smem>>
    %272 = vector.broadcast %271 : f32 to vector<32x128xf32>
    %c2_64 = arith.constant 2 : index
    %273 = memref.load %arg1[%c2_64] : memref<5xf32, #tpu.memory_space<smem>>
    %274 = vector.broadcast %273 : f32 to vector<32x128xf32>
    %c3_65 = arith.constant 3 : index
    %275 = memref.load %arg1[%c3_65] : memref<5xf32, #tpu.memory_space<smem>>
    %276 = vector.broadcast %275 : f32 to vector<32x128xf32>
    %c4_66 = arith.constant 4 : index
    %277 = memref.load %arg1[%c4_66] : memref<5xf32, #tpu.memory_space<smem>>
    %278 = vector.broadcast %277 : f32 to vector<32x128xf32>
    %c0_67 = arith.constant 0 : index
    %c128 = arith.constant 128 : index
    %279 = vector.load %arg2[%c0_67, %c128] : memref<40x258xf32, #tpu.memory_space<vmem>>, vector<32x128xf32>
    %c0_68 = arith.constant 0 : index
    %280 = memref.load %arg0[%c0_68] : memref<45xf32, #tpu.memory_space<smem>>
    %281 = vector.broadcast %280 : f32 to vector<32x128xf32>
    %282 = arith.mulf %281, %279 : vector<32x128xf32>
    %283 = arith.addf %270, %282 : vector<32x128xf32>
    %c9_69 = arith.constant 9 : index
    %284 = memref.load %arg0[%c9_69] : memref<45xf32, #tpu.memory_space<smem>>
    %285 = vector.broadcast %284 : f32 to vector<32x128xf32>
    %286 = arith.mulf %285, %279 : vector<32x128xf32>
    %287 = arith.addf %272, %286 : vector<32x128xf32>
    %c18_70 = arith.constant 18 : index
    %288 = memref.load %arg0[%c18_70] : memref<45xf32, #tpu.memory_space<smem>>
    %289 = vector.broadcast %288 : f32 to vector<32x128xf32>
    %290 = arith.mulf %289, %279 : vector<32x128xf32>
    %291 = arith.addf %274, %290 : vector<32x128xf32>
    %c27_71 = arith.constant 27 : index
    %292 = memref.load %arg0[%c27_71] : memref<45xf32, #tpu.memory_space<smem>>
    %293 = vector.broadcast %292 : f32 to vector<32x128xf32>
    %294 = arith.mulf %293, %279 : vector<32x128xf32>
    %295 = arith.addf %276, %294 : vector<32x128xf32>
    %c36_72 = arith.constant 36 : index
    %296 = memref.load %arg0[%c36_72] : memref<45xf32, #tpu.memory_space<smem>>
    %297 = vector.broadcast %296 : f32 to vector<32x128xf32>
    %298 = arith.mulf %297, %279 : vector<32x128xf32>
    %299 = arith.addf %278, %298 : vector<32x128xf32>
    %c0_73 = arith.constant 0 : index
    %c129 = arith.constant 129 : index
    %300 = vector.load %arg2[%c0_73, %c129] : memref<40x258xf32, #tpu.memory_space<vmem>>, vector<32x128xf32>
    %c1_74 = arith.constant 1 : index
    %301 = memref.load %arg0[%c1_74] : memref<45xf32, #tpu.memory_space<smem>>
    %302 = vector.broadcast %301 : f32 to vector<32x128xf32>
    %303 = arith.mulf %302, %300 : vector<32x128xf32>
    %304 = arith.addf %283, %303 : vector<32x128xf32>
    %c10_75 = arith.constant 10 : index
    %305 = memref.load %arg0[%c10_75] : memref<45xf32, #tpu.memory_space<smem>>
    %306 = vector.broadcast %305 : f32 to vector<32x128xf32>
    %307 = arith.mulf %306, %300 : vector<32x128xf32>
    %308 = arith.addf %287, %307 : vector<32x128xf32>
    %c19_76 = arith.constant 19 : index
    %309 = memref.load %arg0[%c19_76] : memref<45xf32, #tpu.memory_space<smem>>
    %310 = vector.broadcast %309 : f32 to vector<32x128xf32>
    %311 = arith.mulf %310, %300 : vector<32x128xf32>
    %312 = arith.addf %291, %311 : vector<32x128xf32>
    %c28_77 = arith.constant 28 : index
    %313 = memref.load %arg0[%c28_77] : memref<45xf32, #tpu.memory_space<smem>>
    %314 = vector.broadcast %313 : f32 to vector<32x128xf32>
    %315 = arith.mulf %314, %300 : vector<32x128xf32>
    %316 = arith.addf %295, %315 : vector<32x128xf32>
    %c37_78 = arith.constant 37 : index
    %317 = memref.load %arg0[%c37_78] : memref<45xf32, #tpu.memory_space<smem>>
    %318 = vector.broadcast %317 : f32 to vector<32x128xf32>
    %319 = arith.mulf %318, %300 : vector<32x128xf32>
    %320 = arith.addf %299, %319 : vector<32x128xf32>
    %c0_79 = arith.constant 0 : index
    %c130 = arith.constant 130 : index
    %321 = vector.load %arg2[%c0_79, %c130] : memref<40x258xf32, #tpu.memory_space<vmem>>, vector<32x128xf32>
    %c2_80 = arith.constant 2 : index
    %322 = memref.load %arg0[%c2_80] : memref<45xf32, #tpu.memory_space<smem>>
    %323 = vector.broadcast %322 : f32 to vector<32x128xf32>
    %324 = arith.mulf %323, %321 : vector<32x128xf32>
    %325 = arith.addf %304, %324 : vector<32x128xf32>
    %c11_81 = arith.constant 11 : index
    %326 = memref.load %arg0[%c11_81] : memref<45xf32, #tpu.memory_space<smem>>
    %327 = vector.broadcast %326 : f32 to vector<32x128xf32>
    %328 = arith.mulf %327, %321 : vector<32x128xf32>
    %329 = arith.addf %308, %328 : vector<32x128xf32>
    %c20_82 = arith.constant 20 : index
    %330 = memref.load %arg0[%c20_82] : memref<45xf32, #tpu.memory_space<smem>>
    %331 = vector.broadcast %330 : f32 to vector<32x128xf32>
    %332 = arith.mulf %331, %321 : vector<32x128xf32>
    %333 = arith.addf %312, %332 : vector<32x128xf32>
    %c29_83 = arith.constant 29 : index
    %334 = memref.load %arg0[%c29_83] : memref<45xf32, #tpu.memory_space<smem>>
    %335 = vector.broadcast %334 : f32 to vector<32x128xf32>
    %336 = arith.mulf %335, %321 : vector<32x128xf32>
    %337 = arith.addf %316, %336 : vector<32x128xf32>
    %c38_84 = arith.constant 38 : index
    %338 = memref.load %arg0[%c38_84] : memref<45xf32, #tpu.memory_space<smem>>
    %339 = vector.broadcast %338 : f32 to vector<32x128xf32>
    %340 = arith.mulf %339, %321 : vector<32x128xf32>
    %341 = arith.addf %320, %340 : vector<32x128xf32>
    %c1_85 = arith.constant 1 : index
    %c128_86 = arith.constant 128 : index
    %342 = vector.load %arg2[%c1_85, %c128_86] : memref<40x258xf32, #tpu.memory_space<vmem>>, vector<32x128xf32>
    %c3_87 = arith.constant 3 : index
    %343 = memref.load %arg0[%c3_87] : memref<45xf32, #tpu.memory_space<smem>>
    %344 = vector.broadcast %343 : f32 to vector<32x128xf32>
    %345 = arith.mulf %344, %342 : vector<32x128xf32>
    %346 = arith.addf %325, %345 : vector<32x128xf32>
    %c12_88 = arith.constant 12 : index
    %347 = memref.load %arg0[%c12_88] : memref<45xf32, #tpu.memory_space<smem>>
    %348 = vector.broadcast %347 : f32 to vector<32x128xf32>
    %349 = arith.mulf %348, %342 : vector<32x128xf32>
    %350 = arith.addf %329, %349 : vector<32x128xf32>
    %c21_89 = arith.constant 21 : index
    %351 = memref.load %arg0[%c21_89] : memref<45xf32, #tpu.memory_space<smem>>
    %352 = vector.broadcast %351 : f32 to vector<32x128xf32>
    %353 = arith.mulf %352, %342 : vector<32x128xf32>
    %354 = arith.addf %333, %353 : vector<32x128xf32>
    %c30_90 = arith.constant 30 : index
    %355 = memref.load %arg0[%c30_90] : memref<45xf32, #tpu.memory_space<smem>>
    %356 = vector.broadcast %355 : f32 to vector<32x128xf32>
    %357 = arith.mulf %356, %342 : vector<32x128xf32>
    %358 = arith.addf %337, %357 : vector<32x128xf32>
    %c39_91 = arith.constant 39 : index
    %359 = memref.load %arg0[%c39_91] : memref<45xf32, #tpu.memory_space<smem>>
    %360 = vector.broadcast %359 : f32 to vector<32x128xf32>
    %361 = arith.mulf %360, %342 : vector<32x128xf32>
    %362 = arith.addf %341, %361 : vector<32x128xf32>
    %c1_92 = arith.constant 1 : index
    %c129_93 = arith.constant 129 : index
    %363 = vector.load %arg2[%c1_92, %c129_93] : memref<40x258xf32, #tpu.memory_space<vmem>>, vector<32x128xf32>
    %c4_94 = arith.constant 4 : index
    %364 = memref.load %arg0[%c4_94] : memref<45xf32, #tpu.memory_space<smem>>
    %365 = vector.broadcast %364 : f32 to vector<32x128xf32>
    %366 = arith.mulf %365, %363 : vector<32x128xf32>
    %367 = arith.addf %346, %366 : vector<32x128xf32>
    %c13_95 = arith.constant 13 : index
    %368 = memref.load %arg0[%c13_95] : memref<45xf32, #tpu.memory_space<smem>>
    %369 = vector.broadcast %368 : f32 to vector<32x128xf32>
    %370 = arith.mulf %369, %363 : vector<32x128xf32>
    %371 = arith.addf %350, %370 : vector<32x128xf32>
    %c22_96 = arith.constant 22 : index
    %372 = memref.load %arg0[%c22_96] : memref<45xf32, #tpu.memory_space<smem>>
    %373 = vector.broadcast %372 : f32 to vector<32x128xf32>
    %374 = arith.mulf %373, %363 : vector<32x128xf32>
    %375 = arith.addf %354, %374 : vector<32x128xf32>
    %c31_97 = arith.constant 31 : index
    %376 = memref.load %arg0[%c31_97] : memref<45xf32, #tpu.memory_space<smem>>
    %377 = vector.broadcast %376 : f32 to vector<32x128xf32>
    %378 = arith.mulf %377, %363 : vector<32x128xf32>
    %379 = arith.addf %358, %378 : vector<32x128xf32>
    %c40_98 = arith.constant 40 : index
    %380 = memref.load %arg0[%c40_98] : memref<45xf32, #tpu.memory_space<smem>>
    %381 = vector.broadcast %380 : f32 to vector<32x128xf32>
    %382 = arith.mulf %381, %363 : vector<32x128xf32>
    %383 = arith.addf %362, %382 : vector<32x128xf32>
    %c1_99 = arith.constant 1 : index
    %c130_100 = arith.constant 130 : index
    %384 = vector.load %arg2[%c1_99, %c130_100] : memref<40x258xf32, #tpu.memory_space<vmem>>, vector<32x128xf32>
    %c5_101 = arith.constant 5 : index
    %385 = memref.load %arg0[%c5_101] : memref<45xf32, #tpu.memory_space<smem>>
    %386 = vector.broadcast %385 : f32 to vector<32x128xf32>
    %387 = arith.mulf %386, %384 : vector<32x128xf32>
    %388 = arith.addf %367, %387 : vector<32x128xf32>
    %c14_102 = arith.constant 14 : index
    %389 = memref.load %arg0[%c14_102] : memref<45xf32, #tpu.memory_space<smem>>
    %390 = vector.broadcast %389 : f32 to vector<32x128xf32>
    %391 = arith.mulf %390, %384 : vector<32x128xf32>
    %392 = arith.addf %371, %391 : vector<32x128xf32>
    %c23_103 = arith.constant 23 : index
    %393 = memref.load %arg0[%c23_103] : memref<45xf32, #tpu.memory_space<smem>>
    %394 = vector.broadcast %393 : f32 to vector<32x128xf32>
    %395 = arith.mulf %394, %384 : vector<32x128xf32>
    %396 = arith.addf %375, %395 : vector<32x128xf32>
    %c32_104 = arith.constant 32 : index
    %397 = memref.load %arg0[%c32_104] : memref<45xf32, #tpu.memory_space<smem>>
    %398 = vector.broadcast %397 : f32 to vector<32x128xf32>
    %399 = arith.mulf %398, %384 : vector<32x128xf32>
    %400 = arith.addf %379, %399 : vector<32x128xf32>
    %c41_105 = arith.constant 41 : index
    %401 = memref.load %arg0[%c41_105] : memref<45xf32, #tpu.memory_space<smem>>
    %402 = vector.broadcast %401 : f32 to vector<32x128xf32>
    %403 = arith.mulf %402, %384 : vector<32x128xf32>
    %404 = arith.addf %383, %403 : vector<32x128xf32>
    %c2_106 = arith.constant 2 : index
    %c128_107 = arith.constant 128 : index
    %405 = vector.load %arg2[%c2_106, %c128_107] : memref<40x258xf32, #tpu.memory_space<vmem>>, vector<32x128xf32>
    %c6_108 = arith.constant 6 : index
    %406 = memref.load %arg0[%c6_108] : memref<45xf32, #tpu.memory_space<smem>>
    %407 = vector.broadcast %406 : f32 to vector<32x128xf32>
    %408 = arith.mulf %407, %405 : vector<32x128xf32>
    %409 = arith.addf %388, %408 : vector<32x128xf32>
    %c15_109 = arith.constant 15 : index
    %410 = memref.load %arg0[%c15_109] : memref<45xf32, #tpu.memory_space<smem>>
    %411 = vector.broadcast %410 : f32 to vector<32x128xf32>
    %412 = arith.mulf %411, %405 : vector<32x128xf32>
    %413 = arith.addf %392, %412 : vector<32x128xf32>
    %c24_110 = arith.constant 24 : index
    %414 = memref.load %arg0[%c24_110] : memref<45xf32, #tpu.memory_space<smem>>
    %415 = vector.broadcast %414 : f32 to vector<32x128xf32>
    %416 = arith.mulf %415, %405 : vector<32x128xf32>
    %417 = arith.addf %396, %416 : vector<32x128xf32>
    %c33_111 = arith.constant 33 : index
    %418 = memref.load %arg0[%c33_111] : memref<45xf32, #tpu.memory_space<smem>>
    %419 = vector.broadcast %418 : f32 to vector<32x128xf32>
    %420 = arith.mulf %419, %405 : vector<32x128xf32>
    %421 = arith.addf %400, %420 : vector<32x128xf32>
    %c42_112 = arith.constant 42 : index
    %422 = memref.load %arg0[%c42_112] : memref<45xf32, #tpu.memory_space<smem>>
    %423 = vector.broadcast %422 : f32 to vector<32x128xf32>
    %424 = arith.mulf %423, %405 : vector<32x128xf32>
    %425 = arith.addf %404, %424 : vector<32x128xf32>
    %c2_113 = arith.constant 2 : index
    %c129_114 = arith.constant 129 : index
    %426 = vector.load %arg2[%c2_113, %c129_114] : memref<40x258xf32, #tpu.memory_space<vmem>>, vector<32x128xf32>
    %c7_115 = arith.constant 7 : index
    %427 = memref.load %arg0[%c7_115] : memref<45xf32, #tpu.memory_space<smem>>
    %428 = vector.broadcast %427 : f32 to vector<32x128xf32>
    %429 = arith.mulf %428, %426 : vector<32x128xf32>
    %430 = arith.addf %409, %429 : vector<32x128xf32>
    %c16_116 = arith.constant 16 : index
    %431 = memref.load %arg0[%c16_116] : memref<45xf32, #tpu.memory_space<smem>>
    %432 = vector.broadcast %431 : f32 to vector<32x128xf32>
    %433 = arith.mulf %432, %426 : vector<32x128xf32>
    %434 = arith.addf %413, %433 : vector<32x128xf32>
    %c25_117 = arith.constant 25 : index
    %435 = memref.load %arg0[%c25_117] : memref<45xf32, #tpu.memory_space<smem>>
    %436 = vector.broadcast %435 : f32 to vector<32x128xf32>
    %437 = arith.mulf %436, %426 : vector<32x128xf32>
    %438 = arith.addf %417, %437 : vector<32x128xf32>
    %c34_118 = arith.constant 34 : index
    %439 = memref.load %arg0[%c34_118] : memref<45xf32, #tpu.memory_space<smem>>
    %440 = vector.broadcast %439 : f32 to vector<32x128xf32>
    %441 = arith.mulf %440, %426 : vector<32x128xf32>
    %442 = arith.addf %421, %441 : vector<32x128xf32>
    %c43_119 = arith.constant 43 : index
    %443 = memref.load %arg0[%c43_119] : memref<45xf32, #tpu.memory_space<smem>>
    %444 = vector.broadcast %443 : f32 to vector<32x128xf32>
    %445 = arith.mulf %444, %426 : vector<32x128xf32>
    %446 = arith.addf %425, %445 : vector<32x128xf32>
    %c2_120 = arith.constant 2 : index
    %c130_121 = arith.constant 130 : index
    %447 = vector.load %arg2[%c2_120, %c130_121] : memref<40x258xf32, #tpu.memory_space<vmem>>, vector<32x128xf32>
    %c8_122 = arith.constant 8 : index
    %448 = memref.load %arg0[%c8_122] : memref<45xf32, #tpu.memory_space<smem>>
    %449 = vector.broadcast %448 : f32 to vector<32x128xf32>
    %450 = arith.mulf %449, %447 : vector<32x128xf32>
    %451 = arith.addf %430, %450 : vector<32x128xf32>
    %c17_123 = arith.constant 17 : index
    %452 = memref.load %arg0[%c17_123] : memref<45xf32, #tpu.memory_space<smem>>
    %453 = vector.broadcast %452 : f32 to vector<32x128xf32>
    %454 = arith.mulf %453, %447 : vector<32x128xf32>
    %455 = arith.addf %434, %454 : vector<32x128xf32>
    %c26_124 = arith.constant 26 : index
    %456 = memref.load %arg0[%c26_124] : memref<45xf32, #tpu.memory_space<smem>>
    %457 = vector.broadcast %456 : f32 to vector<32x128xf32>
    %458 = arith.mulf %457, %447 : vector<32x128xf32>
    %459 = arith.addf %438, %458 : vector<32x128xf32>
    %c35_125 = arith.constant 35 : index
    %460 = memref.load %arg0[%c35_125] : memref<45xf32, #tpu.memory_space<smem>>
    %461 = vector.broadcast %460 : f32 to vector<32x128xf32>
    %462 = arith.mulf %461, %447 : vector<32x128xf32>
    %463 = arith.addf %442, %462 : vector<32x128xf32>
    %c44_126 = arith.constant 44 : index
    %464 = memref.load %arg0[%c44_126] : memref<45xf32, #tpu.memory_space<smem>>
    %465 = vector.broadcast %464 : f32 to vector<32x128xf32>
    %466 = arith.mulf %465, %447 : vector<32x128xf32>
    %467 = arith.addf %446, %466 : vector<32x128xf32>
    %cst_127 = arith.constant 0.000000e+00 : f32
    %468 = vector.broadcast %cst_127 : f32 to vector<32x128xf32>
    %469 = arith.maximumf %451, %468 : vector<32x128xf32>
    %cst_128 = arith.constant 5.000000e-01 : f32
    %470 = vector.broadcast %cst_128 : f32 to vector<32x128xf32>
    %471 = arith.mulf %470, %469 : vector<32x128xf32>
    %472 = math.tanh %471 : vector<32x128xf32>
    %cst_129 = arith.constant 5.000000e-01 : f32
    %473 = vector.broadcast %cst_129 : f32 to vector<32x128xf32>
    %474 = arith.mulf %473, %472 : vector<32x128xf32>
    %cst_130 = arith.constant 5.000000e-01 : f32
    %475 = vector.broadcast %cst_130 : f32 to vector<32x128xf32>
    %476 = arith.addf %474, %475 : vector<32x128xf32>
    %477 = tpu.transpose %476, [1, 0] : vector<32x128xf32> -> vector<128x32xf32>
    %478 = vector.extract_strided_slice %477 {offsets = [0, 0], sizes = [127, 31], strides = [1, 1]} : vector<128x32xf32> to vector<127x31xf32>
    %c0_131 = arith.constant 0 : index
    %c0_132 = arith.constant 0 : index
    %c128_133 = arith.constant 128 : index
    %c0_134 = arith.constant 0 : index
    %479 = vector.load %arg3[%c0_131, %c0_132, %c128_133, %c0_134] : memref<1x5x255x31xf32, #tpu.memory_space<vmem>>, vector<1x1x127x31xf32>
    %480 = vector.shape_cast %479 : vector<1x1x127x31xf32> to vector<127x31xf32>
    %481 = vector.shape_cast %478 : vector<127x31xf32> to vector<1x1x127x31xf32>
    tpu.vector_store %arg3[%c0_131, %c0_132, %c128_133, %c0_134], %481 {strides = array<i32>} : memref<1x5x255x31xf32, #tpu.memory_space<vmem>>, vector<1x1x127x31xf32>,
    %cst_135 = arith.constant 0.000000e+00 : f32
    %482 = vector.broadcast %cst_135 : f32 to vector<32x128xf32>
    %483 = arith.maximumf %455, %482 : vector<32x128xf32>
    %cst_136 = arith.constant 5.000000e-01 : f32
    %484 = vector.broadcast %cst_136 : f32 to vector<32x128xf32>
    %485 = arith.mulf %484, %483 : vector<32x128xf32>
    %486 = math.tanh %485 : vector<32x128xf32>
    %cst_137 = arith.constant 5.000000e-01 : f32
    %487 = vector.broadcast %cst_137 : f32 to vector<32x128xf32>
    %488 = arith.mulf %487, %486 : vector<32x128xf32>
    %cst_138 = arith.constant 5.000000e-01 : f32
    %489 = vector.broadcast %cst_138 : f32 to vector<32x128xf32>
    %490 = arith.addf %488, %489 : vector<32x128xf32>
    %491 = tpu.transpose %490, [1, 0] : vector<32x128xf32> -> vector<128x32xf32>
    %492 = vector.extract_strided_slice %491 {offsets = [0, 0], sizes = [127, 31], strides = [1, 1]} : vector<128x32xf32> to vector<127x31xf32>
    %c0_139 = arith.constant 0 : index
    %c1_140 = arith.constant 1 : index
    %c128_141 = arith.constant 128 : index
    %c0_142 = arith.constant 0 : index
    %493 = vector.load %arg3[%c0_139, %c1_140, %c128_141, %c0_142] : memref<1x5x255x31xf32, #tpu.memory_space<vmem>>, vector<1x1x127x31xf32>
    %494 = vector.shape_cast %493 : vector<1x1x127x31xf32> to vector<127x31xf32>
    %495 = vector.shape_cast %492 : vector<127x31xf32> to vector<1x1x127x31xf32>
    tpu.vector_store %arg3[%c0_139, %c1_140, %c128_141, %c0_142], %495 {strides = array<i32>} : memref<1x5x255x31xf32, #tpu.memory_space<vmem>>, vector<1x1x127x31xf32>,
    %cst_143 = arith.constant 0.000000e+00 : f32
    %496 = vector.broadcast %cst_143 : f32 to vector<32x128xf32>
    %497 = arith.maximumf %459, %496 : vector<32x128xf32>
    %cst_144 = arith.constant 5.000000e-01 : f32
    %498 = vector.broadcast %cst_144 : f32 to vector<32x128xf32>
    %499 = arith.mulf %498, %497 : vector<32x128xf32>
    %500 = math.tanh %499 : vector<32x128xf32>
    %cst_145 = arith.constant 5.000000e-01 : f32
    %501 = vector.broadcast %cst_145 : f32 to vector<32x128xf32>
    %502 = arith.mulf %501, %500 : vector<32x128xf32>
    %cst_146 = arith.constant 5.000000e-01 : f32
    %503 = vector.broadcast %cst_146 : f32 to vector<32x128xf32>
    %504 = arith.addf %502, %503 : vector<32x128xf32>
    %505 = tpu.transpose %504, [1, 0] : vector<32x128xf32> -> vector<128x32xf32>
    %506 = vector.extract_strided_slice %505 {offsets = [0, 0], sizes = [127, 31], strides = [1, 1]} : vector<128x32xf32> to vector<127x31xf32>
    %c0_147 = arith.constant 0 : index
    %c2_148 = arith.constant 2 : index
    %c128_149 = arith.constant 128 : index
    %c0_150 = arith.constant 0 : index
    %507 = vector.load %arg3[%c0_147, %c2_148, %c128_149, %c0_150] : memref<1x5x255x31xf32, #tpu.memory_space<vmem>>, vector<1x1x127x31xf32>
    %508 = vector.shape_cast %507 : vector<1x1x127x31xf32> to vector<127x31xf32>
    %509 = vector.shape_cast %506 : vector<127x31xf32> to vector<1x1x127x31xf32>
    tpu.vector_store %arg3[%c0_147, %c2_148, %c128_149, %c0_150], %509 {strides = array<i32>} : memref<1x5x255x31xf32, #tpu.memory_space<vmem>>, vector<1x1x127x31xf32>,
    %cst_151 = arith.constant 0.000000e+00 : f32
    %510 = vector.broadcast %cst_151 : f32 to vector<32x128xf32>
    %511 = arith.maximumf %463, %510 : vector<32x128xf32>
    %cst_152 = arith.constant 5.000000e-01 : f32
    %512 = vector.broadcast %cst_152 : f32 to vector<32x128xf32>
    %513 = arith.mulf %512, %511 : vector<32x128xf32>
    %514 = math.tanh %513 : vector<32x128xf32>
    %cst_153 = arith.constant 5.000000e-01 : f32
    %515 = vector.broadcast %cst_153 : f32 to vector<32x128xf32>
    %516 = arith.mulf %515, %514 : vector<32x128xf32>
    %cst_154 = arith.constant 5.000000e-01 : f32
    %517 = vector.broadcast %cst_154 : f32 to vector<32x128xf32>
    %518 = arith.addf %516, %517 : vector<32x128xf32>
    %519 = tpu.transpose %518, [1, 0] : vector<32x128xf32> -> vector<128x32xf32>
    %520 = vector.extract_strided_slice %519 {offsets = [0, 0], sizes = [127, 31], strides = [1, 1]} : vector<128x32xf32> to vector<127x31xf32>
    %c0_155 = arith.constant 0 : index
    %c3_156 = arith.constant 3 : index
    %c128_157 = arith.constant 128 : index
    %c0_158 = arith.constant 0 : index
    %521 = vector.load %arg3[%c0_155, %c3_156, %c128_157, %c0_158] : memref<1x5x255x31xf32, #tpu.memory_space<vmem>>, vector<1x1x127x31xf32>
    %522 = vector.shape_cast %521 : vector<1x1x127x31xf32> to vector<127x31xf32>
    %523 = vector.shape_cast %520 : vector<127x31xf32> to vector<1x1x127x31xf32>
    tpu.vector_store %arg3[%c0_155, %c3_156, %c128_157, %c0_158], %523 {strides = array<i32>} : memref<1x5x255x31xf32, #tpu.memory_space<vmem>>, vector<1x1x127x31xf32>,
    %cst_159 = arith.constant 0.000000e+00 : f32
    %524 = vector.broadcast %cst_159 : f32 to vector<32x128xf32>
    %525 = arith.maximumf %467, %524 : vector<32x128xf32>
    %cst_160 = arith.constant 5.000000e-01 : f32
    %526 = vector.broadcast %cst_160 : f32 to vector<32x128xf32>
    %527 = arith.mulf %526, %525 : vector<32x128xf32>
    %528 = math.tanh %527 : vector<32x128xf32>
    %cst_161 = arith.constant 5.000000e-01 : f32
    %529 = vector.broadcast %cst_161 : f32 to vector<32x128xf32>
    %530 = arith.mulf %529, %528 : vector<32x128xf32>
    %cst_162 = arith.constant 5.000000e-01 : f32
    %531 = vector.broadcast %cst_162 : f32 to vector<32x128xf32>
    %532 = arith.addf %530, %531 : vector<32x128xf32>
    %533 = tpu.transpose %532, [1, 0] : vector<32x128xf32> -> vector<128x32xf32>
    %534 = vector.extract_strided_slice %533 {offsets = [0, 0], sizes = [127, 31], strides = [1, 1]} : vector<128x32xf32> to vector<127x31xf32>
    %c0_163 = arith.constant 0 : index
    %c4_164 = arith.constant 4 : index
    %c128_165 = arith.constant 128 : index
    %c0_166 = arith.constant 0 : index
    %535 = vector.load %arg3[%c0_163, %c4_164, %c128_165, %c0_166] : memref<1x5x255x31xf32, #tpu.memory_space<vmem>>, vector<1x1x127x31xf32>
    %536 = vector.shape_cast %535 : vector<1x1x127x31xf32> to vector<127x31xf32>
    %537 = vector.shape_cast %534 : vector<127x31xf32> to vector<1x1x127x31xf32>
    tpu.vector_store %arg3[%c0_163, %c4_164, %c128_165, %c0_166], %537 {strides = array<i32>} : memref<1x5x255x31xf32, #tpu.memory_space<vmem>>, vector<1x1x127x31xf32>,
    return
  }
}

</mosaic_0001>

<bundles_post_ra>
// kernel: model_forward.1
= control target key start
LH: loop header
LB: loop body
LE: loop exit
PB: predicated region body
PF: predicated region fallthrough
CT: control target
= control target key end

     0   :  { %8 = vsyncpa [#allocation3], 0  ;;  %s11608_s0 = inlined_call_operand.vmem [shape: f32[45], index: 0, kind: input, shape index: {}]   ;;  %s11609_s1 = inlined_call_operand.vmem [shape: f32[5], index: 1, kind: input, shape index: {}]   ;;  %s11610_s2 = inlined_call_operand.vmem [shape: f32[40,258], index: 2, kind: input, shape index: {}]   ;;  %s11611_s3 = inlined_call_operand.vmem [shape: f32[1,5,255,31], index: 3, kind: output, shape index: {}]  }
   0x1   :  { %s15_s14 = sshll.u32 %s11608_s0, 4  ;;  %s16_s14 = int_to_ptr.vmem [resolvable:$true] %s15_s14 }
   0x2   :  { %9 = vsyncpa [#allocation5], 0  ;;  %s24_s17 = sshll.u32 %s11609_s1, 4  ;;  %s5542_s18 = smov [#allocation2]   ;;  %s25_s17 = int_to_ptr.vmem [resolvable:$true] %s24_s17 }
   0x3   :  { %18 = dma.vmem_to_smem %s16_s14, 16, %s5542_s18, [#allocation3]  }
   0x4   :  { %s5543_s19 = smov [#allocation4]  }
   0x5   :  { %27 = dma.vmem_to_smem %s25_s17, 16, %s5543_s19, [#allocation5]  }
   0x6   :  { %5538 = dma.done.wait [#allocation3], 16  }
   0x7   :  { %5539 = vsyncadd [#allocation3], 4294967280 }
   0x8   :  { %5540 = dma.done.wait [#allocation5], 16  }
   0x9   :  { %5541 = vsyncadd [#allocation5], 4294967280 }
   0xa   :  { %38 = sfence }
   0xb   :  { %s5149_s20 = sld [smem:[#allocation2 + $0x1]]  ;;  %v5575_v0 = vld [vmem:[%s11610_s2 + $0x30] sm:$0xff]  ;;  %v5580_v1 = vld [vmem:[%s11610_s2 + $0x18] sm:$0xff]  ;;  %v5585_v2 = vld [vmem:[%s11610_s2] sm:$0xff]  ;;  %s5544_s25 = smov 127   ;;  %vm590_vm0 = vcmask 1046528  }
   0xc   :  { %v5596_v7 = vld [vmem:[%s11610_s2 + $0x38] sm:$0xff]  ;;  %v5601_v8 = vld [vmem:[%s11610_s2 + $0x20] sm:$0xff]  ;;  %s5150_s30 = sld [smem:[#allocation2 + $0xa]]  ;;  %v5606_v9 = vld [vmem:[%s11610_s2 + $0x8] sm:$0xff]  ;;  %s5545_s14 = smov 126   ;;  %vm1428_vm1 = vcmask 1045504  }
   0xd   :  { %v5617_v13 = vld [vmem:[%s11610_s2 + $0x50] sm:$0xff]  ;;  %v5622_v15 = vld [vmem:[%s11610_s2 + $0x48] sm:$0xff]  ;;  %s5151_s10 = sld [smem:[#allocation2 + $0x13]]  ;;  %vm145_vm2 = vcmask 1039360   ;;  %vm376_vm3 = vcmask 1031168   ;;  %vm2298_vm4 = vcmask 252928  }
   0xe   :  { %s5152_s11 = sld [smem:[#allocation2 + $0x1c]]  ;;  %vm4861_vm5 = vcmask 251904  }
   0xf   :  { %s5153_s12 = sld [smem:[#allocation2 + $0x25]] }
  0x10   :  { %s5154_s13 = sld [smem:[#allocation2 + $0x2]] }
  0x11   :  { %v112_v3 = vstv %s5149_s20  ;;  %s5155_s15 = sld [smem:[#allocation2 + $0xb]] }
  0x12   :  { %v117_v4 = vmul.f32 %v112_v3, %v5575_v0  ;;  %v115_v5 = vmul.f32 %v112_v3, %v5580_v1  ;;  %v113_v6 = vmul.f32 %v112_v3, %v5585_v2  ;;  %v118_v10 = vmul.f32 %v112_v3, %v5596_v7  ;;  %s5156_s16 = sld [smem:[#allocation2 + $0x14]] }
  0x13   :  { %v116_v11 = vmul.f32 %v112_v3, %v5601_v8  ;;  %v114_v12 = vmul.f32 %v112_v3, %v5606_v9  ;;  %v159_v14 = vstv %s5150_s30  ;;  %v120_v16 = vmul.f32 %v112_v3, %v5617_v13  ;;  %s5157_s17 = sld [smem:[#allocation2 + $0x1d]] }
  0x14   :  { %137 = vrot.lane.b32.xlu2 %v117_v4, %s5544_s25  ;;  %133 = vrot.lane.b32.xlu1 %v115_v5, %s5544_s25  ;;  %v160_v17 = vmul.f32 %v159_v14, %v5585_v2  ;;  %v119_v18 = vmul.f32 %v112_v3, %v5622_v15  ;;  %v162_v19 = vmul.f32 %v159_v14, %v5580_v1  ;;  %v205_v25 = vstv %s5151_s10  ;;  %s5158_s18 = sld [smem:[#allocation2 + $0x26]] }
  0x15   :  { %129 = vrot.lane.b32.xlu0 %v113_v6, %s5544_s25  ;;  %v163_v20 = vmul.f32 %v159_v14, %v5601_v8  ;;  %v161_v21 = vmul.f32 %v159_v14, %v5606_v9  ;;  %v165_v22 = vmul.f32 %v159_v14, %v5596_v7  ;;  %v166_v23 = vmul.f32 %v159_v14, %v5622_v15  ;;  %s5164_s19 = sld [smem:[#allocation2 + $0x4]] }
  0x16   :  { %v164_v24 = vmul.f32 %v159_v14, %v5575_v0  ;;  %v206_v26 = vmul.f32 %v205_v25, %v5585_v2  ;;  %v207_v27 = vmul.f32 %v205_v25, %v5606_v9  ;;  %v167_v28 = vmul.f32 %v159_v14, %v5617_v13  ;;  %s5165_s24 = sld [smem:[#allocation2 + $0xd]] }
  0x17   :  { %v209_v29 = vmul.f32 %v205_v25, %v5601_v8  ;;  %v210_v30 = vmul.f32 %v205_v25, %v5575_v0  ;;  %v208_v31 = vmul.f32 %v205_v25, %v5580_v1  ;;  %v212_v32 = vmul.f32 %v205_v25, %v5622_v15  ;;  %s5166_s28 = sld [smem:[#allocation2 + $0x16]] }
  0x18   :  { %v213_v33 = vmul.f32 %v205_v25, %v5617_v13  ;;  %v211_v34 = vmul.f32 %v205_v25, %v5596_v7  ;;  %v251_v35 = vstv %s5152_s11  ;;  %v297_v42 = vstv %s5153_s12  ;;  %s5167_s29 = sld [smem:[#allocation2 + $0x1f]] }
  0x19   :  { %v253_v36 = vmul.f32 %v251_v35, %v5606_v9  ;;  %v254_v37 = vmul.f32 %v251_v35, %v5580_v1  ;;  %v252_v38 = vmul.f32 %v251_v35, %v5585_v2  ;;  %v256_v39 = vmul.f32 %v251_v35, %v5575_v0  ;;  %s5168_s30 = sld [smem:[#allocation2 + $0x28]] }
  0x1a   :  { %v257_v40 = vmul.f32 %v251_v35, %v5596_v7  ;;  %v255_v41 = vmul.f32 %v251_v35, %v5601_v8  ;;  %v259_v43 = vmul.f32 %v251_v35, %v5617_v13  ;;  %v298_v44 = vmul.f32 %v297_v42, %v5585_v2  ;;  %s5169_s4 = sld [smem:[#allocation2 + $0x5]] }
  0x1b   :  { %v258_v45 = vmul.f32 %v251_v35, %v5622_v15  ;;  %v300_v46 = vmul.f32 %v297_v42, %v5580_v1  ;;  %v301_v47 = vmul.f32 %v297_v42, %v5601_v8  ;;  %v299_v48 = vmul.f32 %v297_v42, %v5606_v9  ;;  %s5170_s5 = sld [smem:[#allocation2 + $0xe]] }
  0x1c   :  { %139 = vrot.lane.b32.xlu2 %v118_v10, %s5544_s25  ;;  %135 = vrot.lane.b32.xlu1 %v116_v11, %s5544_s25  ;;  %v303_v50 = vmul.f32 %v297_v42, %v5596_v7  ;;  %v304_v51 = vmul.f32 %v297_v42, %v5622_v15  ;;  %v302_v52 = vmul.f32 %v297_v42, %v5575_v0  ;;  %v343_v53 = vstv %s5154_s13  ;;  %s5171_s8 = sld [smem:[#allocation2 + $0x17]] }
  0x1d   :  { %131 = vrot.lane.b32.xlu0 %v114_v12, %s5544_s25  ;;  %v344_v55 = vmul.f32 %v343_v53, %v5585_v2  ;;  %v345_v56 = vmul.f32 %v343_v53, %v5606_v9  ;;  %v305_v57 = vmul.f32 %v297_v42, %v5617_v13  ;;  %v347_v59 = vmul.f32 %v343_v53, %v5601_v8  ;;  %s5173_s21 = sld [smem:[#allocation2 + $0x29]] }
  0x1e   :  { %v348_v60 = vmul.f32 %v343_v53, %v5575_v0  ;;  %v346_v61 = vmul.f32 %v343_v53, %v5580_v1  ;;  %v350_v4 = vmul.f32 %v343_v53, %v5622_v15  ;;  %v351_v5 = vmul.f32 %v343_v53, %v5617_v13  ;;  %s5179_s22 = sld [smem:[#allocation2 + $0x7]] }
  0x1f   :  { %v349_v6 = vmul.f32 %v343_v53, %v5596_v7  ;;  %v390_v10 = vstv %s5155_s15  ;;  %v436_v25 = vstv %s5156_s16  ;;  %s5180_s26 = sld [smem:[#allocation2 + $0x10]] }
  0x20   :  { %v439_v35 = vmul.f32 %v436_v25, %v5580_v1  ;;  %v443_v42 = vmul.f32 %v436_v25, %v5622_v15  ;;  %s5183_s6 = sld [smem:[#allocation2 + $0x2b]] }
  0x21   :  { %s5184_s7 = sld [smem:[#allocation2 + $0x8]] }
  0x22   :  { %s5186_s9 = sld [smem:[#allocation2 + $0x1a]] }
  0x23   :  { %s5187_s10 = sld [smem:[#allocation2 + $0x23]] }
  0x24   :  { %143 = vrot.lane.b32.xlu1 %v120_v16, %s5544_s25  ;;  %176 = vrot.lane.b32.xlu2 %v160_v17, %s5544_s25  ;;  %v392_v16 = vmul.f32 %v390_v10, %v5606_v9  ;;  %v393_v17 = vmul.f32 %v390_v10, %v5580_v1  ;;  %s5188_s16 = sld [smem:[#allocation2 + $0x2c]] }
  0x25   :  { %141 = vrot.lane.b32.xlu0 %v119_v18, %s5544_s25  ;;  %v391_v18 = vmul.f32 %v390_v10, %v5585_v2  ;;  %s5261_s1 = sld [smem:[#allocation2 + $0x1]] }
  0x26   :  { %s5264_s11 = sld [smem:[#allocation2 + $0x1c]] }
  0x27   :  { %s5267_s20 = sld [smem:[#allocation2 + $0xb]] }
  0x28   :  { %s5270_s0 = sld [smem:[#allocation2 + $0x26]] }
  0x29   :  { %s5276_s23 = sld [smem:[#allocation2 + $0x4]] }
  0x2a   :  { %s53_s15 = sld [smem:[#allocation2]] }
  0x2b   :  { %s8227_s27 = sld [smem:[#allocation4 + $0x2]] }
  0x2c   :  { %180 = vrot.lane.b32.xlu1 %v162_v19, %s5544_s25  ;;  %182 = vrot.lane.b32.xlu2 %v163_v20, %s5544_s25  ;;  %s8338_s12 = sld [smem:[#allocation4 + $0x2]] }
  0x2d   :  { %178 = vrot.lane.b32.xlu0 %v161_v21, %s5544_s25  ;;  %s8367_s13 = sld [smem:[#allocation2 + $0x15]] }
  0x34   :  { %186 = vrot.lane.b32.xlu1 %v165_v22, %s5544_s25  ;;  %188 = vrot.lane.b32.xlu2 %v166_v23, %s5544_s25  ;;  %v395_v22 = vmul.f32 %v390_v10, %v5575_v0  ;;  %v396_v23 = vmul.f32 %v390_v10, %v5596_v7 }
  0x35   :  { %184 = vrot.lane.b32.xlu0 %v164_v24, %s5544_s25  ;;  %v394_v24 = vmul.f32 %v390_v10, %v5601_v8 }
  0x3c   :  { %222 = vrot.lane.b32.xlu1 %v206_v26, %s5544_s25  ;;  %224 = vrot.lane.b32.xlu2 %v207_v27, %s5544_s25 }
  0x3d   :  { %190 = vrot.lane.b32.xlu0 %v167_v28, %s5544_s25 }
  0x44   :  { %228 = vrot.lane.b32.xlu1 %v209_v29, %s5544_s25  ;;  %230 = vrot.lane.b32.xlu2 %v210_v30, %s5544_s25  ;;  %v398_v29 = vmul.f32 %v390_v10, %v5617_v13  ;;  %v437_v30 = vmul.f32 %v436_v25, %v5585_v2 }
  0x45   :  { %226 = vrot.lane.b32.xlu0 %v208_v31, %s5544_s25  ;;  %v397_v31 = vmul.f32 %v390_v10, %v5622_v15 }
  0x4c   :  { %234 = vrot.lane.b32.xlu1 %v212_v32, %s5544_s25  ;;  %236 = vrot.lane.b32.xlu2 %v213_v33, %s5544_s25 }
  0x4d   :  { %232 = vrot.lane.b32.xlu0 %v211_v34, %s5544_s25 }
  0x54   :  { %270 = vrot.lane.b32.xlu1 %v253_v36, %s5544_s25  ;;  %272 = vrot.lane.b32.xlu2 %v254_v37, %s5544_s25  ;;  %v440_v36 = vmul.f32 %v436_v25, %v5601_v8  ;;  %v438_v37 = vmul.f32 %v436_v25, %v5606_v9 }
  0x55   :  { %268 = vrot.lane.b32.xlu0 %v252_v38, %s5544_s25 }
  0x5c   :  { %276 = vrot.lane.b32.xlu1 %v256_v39, %s5544_s25  ;;  %278 = vrot.lane.b32.xlu2 %v257_v40, %s5544_s25 }
  0x5d   :  { %274 = vrot.lane.b32.xlu0 %v255_v41, %s5544_s25  ;;  %v442_v41 = vmul.f32 %v436_v25, %v5596_v7 }
  0x64   :  { %282 = vrot.lane.b32.xlu1 %v259_v43, %s5544_s25  ;;  %314 = vrot.lane.b32.xlu2 %v298_v44, %s5544_s25  ;;  %v441_v43 = vmul.f32 %v436_v25, %v5575_v0  ;;  %v482_v44 = vstv %s5157_s17  ;;  %s5265_s17 = sld [smem:[#allocation2 + $0x25]] }
  0x65   :  { %280 = vrot.lane.b32.xlu0 %v258_v45, %s5544_s25  ;;  %v488_v10 = vmul.f32 %v482_v44, %v5596_v7 }
  0x6c   :  { %318 = vrot.lane.b32.xlu1 %v300_v46, %s5544_s25  ;;  %320 = vrot.lane.b32.xlu2 %v301_v47, %s5544_s25 }
  0x6d   :  { %316 = vrot.lane.b32.xlu0 %v299_v48, %s5544_s25  ;;  %v483_v48 = vmul.f32 %v482_v44, %v5585_v2 }
  0x6e   :  { %v5684_v49 = vpop.permute.xlu2 %137 }
  0x74   :  { %324 = vrot.lane.b32.xlu1 %v303_v50, %s5544_s25  ;;  %326 = vrot.lane.b32.xlu2 %v304_v51, %s5544_s25  ;;  %v484_v50 = vmul.f32 %v482_v44, %v5606_v9  ;;  %v444_v51 = vmul.f32 %v436_v25, %v5617_v13 }
  0x75   :  { %322 = vrot.lane.b32.xlu0 %v302_v52, %s5544_s25 }
  0x76   :  { %v5692_v54 = vpop.permute.xlu2 %139 }
  0x7c   :  { %360 = vrot.lane.b32.xlu1 %v344_v55, %s5545_s14  ;;  %362 = vrot.lane.b32.xlu2 %v345_v56, %s5545_s14  ;;  %v486_v56 = vmul.f32 %v482_v44, %v5601_v8 }
  0x7d   :  { %328 = vrot.lane.b32.xlu0 %v305_v57, %s5544_s25  ;;  %v487_v57 = vmul.f32 %v482_v44, %v5575_v0 }
  0x7e   :  { %v5700_v58 = vpop.permute.xlu2 %176 }
  0x7f   :  { %11803 = vst [vmem:[#allocation8_spill] sm:$0xff] %v5700_v58 }
  0x84   :  { %366 = vrot.lane.b32.xlu1 %v347_v59, %s5545_s14  ;;  %368 = vrot.lane.b32.xlu2 %v348_v60, %s5545_s14  ;;  %v485_v59 = vmul.f32 %v482_v44, %v5580_v1 }
  0x85   :  { %364 = vrot.lane.b32.xlu0 %v346_v61, %s5545_s14 }
  0x86   :  { %v5708_v62 = vpop.permute.xlu1 %133  ;;  %v5710_v63 = vpop.permute.xlu2 %182 }
  0x87   :  { %11804 = vst [vmem:[#allocation9_spill] sm:$0xff] %v5710_v63  ;;  %v5712_v3 = vpop.permute.xlu0 %129 }
  0x8c   :  { %372 = vrot.lane.b32.xlu1 %v350_v4, %s5545_s14  ;;  %374 = vrot.lane.b32.xlu2 %v351_v5, %s5545_s14  ;;  %v489_v5 = vmul.f32 %v482_v44, %v5622_v15 }
  0x8d   :  { %370 = vrot.lane.b32.xlu0 %v349_v6, %s5545_s14  ;;  %v490_v6 = vmul.f32 %v482_v44, %v5617_v13 }
  0x8e   :  { %v5720_v11 = vpop.permute.xlu1 %135  ;;  %v5722_v12 = vpop.permute.xlu2 %188 }
  0x8f   :  { %11805 = vst [vmem:[#allocation10_spill] sm:$0xff] %v5722_v12  ;;  %v5724_v14 = vpop.permute.xlu0 %131 }
  0x94   :  { %409 = vrot.lane.b32.xlu1 %v392_v16, %s5545_s14  ;;  %411 = vrot.lane.b32.xlu2 %v393_v17, %s5545_s14  ;;  %v528_v16 = vstv %s5158_s18  ;;  %s5172_s18 = sld [smem:[#allocation2 + $0x20]] }
  0x95   :  { %407 = vrot.lane.b32.xlu0 %v391_v18, %s5545_s14  ;;  %v529_v25 = vmul.f32 %v528_v16, %v5585_v2  ;;  %v533_v2 = vmul.f32 %v528_v16, %v5575_v0 }
  0x96   :  { %v5732_v19 = vpop.permute.xlu1 %143  ;;  %v5734_v20 = vpop.permute.xlu2 %224 }
  0x97   :  { %11806 = vst [vmem:[#allocation11_spill] sm:$0xff] %v5734_v20  ;;  %v5736_v21 = vpop.permute.xlu0 %141 }
  0x98   :  { %11807 = vst [vmem:[#allocation12_spill] sm:$0xff] %v5736_v21 }
  0x9c   :  { %415 = vrot.lane.b32.xlu1 %v395_v22, %s5545_s14  ;;  %417 = vrot.lane.b32.xlu2 %v396_v23, %s5545_s14  ;;  %v530_v23 = vmul.f32 %v528_v16, %v5606_v9  ;;  %v735_v9 = vstv %s5164_s19  ;;  %s5266_s19 = sld [smem:[#allocation2 + $0x2]] }
  0x9d   :  { %413 = vrot.lane.b32.xlu0 %v394_v24, %s5545_s14  ;;  %v531_v24 = vmul.f32 %v528_v16, %v5580_v1 }
  0x9e   :  { %v5744_v26 = vpop.permute.xlu1 %180  ;;  %v5746_v27 = vpop.permute.xlu2 %230 }
  0x9f   :  { %11808 = vst [vmem:[#allocation13_spill] sm:$0xff] %v5744_v26  ;;  %v5748_v28 = vpop.permute.xlu0 %178 }
  0xa0   :  { %11809 = vst [vmem:[#allocation14_spill] sm:$0xff] %v5746_v27 }
  0xa1   :  { %11810 = vst [vmem:[#allocation15_spill] sm:$0xff] %v5748_v28 }
  0xa4   :  { %421 = vrot.lane.b32.xlu1 %v398_v29, %s5545_s14  ;;  %453 = vrot.lane.b32.xlu2 %v437_v30, %s5545_s14 }
  0xa5   :  { %419 = vrot.lane.b32.xlu0 %v397_v31, %s5545_s14  ;;  %v5835_v31 = vld [vmem:[%s11610_s2] sm:$0xfe] }
  0xa6   :  { %v5756_v32 = vpop.permute.xlu1 %186  ;;  %v5758_v33 = vpop.permute.xlu2 %236 }
  0xa7   :  { %11811 = vst [vmem:[#allocation16_spill] sm:$0xff] %v5756_v32  ;;  %v5760_v34 = vpop.permute.xlu0 %184 }
  0xa8   :  { %11812 = vst [vmem:[#allocation17_spill] sm:$0xff] %v5758_v33 }
  0xa9   :  { %11813 = vst [vmem:[#allocation18_spill] sm:$0xff] %v5760_v34  ;;  %v1007_v34 = vstv %s5168_s30  ;;  %s5277_s30 = sld [smem:[#allocation2 + $0xd]] }
  0xac   :  { %457 = vrot.lane.b32.xlu1 %v439_v35, %s5545_s14  ;;  %459 = vrot.lane.b32.xlu2 %v440_v36, %s5545_s14  ;;  %v534_v36 = vmul.f32 %v528_v16, %v5596_v7 }
  0xad   :  { %455 = vrot.lane.b32.xlu0 %v438_v37, %s5545_s14  ;;  %v532_v37 = vmul.f32 %v528_v16, %v5601_v8 }
  0xae   :  { %v5768_v38 = vpop.permute.xlu1 %222  ;;  %v5770_v39 = vpop.permute.xlu2 %272 }
  0xaf   :  { %11814 = vst [vmem:[#allocation19_spill] sm:$0xff] %v5768_v38  ;;  %v5772_v40 = vpop.permute.xlu0 %190 }
  0xb0   :  { %11815 = vst [vmem:[#allocation20_spill] sm:$0xff] %v5770_v39 }
  0xb1   :  { %11816 = vst [vmem:[#allocation21_spill] sm:$0xff] %v5772_v40 }
  0xb4   :  { %463 = vrot.lane.b32.xlu1 %v442_v41, %s5545_s14  ;;  %465 = vrot.lane.b32.xlu2 %v443_v42, %s5545_s14  ;;  %v736_v41 = vmul.f32 %v735_v9, %v5835_v31  ;;  %v738_v42 = vmul.f32 %v735_v9, %v5580_v1 }
  0xb5   :  { %461 = vrot.lane.b32.xlu0 %v441_v43, %s5545_s14 }
  0xb6   :  { %v5780_v45 = vpop.permute.xlu1 %228  ;;  %v5782_v46 = vpop.permute.xlu2 %278  ;;  %v756_v43 = vrot.slane %v736_v41, 1  ;;  %v757_v44 = vrot.slane %v738_v42, 1 }
  0xb7   :  { %11817 = vst [vmem:[#allocation22_spill] sm:$0xff] %v5780_v45  ;;  %v5784_v47 = vpop.permute.xlu0 %226 }
  0xb8   :  { %11818 = vst [vmem:[#allocation23_spill] sm:$0xff] %v5782_v46 }
  0xb9   :  { %11819 = vst [vmem:[#allocation24_spill] sm:$0xff] %v5784_v47 }
  0xbc   :  { %499 = vrot.lane.b32.xlu1 %v483_v48, %s5545_s14  ;;  %501 = vrot.lane.b32.xlu2 %v484_v50, %s5545_s14 }
  0xbd   :  { %467 = vrot.lane.b32.xlu0 %v444_v51, %s5545_s14 }
  0xbe   :  { %v5792_v52 = vpop.permute.xlu1 %234  ;;  %v5794_v53 = vpop.permute.xlu2 %314 }
  0xbf   :  { %11820 = vst [vmem:[#allocation25_spill] sm:$0xff] %v5792_v52  ;;  %v5796_v55 = vpop.permute.xlu0 %232 }
  0xc0   :  { %11821 = vst [vmem:[#allocation26_spill] sm:$0xff] %v5794_v53 }
  0xc1   :  { %11822 = vst [vmem:[#allocation27_spill] sm:$0xff] %v5796_v55 }
  0xc4   :  { %505 = vrot.lane.b32.xlu1 %v486_v56, %s5545_s14  ;;  %507 = vrot.lane.b32.xlu2 %v487_v57, %s5545_s14  ;;  %v5856_v56 = vld [vmem:[%s11610_s2 + $0x8] sm:$0xfe]  ;;  %v536_v57 = vmul.f32 %v528_v16, %v5617_v13 }
  0xc5   :  { %503 = vrot.lane.b32.xlu0 %v485_v59, %s5545_s14  ;;  %v535_v59 = vmul.f32 %v528_v16, %v5622_v15  ;;  %v5871_v16 = vld [vmem:[%s11610_s2 + $0x60] sm:$0x1] }
  0xc6   :  { %v5804_v60 = vpop.permute.xlu1 %270  ;;  %v5806_v61 = vpop.permute.xlu2 %320 }
  0xc7   :  { %11823 = vst [vmem:[#allocation28_spill] sm:$0xff] %v5804_v60  ;;  %v5808_v4 = vpop.permute.xlu0 %268 }
  0xc8   :  { %11824 = vst [vmem:[#allocation29_spill] sm:$0xff] %v5806_v61 }
  0xc9   :  { %11825 = vst [vmem:[#allocation30_spill] sm:$0xff] %v5808_v4 }
  0xcc   :  { %511 = vrot.lane.b32.xlu1 %v489_v5, %s5545_s14  ;;  %513 = vrot.lane.b32.xlu2 %v490_v6, %s5545_s14  ;;  %v758_v5 = vsel %vm590_vm0, %v756_v43, %v757_v44  ;;  %v740_v6 = vmul.f32 %v735_v9, %v5575_v0 }
  0xcd   :  { %509 = vrot.lane.b32.xlu0 %v488_v10, %s5545_s14  ;;  %v739_v10 = vmul.f32 %v735_v9, %v5601_v8 }
  0xce   :  { %v5816_v17 = vpop.permute.xlu1 %276  ;;  %v5818_v18 = vpop.permute.xlu2 %326 }
  0xcf   :  { %11826 = vst [vmem:[#allocation31_spill] sm:$0xff] %v5816_v17  ;;  %v5820_v22 = vpop.permute.xlu0 %274 }
  0xd0   :  { %11827 = vst [vmem:[#allocation32_spill] sm:$0xff] %v5818_v18 }
  0xd1   :  { %11828 = vst [vmem:[#allocation33_spill] sm:$0xff] %v5820_v22 }
  0xd4   :  { %547 = vrot.lane.b32.xlu1 %v530_v23, %s5545_s14  ;;  %549 = vrot.lane.b32.xlu2 %v531_v24, %s5545_s14  ;;  %v741_v23 = vmul.f32 %v735_v9, %v5596_v7  ;;  %v737_v24 = vmul.f32 %v735_v9, %v5856_v56 }
  0xd5   :  { %545 = vrot.lane.b32.xlu0 %v529_v25, %s5545_s14  ;;  %v762_v25 = vrot.slane %v740_v6, 1 }
  0xd6   :  { %v5828_v29 = vpop.permute.xlu1 %282  ;;  %v5830_v30 = vpop.permute.xlu2 %362  ;;  %v759_v42 = vrot.slane %v737_v24, 1 }
  0xd7   :  { %11829 = vst [vmem:[#allocation34_spill] sm:$0xff] %v5828_v29  ;;  %v5837_v35 = vpop.permute.xlu0 %280  ;;  %v763_v6 = vsel %vm590_vm0, %v757_v44, %v762_v25  ;;  %v5897_v44 = vld [vmem:[%s11610_s2 + $0x68] sm:$0x1] }
  0xd8   :  { %11830 = vst [vmem:[#allocation35_spill] sm:$0xff] %v5830_v30 }
  0xd9   :  { %11831 = vst [vmem:[#allocation36_spill] sm:$0xff] %v5837_v35 }
  0xdc   :  { %553 = vrot.lane.b32.xlu1 %v533_v2, %s5545_s14  ;;  %555 = vrot.lane.b32.xlu2 %v534_v36, %s5545_s14  ;;  %v760_v2 = vrot.slane %v739_v10, 1  ;;  %v764_v36 = vrot.slane %v741_v23, 1 }
  0xdd   :  { %551 = vrot.lane.b32.xlu0 %v532_v37, %s5545_s14 }
  0xde   :  { %v5847_v48 = vpop.permute.xlu1 %318  ;;  %v5849_v50 = vpop.permute.xlu2 %368  ;;  %v765_v10 = vsel %vm590_vm0, %v760_v2, %v764_v36  ;;  %v761_v23 = vsel %vm590_vm0, %v759_v42, %v760_v2 }
  0xdf   :  { %11832 = vst [vmem:[#allocation37_spill] sm:$0xff] %v5847_v48  ;;  %v5851_v51 = vpop.permute.xlu0 %316 }
  0xe0   :  { %11833 = vst [vmem:[#allocation38_spill] sm:$0xff] %v5849_v50 }
  0xe1   :  { %11834 = vst [vmem:[#allocation39_spill] sm:$0xff] %v5851_v51  ;;  %v803_v51 = vstv %s5165_s24  ;;  %s9518_s24 = sld [smem:[#allocation2 + $0x2c]] }
  0xe4   :  { %559 = vrot.lane.b32.xlu1 %v536_v57, %s5545_s14  ;;  %774 = vrot.lane.b32.xlu2 %v758_v5, %s5544_s25  ;;  %v743_v57 = vmul.f32 %v735_v9, %v5617_v13  ;;  %v744_v5 = vmul.f32 %v735_v9, %v5871_v16 }
  0xe5   :  { %557 = vrot.lane.b32.xlu0 %v535_v59, %s5545_s14  ;;  %v742_v59 = vmul.f32 %v735_v9, %v5622_v15 }
  0xe6   :  { %v5873_v37 = vpop.permute.xlu1 %324  ;;  %v5875_v41 = vpop.permute.xlu2 %374  ;;  %v768_v24 = vrot.slane %v743_v57, 1  ;;  %v804_v57 = vmul.f32 %v803_v51, %v5835_v31 }
  0xe7   :  { %11835 = vst [vmem:[#allocation40_spill] sm:$0xff] %v5873_v37  ;;  %v5877_v43 = vpop.permute.xlu0 %322  ;;  %v766_v18 = vrot.slane %v742_v59, 1  ;;  %v770_v37 = vrot.slane %v744_v5, 1  ;;  %v806_v59 = vmul.f32 %v803_v51, %v5580_v1  ;;  %v805_v5 = vmul.f32 %v803_v51, %v5856_v56 }
  0xe8   :  { %11836 = vst [vmem:[#allocation41_spill] sm:$0xff] %v5875_v41  ;;  %v769_v2 = vsel %vm590_vm0, %v764_v36, %v768_v24  ;;  %v824_v36 = vrot.slane %v804_v57, 1 }
  0xe9   :  { %11837 = vst [vmem:[#allocation42_spill] sm:$0xff] %v5877_v43  ;;  %v771_v42 = vsel %vm590_vm0, %v766_v18, %v770_v37  ;;  %v825_v37 = vrot.slane %v806_v59, 1 }
  0xec   :  { %778 = vrot.lane.b32.xlu1 %v763_v6, %s5544_s25  ;;  %780 = vrot.lane.b32.xlu2 %v765_v10, %s5544_s25  ;;  %v807_v6 = vmul.f32 %v803_v51, %v5601_v8  ;;  %v767_v10 = vsel %vm590_vm0, %v762_v25, %v766_v18  ;;  %v809_v18 = vmul.f32 %v803_v51, %v5596_v7 }
  0xed   :  { %776 = vrot.lane.b32.xlu0 %v761_v23, %s5544_s25  ;;  %v745_v23 = vmul.f32 %v735_v9, %v5897_v44  ;;  %v826_v9 = vsel %vm590_vm0, %v824_v36, %v825_v37 }
  0xee   :  { %v5888_v43 = vpop.permute.xlu1 %360  ;;  %v5890_v53 = vpop.permute.xlu2 %411  ;;  %v832_v59 = vrot.slane %v809_v18, 1  ;;  %v813_v18 = vmul.f32 %v803_v51, %v5897_v44 }
  0xef   :  { %11838 = vst [vmem:[#allocation43_spill] sm:$0xff] %v5888_v43  ;;  %v5892_v48 = vpop.permute.xlu0 %328  ;;  %v772_v29 = vrot.slane %v745_v23, 1 }
  0xf0   :  { %11839 = vst [vmem:[#allocation44_spill] sm:$0xff] %v5890_v53  ;;  %v827_v53 = vrot.slane %v805_v5, 1 }
  0xf1   :  { %11840 = vst [vmem:[#allocation45_spill] sm:$0xff] %v5892_v48  ;;  %v828_v48 = vrot.slane %v807_v6, 1  ;;  %v773_v57 = vsel %vm590_vm0, %v768_v24, %v772_v29  ;;  %v812_v24 = vmul.f32 %v803_v51, %v5871_v16 }
  0xf3   :  { %v829_v25 = vsel %vm590_vm0, %v827_v53, %v828_v48  ;;  %v833_v36 = vsel %vm590_vm0, %v828_v48, %v832_v59  ;;  %v871_v48 = vstv %s5166_s28  ;;  %s8518_s28 = sld [smem:[#allocation4 + $0x3]] }
  0xf4   :  { %784 = vrot.lane.b32.xlu1 %v769_v2, %s5544_s25  ;;  %786 = vrot.lane.b32.xlu2 %v771_v42, %s5544_s25  ;;  %v808_v2 = vmul.f32 %v803_v51, %v5575_v0  ;;  %v810_v42 = vmul.f32 %v803_v51, %v5622_v15  ;;  %v881_v60 = vmul.f32 %v871_v48, %v5897_v44 }
  0xf5   :  { %782 = vrot.lane.b32.xlu0 %v767_v10, %s5544_s25 }
  0xf6   :  { %v5910_v61 = vpop.permute.xlu1 %366  ;;  %v5912_v35 = vpop.permute.xlu2 %417  ;;  %v830_v5 = vrot.slane %v808_v2, 1  ;;  %v834_v6 = vrot.slane %v810_v42, 1  ;;  %v838_v2 = vrot.slane %v812_v24, 1  ;;  %v876_v24 = vmul.f32 %v871_v48, %v5575_v0 }
  0xf7   :  { %11841 = vst [vmem:[#allocation46_spill] sm:$0xff] %v5910_v61  ;;  %v5914_v39 = vpop.permute.xlu0 %364 }
  0xf8   :  { %11842 = vst [vmem:[#allocation47_spill] sm:$0xff] %v5912_v35  ;;  %v835_v29 = vsel %vm590_vm0, %v830_v5, %v834_v6 }
  0xf9   :  { %11843 = vst [vmem:[#allocation48_spill] sm:$0xff] %v5914_v39 }
  0xfc   :  { %842 = vrot.lane.b32.xlu1 %v826_v9, %s5544_s25  ;;  %844 = vrot.lane.b32.xlu2 %v829_v25, %s5544_s25  ;;  %v811_v9 = vmul.f32 %v803_v51, %v5617_v13  ;;  %v831_v25 = vsel %vm590_vm0, %v825_v37, %v830_v5  ;;  %v873_v51 = vmul.f32 %v871_v48, %v5856_v56 }
  0xfd   :  { %788 = vrot.lane.b32.xlu0 %v773_v57, %s5544_s25  ;;  %v840_v57 = vrot.slane %v813_v18, 1  ;;  %v875_v37 = vmul.f32 %v871_v48, %v5601_v8  ;;  %v839_v5 = vsel %vm590_vm0, %v834_v6, %v838_v2  ;;  %v872_v18 = vmul.f32 %v871_v48, %v5835_v31 }
  0xfe   :  { %v5925_v10 = vpop.permute.xlu1 %372  ;;  %v5927_v23 = vpop.permute.xlu2 %453  ;;  %v836_v42 = vrot.slane %v811_v9, 1  ;;  %v898_v6 = vrot.slane %v876_v24, 1 }
  0xff   :  { %11844 = vst [vmem:[#allocation49_spill] sm:$0xff] %v5925_v10  ;;  %v5929_v53 = vpop.permute.xlu0 %370  ;;  %v892_v46 = vrot.slane %v872_v18, 1 }
 0x100   :  { %11845 = vst [vmem:[#allocation50_spill] sm:$0xff] %v5927_v23  ;;  %v837_v9 = vsel %vm590_vm0, %v832_v59, %v836_v42 }
 0x101   :  { %11846 = vst [vmem:[#allocation51_spill] sm:$0xff] %v5929_v53 }
 0x104   :  { %848 = vrot.lane.b32.xlu1 %v833_v36, %s5544_s25  ;;  %850 = vrot.lane.b32.xlu2 %v835_v29, %s5544_s25  ;;  %v841_v36 = vsel %vm590_vm0, %v836_v42, %v840_v57  ;;  %v874_v29 = vmul.f32 %v871_v48, %v5580_v1 }
 0x105   :  { %846 = vrot.lane.b32.xlu0 %v831_v25, %s5544_s25  ;;  %v895_v25 = vrot.slane %v873_v51, 1  ;;  %v877_v51 = vmul.f32 %v871_v48, %v5596_v7 }
 0x106   :  { %v5940_v35 = vpop.permute.xlu1 %409  ;;  %v5942_v22 = vpop.permute.xlu2 %459 }
 0x107   :  { %11847 = vst [vmem:[#allocation52_spill] sm:$0xff] %v5940_v35  ;;  %v5944_v17 = vpop.permute.xlu0 %407  ;;  %v893_v35 = vrot.slane %v874_v29, 1  ;;  %v900_v24 = vrot.slane %v877_v51, 1  ;;  %v880_v51 = vmul.f32 %v871_v48, %v5871_v16 }
 0x108   :  { %11848 = vst [vmem:[#allocation53_spill] sm:$0xff] %v5942_v22 }
 0x109   :  { %11849 = vst [vmem:[#allocation54_spill] sm:$0xff] %v5944_v17  ;;  %v896_v17 = vrot.slane %v875_v37, 1  ;;  %v899_v42 = vsel %vm590_vm0, %v893_v35, %v898_v6  ;;  %v879_v37 = vmul.f32 %v871_v48, %v5617_v13 }
 0x10b   :  { %v897_v59 = vsel %vm590_vm0, %v895_v25, %v896_v17 }
 0x10c   :  { %854 = vrot.lane.b32.xlu1 %v839_v5, %s5544_s25  ;;  %856 = vrot.lane.b32.xlu2 %v841_v36, %s5544_s25  ;;  %v878_v5 = vmul.f32 %v871_v48, %v5622_v15  ;;  %v894_v36 = vsel %vm590_vm0, %v892_v46, %v893_v35 }
 0x10d   :  { %852 = vrot.lane.b32.xlu0 %v837_v9, %s5544_s25  ;;  %v904_v9 = vrot.slane %v879_v37, 1  ;;  %v908_v37 = vrot.slane %v881_v60, 1 }
 0x10e   :  { %v5957_v2 = vpop.permute.xlu1 %415  ;;  %v5959_v57 = vpop.permute.xlu2 %465  ;;  %v902_v29 = vrot.slane %v878_v5, 1  ;;  %v901_v5 = vsel %vm590_vm0, %v896_v17, %v900_v24 }
 0x10f   :  { %11850 = vst [vmem:[#allocation55_spill] sm:$0xff] %v5957_v2  ;;  %v5961_v4 = vpop.permute.xlu0 %413  ;;  %v939_v2 = vstv %s5167_s29  ;;  %v905_v35 = vsel %vm590_vm0, %v900_v24, %v904_v9  ;;  %v909_v17 = vsel %vm590_vm0, %v904_v9, %v908_v37  ;;  %s5263_s29 = sld [smem:[#allocation2 + $0x13]] }
 0x110   :  { %11851 = vst [vmem:[#allocation56_spill] sm:$0xff] %v5959_v57  ;;  %v903_v46 = vsel %vm590_vm0, %v898_v6, %v902_v29  ;;  %v944_v24 = vmul.f32 %v939_v2, %v5575_v0  ;;  %v945_v60 = vmul.f32 %v939_v2, %v5596_v7 }
 0x111   :  { %11852 = vst [vmem:[#allocation57_spill] sm:$0xff] %v5961_v4 }
 0x114   :  { %912 = vrot.lane.b32.xlu1 %v897_v59, %s5544_s25  ;;  %914 = vrot.lane.b32.xlu2 %v899_v42, %s5544_s25  ;;  %v940_v59 = vmul.f32 %v939_v2, %v5835_v31  ;;  %v942_v42 = vmul.f32 %v939_v2, %v5580_v1 }
 0x115   :  { %910 = vrot.lane.b32.xlu0 %v894_v36, %s5544_s25 }
 0x116   :  { %v5972_v18 = vpop.permute.xlu1 %421  ;;  %v5974_v25 = vpop.permute.xlu2 %501  ;;  %v960_v36 = vrot.slane %v940_v59, 1  ;;  %v941_v59 = vmul.f32 %v939_v2, %v5856_v56 }
 0x117   :  { %11853 = vst [vmem:[#allocation58_spill] sm:$0xff] %v5972_v18  ;;  %v5976_v4 = vpop.permute.xlu0 %419 }
 0x118   :  { %11854 = vst [vmem:[#allocation59_spill] sm:$0xff] %v5974_v25  ;;  %v906_v25 = vrot.slane %v880_v51, 1 }
 0x119   :  { %11855 = vst [vmem:[#allocation60_spill] sm:$0xff] %v5976_v4  ;;  %v961_v4 = vrot.slane %v942_v42, 1  ;;  %v966_v42 = vrot.slane %v944_v24, 1 }
 0x11b   :  { %v962_v48 = vsel %vm590_vm0, %v960_v36, %v961_v4  ;;  %v963_v36 = vrot.slane %v941_v59, 1 }
 0x11c   :  { %918 = vrot.lane.b32.xlu1 %v903_v46, %s5544_s25  ;;  %920 = vrot.lane.b32.xlu2 %v905_v35, %s5544_s25  ;;  %v943_v46 = vmul.f32 %v939_v2, %v5601_v8  ;;  %v907_v35 = vsel %vm590_vm0, %v902_v29, %v906_v25  ;;  %v947_v29 = vmul.f32 %v939_v2, %v5617_v13 }
 0x11d   :  { %916 = vrot.lane.b32.xlu0 %v901_v5, %s5544_s25  ;;  %v968_v5 = vrot.slane %v945_v60, 1  ;;  %v946_v25 = vmul.f32 %v939_v2, %v5622_v15 }
 0x11e   :  { %v5988_v6 = vpop.permute.xlu1 %457  ;;  %v5990_v18 = vpop.permute.xlu2 %507  ;;  %v964_v9 = vrot.slane %v943_v46, 1  ;;  %v972_v60 = vrot.slane %v947_v29, 1  ;;  %v1009_v29 = vmul.f32 %v1007_v34, %v5856_v56 }
 0x11f   :  { %11856 = vst [vmem:[#allocation61_spill] sm:$0xff] %v5988_v6  ;;  %v5992_v12 = vpop.permute.xlu0 %455 }
 0x120   :  { %11857 = vst [vmem:[#allocation62_spill] sm:$0xff] %v5990_v18  ;;  %v969_v24 = vsel %vm590_vm0, %v964_v9, %v968_v5  ;;  %v965_v46 = vsel %vm590_vm0, %v963_v36, %v964_v9  ;;  %v1008_v36 = vmul.f32 %v1007_v34, %v5835_v31 }
 0x121   :  { %11858 = vst [vmem:[#allocation63_spill] sm:$0xff] %v5992_v12 }
 0x124   :  { %924 = vrot.lane.b32.xlu1 %v909_v17, %s5544_s25  ;;  %978 = vrot.lane.b32.xlu2 %v962_v48, %s5544_s25  ;;  %v948_v17 = vmul.f32 %v939_v2, %v5871_v16  ;;  %v967_v48 = vsel %vm590_vm0, %v961_v4, %v966_v42  ;;  %v973_v4 = vsel %vm590_vm0, %v968_v5, %v972_v60  ;;  %v1028_v5 = vrot.slane %v1008_v36, 1 }
 0x125   :  { %922 = vrot.lane.b32.xlu0 %v907_v35, %s5544_s25  ;;  %v970_v35 = vrot.slane %v946_v25, 1  ;;  %v1011_v25 = vmul.f32 %v1007_v34, %v5601_v8 }
 0x126   :  { %v6004_v51 = vpop.permute.xlu1 %463  ;;  %v6006_v37 = vpop.permute.xlu2 %513  ;;  %v974_v59 = vrot.slane %v948_v17, 1 }
 0x127   :  { %11859 = vst [vmem:[#allocation64_spill] sm:$0xff] %v6004_v51  ;;  %v6008_v18 = vpop.permute.xlu0 %461  ;;  %v971_v17 = vsel %vm590_vm0, %v966_v42, %v970_v35  ;;  %v1013_v42 = vmul.f32 %v1007_v34, %v5596_v7 }
 0x128   :  { %11860 = vst [vmem:[#allocation65_spill] sm:$0xff] %v6006_v37  ;;  %v975_v9 = vsel %vm590_vm0, %v970_v35, %v974_v59  ;;  %v1031_v59 = vrot.slane %v1009_v29, 1 }
 0x129   :  { %11861 = vst [vmem:[#allocation66_spill] sm:$0xff] %v6008_v18 }
 0x12c   :  { %982 = vrot.lane.b32.xlu1 %v967_v48, %s5544_s25  ;;  %984 = vrot.lane.b32.xlu2 %v969_v24, %s5544_s25  ;;  %v1010_v48 = vmul.f32 %v1007_v34, %v5580_v1  ;;  %v949_v24 = vmul.f32 %v939_v2, %v5897_v44 }
 0x12d   :  { %980 = vrot.lane.b32.xlu0 %v965_v46, %s5544_s25 }
 0x12e   :  { %v6019_v37 = vpop.permute.xlu1 %499  ;;  %v6021_v40 = vpop.permute.xlu2 %549  ;;  %v1029_v46 = vrot.slane %v1010_v48, 1  ;;  %v976_v28 = vrot.slane %v949_v24, 1  ;;  %v1036_v48 = vrot.slane %v1013_v42, 1  ;;  %v1017_v42 = vmul.f32 %v1007_v34, %v5897_v44 }
 0x12f   :  { %11862 = vst [vmem:[#allocation67_spill] sm:$0xff] %v6019_v37  ;;  %v6023_v32 = vpop.permute.xlu0 %467 }
 0x130   :  { %11863 = vst [vmem:[#allocation68_spill] sm:$0xff] %v6021_v40  ;;  %v1032_v40 = vrot.slane %v1011_v25, 1  ;;  %v1030_v2 = vsel %vm590_vm0, %v1028_v5, %v1029_v46  ;;  %v977_v36 = vsel %vm590_vm0, %v972_v60, %v976_v28  ;;  %v1016_v60 = vmul.f32 %v1007_v34, %v5871_v16 }
 0x131   :  { %11864 = vst [vmem:[#allocation69_spill] sm:$0xff] %v6023_v32 }
 0x132   :  { %v1033_v35 = vsel %vm590_vm0, %v1031_v59, %v1032_v40  ;;  %v1037_v59 = vsel %vm590_vm0, %v1032_v40, %v1036_v48  ;;  %v1075_v40 = vstv %s5169_s4  ;;  %s5181_s4 = sld [smem:[#allocation2 + $0x19]] }
 0x134   :  { %988 = vrot.lane.b32.xlu1 %v973_v4, %s5544_s25  ;;  %990 = vrot.lane.b32.xlu2 %v975_v9, %s5544_s25  ;;  %v1012_v4 = vmul.f32 %v1007_v34, %v5575_v0  ;;  %v1014_v9 = vmul.f32 %v1007_v34, %v5622_v15 }
 0x135   :  { %986 = vrot.lane.b32.xlu0 %v971_v17, %s5544_s25 }
 0x136   :  { %v6036_v37 = vpop.permute.xlu1 %505  ;;  %v6038_v58 = vpop.permute.xlu2 %555  ;;  %v1034_v29 = vrot.slane %v1012_v4, 1  ;;  %v1038_v25 = vrot.slane %v1014_v9, 1  ;;  %v1042_v4 = vrot.slane %v1016_v60, 1  ;;  %v1080_v60 = vmul.f32 %v1075_v40, %v5575_v0 }
 0x137   :  { %11865 = vst [vmem:[#allocation70_spill] sm:$0xff] %v6036_v37  ;;  %v6040_v26 = vpop.permute.xlu0 %503  ;;  %v1085_v37 = vmul.f32 %v1075_v40, %v5897_v44 }
 0x138   :  { %11866 = vst [vmem:[#allocation71_spill] sm:$0xff] %v6038_v58  ;;  %v1039_v28 = vsel %vm590_vm0, %v1034_v29, %v1038_v25 }
 0x139   :  { %11867 = vst [vmem:[#allocation72_spill] sm:$0xff] %v6040_v26 }
 0x13c   :  { %1046 = vrot.lane.b32.xlu1 %v1030_v2, %s5544_s25  ;;  %1048 = vrot.lane.b32.xlu2 %v1033_v35, %s5544_s25  ;;  %v1015_v2 = vmul.f32 %v1007_v34, %v5617_v13  ;;  %v1035_v35 = vsel %vm590_vm0, %v1029_v46, %v1034_v29  ;;  %v1077_v34 = vmul.f32 %v1075_v40, %v5856_v56 }
 0x13d   :  { %992 = vrot.lane.b32.xlu0 %v977_v36, %s5544_s25  ;;  %v1044_v36 = vrot.slane %v1017_v42, 1  ;;  %v1079_v46 = vmul.f32 %v1075_v40, %v5601_v8  ;;  %v1043_v29 = vsel %vm590_vm0, %v1038_v25, %v1042_v4  ;;  %v1076_v42 = vmul.f32 %v1075_v40, %v5835_v31 }
 0x13e   :  { %v6051_v17 = vpop.permute.xlu1 %511  ;;  %v6053_v24 = vpop.permute.xlu2 %774  ;;  %v1040_v9 = vrot.slane %v1015_v2, 1  ;;  %v1102_v25 = vrot.slane %v1080_v60, 1 }
 0x13f   :  { %11868 = vst [vmem:[#allocation73_spill] sm:$0xff] %v6051_v17  ;;  %v6055_v5 = vpop.permute.xlu0 %509  ;;  %v1096_v26 = vrot.slane %v1076_v42, 1 }
 0x140   :  { %11869 = vst [vmem:[#allocation74_spill] sm:$0xff] %v6053_v24  ;;  %v1041_v2 = vsel %vm590_vm0, %v1036_v48, %v1040_v9 }
 0x141   :  { %11870 = vst [vmem:[#allocation75_spill] sm:$0xff] %v6055_v5 }
 0x144   :  { %1052 = vrot.lane.b32.xlu1 %v1037_v59, %s5544_s25  ;;  %1054 = vrot.lane.b32.xlu2 %v1039_v28, %s5544_s25  ;;  %v1045_v59 = vsel %vm590_vm0, %v1040_v9, %v1044_v36  ;;  %v1078_v28 = vmul.f32 %v1075_v40, %v5580_v1 }
 0x145   :  { %1050 = vrot.lane.b32.xlu0 %v1035_v35, %s5544_s25  ;;  %v1099_v35 = vrot.slane %v1077_v34, 1  ;;  %v1081_v34 = vmul.f32 %v1075_v40, %v5596_v7 }
 0x146   :  { %v6066_v58 = vpop.permute.xlu1 %547  ;;  %v6068_v5 = vpop.permute.xlu2 %780 }
 0x147   :  { %11871 = vst [vmem:[#allocation76_spill] sm:$0xff] %v6066_v58  ;;  %v6070_v17 = vpop.permute.xlu0 %545  ;;  %v1097_v58 = vrot.slane %v1078_v28, 1  ;;  %v1104_v60 = vrot.slane %v1081_v34, 1  ;;  %v1084_v34 = vmul.f32 %v1075_v40, %v5871_v16 }
 0x148   :  { %11872 = vst [vmem:[#allocation77_spill] sm:$0xff] %v6068_v5 }
 0x149   :  { %11873 = vst [vmem:[#allocation78_spill] sm:$0xff] %v6070_v17  ;;  %v1100_v17 = vrot.slane %v1079_v46, 1  ;;  %v1103_v9 = vsel %vm590_vm0, %v1097_v58, %v1102_v25  ;;  %v1083_v46 = vmul.f32 %v1075_v40, %v5617_v13 }
 0x14b   :  { %v1101_v48 = vsel %vm590_vm0, %v1099_v35, %v1100_v17 }
 0x14c   :  { %1058 = vrot.lane.b32.xlu1 %v1043_v29, %s5544_s25  ;;  %1060 = vrot.lane.b32.xlu2 %v1045_v59, %s5544_s25  ;;  %v1082_v29 = vmul.f32 %v1075_v40, %v5622_v15  ;;  %v1098_v59 = vsel %vm590_vm0, %v1096_v26, %v1097_v58  ;;  %v6129_v40 = vld [vmem:[%s11610_s2 + $0x30] sm:$0xff] }
 0x14d   :  { %1056 = vrot.lane.b32.xlu0 %v1041_v2, %s5544_s25  ;;  %v1108_v2 = vrot.slane %v1083_v46, 1  ;;  %v1112_v46 = vrot.slane %v1085_v37, 1 }
 0x14e   :  { %v6083_v4 = vpop.permute.xlu1 %553  ;;  %v6085_v36 = vpop.permute.xlu2 %786  ;;  %v1106_v28 = vrot.slane %v1082_v29, 1  ;;  %v1105_v29 = vsel %vm590_vm0, %v1100_v17, %v1104_v60 }
 0x14f   :  { %11874 = vst [vmem:[#allocation79_spill] sm:$0xff] %v6083_v4  ;;  %v6087_v0 = vpop.permute.xlu0 %551  ;;  %v1109_v26 = vsel %vm590_vm0, %v1104_v60, %v1108_v2 }
 0x150   :  { %11875 = vst [vmem:[#allocation80_spill] sm:$0xff] %v6085_v36  ;;  %v1107_v58 = vsel %vm590_vm0, %v1102_v25, %v1106_v28 }
 0x151   :  { %11876 = vst [vmem:[#allocation81_spill] sm:$0xff] %v6087_v0  ;;  %v6102_v0 = vstv %s5170_s5  ;;  %s5182_s5 = sld [smem:[#allocation2 + $0x22]] }
 0x152   :  { %v1148_v37 = vmul.f32 %v6129_v40, %v6102_v0  ;;  %v1147_v60 = vmul.f32 %v6102_v0, %v5601_v8 }
 0x154   :  { %1116 = vrot.lane.b32.xlu1 %v1101_v48, %s5545_s14  ;;  %1118 = vrot.lane.b32.xlu2 %v1103_v9, %s5545_s14  ;;  %v1144_v48 = vmul.f32 %v6102_v0, %v5835_v31  ;;  %v1146_v9 = vmul.f32 %v6102_v0, %v5580_v1  ;;  %v1113_v1 = vsel %vm590_vm0, %v1108_v2, %v1112_v46 }
 0x155   :  { %1114 = vrot.lane.b32.xlu0 %v1098_v59, %s5545_s14  ;;  %v1145_v2 = vmul.f32 %v6102_v0, %v5856_v56 }
 0x156   :  { %v6098_v42 = vpop.permute.xlu1 %559  ;;  %v6100_v35 = vpop.permute.xlu2 %844  ;;  %v1164_v25 = vrot.slane %v1144_v48, 1  ;;  %v1165_v59 = vrot.slane %v1146_v9, 1  ;;  %v1170_v48 = vrot.slane %v1148_v37, 1  ;;  %v1168_v9 = vrot.slane %v1147_v60, 1 }
 0x157   :  { %11877 = vst [vmem:[#allocation82_spill] sm:$0xff] %v6098_v42  ;;  %v6104_v4 = vpop.permute.xlu0 %557  ;;  %v1110_v42 = vrot.slane %v1084_v34, 1  ;;  %v1167_v46 = vrot.slane %v1145_v2, 1  ;;  %v1211_v2 = vstv %s5171_s8  ;;  %s5185_s8 = sld [smem:[#allocation2 + $0x11]] }
 0x158   :  { %11878 = vst [vmem:[#allocation83_spill] sm:$0xff] %v6100_v35  ;;  %v1166_v17 = vsel %vm590_vm0, %v1164_v25, %v1165_v59  ;;  %v1152_v25 = vmul.f32 %v6102_v0, %v5871_v16 }
 0x159   :  { %11879 = vst [vmem:[#allocation84_spill] sm:$0xff] %v6104_v4  ;;  %v1169_v37 = vsel %vm590_vm0, %v1167_v46, %v1168_v9  ;;  %v1212_v46 = vmul.f32 %v1211_v2, %v5835_v31 }
 0x15c   :  { %1122 = vrot.lane.b32.xlu1 %v1107_v58, %s5545_s14  ;;  %1124 = vrot.lane.b32.xlu2 %v1109_v26, %s5545_s14  ;;  %v1149_v58 = vmul.f32 %v6102_v0, %v5596_v7  ;;  %v1111_v26 = vsel %vm590_vm0, %v1106_v28, %v1110_v42  ;;  %v1151_v28 = vmul.f32 %v6102_v0, %v5617_v13 }
 0x15d   :  { %1120 = vrot.lane.b32.xlu0 %v1105_v29, %s5545_s14  ;;  %v1150_v42 = vmul.f32 %v6102_v0, %v5622_v15 }
 0x15e   :  { %v6118_v35 = vpop.permute.xlu1 %778  ;;  %v6120_v4 = vpop.permute.xlu2 %850  ;;  %v1172_v29 = vrot.slane %v1149_v58, 1  ;;  %v1176_v60 = vrot.slane %v1151_v28, 1  ;;  %v6173_v28 = vld [vmem:[%s11610_s2 + $0x18] sm:$0xff] }
 0x15f   :  { %11880 = vst [vmem:[#allocation85_spill] sm:$0xff] %v6118_v35  ;;  %v6122_v63 = vpop.permute.xlu0 %776  ;;  %v1174_v58 = vrot.slane %v1150_v42, 1  ;;  %v1214_v42 = vmul.f32 %v6173_v28, %v1211_v2 }
 0x160   :  { %11881 = vst [vmem:[#allocation86_spill] sm:$0xff] %v6120_v4 }
 0x161   :  { %11882 = vst [vmem:[#allocation87_spill] sm:$0xff] %v6122_v63  ;;  %v1233_v4 = vrot.slane %v1214_v42, 1 }
 0x164   :  { %1128 = vrot.lane.b32.xlu1 %v1113_v1, %s5545_s14  ;;  %1182 = vrot.lane.b32.xlu2 %v1166_v17, %s5545_s14  ;;  %v1171_v1 = vsel %vm590_vm0, %v1165_v59, %v1170_v48  ;;  %v1173_v17 = vsel %vm590_vm0, %v1168_v9, %v1172_v29  ;;  %v1177_v59 = vsel %vm590_vm0, %v1172_v29, %v1176_v60 }
 0x165   :  { %1126 = vrot.lane.b32.xlu0 %v1111_v26, %s5545_s14  ;;  %v1178_v26 = vrot.slane %v1152_v25, 1  ;;  %v1213_v25 = vmul.f32 %v1211_v2, %v5856_v56 }
 0x166   :  { %v6143_v34 = vpop.permute.xlu1 %784  ;;  %v6145_v8 = vpop.permute.xlu2 %856 }
 0x167   :  { %11883 = vst [vmem:[#allocation88_spill] sm:$0xff] %v6143_v34  ;;  %v6147_v7 = vpop.permute.xlu0 %782  ;;  %v1179_v9 = vsel %vm590_vm0, %v1174_v58, %v1178_v26  ;;  %v1232_v26 = vrot.slane %v1212_v46, 1  ;;  %v6207_v46 = vld [vmem:[%s11610_s2 + $0x48] sm:$0xff] }
 0x168   :  { %11884 = vst [vmem:[#allocation89_spill] sm:$0xff] %v6145_v8  ;;  %v1218_v42 = vmul.f32 %v6207_v46, %v1211_v2 }
 0x169   :  { %11885 = vst [vmem:[#allocation90_spill] sm:$0xff] %v6147_v7 }
 0x16c   :  { %1186 = vrot.lane.b32.xlu1 %v1171_v1, %s5545_s14  ;;  %1188 = vrot.lane.b32.xlu2 %v1173_v17, %s5545_s14  ;;  %v6180_v1 = vld [vmem:[%s11610_s2 + $0x20] sm:$0xff]  ;;  %v1175_v17 = vsel %vm590_vm0, %v1170_v48, %v1174_v58  ;;  %v1234_v58 = vsel %vm590_vm0, %v1232_v26, %v1233_v4 }
 0x16d   :  { %1184 = vrot.lane.b32.xlu0 %v1169_v37, %s5545_s14  ;;  %v1215_v29 = vmul.f32 %v6180_v1, %v1211_v2  ;;  %v1153_v37 = vmul.f32 %v6102_v0, %v5897_v44  ;;  %v6198_v0 = vld [vmem:[%s11610_s2 + $0x38] sm:$0xff] }
 0x16e   :  { %v6161_v13 = vpop.permute.xlu1 %842  ;;  %v6163_v15 = vpop.permute.xlu2 %914  ;;  %v1217_v48 = vmul.f32 %v6198_v0, %v1211_v2 }
 0x16f   :  { %11886 = vst [vmem:[#allocation91_spill] sm:$0xff] %v6161_v13  ;;  %v6165_v8 = vpop.permute.xlu0 %788  ;;  %v1235_v13 = vrot.slane %v1213_v25, 1  ;;  %v1180_v7 = vrot.slane %v1153_v37, 1 }
 0x170   :  { %11887 = vst [vmem:[#allocation92_spill] sm:$0xff] %v6163_v15  ;;  %v1236_v15 = vrot.slane %v1215_v29, 1  ;;  %v1240_v29 = vrot.slane %v1217_v48, 1  ;;  %v6226_v48 = vld [vmem:[%s11610_s2 + $0x50] sm:$0xff] }
 0x171   :  { %11888 = vst [vmem:[#allocation93_spill] sm:$0xff] %v6165_v8  ;;  %v1181_v25 = vsel %vm590_vm0, %v1176_v60, %v1180_v7  ;;  %v1220_v60 = vmul.f32 %v1211_v2, %v5871_v16 }
 0x174   :  { %1192 = vrot.lane.b32.xlu1 %v1177_v59, %s5545_s14  ;;  %1194 = vrot.lane.b32.xlu2 %v1179_v9, %s5545_s14  ;;  %v1237_v59 = vsel %vm590_vm0, %v1235_v13, %v1236_v15  ;;  %v1216_v9 = vmul.f32 %v6129_v40, %v1211_v2  ;;  %v1242_v13 = vrot.slane %v1218_v42, 1 }
 0x175   :  { %1190 = vrot.lane.b32.xlu0 %v1175_v17, %s5545_s14 }
 0x176   :  { %v6189_v36 = vpop.permute.xlu1 %848  ;;  %v6191_v8 = vpop.permute.xlu2 %920  ;;  %v1238_v17 = vrot.slane %v1216_v9, 1 }
 0x177   :  { %11889 = vst [vmem:[#allocation94_spill] sm:$0xff] %v6189_v36  ;;  %v6193_v34 = vpop.permute.xlu0 %846  ;;  %v1241_v36 = vsel %vm590_vm0, %v1236_v15, %v1240_v29  ;;  %v1246_v15 = vrot.slane %v1220_v60, 1 }
 0x178   :  { %11890 = vst [vmem:[#allocation95_spill] sm:$0xff] %v6191_v8  ;;  %v1243_v7 = vsel %vm590_vm0, %v1238_v17, %v1242_v13  ;;  %v1239_v9 = vsel %vm590_vm0, %v1233_v4, %v1238_v17 }
 0x179   :  { %11891 = vst [vmem:[#allocation96_spill] sm:$0xff] %v6193_v34 }
 0x17c   :  { %1250 = vrot.lane.b32.xlu1 %v1234_v58, %s5545_s14  ;;  %1252 = vrot.lane.b32.xlu2 %v1237_v59, %s5545_s14  ;;  %v1219_v58 = vmul.f32 %v6226_v48, %v1211_v2  ;;  %v1221_v59 = vmul.f32 %v1211_v2, %v5897_v44 }
 0x17d   :  { %1196 = vrot.lane.b32.xlu0 %v1181_v25, %s5545_s14 }
 0x17e   :  { %v6214_v37 = vpop.permute.xlu1 %854  ;;  %v6216_v26 = vpop.permute.xlu2 %978  ;;  %v1244_v42 = vrot.slane %v1219_v58, 1  ;;  %v1248_v25 = vrot.slane %v1221_v59, 1 }
 0x17f   :  { %11892 = vst [vmem:[#allocation97_spill] sm:$0xff] %v6214_v37  ;;  %v6218_v34 = vpop.permute.xlu0 %852  ;;  %v1279_v37 = vstv %s5172_s18  ;;  %s5262_s18 = sld [smem:[#allocation2 + $0xa]] }
 0x180   :  { %11893 = vst [vmem:[#allocation98_spill] sm:$0xff] %v6216_v26  ;;  %v1281_v2 = vmul.f32 %v1279_v37, %v5856_v56  ;;  %v1283_v4 = vmul.f32 %v6180_v1, %v1279_v37  ;;  %v1249_v17 = vsel %vm590_vm0, %v1244_v42, %v1248_v25  ;;  %v1284_v60 = vmul.f32 %v6129_v40, %v1279_v37 }
 0x181   :  { %11894 = vst [vmem:[#allocation99_spill] sm:$0xff] %v6218_v34  ;;  %v1245_v58 = vsel %vm590_vm0, %v1240_v29, %v1244_v42  ;;  %v1280_v59 = vmul.f32 %v1279_v37, %v5835_v31 }
 0x184   :  { %1256 = vrot.lane.b32.xlu1 %v1241_v36, %s5545_s14  ;;  %1258 = vrot.lane.b32.xlu2 %v1243_v7, %s5545_s14  ;;  %v1247_v36 = vsel %vm590_vm0, %v1242_v13, %v1246_v15  ;;  %v1282_v7 = vmul.f32 %v6173_v28, %v1279_v37  ;;  %v1306_v13 = vrot.slane %v1284_v60, 1 }
 0x185   :  { %1254 = vrot.lane.b32.xlu0 %v1239_v9, %s5545_s14  ;;  %v1303_v9 = vrot.slane %v1281_v2, 1  ;;  %v1285_v2 = vmul.f32 %v6198_v0, %v1279_v37 }
 0x186   :  { %v6234_v34 = vpop.permute.xlu1 %912  ;;  %v6236_v26 = vpop.permute.xlu2 %984 }
 0x187   :  { %11895 = vst [vmem:[#allocation100_spill] sm:$0xff] %v6234_v34  ;;  %v6238_v8 = vpop.permute.xlu0 %910  ;;  %v1300_v34 = vrot.slane %v1280_v59, 1  ;;  %v1308_v60 = vrot.slane %v1285_v2, 1  ;;  %v1288_v2 = vmul.f32 %v1279_v37, %v5871_v16 }
 0x188   :  { %11896 = vst [vmem:[#allocation101_spill] sm:$0xff] %v6236_v26  ;;  %v1304_v26 = vrot.slane %v1283_v4, 1  ;;  %v1287_v4 = vmul.f32 %v6226_v48, %v1279_v37 }
 0x189   :  { %11897 = vst [vmem:[#allocation102_spill] sm:$0xff] %v6238_v8  ;;  %v1301_v8 = vrot.slane %v1282_v7, 1 }
 0x18a   :  { %v1305_v29 = vsel %vm590_vm0, %v1303_v9, %v1304_v26 }
 0x18b   :  { %v1307_v42 = vsel %vm590_vm0, %v1301_v8, %v1306_v13 }
 0x18c   :  { %1262 = vrot.lane.b32.xlu1 %v1247_v36, %s5545_s14  ;;  %1264 = vrot.lane.b32.xlu2 %v1249_v17, %s5545_s14  ;;  %v1286_v36 = vmul.f32 %v6207_v46, %v1279_v37  ;;  %v1302_v17 = vsel %vm590_vm0, %v1300_v34, %v1301_v8 }
 0x18d   :  { %1260 = vrot.lane.b32.xlu0 %v1245_v58, %s5545_s14  ;;  %v1312_v58 = vrot.slane %v1287_v4, 1 }
 0x18e   :  { %v6251_v15 = vpop.permute.xlu1 %918  ;;  %v6253_v25 = vpop.permute.xlu2 %990  ;;  %v1310_v7 = vrot.slane %v1286_v36, 1  ;;  %v1309_v36 = vsel %vm590_vm0, %v1304_v26, %v1308_v60 }
 0x18f   :  { %11898 = vst [vmem:[#allocation103_spill] sm:$0xff] %v6251_v15  ;;  %v6255_v24 = vpop.permute.xlu0 %916  ;;  %v1289_v15 = vmul.f32 %v1279_v37, %v5897_v44  ;;  %v1313_v8 = vsel %vm590_vm0, %v1308_v60, %v1312_v58 }
 0x190   :  { %11899 = vst [vmem:[#allocation104_spill] sm:$0xff] %v6253_v25  ;;  %v6270_v25 = vstv %s5173_s21  ;;  %v1311_v34 = vsel %vm590_vm0, %v1306_v13, %v1310_v7  ;;  %s5268_s21 = sld [smem:[#allocation2 + $0x14]] }
 0x191   :  { %11900 = vst [vmem:[#allocation105_spill] sm:$0xff] %v6255_v24  ;;  %v1316_v4 = vrot.slane %v1289_v15, 1  ;;  %v1352_v60 = vmul.f32 %v6129_v40, %v6270_v25  ;;  %v1351_v15 = vmul.f32 %v6180_v1, %v6270_v25 }
 0x193   :  { %v1317_v26 = vsel %vm590_vm0, %v1312_v58, %v1316_v4  ;;  %v1374_v58 = vrot.slane %v1352_v60, 1 }
 0x194   :  { %1320 = vrot.lane.b32.xlu1 %v1305_v29, %s5545_s14  ;;  %1322 = vrot.lane.b32.xlu2 %v1307_v42, %s5545_s14  ;;  %v1348_v29 = vmul.f32 %v6270_v25, %v5835_v31  ;;  %v1350_v42 = vmul.f32 %v6173_v28, %v6270_v25  ;;  %v1314_v31 = vrot.slane %v1288_v2, 1 }
 0x195   :  { %1318 = vrot.lane.b32.xlu0 %v1302_v17, %s5545_s14 }
 0x196   :  { %v6266_v59 = vpop.permute.xlu1 %924  ;;  %v6268_v9 = vpop.permute.xlu2 %1048  ;;  %v1368_v13 = vrot.slane %v1348_v29, 1  ;;  %v1369_v17 = vrot.slane %v1350_v42, 1  ;;  %v1349_v29 = vmul.f32 %v6270_v25, %v5856_v56  ;;  %v1372_v42 = vrot.slane %v1351_v15, 1 }
 0x197   :  { %11901 = vst [vmem:[#allocation106_spill] sm:$0xff] %v6266_v59  ;;  %v6272_v24 = vpop.permute.xlu0 %922  ;;  %v1355_v56 = vmul.f32 %v6226_v48, %v6270_v25 }
 0x198   :  { %11902 = vst [vmem:[#allocation107_spill] sm:$0xff] %v6268_v9  ;;  %v1370_v37 = vsel %vm590_vm0, %v1368_v13, %v1369_v17  ;;  %v1371_v13 = vrot.slane %v1349_v29, 1 }
 0x199   :  { %11903 = vst [vmem:[#allocation108_spill] sm:$0xff] %v6272_v24  ;;  %v1380_v15 = vrot.slane %v1355_v56, 1 }
 0x19a   :  { %v1373_v60 = vsel %vm590_vm0, %v1371_v13, %v1372_v42 }
 0x19c   :  { %1326 = vrot.lane.b32.xlu1 %v1311_v34, %s5545_s14  ;;  %1328 = vrot.lane.b32.xlu2 %v1313_v8, %s5545_s14  ;;  %v1353_v34 = vmul.f32 %v6198_v0, %v6270_v25  ;;  %v1315_v8 = vsel %vm590_vm0, %v1310_v7, %v1314_v31  ;;  %v1354_v7 = vmul.f32 %v6207_v46, %v6270_v25 }
 0x19d   :  { %1324 = vrot.lane.b32.xlu0 %v1309_v36, %s5545_s14  ;;  %v1356_v31 = vmul.f32 %v6270_v25, %v5871_v16  ;;  %v6331_v16 = vld [vmem:[%s11610_s2] sm:$0xfc] }
 0x19e   :  { %v6286_v9 = vpop.permute.xlu1 %982  ;;  %v6288_v24 = vpop.permute.xlu2 %1054  ;;  %v1376_v36 = vrot.slane %v1353_v34, 1  ;;  %v1378_v34 = vrot.slane %v1354_v7, 1 }
 0x19f   :  { %11904 = vst [vmem:[#allocation109_spill] sm:$0xff] %v6286_v9  ;;  %v6290_v59 = vpop.permute.xlu0 %980 }
 0x1a0   :  { %11905 = vst [vmem:[#allocation110_spill] sm:$0xff] %v6288_v24  ;;  %v1381_v56 = vsel %vm590_vm0, %v1376_v36, %v1380_v15 }
 0x1a1   :  { %11906 = vst [vmem:[#allocation111_spill] sm:$0xff] %v6290_v59 }
 0x1a4   :  { %1332 = vrot.lane.b32.xlu1 %v1317_v26, %s5545_s14  ;;  %1386 = vrot.lane.b32.xlu2 %v1370_v37, %s5545_s14  ;;  %v1375_v26 = vsel %vm590_vm0, %v1369_v17, %v1374_v58  ;;  %v1377_v37 = vsel %vm590_vm0, %v1372_v42, %v1376_v36  ;;  %v1567_v17 = vstv %s5179_s22  ;;  %v6336_v42 = vld [vmem:[%s11610_s2 + $0x8] sm:$0xfc]  ;;  %s5269_s22 = sld [smem:[#allocation2 + $0x1d]] }
 0x1a5   :  { %1330 = vrot.lane.b32.xlu0 %v1315_v8, %s5545_s14  ;;  %v1382_v8 = vrot.slane %v1356_v31, 1  ;;  %v1568_v31 = vmul.f32 %v1567_v17, %v6331_v16 }
 0x1a6   :  { %v6306_v2 = vpop.permute.xlu1 %988  ;;  %v6308_v4 = vpop.permute.xlu2 %1060 }
 0x1a7   :  { %11907 = vst [vmem:[#allocation112_spill] sm:$0xff] %v6306_v2  ;;  %v6310_v24 = vpop.permute.xlu0 %986  ;;  %v1383_v7 = vsel %vm590_vm0, %v1378_v34, %v1382_v8  ;;  %v1588_v36 = vrot.slane %v1568_v31, 2 }
 0x1a8   :  { %11908 = vst [vmem:[#allocation113_spill] sm:$0xff] %v6308_v4 }
 0x1a9   :  { %11909 = vst [vmem:[#allocation114_spill] sm:$0xff] %v6310_v24  ;;  %v1357_v24 = vmul.f32 %v6270_v25, %v5897_v44  ;;  %v1573_v44 = vmul.f32 %v6198_v0, %v1567_v17 }
 0x1ab   :  { %v1596_v31 = vrot.slane %v1573_v44, 2 }
 0x1ac   :  { %1390 = vrot.lane.b32.xlu1 %v1375_v26, %s5545_s14  ;;  %1392 = vrot.lane.b32.xlu2 %v1377_v37, %s5545_s14  ;;  %v1570_v26 = vmul.f32 %v6173_v28, %v1567_v17  ;;  %v1569_v37 = vmul.f32 %v1567_v17, %v6336_v42 }
 0x1ad   :  { %1388 = vrot.lane.b32.xlu0 %v1373_v60, %s5545_s14  ;;  %v1571_v60 = vmul.f32 %v6180_v1, %v1567_v17 }
 0x1ae   :  { %v6324_v29 = vpop.permute.xlu1 %1046  ;;  %v6326_v4 = vpop.permute.xlu2 %1118  ;;  %v1589_v8 = vrot.slane %v1570_v26, 2 }
 0x1af   :  { %11910 = vst [vmem:[#allocation115_spill] sm:$0xff] %v6324_v29  ;;  %v6338_v13 = vpop.permute.xlu0 %992  ;;  %v1379_v29 = vsel %vm590_vm0, %v1374_v58, %v1378_v34  ;;  %v1592_v2 = vrot.slane %v1571_v60, 2 }
 0x1b0   :  { %11911 = vst [vmem:[#allocation116_spill] sm:$0xff] %v6326_v4  ;;  %v1384_v4 = vrot.slane %v1357_v24, 1  ;;  %v1590_v25 = vsel %vm1428_vm1, %v1588_v36, %v1589_v8 }
 0x1b1   :  { %11912 = vst [vmem:[#allocation117_spill] sm:$0xff] %v6338_v13  ;;  %v1591_v13 = vrot.slane %v1569_v37, 2  ;;  %v1597_v36 = vsel %vm1428_vm1, %v1592_v2, %v1596_v31 }
 0x1b3   :  { %v1593_v34 = vsel %vm1428_vm1, %v1591_v13, %v1592_v2  ;;  %v6374_v13 = vld [vmem:[%s11610_s2 + $0x60] sm:$0x3]  ;;  %v1635_v2 = vstv %s5180_s26  ;;  %s5291_s26 = sld [smem:[#allocation2 + $0x7]] }
 0x1b4   :  { %1396 = vrot.lane.b32.xlu1 %v1381_v56, %s5545_s14  ;;  %1398 = vrot.lane.b32.xlu2 %v1383_v7, %s5545_s14  ;;  %v1574_v56 = vmul.f32 %v6207_v46, %v1567_v17  ;;  %v1385_v7 = vsel %vm590_vm0, %v1380_v15, %v1384_v4  ;;  %v6379_v4 = vld [vmem:[%s11610_s2 + $0x68] sm:$0x3] }
 0x1b5   :  { %1394 = vrot.lane.b32.xlu0 %v1379_v29, %s5545_s14  ;;  %v1572_v29 = vmul.f32 %v6129_v40, %v1567_v17 }
 0x1b6   :  { %v6352_v9 = vpop.permute.xlu1 %1052  ;;  %v6354_v59 = vpop.permute.xlu2 %1124  ;;  %v1598_v26 = vrot.slane %v1574_v56, 2 }
 0x1b7   :  { %11913 = vst [vmem:[#allocation118_spill] sm:$0xff] %v6352_v9  ;;  %v6356_v58 = vpop.permute.xlu0 %1050  ;;  %v1594_v24 = vrot.slane %v1572_v29, 2  ;;  %v1577_v29 = vmul.f32 %v1567_v17, %v6379_v4 }
 0x1b8   :  { %11914 = vst [vmem:[#allocation119_spill] sm:$0xff] %v6354_v59 }
 0x1b9   :  { %11915 = vst [vmem:[#allocation120_spill] sm:$0xff] %v6356_v58  ;;  %v1599_v44 = vsel %vm1428_vm1, %v1594_v24, %v1598_v26  ;;  %v1595_v56 = vsel %vm1428_vm1, %v1589_v8, %v1594_v24  ;;  %v1639_v8 = vmul.f32 %v6180_v1, %v1635_v2 }
 0x1bc   :  { %1606 = vrot.lane.b32.xlu1 %v1590_v25, %s5544_s25  ;;  %1608 = vrot.lane.b32.xlu2 %v1593_v34, %s5544_s25  ;;  %v1576_v25 = vmul.f32 %v1567_v17, %v6374_v13  ;;  %v1575_v34 = vmul.f32 %v6226_v48, %v1567_v17  ;;  %v1637_v17 = vmul.f32 %v1635_v2, %v6336_v42 }
 0x1bd   :  { %1400 = vrot.lane.b32.xlu0 %v1385_v7, %s5545_s14 }
 0x1be   :  { %v6367_v37 = vpop.permute.xlu1 %1058  ;;  %v6369_v60 = vpop.permute.xlu2 %1182  ;;  %v1602_v7 = vrot.slane %v1576_v25, 2  ;;  %v1640_v25 = vmul.f32 %v6129_v40, %v1635_v2 }
 0x1bf   :  { %11916 = vst [vmem:[#allocation121_spill] sm:$0xff] %v6367_v37  ;;  %v6381_v15 = vpop.permute.xlu0 %1056  ;;  %v1600_v37 = vrot.slane %v1575_v34, 2 }
 0x1c0   :  { %11917 = vst [vmem:[#allocation122_spill] sm:$0xff] %v6369_v60  ;;  %v1604_v60 = vrot.slane %v1577_v29, 2  ;;  %v1603_v24 = vsel %vm1428_vm1, %v1598_v26, %v1602_v7  ;;  %v1636_v29 = vmul.f32 %v1635_v2, %v6331_v16  ;;  %v1662_v26 = vrot.slane %v1640_v25, 2 }
 0x1c1   :  { %11918 = vst [vmem:[#allocation123_spill] sm:$0xff] %v6381_v15  ;;  %v1601_v34 = vsel %vm1428_vm1, %v1596_v31, %v1600_v37 }
 0x1c4   :  { %1612 = vrot.lane.b32.xlu1 %v1597_v36, %s5544_s25  ;;  %1614 = vrot.lane.b32.xlu2 %v1599_v44, %s5544_s25  ;;  %v1605_v36 = vsel %vm1428_vm1, %v1600_v37, %v1604_v60  ;;  %v1638_v44 = vmul.f32 %v6173_v28, %v1635_v2 }
 0x1c5   :  { %1610 = vrot.lane.b32.xlu0 %v1595_v56, %s5544_s25  ;;  %v1659_v56 = vrot.slane %v1637_v17, 2  ;;  %v1641_v17 = vmul.f32 %v6198_v0, %v1635_v2 }
 0x1c6   :  { %v6392_v15 = vpop.permute.xlu1 %1116  ;;  %v6394_v58 = vpop.permute.xlu2 %1188  ;;  %v1657_v59 = vrot.slane %v1638_v44, 2 }
 0x1c7   :  { %11919 = vst [vmem:[#allocation124_spill] sm:$0xff] %v6392_v15  ;;  %v6396_v9 = vpop.permute.xlu0 %1114  ;;  %v1664_v25 = vrot.slane %v1641_v17, 2  ;;  %v1644_v17 = vmul.f32 %v1635_v2, %v6374_v13 }
 0x1c8   :  { %11920 = vst [vmem:[#allocation125_spill] sm:$0xff] %v6394_v58  ;;  %v1660_v58 = vrot.slane %v1639_v8, 2  ;;  %v1663_v37 = vsel %vm1428_vm1, %v1657_v59, %v1662_v26  ;;  %v1643_v8 = vmul.f32 %v6226_v48, %v1635_v2 }
 0x1c9   :  { %11921 = vst [vmem:[#allocation126_spill] sm:$0xff] %v6396_v9  ;;  %v1656_v9 = vrot.slane %v1636_v29, 2 }
 0x1ca   :  { %v1661_v31 = vsel %vm1428_vm1, %v1659_v56, %v1660_v58 }
 0x1cc   :  { %1618 = vrot.lane.b32.xlu1 %v1603_v24, %s5544_s25  ;;  %1620 = vrot.lane.b32.xlu2 %v1605_v36, %s5544_s25  ;;  %v1642_v24 = vmul.f32 %v6207_v46, %v1635_v2  ;;  %v1658_v36 = vsel %vm1428_vm1, %v1656_v9, %v1657_v59 }
 0x1cd   :  { %1616 = vrot.lane.b32.xlu0 %v1601_v34, %s5544_s25  ;;  %v1668_v34 = vrot.slane %v1643_v8, 2 }
 0x1ce   :  { %v6409_v7 = vpop.permute.xlu1 %1122  ;;  %v6411_v60 = vpop.permute.xlu2 %1194  ;;  %v1666_v44 = vrot.slane %v1642_v24, 2  ;;  %v1665_v24 = vsel %vm1428_vm1, %v1660_v58, %v1664_v25 }
 0x1cf   :  { %11922 = vst [vmem:[#allocation127_spill] sm:$0xff] %v6409_v7  ;;  %v6413_v15 = vpop.permute.xlu0 %1120  ;;  %v1645_v7 = vmul.f32 %v1635_v2, %v6379_v4  ;;  %v1669_v9 = vsel %vm1428_vm1, %v1664_v25, %v1668_v34 }
 0x1d0   :  { %11923 = vst [vmem:[#allocation128_spill] sm:$0xff] %v6411_v60  ;;  %v1703_v60 = vstv %s5181_s4  ;;  %v1667_v59 = vsel %vm1428_vm1, %v1662_v26, %v1666_v44  ;;  %s8529_s4 = sld [smem:[#allocation2 + $0x1e]] }
 0x1d1   :  { %11924 = vst [vmem:[#allocation129_spill] sm:$0xff] %v6413_v15  ;;  %v1672_v8 = vrot.slane %v1645_v7, 2  ;;  %v1708_v25 = vmul.f32 %v6129_v40, %v1703_v60  ;;  %v1709_v7 = vmul.f32 %v6198_v0, %v1703_v60 }
 0x1d3   :  { %v1673_v58 = vsel %vm1428_vm1, %v1668_v34, %v1672_v8 }
 0x1d4   :  { %1676 = vrot.lane.b32.xlu1 %v1661_v31, %s5544_s25  ;;  %1678 = vrot.lane.b32.xlu2 %v1663_v37, %s5544_s25  ;;  %v1704_v31 = vmul.f32 %v1703_v60, %v6331_v16  ;;  %v1706_v37 = vmul.f32 %v6173_v28, %v1703_v60 }
 0x1d5   :  { %1674 = vrot.lane.b32.xlu0 %v1658_v36, %s5544_s25 }
 0x1d6   :  { %v6424_v29 = vpop.permute.xlu1 %1128  ;;  %v6426_v56 = vpop.permute.xlu2 %1252  ;;  %v1724_v36 = vrot.slane %v1704_v31, 2  ;;  %v1705_v31 = vmul.f32 %v1703_v60, %v6336_v42 }
 0x1d7   :  { %11925 = vst [vmem:[#allocation130_spill] sm:$0xff] %v6424_v29  ;;  %v6428_v15 = vpop.permute.xlu0 %1126  ;;  %v1670_v29 = vrot.slane %v1644_v17, 2 }
 0x1d8   :  { %11926 = vst [vmem:[#allocation131_spill] sm:$0xff] %v6426_v56  ;;  %v1725_v56 = vrot.slane %v1706_v37, 2  ;;  %v1730_v37 = vrot.slane %v1708_v25, 2 }
 0x1d9   :  { %11927 = vst [vmem:[#allocation132_spill] sm:$0xff] %v6428_v15 }
 0x1da   :  { %v1726_v2 = vsel %vm1428_vm1, %v1724_v36, %v1725_v56  ;;  %v1727_v36 = vrot.slane %v1705_v31, 2 }
 0x1dc   :  { %1682 = vrot.lane.b32.xlu1 %v1667_v59, %s5544_s25  ;;  %1684 = vrot.lane.b32.xlu2 %v1669_v9, %s5544_s25  ;;  %v1707_v59 = vmul.f32 %v6180_v1, %v1703_v60  ;;  %v1671_v9 = vsel %vm1428_vm1, %v1666_v44, %v1670_v29  ;;  %v1711_v44 = vmul.f32 %v6226_v48, %v1703_v60 }
 0x1dd   :  { %1680 = vrot.lane.b32.xlu0 %v1665_v24, %s5544_s25  ;;  %v1732_v24 = vrot.slane %v1709_v7, 2  ;;  %v1710_v29 = vmul.f32 %v6207_v46, %v1703_v60 }
 0x1de   :  { %v6440_v26 = vpop.permute.xlu1 %1186  ;;  %v6442_v15 = vpop.permute.xlu2 %1258  ;;  %v1728_v34 = vrot.slane %v1707_v59, 2  ;;  %v1736_v7 = vrot.slane %v1711_v44, 2 }
 0x1df   :  { %11928 = vst [vmem:[#allocation133_spill] sm:$0xff] %v6440_v26  ;;  %v6444_v63 = vpop.permute.xlu0 %1184 }
 0x1e0   :  { %11929 = vst [vmem:[#allocation134_spill] sm:$0xff] %v6442_v15  ;;  %v1733_v25 = vsel %vm1428_vm1, %v1728_v34, %v1732_v24  ;;  %v1729_v59 = vsel %vm1428_vm1, %v1727_v36, %v1728_v34 }
 0x1e1   :  { %11930 = vst [vmem:[#allocation135_spill] sm:$0xff] %v6444_v63  ;;  %v1771_v63 = vstv %s5182_s5  ;;  %s8593_s5 = sld [smem:[#allocation2 + $0x8]] }
 0x1e2   :  { %v1772_v36 = vmul.f32 %v1771_v63, %v6331_v16  ;;  %v1773_v44 = vmul.f32 %v1771_v63, %v6336_v42 }
 0x1e4   :  { %1688 = vrot.lane.b32.xlu1 %v1673_v58, %s5544_s25  ;;  %1742 = vrot.lane.b32.xlu2 %v1726_v2, %s5544_s25  ;;  %v1712_v58 = vmul.f32 %v1703_v60, %v6374_v13  ;;  %v1731_v2 = vsel %vm1428_vm1, %v1725_v56, %v1730_v37  ;;  %v1737_v56 = vsel %vm1428_vm1, %v1732_v24, %v1736_v7  ;;  %v1792_v24 = vrot.slane %v1772_v36, 2 }
 0x1e5   :  { %1686 = vrot.lane.b32.xlu0 %v1671_v9, %s5544_s25  ;;  %v1734_v9 = vrot.slane %v1710_v29, 2  ;;  %v1775_v29 = vmul.f32 %v6180_v1, %v1771_v63 }
 0x1e6   :  { %v6456_v17 = vpop.permute.xlu1 %1192  ;;  %v6458_v8 = vpop.permute.xlu2 %1264  ;;  %v1738_v31 = vrot.slane %v1712_v58, 2 }
 0x1e7   :  { %11931 = vst [vmem:[#allocation136_spill] sm:$0xff] %v6456_v17  ;;  %v6460_v26 = vpop.permute.xlu0 %1190  ;;  %v1735_v58 = vsel %vm1428_vm1, %v1730_v37, %v1734_v9  ;;  %v1777_v37 = vmul.f32 %v6198_v0, %v1771_v63 }
 0x1e8   :  { %11932 = vst [vmem:[#allocation137_spill] sm:$0xff] %v6458_v8  ;;  %v1739_v34 = vsel %vm1428_vm1, %v1734_v9, %v1738_v31  ;;  %v1795_v31 = vrot.slane %v1773_v44, 2 }
 0x1e9   :  { %11933 = vst [vmem:[#allocation138_spill] sm:$0xff] %v6460_v26 }
 0x1ec   :  { %1746 = vrot.lane.b32.xlu1 %v1731_v2, %s5544_s25  ;;  %1748 = vrot.lane.b32.xlu2 %v1733_v25, %s5544_s25  ;;  %v1774_v2 = vmul.f32 %v6173_v28, %v1771_v63  ;;  %v1713_v25 = vmul.f32 %v1703_v60, %v6379_v4 }
 0x1ed   :  { %1744 = vrot.lane.b32.xlu0 %v1729_v59, %s5544_s25 }
 0x1ee   :  { %v6471_v26 = vpop.permute.xlu1 %1250  ;;  %v6473_v17 = vpop.permute.xlu2 %1322  ;;  %v1793_v59 = vrot.slane %v1774_v2, 2  ;;  %v1800_v2 = vrot.slane %v1777_v37, 2  ;;  %v1781_v37 = vmul.f32 %v1771_v63, %v6379_v4 }
 0x1ef   :  { %11934 = vst [vmem:[#allocation139_spill] sm:$0xff] %v6471_v26  ;;  %v6475_v15 = vpop.permute.xlu0 %1196  ;;  %v1740_v26 = vrot.slane %v1713_v25, 2 }
 0x1f0   :  { %11935 = vst [vmem:[#allocation140_spill] sm:$0xff] %v6473_v17  ;;  %v1794_v60 = vsel %vm1428_vm1, %v1792_v24, %v1793_v59 }
 0x1f1   :  { %11936 = vst [vmem:[#allocation141_spill] sm:$0xff] %v6475_v15  ;;  %v1796_v15 = vrot.slane %v1775_v29, 2  ;;  %v1741_v36 = vsel %vm1428_vm1, %v1736_v7, %v1740_v26  ;;  %v1780_v7 = vmul.f32 %v1771_v63, %v6374_v13 }
 0x1f3   :  { %v1797_v9 = vsel %vm1428_vm1, %v1795_v31, %v1796_v15  ;;  %v1801_v31 = vsel %vm1428_vm1, %v1796_v15, %v1800_v2  ;;  %v1839_v15 = vstv %s5183_s6  ;;  %s5278_s6 = sld [smem:[#allocation2 + $0x16]] }
 0x1f4   :  { %1752 = vrot.lane.b32.xlu1 %v1737_v56, %s5544_s25  ;;  %1754 = vrot.lane.b32.xlu2 %v1739_v34, %s5544_s25  ;;  %v1776_v56 = vmul.f32 %v6129_v40, %v1771_v63  ;;  %v1778_v34 = vmul.f32 %v6207_v46, %v1771_v63 }
 0x1f5   :  { %1750 = vrot.lane.b32.xlu0 %v1735_v58, %s5544_s25 }
 0x1f6   :  { %v6488_v17 = vpop.permute.xlu1 %1256  ;;  %v6490_v8 = vpop.permute.xlu2 %1328  ;;  %v1798_v44 = vrot.slane %v1776_v56, 2  ;;  %v1802_v29 = vrot.slane %v1778_v34, 2  ;;  %v1806_v56 = vrot.slane %v1780_v7, 2  ;;  %v1844_v7 = vmul.f32 %v6129_v40, %v1839_v15 }
 0x1f7   :  { %11937 = vst [vmem:[#allocation142_spill] sm:$0xff] %v6488_v17  ;;  %v6492_v35 = vpop.permute.xlu0 %1254 }
 0x1f8   :  { %11938 = vst [vmem:[#allocation143_spill] sm:$0xff] %v6490_v8  ;;  %v1803_v26 = vsel %vm1428_vm1, %v1798_v44, %v1802_v29 }
 0x1f9   :  { %11939 = vst [vmem:[#allocation144_spill] sm:$0xff] %v6492_v35  ;;  %v7318_v53 = vstv %s5278_s6  ;;  %s9016_s6 = sld [smem:[#allocation4]] }
 0x1fc   :  { %1810 = vrot.lane.b32.xlu1 %v1794_v60, %s5544_s25  ;;  %1812 = vrot.lane.b32.xlu2 %v1797_v9, %s5544_s25  ;;  %v1779_v60 = vmul.f32 %v6226_v48, %v1771_v63  ;;  %v1799_v9 = vsel %vm1428_vm1, %v1793_v59, %v1798_v44  ;;  %v1841_v63 = vmul.f32 %v1839_v15, %v6336_v42 }
 0x1fd   :  { %1756 = vrot.lane.b32.xlu0 %v1741_v36, %s5544_s25  ;;  %v1808_v36 = vrot.slane %v1781_v37, 2  ;;  %v1843_v59 = vmul.f32 %v6180_v1, %v1839_v15  ;;  %v1807_v44 = vsel %vm1428_vm1, %v1802_v29, %v1806_v56  ;;  %v1840_v37 = vmul.f32 %v1839_v15, %v6331_v16 }
 0x1fe   :  { %v6503_v58 = vpop.permute.xlu1 %1262  ;;  %v6505_v25 = vpop.permute.xlu2 %1386  ;;  %v1804_v34 = vrot.slane %v1779_v60, 2  ;;  %v1866_v29 = vrot.slane %v1844_v7, 2 }
 0x1ff   :  { %11940 = vst [vmem:[#allocation145_spill] sm:$0xff] %v6503_v58  ;;  %v6507_v24 = vpop.permute.xlu0 %1260 }
 0x200   :  { %11941 = vst [vmem:[#allocation146_spill] sm:$0xff] %v6505_v25  ;;  %v1805_v60 = vsel %vm1428_vm1, %v1800_v2, %v1804_v34 }
 0x201   :  { %11942 = vst [vmem:[#allocation147_spill] sm:$0xff] %v6507_v24 }
 0x204   :  { %1816 = vrot.lane.b32.xlu1 %v1801_v31, %s5544_s25  ;;  %1818 = vrot.lane.b32.xlu2 %v1803_v26, %s5544_s25  ;;  %v1809_v31 = vsel %vm1428_vm1, %v1804_v34, %v1808_v36  ;;  %v1842_v26 = vmul.f32 %v6173_v28, %v1839_v15 }
 0x205   :  { %1814 = vrot.lane.b32.xlu0 %v1799_v9, %s5544_s25  ;;  %v1863_v9 = vrot.slane %v1841_v63, 2  ;;  %v1845_v63 = vmul.f32 %v6198_v0, %v1839_v15 }
 0x206   :  { %v6518_v8 = vpop.permute.xlu1 %1320  ;;  %v6520_v25 = vpop.permute.xlu2 %1392 }
 0x207   :  { %11943 = vst [vmem:[#allocation148_spill] sm:$0xff] %v6518_v8  ;;  %v6522_v24 = vpop.permute.xlu0 %1318  ;;  %v1860_v8 = vrot.slane %v1840_v37, 2  ;;  %v1868_v7 = vrot.slane %v1845_v63, 2  ;;  %v1848_v63 = vmul.f32 %v1839_v15, %v6374_v13 }
 0x208   :  { %11944 = vst [vmem:[#allocation149_spill] sm:$0xff] %v6520_v25  ;;  %v1864_v25 = vrot.slane %v1843_v59, 2  ;;  %v1847_v59 = vmul.f32 %v6226_v48, %v1839_v15 }
 0x209   :  { %11945 = vst [vmem:[#allocation150_spill] sm:$0xff] %v6522_v24  ;;  %v1861_v24 = vrot.slane %v1842_v26, 2 }
 0x20a   :  { %v1865_v2 = vsel %vm1428_vm1, %v1863_v9, %v1864_v25 }
 0x20b   :  { %v1867_v34 = vsel %vm1428_vm1, %v1861_v24, %v1866_v29 }
 0x20c   :  { %1822 = vrot.lane.b32.xlu1 %v1807_v44, %s5544_s25  ;;  %1824 = vrot.lane.b32.xlu2 %v1809_v31, %s5544_s25  ;;  %v1846_v44 = vmul.f32 %v6207_v46, %v1839_v15  ;;  %v1862_v31 = vsel %vm1428_vm1, %v1860_v8, %v1861_v24 }
 0x20d   :  { %1820 = vrot.lane.b32.xlu0 %v1805_v60, %s5544_s25  ;;  %v1872_v60 = vrot.slane %v1847_v59, 2 }
 0x20e   :  { %v6535_v56 = vpop.permute.xlu1 %1326  ;;  %v6537_v36 = vpop.permute.xlu2 %1398  ;;  %v1870_v26 = vrot.slane %v1846_v44, 2  ;;  %v1869_v44 = vsel %vm1428_vm1, %v1864_v25, %v1868_v7 }
 0x20f   :  { %11946 = vst [vmem:[#allocation151_spill] sm:$0xff] %v6535_v56  ;;  %v6539_v58 = vpop.permute.xlu0 %1324  ;;  %v1873_v24 = vsel %vm1428_vm1, %v1868_v7, %v1872_v60 }
 0x210   :  { %11947 = vst [vmem:[#allocation152_spill] sm:$0xff] %v6537_v36  ;;  %v1907_v36 = vstv %s5184_s7  ;;  %v1871_v8 = vsel %vm1428_vm1, %v1866_v29, %v1870_v26  ;;  %s5279_s7 = sld [smem:[#allocation2 + $0x1f]] }
 0x211   :  { %11948 = vst [vmem:[#allocation153_spill] sm:$0xff] %v6539_v58  ;;  %v1849_v58 = vmul.f32 %v1839_v15, %v6379_v4  ;;  %v1912_v7 = vmul.f32 %v6129_v40, %v1907_v36 }
 0x213   :  { %v1876_v59 = vrot.slane %v1849_v58, 2  ;;  %v1913_v58 = vmul.f32 %v6198_v0, %v1907_v36 }
 0x214   :  { %1880 = vrot.lane.b32.xlu1 %v1865_v2, %s5544_s25  ;;  %1882 = vrot.lane.b32.xlu2 %v1867_v34, %s5544_s25  ;;  %v1908_v2 = vmul.f32 %v1907_v36, %v6331_v16  ;;  %v1910_v34 = vmul.f32 %v6173_v28, %v1907_v36 }
 0x215   :  { %1878 = vrot.lane.b32.xlu0 %v1862_v31, %s5544_s25  ;;  %v1877_v25 = vsel %vm1428_vm1, %v1872_v60, %v1876_v59 }
 0x216   :  { %v6550_v37 = vpop.permute.xlu1 %1332  ;;  %v6552_v9 = vpop.permute.xlu2 %1608  ;;  %v1928_v31 = vrot.slane %v1908_v2, 2  ;;  %v1909_v2 = vmul.f32 %v1907_v36, %v6336_v42 }
 0x217   :  { %11949 = vst [vmem:[#allocation154_spill] sm:$0xff] %v6550_v37  ;;  %v6554_v56 = vpop.permute.xlu0 %1330 }
 0x218   :  { %11950 = vst [vmem:[#allocation155_spill] sm:$0xff] %v6552_v9  ;;  %v1874_v9 = vrot.slane %v1848_v63, 2 }
 0x219   :  { %11951 = vst [vmem:[#allocation156_spill] sm:$0xff] %v6554_v56  ;;  %v1929_v56 = vrot.slane %v1910_v34, 2  ;;  %v1934_v34 = vrot.slane %v1912_v7, 2 }
 0x21b   :  { %v1930_v15 = vsel %vm1428_vm1, %v1928_v31, %v1929_v56  ;;  %v1931_v31 = vrot.slane %v1909_v2, 2 }
 0x21c   :  { %1886 = vrot.lane.b32.xlu1 %v1871_v8, %s5544_s25  ;;  %1888 = vrot.lane.b32.xlu2 %v1873_v24, %s5544_s25  ;;  %v1911_v8 = vmul.f32 %v6180_v1, %v1907_v36  ;;  %v1875_v24 = vsel %vm1428_vm1, %v1870_v26, %v1874_v9  ;;  %v1915_v26 = vmul.f32 %v6226_v48, %v1907_v36 }
 0x21d   :  { %1884 = vrot.lane.b32.xlu0 %v1869_v44, %s5544_s25  ;;  %v1936_v44 = vrot.slane %v1913_v58, 2  ;;  %v1914_v9 = vmul.f32 %v6207_v46, %v1907_v36 }
 0x21e   :  { %v6566_v29 = vpop.permute.xlu1 %1390  ;;  %v6568_v37 = vpop.permute.xlu2 %1614  ;;  %v1932_v60 = vrot.slane %v1911_v8, 2  ;;  %v1940_v58 = vrot.slane %v1915_v26, 2 }
 0x21f   :  { %11952 = vst [vmem:[#allocation157_spill] sm:$0xff] %v6566_v29  ;;  %v6570_v35 = vpop.permute.xlu0 %1388 }
 0x220   :  { %11953 = vst [vmem:[#allocation158_spill] sm:$0xff] %v6568_v37  ;;  %v1937_v7 = vsel %vm1428_vm1, %v1932_v60, %v1936_v44  ;;  %v1933_v8 = vsel %vm1428_vm1, %v1931_v31, %v1932_v60 }
 0x221   :  { %11954 = vst [vmem:[#allocation159_spill] sm:$0xff] %v6570_v35  ;;  %v1975_v35 = vstv %s5185_s8  ;;  %s5280_s8 = sld [smem:[#allocation2 + $0x28]] }
 0x222   :  { %v1976_v31 = vmul.f32 %v1975_v35, %v6331_v16  ;;  %v1977_v26 = vmul.f32 %v1975_v35, %v6336_v42 }
 0x224   :  { %1892 = vrot.lane.b32.xlu1 %v1877_v25, %s5544_s25  ;;  %1946 = vrot.lane.b32.xlu2 %v1930_v15, %s5545_s14  ;;  %v1916_v25 = vmul.f32 %v1907_v36, %v6374_v13  ;;  %v1935_v15 = vsel %vm1428_vm1, %v1929_v56, %v1934_v34  ;;  %v1941_v56 = vsel %vm1428_vm1, %v1936_v44, %v1940_v58  ;;  %v1996_v44 = vrot.slane %v1976_v31, 2 }
 0x225   :  { %1890 = vrot.lane.b32.xlu0 %v1875_v24, %s5544_s25  ;;  %v1938_v24 = vrot.slane %v1914_v9, 2  ;;  %v1979_v9 = vmul.f32 %v6180_v1, %v1975_v35 }
 0x226   :  { %v6582_v63 = vpop.permute.xlu1 %1396  ;;  %v6584_v59 = vpop.permute.xlu2 %1620  ;;  %v1942_v2 = vrot.slane %v1916_v25, 2 }
 0x227   :  { %11955 = vst [vmem:[#allocation160_spill] sm:$0xff] %v6582_v63  ;;  %v6586_v29 = vpop.permute.xlu0 %1394  ;;  %v1939_v25 = vsel %vm1428_vm1, %v1934_v34, %v1938_v24  ;;  %v1981_v34 = vmul.f32 %v6198_v0, %v1975_v35 }
 0x228   :  { %11956 = vst [vmem:[#allocation161_spill] sm:$0xff] %v6584_v59  ;;  %v1943_v60 = vsel %vm1428_vm1, %v1938_v24, %v1942_v2  ;;  %v1999_v2 = vrot.slane %v1977_v26, 2 }
 0x229   :  { %11957 = vst [vmem:[#allocation162_spill] sm:$0xff] %v6586_v29 }
 0x22c   :  { %1950 = vrot.lane.b32.xlu1 %v1935_v15, %s5545_s14  ;;  %1952 = vrot.lane.b32.xlu2 %v1937_v7, %s5545_s14  ;;  %v1978_v15 = vmul.f32 %v6173_v28, %v1975_v35  ;;  %v1917_v7 = vmul.f32 %v1907_v36, %v6379_v4 }
 0x22d   :  { %1948 = vrot.lane.b32.xlu0 %v1933_v8, %s5545_s14 }
 0x22e   :  { %v6597_v29 = vpop.permute.xlu1 %1606  ;;  %v6599_v63 = vpop.permute.xlu2 %1678  ;;  %v1997_v8 = vrot.slane %v1978_v15, 2  ;;  %v2004_v15 = vrot.slane %v1981_v34, 2  ;;  %v1985_v34 = vmul.f32 %v1975_v35, %v6379_v4 }
 0x22f   :  { %11958 = vst [vmem:[#allocation163_spill] sm:$0xff] %v6597_v29  ;;  %v6601_v37 = vpop.permute.xlu0 %1400  ;;  %v1944_v29 = vrot.slane %v1917_v7, 2 }
 0x230   :  { %11959 = vst [vmem:[#allocation164_spill] sm:$0xff] %v6599_v63  ;;  %v2000_v63 = vrot.slane %v1979_v9, 2  ;;  %v1998_v36 = vsel %vm1428_vm1, %v1996_v44, %v1997_v8 }
 0x231   :  { %11960 = vst [vmem:[#allocation165_spill] sm:$0xff] %v6601_v37  ;;  %v1945_v31 = vsel %vm1428_vm1, %v1940_v58, %v1944_v29  ;;  %v1984_v58 = vmul.f32 %v1975_v35, %v6374_v13 }
 0x232   :  { %v2001_v24 = vsel %vm1428_vm1, %v1999_v2, %v2000_v63  ;;  %v2005_v2 = vsel %vm1428_vm1, %v2000_v63, %v2004_v15  ;;  %v2043_v63 = vstv %s5186_s9  ;;  %s5281_s9 = sld [smem:[#allocation2 + $0x5]] }
 0x234   :  { %1956 = vrot.lane.b32.xlu1 %v1941_v56, %s5545_s14  ;;  %1958 = vrot.lane.b32.xlu2 %v1943_v60, %s5545_s14  ;;  %v1980_v56 = vmul.f32 %v6129_v40, %v1975_v35  ;;  %v1982_v60 = vmul.f32 %v6207_v46, %v1975_v35 }
 0x235   :  { %1954 = vrot.lane.b32.xlu0 %v1939_v25, %s5545_s14 }
 0x236   :  { %v6614_v37 = vpop.permute.xlu1 %1612  ;;  %v6616_v59 = vpop.permute.xlu2 %1684  ;;  %v2002_v26 = vrot.slane %v1980_v56, 2  ;;  %v2006_v9 = vrot.slane %v1982_v60, 2  ;;  %v2010_v56 = vrot.slane %v1984_v58, 2  ;;  %v2048_v58 = vmul.f32 %v6129_v40, %v2043_v63 }
 0x237   :  { %11961 = vst [vmem:[#allocation166_spill] sm:$0xff] %v6614_v37  ;;  %v6618_v17 = vpop.permute.xlu0 %1610 }
 0x238   :  { %11962 = vst [vmem:[#allocation167_spill] sm:$0xff] %v6616_v59  ;;  %v2007_v29 = vsel %vm1428_vm1, %v2002_v26, %v2006_v9  ;;  %v7528_v52 = vstv %s5281_s9  ;;  %s5293_s9 = sld [smem:[#allocation2 + $0x19]] }
 0x239   :  { %11963 = vst [vmem:[#allocation168_spill] sm:$0xff] %v6618_v17 }
 0x23c   :  { %2014 = vrot.lane.b32.xlu1 %v1998_v36, %s5545_s14  ;;  %2016 = vrot.lane.b32.xlu2 %v2001_v24, %s5545_s14  ;;  %v1983_v36 = vmul.f32 %v6226_v48, %v1975_v35  ;;  %v2003_v24 = vsel %vm1428_vm1, %v1997_v8, %v2002_v26  ;;  %v2045_v35 = vmul.f32 %v2043_v63, %v6336_v42 }
 0x23d   :  { %1960 = vrot.lane.b32.xlu0 %v1945_v31, %s5545_s14  ;;  %v2012_v31 = vrot.slane %v1985_v34, 2  ;;  %v2047_v8 = vmul.f32 %v6180_v1, %v2043_v63  ;;  %v2011_v26 = vsel %vm1428_vm1, %v2006_v9, %v2010_v56  ;;  %v2044_v34 = vmul.f32 %v2043_v63, %v6331_v16 }
 0x23e   :  { %v6629_v25 = vpop.permute.xlu1 %1618  ;;  %v6631_v7 = vpop.permute.xlu2 %1742  ;;  %v2008_v60 = vrot.slane %v1983_v36, 2  ;;  %v2070_v9 = vrot.slane %v2048_v58, 2 }
 0x23f   :  { %11964 = vst [vmem:[#allocation169_spill] sm:$0xff] %v6629_v25  ;;  %v6633_v44 = vpop.permute.xlu0 %1616 }
 0x240   :  { %11965 = vst [vmem:[#allocation170_spill] sm:$0xff] %v6631_v7  ;;  %v2009_v36 = vsel %vm1428_vm1, %v2004_v15, %v2008_v60 }
 0x241   :  { %11966 = vst [vmem:[#allocation171_spill] sm:$0xff] %v6633_v44 }
 0x244   :  { %2020 = vrot.lane.b32.xlu1 %v2005_v2, %s5545_s14  ;;  %2022 = vrot.lane.b32.xlu2 %v2007_v29, %s5545_s14  ;;  %v2013_v2 = vsel %vm1428_vm1, %v2008_v60, %v2012_v31  ;;  %v2046_v29 = vmul.f32 %v6173_v28, %v2043_v63 }
 0x245   :  { %2018 = vrot.lane.b32.xlu0 %v2003_v24, %s5545_s14  ;;  %v2067_v24 = vrot.slane %v2045_v35, 2  ;;  %v2049_v35 = vmul.f32 %v6198_v0, %v2043_v63 }
 0x246   :  { %v6644_v59 = vpop.permute.xlu1 %1676  ;;  %v6646_v7 = vpop.permute.xlu2 %1748  ;;  %v2065_v1 = vrot.slane %v2046_v29, 2 }
 0x247   :  { %11967 = vst [vmem:[#allocation172_spill] sm:$0xff] %v6644_v59  ;;  %v6648_v44 = vpop.permute.xlu0 %1674  ;;  %v2064_v59 = vrot.slane %v2044_v34, 2  ;;  %v2072_v58 = vrot.slane %v2049_v35, 2  ;;  %v2052_v35 = vmul.f32 %v2043_v63, %v6374_v13 }
 0x248   :  { %11968 = vst [vmem:[#allocation173_spill] sm:$0xff] %v6646_v7  ;;  %v2071_v60 = vsel %vm1428_vm1, %v2065_v1, %v2070_v9 }
 0x249   :  { %11969 = vst [vmem:[#allocation174_spill] sm:$0xff] %v6648_v44  ;;  %v2068_v44 = vrot.slane %v2047_v8, 2  ;;  %v2051_v8 = vmul.f32 %v6226_v48, %v2043_v63 }
 0x24b   :  { %v2069_v15 = vsel %vm1428_vm1, %v2067_v24, %v2068_v44 }
 0x24c   :  { %2026 = vrot.lane.b32.xlu1 %v2011_v26, %s5545_s14  ;;  %2028 = vrot.lane.b32.xlu2 %v2013_v2, %s5545_s14  ;;  %v2050_v26 = vmul.f32 %v6207_v46, %v2043_v63  ;;  %v2066_v2 = vsel %vm1428_vm1, %v2064_v59, %v2065_v1  ;;  %v6680_v46 = vstv %s5187_s10  ;;  %s5282_s10 = sld [smem:[#allocation2 + $0xe]] }
 0x24d   :  { %2024 = vrot.lane.b32.xlu0 %v2009_v36, %s5545_s14  ;;  %v2076_v36 = vrot.slane %v2051_v8, 2 }
 0x24e   :  { %v6661_v56 = vpop.permute.xlu1 %1682  ;;  %v6663_v31 = vpop.permute.xlu2 %1754  ;;  %v2074_v29 = vrot.slane %v2050_v26, 2  ;;  %v2073_v26 = vsel %vm1428_vm1, %v2068_v44, %v2072_v58 }
 0x24f   :  { %11970 = vst [vmem:[#allocation175_spill] sm:$0xff] %v6661_v56  ;;  %v6665_v40 = vpop.permute.xlu0 %1680  ;;  %v2077_v1 = vsel %vm1428_vm1, %v2072_v58, %v2076_v36  ;;  %v5457_v58 = vld [vmem:[%s11610_s2 + $0x20] sm:$0xff] }
 0x250   :  { %11971 = vst [vmem:[#allocation176_spill] sm:$0xff] %v6663_v31  ;;  %v2075_v59 = vsel %vm1428_vm1, %v2070_v9, %v2074_v29 }
 0x251   :  { %11972 = vst [vmem:[#allocation177_spill] sm:$0xff] %v6665_v40  ;;  %v2053_v40 = vmul.f32 %v2043_v63, %v6379_v4  ;;  %v5456_v63 = vld [vmem:[%s11610_s2 + $0x30] sm:$0xff] }
 0x253   :  { %v2080_v8 = vrot.slane %v2053_v40, 2  ;;  %v2116_v40 = vmul.f32 %v5456_v63, %v6680_v46 }
 0x254   :  { %2084 = vrot.lane.b32.xlu1 %v2069_v15, %s5545_s14  ;;  %2086 = vrot.lane.b32.xlu2 %v2071_v60, %s5545_s14  ;;  %v2112_v15 = vmul.f32 %v6680_v46, %v6331_v16  ;;  %v2114_v60 = vmul.f32 %v6173_v28, %v6680_v46 }
 0x255   :  { %2082 = vrot.lane.b32.xlu0 %v2066_v2, %s5545_s14  ;;  %v2081_v28 = vsel %vm1428_vm1, %v2076_v36, %v2080_v8  ;;  %v2113_v36 = vmul.f32 %v6680_v46, %v6336_v42 }
 0x256   :  { %v6676_v34 = vpop.permute.xlu1 %1688  ;;  %v6678_v24 = vpop.permute.xlu2 %1812  ;;  %v2132_v9 = vrot.slane %v2112_v15, 2  ;;  %v2133_v2 = vrot.slane %v2114_v60, 2  ;;  %v2138_v60 = vrot.slane %v2116_v40, 2 }
 0x257   :  { %11973 = vst [vmem:[#allocation178_spill] sm:$0xff] %v6676_v34  ;;  %v6682_v56 = vpop.permute.xlu0 %1686 }
 0x258   :  { %11974 = vst [vmem:[#allocation179_spill] sm:$0xff] %v6678_v24  ;;  %v2078_v24 = vrot.slane %v2052_v35, 2  ;;  %v2134_v44 = vsel %vm1428_vm1, %v2132_v9, %v2133_v2  ;;  %v2139_v40 = vsel %vm1428_vm1, %v2133_v2, %v2138_v60 }
 0x259   :  { %11975 = vst [vmem:[#allocation180_spill] sm:$0xff] %v6682_v56 }
 0x25a   :  { %v2079_v15 = vsel %vm1428_vm1, %v2074_v29, %v2078_v24  ;;  %v2119_v29 = vmul.f32 %v6226_v48, %v6680_v46  ;;  %v5458_v24 = vld [vmem:[%s11610_s2 + $0x48] sm:$0xff] }
 0x25c   :  { %2090 = vrot.lane.b32.xlu1 %v2075_v59, %s5545_s14  ;;  %2092 = vrot.lane.b32.xlu2 %v2077_v1, %s5545_s14  ;;  %v2115_v59 = vmul.f32 %v5457_v58, %v6680_v46  ;;  %v2117_v1 = vmul.f32 %v6198_v0, %v6680_v46  ;;  %v2144_v48 = vrot.slane %v2119_v29, 2  ;;  %v5459_v29 = vld [vmem:[%s11610_s2 + $0x18] sm:$0xff] }
 0x25d   :  { %2088 = vrot.lane.b32.xlu0 %v2073_v26, %s5545_s14 }
 0x25e   :  { %v6696_v56 = vpop.permute.xlu1 %1746  ;;  %v6698_v34 = vpop.permute.xlu2 %1818  ;;  %v2136_v26 = vrot.slane %v2115_v59, 2  ;;  %v2140_v35 = vrot.slane %v2117_v1, 2 }
 0x25f   :  { %11976 = vst [vmem:[#allocation181_spill] sm:$0xff] %v6696_v56  ;;  %v6700_v31 = vpop.permute.xlu0 %1744 }
 0x260   :  { %11977 = vst [vmem:[#allocation182_spill] sm:$0xff] %v6698_v34  ;;  %v2135_v34 = vrot.slane %v2113_v36, 2  ;;  %v2141_v59 = vsel %vm1428_vm1, %v2136_v26, %v2140_v35  ;;  %v2145_v2 = vsel %vm1428_vm1, %v2140_v35, %v2144_v48 }
 0x261   :  { %11978 = vst [vmem:[#allocation183_spill] sm:$0xff] %v6700_v31 }
 0x262   :  { %v2137_v1 = vsel %vm1428_vm1, %v2135_v34, %v2136_v26 }
 0x264   :  { %2096 = vrot.lane.b32.xlu1 %v2081_v28, %s5545_s14  ;;  %2150 = vrot.lane.b32.xlu2 %v2134_v44, %s5545_s14  ;;  %v2118_v28 = vmul.f32 %v5458_v24, %v6680_v46  ;;  %v2120_v44 = vmul.f32 %v6680_v46, %v6374_v13 }
 0x265   :  { %2094 = vrot.lane.b32.xlu0 %v2079_v15, %s5545_s14 }
 0x266   :  { %v6720_v8 = vpop.permute.xlu1 %1752  ;;  %v6722_v9 = vpop.permute.xlu2 %1824  ;;  %v2142_v15 = vrot.slane %v2118_v28, 2  ;;  %v2146_v36 = vrot.slane %v2120_v44, 2 }
 0x267   :  { %11979 = vst [vmem:[#allocation184_spill] sm:$0xff] %v6720_v8  ;;  %v6724_v0 = vpop.permute.xlu0 %1750  ;;  %v2179_v8 = vstv %s5188_s16  ;;  %s39_s16 = sld [smem:[#allocation4]] }
 0x268   :  { %11980 = vst [vmem:[#allocation185_spill] sm:$0xff] %v6722_v9  ;;  %v2147_v34 = vsel %vm1428_vm1, %v2142_v15, %v2146_v36  ;;  %v2180_v26 = vmul.f32 %v2179_v8, %v6331_v16  ;;  %v2182_v28 = vmul.f32 %v5459_v29, %v2179_v8  ;;  %v2181_v44 = vmul.f32 %v2179_v8, %v6336_v42 }
 0x269   :  { %11981 = vst [vmem:[#allocation186_spill] sm:$0xff] %v6724_v0 }
 0x26a   :  { %v2200_v16 = vrot.slane %v2180_v26, 2  ;;  %v2201_v35 = vrot.slane %v2182_v28, 2  ;;  %v2203_v36 = vrot.slane %v2181_v44, 2  ;;  %v2186_v26 = vmul.f32 %v5458_v24, %v2179_v8 }
 0x26c   :  { %2154 = vrot.lane.b32.xlu1 %v2139_v40, %s5545_s14  ;;  %2156 = vrot.lane.b32.xlu2 %v2141_v59, %s5545_s14  ;;  %v2183_v40 = vmul.f32 %v5457_v58, %v2179_v8  ;;  %v2143_v59 = vsel %vm1428_vm1, %v2138_v60, %v2142_v15  ;;  %v2202_v15 = vsel %vm1428_vm1, %v2200_v16, %v2201_v35 }
 0x26d   :  { %2152 = vrot.lane.b32.xlu0 %v2137_v1, %s5545_s14  ;;  %v2121_v1 = vmul.f32 %v6680_v46, %v6379_v4  ;;  %v5460_v46 = vld [vmem:[%s11610_s2 + $0x38] sm:$0xff] }
 0x26e   :  { %v6740_v9 = vpop.permute.xlu1 %1810  ;;  %v6742_v0 = vpop.permute.xlu2 %1882  ;;  %v2185_v60 = vmul.f32 %v5460_v46, %v2179_v8 }
 0x26f   :  { %11982 = vst [vmem:[#allocation187_spill] sm:$0xff] %v6740_v9  ;;  %v6744_v31 = vpop.permute.xlu0 %1756  ;;  %v2148_v42 = vrot.slane %v2121_v1, 2 }
 0x270   :  { %11983 = vst [vmem:[#allocation188_spill] sm:$0xff] %v6742_v0  ;;  %v2204_v0 = vrot.slane %v2183_v40, 2  ;;  %v2208_v44 = vrot.slane %v2185_v60, 2  ;;  %v2189_v60 = vmul.f32 %v2179_v8, %v6379_v4 }
 0x271   :  { %11984 = vst [vmem:[#allocation189_spill] sm:$0xff] %v6744_v31  ;;  %v2149_v28 = vsel %vm1428_vm1, %v2144_v48, %v2148_v42  ;;  %v2188_v48 = vmul.f32 %v2179_v8, %v6374_v13 }
 0x274   :  { %2160 = vrot.lane.b32.xlu1 %v2145_v2, %s5545_s14  ;;  %2162 = vrot.lane.b32.xlu2 %v2147_v34, %s5545_s14  ;;  %v2205_v2 = vsel %vm1428_vm1, %v2203_v36, %v2204_v0  ;;  %v2184_v34 = vmul.f32 %v5456_v63, %v2179_v8  ;;  %v2209_v63 = vsel %vm1428_vm1, %v2204_v0, %v2208_v44  ;;  %v5461_v36 = vld [vmem:[%s11610_s2 + $0x50] sm:$0xff]  ;;  %v2214_v0 = vrot.slane %v2188_v48, 2 }
 0x275   :  { %2158 = vrot.lane.b32.xlu0 %v2143_v59, %s5545_s14  ;;  %v2210_v59 = vrot.slane %v2186_v26, 2  ;;  %v2187_v42 = vmul.f32 %v5461_v36, %v2179_v8  ;;  %v6822_v48 = vld [vmem:[%s11610_s2 + $0x10] sm:$0xff] }
 0x276   :  { %v6759_v9 = vpop.permute.xlu1 %1816  ;;  %v6761_v29 = vpop.permute.xlu2 %1888  ;;  %v2206_v40 = vrot.slane %v2184_v34, 2  ;;  %v2216_v34 = vrot.slane %v2189_v60, 2 }
 0x277   :  { %11985 = vst [vmem:[#allocation190_spill] sm:$0xff] %v6759_v9  ;;  %v6763_v58 = vpop.permute.xlu0 %1814  ;;  %v2215_v4 = vsel %vm1428_vm1, %v2210_v59, %v2214_v0  ;;  %v6838_v0 = vld [vmem:[%s11610_s2 + $0x28] sm:$0xff] }
 0x278   :  { %11986 = vst [vmem:[#allocation191_spill] sm:$0xff] %v6761_v29  ;;  %v2211_v24 = vsel %vm1428_vm1, %v2206_v40, %v2210_v59  ;;  %v6813_v59 = vld [vmem:[%s11610_s2 + $0x20] sm:$0xff]  ;;  %v6876_v29 = vstv %s5264_s11  ;;  %s5283_s11 = sld [smem:[#allocation2 + $0x17]] }
 0x279   :  { %11987 = vst [vmem:[#allocation192_spill] sm:$0xff] %v6763_v58  ;;  %v2806_v58 = vmul.f32 %v6876_v29, %v6838_v0 }
 0x27c   :  { %2218 = vrot.lane.b32.xlu1 %v2202_v15, %s5545_s14  ;;  %2220 = vrot.lane.b32.xlu2 %v2205_v2, %s5545_s14  ;;  %v2207_v15 = vsel %vm1428_vm1, %v2201_v35, %v2206_v40  ;;  %v2212_v2 = vrot.slane %v2187_v42, 2  ;;  %v6806_v40 = vld [vmem:[%s11610_s2 + $0x8] sm:$0xff] }
 0x27d   :  { %2164 = vrot.lane.b32.xlu0 %v2149_v28, %s5545_s14 }
 0x27e   :  { %v6774_v1 = vpop.permute.xlu1 %1822  ;;  %v6776_v46 = vpop.permute.xlu2 %1946  ;;  %v2217_v8 = vsel %vm1428_vm1, %v2212_v2, %v2216_v34  ;;  %v2213_v35 = vsel %vm1428_vm1, %v2208_v44, %v2212_v2  ;;  %v6843_v2 = vld [vmem:[%s11610_s2 + $0x38] sm:$0xff]  ;;  %v6845_v34 = vstv %s5263_s29  ;;  %s5292_s29 = sld [smem:[#allocation2 + $0x10]] }
 0x27f   :  { %11988 = vst [vmem:[#allocation193_spill] sm:$0xff] %v6774_v1  ;;  %v6778_v16 = vpop.permute.xlu0 %1820  ;;  %v2759_v25 = vmul.f32 %v6845_v34, %v6813_v59 }
 0x280   :  { %11989 = vst [vmem:[#allocation194_spill] sm:$0xff] %v6776_v46 }
 0x281   :  { %11990 = vst [vmem:[#allocation195_spill] sm:$0xff] %v6778_v16 }
 0x284   :  { %2224 = vrot.lane.b32.xlu1 %v2209_v63, %s5545_s14  ;;  %2226 = vrot.lane.b32.xlu2 %v2211_v24, %s5545_s14  ;;  %v6808_v63 = vstv %s5261_s1  ;;  %s8219_s1 = sld [smem:[#allocation4 + $0x1]] }
 0x285   :  { %2222 = vrot.lane.b32.xlu0 %v2207_v15, %s5545_s14  ;;  %v2665_v42 = vmul.f32 %v6808_v63, %v6806_v40  ;;  %v2667_v60 = vmul.f32 %v6808_v63, %v6813_v59  ;;  %v2666_v15 = vmul.f32 %v6808_v63, %v6822_v48 }
 0x286   :  { %v6791_v13 = vpop.permute.xlu1 %1880  ;;  %v6793_v26 = vpop.permute.xlu2 %1952 }
 0x287   :  { %11991 = vst [vmem:[#allocation196_spill] sm:$0xff] %v6791_v13  ;;  %v6795_v28 = vpop.permute.xlu0 %1878  ;;  %v2805_v13 = vmul.f32 %v6876_v29, %v6813_v59 }
 0x288   :  { %11992 = vst [vmem:[#allocation197_spill] sm:$0xff] %v6793_v26 }
 0x289   :  { %11993 = vst [vmem:[#allocation198_spill] sm:$0xff] %v6795_v28 }
 0x28c   :  { %2230 = vrot.lane.b32.xlu1 %v2215_v4, %s5545_s14  ;;  %2232 = vrot.lane.b32.xlu2 %v2217_v8, %s5545_s14 }
 0x28d   :  { %2228 = vrot.lane.b32.xlu0 %v2213_v35, %s5545_s14  ;;  %v6854_v35 = vld [vmem:[%s11610_s2 + $0x40] sm:$0xff] }
 0x28e   :  { %v6815_v44 = vpop.permute.xlu1 %1886  ;;  %v6817_v24 = vpop.permute.xlu2 %1958  ;;  %v2670_v28 = vmul.f32 %v6808_v63, %v6854_v35 }
 0x28f   :  { %11994 = vst [vmem:[#allocation199_spill] sm:$0xff] %v6815_v44  ;;  %v6824_v36 = vpop.permute.xlu0 %1884  ;;  %v2762_v44 = vmul.f32 %v6845_v34, %v6854_v35 }
 0x290   :  { %11995 = vst [vmem:[#allocation200_spill] sm:$0xff] %v6817_v24 }
 0x291   :  { %11996 = vst [vmem:[#allocation201_spill] sm:$0xff] %v6824_v36 }
 0x294   :  { %2681 = vrot.lane.b32.xlu1 %v2665_v42, %s5544_s25  ;;  %2685 = vrot.lane.b32.xlu2 %v2667_v60, %s5544_s25  ;;  %v2668_v60 = vmul.f32 %v6808_v63, %v6838_v0 }
 0x295   :  { %2683 = vrot.lane.b32.xlu0 %v2666_v15, %s5544_s25  ;;  %v2761_v15 = vmul.f32 %v6845_v34, %v6843_v2 }
 0x296   :  { %v6847_v4 = vpop.permute.xlu1 %1892  ;;  %v6849_v8 = vpop.permute.xlu2 %2016 }
 0x297   :  { %11997 = vst [vmem:[#allocation202_spill] sm:$0xff] %v6847_v4  ;;  %v6856_v42 = vpop.permute.xlu0 %1890  ;;  %v6870_v4 = vld [vmem:[%s11610_s2 + $0x58] sm:$0xff] }
 0x298   :  { %11998 = vst [vmem:[#allocation203_spill] sm:$0xff] %v6849_v8  ;;  %v2672_v31 = vmul.f32 %v6808_v63, %v6870_v4  ;;  %v2810_v23 = vmul.f32 %v6876_v29, %v6870_v4 }
 0x299   :  { %11999 = vst [vmem:[#allocation204_spill] sm:$0xff] %v6856_v42 }
 0x29c   :  { %2687 = vrot.lane.b32.xlu1 %v2668_v60, %s5544_s25  ;;  %2781 = vrot.lane.b32.xlu2 %v2761_v15, %s5544_s25  ;;  %v2669_v60 = vmul.f32 %v6808_v63, %v6843_v2  ;;  %v2764_v15 = vmul.f32 %v6845_v34, %v6870_v4 }
 0x29d   :  { %2783 = vrot.lane.b32.xlu0 %v2762_v44, %s5544_s25  ;;  %v2803_v44 = vmul.f32 %v6876_v29, %v6806_v40 }
 0x29e   :  { %v6872_v42 = vpop.permute.xlu1 %1950  ;;  %v6874_v8 = vpop.permute.xlu2 %2022 }
 0x29f   :  { %12000 = vst [vmem:[#allocation205_spill] sm:$0xff] %v6872_v42  ;;  %v6878_v1 = vpop.permute.xlu0 %1948  ;;  %v7135_v42 = vstv %s5270_s0  ;;  %s9433_s0 = sld [smem:[#allocation2 + $0x18]] }
 0x2a0   :  { %12001 = vst [vmem:[#allocation206_spill] sm:$0xff] %v6874_v8 }
 0x2a1   :  { %12002 = vst [vmem:[#allocation207_spill] sm:$0xff] %v6878_v1 }
 0x2a4   :  { %2689 = vrot.lane.b32.xlu1 %v2669_v60, %s5544_s25  ;;  %2787 = vrot.lane.b32.xlu2 %v2764_v15, %s5544_s25  ;;  %v6907_v60 = vld [vmem:[%s11610_s2 + $0x50] sm:$0xff] }
 0x2a5   :  { %2819 = vrot.lane.b32.xlu0 %v2803_v44, %s5544_s25  ;;  %v2671_v9 = vmul.f32 %v6808_v63, %v6907_v60  ;;  %v2763_v17 = vmul.f32 %v6845_v34, %v6907_v60 }
 0x2a6   :  { %v6889_v8 = vpop.permute.xlu1 %1956  ;;  %v6891_v36 = vpop.permute.xlu2 %2028 }
 0x2a7   :  { %12003 = vst [vmem:[#allocation208_spill] sm:$0xff] %v6889_v8  ;;  %v6893_v16 = vpop.permute.xlu0 %1954 }
 0x2a8   :  { %12004 = vst [vmem:[#allocation209_spill] sm:$0xff] %v6891_v36 }
 0x2a9   :  { %12005 = vst [vmem:[#allocation210_spill] sm:$0xff] %v6893_v16 }
 0x2ac   :  { %2691 = vrot.lane.b32.xlu1 %v2670_v28, %s5544_s25  ;;  %2823 = vrot.lane.b32.xlu2 %v2805_v13, %s5544_s25  ;;  %v2808_v13 = vmul.f32 %v6876_v29, %v6854_v35  ;;  %v6924_v28 = vstv %s5265_s17  ;;  %s5294_s17 = sld [smem:[#allocation2 + $0x22]] }
 0x2ad   :  { %2825 = vrot.lane.b32.xlu0 %v2806_v58, %s5544_s25  ;;  %v2809_v58 = vmul.f32 %v6876_v29, %v6907_v60 }
 0x2ae   :  { %v6909_v15 = vpop.permute.xlu1 %2014  ;;  %v6911_v44 = vpop.permute.xlu2 %2086 }
 0x2af   :  { %12006 = vst [vmem:[#allocation211_spill] sm:$0xff] %v6909_v15  ;;  %v6913_v36 = vpop.permute.xlu0 %1960 }
 0x2b0   :  { %12007 = vst [vmem:[#allocation212_spill] sm:$0xff] %v6911_v44  ;;  %v2849_v44 = vmul.f32 %v6924_v28, %v6806_v40 }
 0x2b1   :  { %12008 = vst [vmem:[#allocation213_spill] sm:$0xff] %v6913_v36 }
 0x2b4   :  { %2693 = vrot.lane.b32.xlu1 %v2671_v9, %s5544_s25  ;;  %2829 = vrot.lane.b32.xlu2 %v2808_v13, %s5544_s25  ;;  %v2850_v9 = vmul.f32 %v6924_v28, %v6822_v48  ;;  %v6941_v13 = vstv %s5262_s18  ;;  %s8184_s18 = sld [smem:[#allocation2 + $0x9]] }
 0x2b5   :  { %2831 = vrot.lane.b32.xlu0 %v2809_v58, %s5544_s25  ;;  %v2711_v63 = vmul.f32 %v6941_v13, %v6806_v40 }
 0x2b6   :  { %v6926_v15 = vpop.permute.xlu1 %2020  ;;  %v6928_v24 = vpop.permute.xlu2 %2092 }
 0x2b7   :  { %12009 = vst [vmem:[#allocation214_spill] sm:$0xff] %v6926_v15  ;;  %v6930_v36 = vpop.permute.xlu0 %2018 }
 0x2b8   :  { %12010 = vst [vmem:[#allocation215_spill] sm:$0xff] %v6928_v24  ;;  %v2852_v24 = vmul.f32 %v6924_v28, %v6838_v0 }
 0x2b9   :  { %12011 = vst [vmem:[#allocation216_spill] sm:$0xff] %v6930_v36 }
 0x2bc   :  { %2695 = vrot.lane.b32.xlu1 %v2672_v31, %s5544_s25  ;;  %2865 = vrot.lane.b32.xlu2 %v2849_v44, %s5544_s25  ;;  %v2853_v31 = vmul.f32 %v6924_v28, %v6843_v2 }
 0x2bd   :  { %2867 = vrot.lane.b32.xlu0 %v2850_v9, %s5544_s25 }
 0x2be   :  { %v6943_v58 = vpop.permute.xlu1 %2026  ;;  %v6945_v36 = vpop.permute.xlu2 %2150 }
 0x2bf   :  { %12012 = vst [vmem:[#allocation217_spill] sm:$0xff] %v6943_v58  ;;  %v6947_v15 = vpop.permute.xlu0 %2024 }
 0x2c0   :  { %12013 = vst [vmem:[#allocation218_spill] sm:$0xff] %v6945_v36  ;;  %v2855_v36 = vmul.f32 %v6924_v28, %v6907_v60 }
 0x2c1   :  { %12014 = vst [vmem:[#allocation219_spill] sm:$0xff] %v6947_v15  ;;  %v2712_v15 = vmul.f32 %v6941_v13, %v6822_v48 }
 0x2c4   :  { %2727 = vrot.lane.b32.xlu1 %v2711_v63, %s5544_s25  ;;  %2871 = vrot.lane.b32.xlu2 %v2852_v24, %s5544_s25  ;;  %v2856_v63 = vmul.f32 %v6924_v28, %v6870_v4  ;;  %v6973_v24 = vstv %s5266_s19  ;;  %s5284_s19 = sld [smem:[#allocation2 + $0x20]] }
 0x2c5   :  { %2873 = vrot.lane.b32.xlu0 %v2853_v31, %s5544_s25  ;;  %v2896_v16 = vmul.f32 %v6973_v24, %v6822_v48  ;;  %v2902_v8 = vmul.f32 %v6973_v24, %v6870_v4  ;;  %v2901_v39 = vmul.f32 %v6973_v24, %v6907_v60 }
 0x2c6   :  { %v6958_v44 = vpop.permute.xlu1 %2084  ;;  %v6960_v9 = vpop.permute.xlu2 %2156 }
 0x2c7   :  { %12015 = vst [vmem:[#allocation220_spill] sm:$0xff] %v6958_v44  ;;  %v6962_v58 = vpop.permute.xlu0 %2082  ;;  %v2713_v44 = vmul.f32 %v6941_v13, %v6813_v59 }
 0x2c8   :  { %12016 = vst [vmem:[#allocation221_spill] sm:$0xff] %v6960_v9 }
 0x2c9   :  { %12017 = vst [vmem:[#allocation222_spill] sm:$0xff] %v6962_v58 }
 0x2cc   :  { %2729 = vrot.lane.b32.xlu1 %v2712_v15, %s5544_s25  ;;  %2877 = vrot.lane.b32.xlu2 %v2855_v36, %s5544_s25  ;;  %v2897_v15 = vmul.f32 %v6973_v24, %v6813_v59 }
 0x2cd   :  { %2879 = vrot.lane.b32.xlu0 %v2856_v63, %s5544_s25 }
 0x2ce   :  { %v6975_v31 = vpop.permute.xlu1 %2090  ;;  %v6977_v9 = vpop.permute.xlu2 %2162 }
 0x2cf   :  { %12018 = vst [vmem:[#allocation223_spill] sm:$0xff] %v6975_v31  ;;  %v6979_v58 = vpop.permute.xlu0 %2088  ;;  %v2714_v31 = vmul.f32 %v6941_v13, %v6838_v0 }
 0x2d0   :  { %12019 = vst [vmem:[#allocation224_spill] sm:$0xff] %v6977_v9 }
 0x2d1   :  { %12020 = vst [vmem:[#allocation225_spill] sm:$0xff] %v6979_v58  ;;  %v2899_v58 = vmul.f32 %v6973_v24, %v6843_v2 }
 0x2d4   :  { %2731 = vrot.lane.b32.xlu1 %v2713_v44, %s5544_s25  ;;  %2913 = vrot.lane.b32.xlu2 %v2896_v16, %s5545_s14  ;;  %v2900_v44 = vmul.f32 %v6973_v24, %v6854_v35 }
 0x2d5   :  { %2915 = vrot.lane.b32.xlu0 %v2897_v15, %s5545_s14 }
 0x2d6   :  { %v6990_v36 = vpop.permute.xlu1 %2096  ;;  %v6992_v63 = vpop.permute.xlu2 %2220 }
 0x2d7   :  { %12021 = vst [vmem:[#allocation226_spill] sm:$0xff] %v6990_v36  ;;  %v6994_v9 = vpop.permute.xlu0 %2094  ;;  %v2715_v36 = vmul.f32 %v6941_v13, %v6843_v2 }
 0x2d8   :  { %12022 = vst [vmem:[#allocation227_spill] sm:$0xff] %v6992_v63  ;;  %v7009_v63 = vstv %s5267_s20  ;;  %s8201_s20 = sld [smem:[#allocation2 + $0xc]] }
 0x2d9   :  { %12023 = vst [vmem:[#allocation228_spill] sm:$0xff] %v6994_v9  ;;  %v2944_v56 = vmul.f32 %v7009_v63, %v6838_v0  ;;  %v2945_v43 = vmul.f32 %v7009_v63, %v6843_v2 }
 0x2dc   :  { %2733 = vrot.lane.b32.xlu1 %v2714_v31, %s5544_s25  ;;  %2919 = vrot.lane.b32.xlu2 %v2899_v58, %s5545_s14  ;;  %v2941_v31 = vmul.f32 %v7009_v63, %v6806_v40 }
 0x2dd   :  { %2921 = vrot.lane.b32.xlu0 %v2900_v44, %s5545_s14 }
 0x2de   :  { %v7005_v16 = vpop.permute.xlu1 %2154  ;;  %v7007_v15 = vpop.permute.xlu2 %2226 }
 0x2df   :  { %12024 = vst [vmem:[#allocation229_spill] sm:$0xff] %v7005_v16  ;;  %v7011_v9 = vpop.permute.xlu0 %2152  ;;  %v2716_v16 = vmul.f32 %v6941_v13, %v6854_v35 }
 0x2e0   :  { %12025 = vst [vmem:[#allocation230_spill] sm:$0xff] %v7007_v15 }
 0x2e1   :  { %12026 = vst [vmem:[#allocation231_spill] sm:$0xff] %v7011_v9  ;;  %v2943_v9 = vmul.f32 %v7009_v63, %v6813_v59 }
 0x2e4   :  { %2735 = vrot.lane.b32.xlu1 %v2715_v36, %s5544_s25  ;;  %2925 = vrot.lane.b32.xlu2 %v2902_v8, %s5545_s14 }
 0x2e5   :  { %2957 = vrot.lane.b32.xlu0 %v2941_v31, %s5545_s14 }
 0x2e6   :  { %v7022_v58 = vpop.permute.xlu1 %2160  ;;  %v7024_v44 = vpop.permute.xlu2 %2232 }
 0x2e7   :  { %12027 = vst [vmem:[#allocation232_spill] sm:$0xff] %v7022_v58  ;;  %v7026_v15 = vpop.permute.xlu0 %2158 }
 0x2e8   :  { %12028 = vst [vmem:[#allocation233_spill] sm:$0xff] %v7024_v44  ;;  %v2717_v44 = vmul.f32 %v6941_v13, %v6907_v60 }
 0x2e9   :  { %12029 = vst [vmem:[#allocation234_spill] sm:$0xff] %v7026_v15  ;;  %v2946_v15 = vmul.f32 %v7009_v63, %v6854_v35 }
 0x2ec   :  { %2737 = vrot.lane.b32.xlu1 %v2716_v16, %s5544_s25  ;;  %2961 = vrot.lane.b32.xlu2 %v2943_v9, %s5545_s14  ;;  %v2947_v16 = vmul.f32 %v7009_v63, %v6907_v60 }
 0x2ed   :  { %2963 = vrot.lane.b32.xlu0 %v2944_v56, %s5545_s14  ;;  %v7052_v56 = vstv %s5268_s21 }
 0x2ee   :  { %v7037_v8 = vpop.permute.xlu1 %2218  ;;  %v7039_v36 = vpop.permute.xlu2 %2685  ;;  %v2991_v7 = vmul.f32 %v7052_v56, %v6843_v2 }
 0x2ef   :  { %12030 = vst [vmem:[#allocation235_spill] sm:$0xff] %v7037_v8  ;;  %v7041_v31 = vpop.permute.xlu0 %2164  ;;  %v2718_v8 = vmul.f32 %v6941_v13, %v6870_v4  ;;  %v2757_v13 = vmul.f32 %v6845_v34, %v6806_v40 }
 0x2f0   :  { %12031 = vst [vmem:[#allocation236_spill] sm:$0xff] %v7039_v36  ;;  %v2987_v36 = vmul.f32 %v7052_v56, %v6806_v40 }
 0x2f1   :  { %12032 = vst [vmem:[#allocation237_spill] sm:$0xff] %v7041_v31 }
 0x2f4   :  { %2739 = vrot.lane.b32.xlu1 %v2717_v44, %s5544_s25  ;;  %2967 = vrot.lane.b32.xlu2 %v2946_v15, %s5545_s14  ;;  %v2988_v44 = vmul.f32 %v7052_v56, %v6822_v48 }
 0x2f5   :  { %2969 = vrot.lane.b32.xlu0 %v2947_v16, %s5545_s14 }
 0x2f6   :  { %v7054_v9 = vpop.permute.xlu1 %2224  ;;  %v7056_v31 = vpop.permute.xlu2 %2781 }
 0x2f7   :  { %12033 = vst [vmem:[#allocation238_spill] sm:$0xff] %v7054_v9  ;;  %v7058_v58 = vpop.permute.xlu0 %2222  ;;  %v2990_v9 = vmul.f32 %v7052_v56, %v6838_v0 }
 0x2f8   :  { %12034 = vst [vmem:[#allocation239_spill] sm:$0xff] %v7056_v31 }
 0x2f9   :  { %12035 = vst [vmem:[#allocation240_spill] sm:$0xff] %v7058_v58 }
 0x2fc   :  { %2741 = vrot.lane.b32.xlu1 %v2718_v8, %s5544_s25  ;;  %3003 = vrot.lane.b32.xlu2 %v2987_v36, %s5545_s14 }
 0x2fd   :  { %3005 = vrot.lane.b32.xlu0 %v2988_v44, %s5545_s14 }
 0x2fe   :  { %v7069_v15 = vpop.permute.xlu1 %2230  ;;  %v7071_v16 = vpop.permute.xlu2 %2787 }
 0x2ff   :  { %12036 = vst [vmem:[#allocation241_spill] sm:$0xff] %v7069_v15  ;;  %v7073_v58 = vpop.permute.xlu0 %2228  ;;  %v2758_v15 = vmul.f32 %v6845_v34, %v6822_v48 }
 0x300   :  { %12037 = vst [vmem:[#allocation242_spill] sm:$0xff] %v7071_v16 }
 0x301   :  { %12038 = vst [vmem:[#allocation243_spill] sm:$0xff] %v7073_v58  ;;  %v2993_v58 = vmul.f32 %v7052_v56, %v6907_v60 }
 0x304   :  { %2773 = vrot.lane.b32.xlu1 %v2757_v13, %s5544_s25  ;;  %3009 = vrot.lane.b32.xlu2 %v2990_v9, %s5545_s14  ;;  %v2994_v13 = vmul.f32 %v7052_v56, %v6870_v4 }
 0x305   :  { %3011 = vrot.lane.b32.xlu0 %v2991_v7, %s5545_s14  ;;  %v7099_v7 = vstv %s5269_s22 }
 0x306   :  { %v7084_v8 = vpop.permute.xlu1 %2681  ;;  %v7086_v36 = vpop.permute.xlu2 %2823  ;;  %v3034_v46 = vmul.f32 %v7099_v7, %v6822_v48  ;;  %v3037_v1 = vmul.f32 %v7099_v7, %v6843_v2  ;;  %v3040_v37 = vmul.f32 %v7099_v7, %v6870_v4  ;;  %v3039_v45 = vmul.f32 %v7099_v7, %v6907_v60 }
 0x307   :  { %12039 = vst [vmem:[#allocation244_spill] sm:$0xff] %v7084_v8  ;;  %v7088_v44 = vpop.permute.xlu0 %2683 }
 0x308   :  { %12040 = vst [vmem:[#allocation245_spill] sm:$0xff] %v7086_v36  ;;  %v3488_v36 = vstv %s5279_s7  ;;  %s8294_s7 = sld [smem:[#allocation2 + $0x3]] }
 0x309   :  { %12041 = vst [vmem:[#allocation246_spill] sm:$0xff] %v7088_v44 }
 0x30c   :  { %2775 = vrot.lane.b32.xlu1 %v2758_v15, %s5544_s25  ;;  %3015 = vrot.lane.b32.xlu2 %v2993_v58, %s5545_s14  ;;  %v3035_v15 = vmul.f32 %v7099_v7, %v6813_v59 }
 0x30d   :  { %3017 = vrot.lane.b32.xlu0 %v2994_v13, %s5545_s14 }
 0x30e   :  { %v7101_v9 = vpop.permute.xlu1 %2687  ;;  %v7103_v8 = vpop.permute.xlu2 %2829 }
 0x30f   :  { %12042 = vst [vmem:[#allocation247_spill] sm:$0xff] %v7101_v9  ;;  %v7105_v44 = vpop.permute.xlu0 %2783 }
 0x310   :  { %12043 = vst [vmem:[#allocation248_spill] sm:$0xff] %v7103_v8  ;;  %v2760_v8 = vmul.f32 %v6845_v34, %v6838_v0  ;;  %v2804_v34 = vmul.f32 %v6876_v29, %v6822_v48 }
 0x311   :  { %12044 = vst [vmem:[#allocation249_spill] sm:$0xff] %v7105_v44 }
 0x314   :  { %2777 = vrot.lane.b32.xlu1 %v2759_v25, %s5544_s25  ;;  %3051 = vrot.lane.b32.xlu2 %v3034_v46, %s5545_s14  ;;  %v3038_v25 = vmul.f32 %v7099_v7, %v6854_v35 }
 0x315   :  { %3053 = vrot.lane.b32.xlu0 %v3035_v15, %s5545_s14 }
 0x316   :  { %v7116_v58 = vpop.permute.xlu1 %2689  ;;  %v7118_v13 = vpop.permute.xlu2 %2865 }
 0x317   :  { %12045 = vst [vmem:[#allocation250_spill] sm:$0xff] %v7116_v58  ;;  %v7120_v9 = vpop.permute.xlu0 %2819 }
 0x318   :  { %12046 = vst [vmem:[#allocation251_spill] sm:$0xff] %v7118_v13 }
 0x319   :  { %12047 = vst [vmem:[#allocation252_spill] sm:$0xff] %v7120_v9  ;;  %v3081_v9 = vmul.f32 %v7135_v42, %v6813_v59 }
 0x31c   :  { %2779 = vrot.lane.b32.xlu1 %v2760_v8, %s5544_s25  ;;  %3057 = vrot.lane.b32.xlu2 %v3037_v1, %s5545_s14  ;;  %v3079_v8 = vmul.f32 %v7135_v42, %v6806_v40 }
 0x31d   :  { %3059 = vrot.lane.b32.xlu0 %v3038_v25, %s5545_s14 }
 0x31e   :  { %v7131_v46 = vpop.permute.xlu1 %2691  ;;  %v7133_v15 = vpop.permute.xlu2 %2871 }
 0x31f   :  { %12048 = vst [vmem:[#allocation253_spill] sm:$0xff] %v7131_v46  ;;  %v7137_v26 = vpop.permute.xlu0 %2825 }
 0x320   :  { %12049 = vst [vmem:[#allocation254_spill] sm:$0xff] %v7133_v15 }
 0x321   :  { %12050 = vst [vmem:[#allocation255_spill] sm:$0xff] %v7137_v26 }
 0x324   :  { %2785 = vrot.lane.b32.xlu1 %v2763_v17, %s5544_s25  ;;  %3063 = vrot.lane.b32.xlu2 %v3040_v37, %s5545_s14  ;;  %v3082_v17 = vmul.f32 %v7135_v42, %v6838_v0 }
 0x325   :  { %3095 = vrot.lane.b32.xlu0 %v3079_v8, %s5545_s14 }
 0x326   :  { %v7148_v1 = vpop.permute.xlu1 %2693  ;;  %v7150_v25 = vpop.permute.xlu2 %2877 }
 0x327   :  { %12051 = vst [vmem:[#allocation256_spill] sm:$0xff] %v7148_v1  ;;  %v7152_v15 = vpop.permute.xlu0 %2831  ;;  %v7170_v1 = vld [vmem:[%s11610_s2 + $0x8] sm:$0xfe] }
 0x328   :  { %12052 = vst [vmem:[#allocation257_spill] sm:$0xff] %v7150_v25 }
 0x329   :  { %12053 = vst [vmem:[#allocation258_spill] sm:$0xff] %v7152_v15  ;;  %v3284_v15 = vstv %s5276_s23  ;;  %s5285_s23 = sld [smem:[#allocation2 + $0x29]] }
 0x32a   :  { %v7187_v58 = vmul.f32 %v3284_v15, %v6813_v59  ;;  %v3288_v25 = vmul.f32 %v3284_v15, %v6838_v0 }
 0x32c   :  { %2821 = vrot.lane.b32.xlu1 %v2804_v34, %s5544_s25  ;;  %3099 = vrot.lane.b32.xlu2 %v3081_v9, %s5545_s14  ;;  %v7177_v34 = vld [vmem:[%s11610_s2 + $0x10] sm:$0xfe]  ;;  %v2807_v9 = vmul.f32 %v6876_v29, %v6843_v2  ;;  %v11612_v13 = vrot.slane %v7187_v58, 1  ;;  %v3309_v18 = vrot.slane %v3288_v25, 1 }
 0x32d   :  { %3101 = vrot.lane.b32.xlu0 %v3082_v17, %s5545_s14  ;;  %v3084_v17 = vmul.f32 %v7135_v42, %v6854_v35  ;;  %v3286_v46 = vmul.f32 %v3284_v15, %v7177_v34 }
 0x32e   :  { %v7163_v37 = vpop.permute.xlu1 %2695  ;;  %v7165_v8 = vpop.permute.xlu2 %2913 }
 0x32f   :  { %12054 = vst [vmem:[#allocation259_spill] sm:$0xff] %v7163_v37  ;;  %v7172_v16 = vpop.permute.xlu0 %2867  ;;  %v3085_v37 = vmul.f32 %v7135_v42, %v6907_v60  ;;  %v3308_v32 = vrot.slane %v3286_v46, 1  ;;  %v3291_v46 = vmul.f32 %v3284_v15, %v6907_v60 }
 0x330   :  { %12055 = vst [vmem:[#allocation260_spill] sm:$0xff] %v7165_v8  ;;  %v3285_v8 = vmul.f32 %v3284_v15, %v7170_v1 }
 0x331   :  { %12056 = vst [vmem:[#allocation261_spill] sm:$0xff] %v7172_v16 }
 0x332   :  { %v3305_v5 = vrot.slane %v3285_v8, 1  ;;  %v3310_v8 = vsel %vm590_vm0, %v3308_v32, %v3309_v18  ;;  %v3315_v32 = vrot.slane %v3291_v46, 1 }
 0x334   :  { %2827 = vrot.lane.b32.xlu1 %v2807_v9, %s5544_s25  ;;  %3105 = vrot.lane.b32.xlu2 %v3084_v17, %s5545_s14  ;;  %v3307_v9 = vsel %vm590_vm0, %v3305_v5, %v11612_v13  ;;  %v7211_v17 = vmul.f32 %v3284_v15, %v6843_v2 }
 0x335   :  { %3107 = vrot.lane.b32.xlu0 %v3085_v37, %s5545_s14  ;;  %v7207_v37 = vmul.f32 %v3284_v15, %v6854_v35 }
 0x336   :  { %v7195_v16 = vpop.permute.xlu1 %2727  ;;  %v7197_v57 = vpop.permute.xlu2 %2919 }
 0x337   :  { %12057 = vst [vmem:[#allocation262_spill] sm:$0xff] %v7195_v16  ;;  %v7199_v51 = vpop.permute.xlu0 %2873  ;;  %v11613_v29 = vrot.slane %v7207_v37, 1  ;;  %v7226_v16 = vld [vmem:[%s11610_s2 + $0x68] sm:$0x1] }
 0x338   :  { %12058 = vst [vmem:[#allocation263_spill] sm:$0xff] %v7197_v57  ;;  %v3293_v13 = vmul.f32 %v3284_v15, %v7226_v16 }
 0x339   :  { %12059 = vst [vmem:[#allocation264_spill] sm:$0xff] %v7199_v51  ;;  %v3314_v46 = vsel %vm590_vm0, %v3309_v18, %v11613_v29  ;;  %v7245_v51 = vmul.f32 %v3284_v15, %v6870_v4 }
 0x33b   :  { %v11614_v29 = vrot.slane %v7245_v51, 1 }
 0x33c   :  { %2833 = vrot.lane.b32.xlu1 %v2810_v23, %s5544_s25  ;;  %3323 = vrot.lane.b32.xlu2 %v3307_v9, %s5544_s25  ;;  %v7233_v9 = vld [vmem:[%s11610_s2 + $0x70] sm:$0x1] }
 0x33d   :  { %3325 = vrot.lane.b32.xlu0 %v3310_v8, %s5544_s25  ;;  %v2851_v8 = vmul.f32 %v6924_v28, %v6813_v59  ;;  %v3294_v57 = vmul.f32 %v3284_v15, %v7233_v9  ;;  %v2854_v15 = vmul.f32 %v6924_v28, %v6854_v35 }
 0x33e   :  { %v7218_v25 = vpop.permute.xlu1 %2729  ;;  %v7220_v5 = vpop.permute.xlu2 %2925 }
 0x33f   :  { %12060 = vst [vmem:[#allocation265_spill] sm:$0xff] %v7218_v25  ;;  %v7228_v23 = vpop.permute.xlu0 %2879  ;;  %v12063_v25 = vrot.slane %v7211_v17, 1  ;;  %v3321_v6 = vrot.slane %v3294_v57, 1 }
 0x340   :  { %12061 = vst [vmem:[#allocation266_spill] sm:$0xff] %v7220_v5 }
 0x341   :  { %12062 = vst [vmem:[#allocation267_spill] sm:$0xff] %v7228_v23  ;;  %v3316_v5 = vsel %vm590_vm0, %v12063_v25, %v3315_v32  ;;  %v3319_v23 = vrot.slane %v3293_v13, 1  ;;  %v7256_v25 = vstv %s5277_s30  ;;  %v3322_v57 = vsel %vm590_vm0, %v11614_v29, %v3321_v6  ;;  %s10530_s30 = sld [smem:[#allocation2 + $0x2a]] }
 0x342   :  { %v7267_v13 = vmul.f32 %v7256_v25, %v6838_v0  ;;  %v3357_v28 = vmul.f32 %v7256_v25, %v6843_v2 }
 0x344   :  { %2869 = vrot.lane.b32.xlu1 %v2851_v8, %s5544_s25  ;;  %3329 = vrot.lane.b32.xlu2 %v3314_v46, %s5544_s25  ;;  %v3320_v8 = vsel %vm590_vm0, %v3315_v32, %v3319_v23  ;;  %v7274_v46 = vmul.f32 %v7256_v25, %v6813_v59  ;;  %v11615_v23 = vrot.slane %v7267_v13, 1  ;;  %v3379_v29 = vrot.slane %v3357_v28, 1 }
 0x345   :  { %3331 = vrot.lane.b32.xlu0 %v3316_v5, %s5544_s25  ;;  %v3354_v5 = vmul.f32 %v7256_v25, %v7177_v34  ;;  %v7303_v28 = vmul.f32 %v7256_v25, %v6854_v35 }
 0x346   :  { %v7251_v12 = vpop.permute.xlu1 %2731  ;;  %v7253_v18 = vpop.permute.xlu2 %2961  ;;  %v11616_v6 = vrot.slane %v7274_v46, 1 }
 0x347   :  { %12064 = vst [vmem:[#allocation268_spill] sm:$0xff] %v7251_v12  ;;  %v7258_v22 = vpop.permute.xlu0 %2915  ;;  %v3376_v32 = vrot.slane %v3354_v5, 1  ;;  %v7296_v5 = vmul.f32 %v7256_v25, %v6907_v60 }
 0x348   :  { %12065 = vst [vmem:[#allocation269_spill] sm:$0xff] %v7253_v18 }
 0x349   :  { %12066 = vst [vmem:[#allocation270_spill] sm:$0xff] %v7258_v22 }
 0x34c   :  { %2875 = vrot.lane.b32.xlu1 %v2854_v15, %s5544_s25  ;;  %3335 = vrot.lane.b32.xlu2 %v3320_v8, %s5544_s25  ;;  %v2895_v15 = vmul.f32 %v6973_v24, %v6806_v40  ;;  %v3378_v8 = vsel %vm590_vm0, %v3376_v32, %v11615_v23  ;;  %v11617_v32 = vrot.slane %v7296_v5, 1 }
 0x34d   :  { %3337 = vrot.lane.b32.xlu0 %v3322_v57, %s5544_s25  ;;  %v3380_v57 = vsel %vm590_vm0, %v11616_v6, %v3379_v29  ;;  %v11618_v6 = vrot.slane %v7303_v28, 1 }
 0x34e   :  { %v7282_v22 = vpop.permute.xlu1 %2733  ;;  %v7284_v18 = vpop.permute.xlu2 %2967 }
 0x34f   :  { %12067 = vst [vmem:[#allocation271_spill] sm:$0xff] %v7282_v22  ;;  %v7287_v12 = vpop.permute.xlu0 %2921 }
 0x350   :  { %12068 = vst [vmem:[#allocation272_spill] sm:$0xff] %v7284_v18  ;;  %v3360_v18 = vmul.f32 %v7256_v25, %v6870_v4 }
 0x351   :  { %12069 = vst [vmem:[#allocation273_spill] sm:$0xff] %v7287_v12 }
 0x352   :  { %v3385_v12 = vrot.slane %v3360_v18, 1  ;;  %v3421_v18 = vmul.f32 %v7318_v53, %v7170_v1 }
 0x354   :  { %2911 = vrot.lane.b32.xlu1 %v2895_v15, %s5545_s14  ;;  %3393 = vrot.lane.b32.xlu2 %v3378_v8, %s5544_s25  ;;  %v2898_v15 = vmul.f32 %v6973_v24, %v6838_v0  ;;  %v3384_v8 = vsel %vm590_vm0, %v3379_v29, %v11617_v32  ;;  %v3441_v10 = vrot.slane %v3421_v18, 1 }
 0x355   :  { %3395 = vrot.lane.b32.xlu0 %v3380_v57, %s5544_s25  ;;  %v3362_v57 = vmul.f32 %v7256_v25, %v7233_v9 }
 0x356   :  { %v7311_v23 = vpop.permute.xlu1 %2735  ;;  %v7313_v22 = vpop.permute.xlu2 %3003 }
 0x357   :  { %12070 = vst [vmem:[#allocation274_spill] sm:$0xff] %v7311_v23  ;;  %v7316_v50 = vpop.permute.xlu0 %2957  ;;  %v3389_v29 = vrot.slane %v3362_v57, 1 }
 0x358   :  { %12071 = vst [vmem:[#allocation275_spill] sm:$0xff] %v7313_v22  ;;  %v3386_v22 = vsel %vm590_vm0, %v11618_v6, %v3385_v12 }
 0x359   :  { %12072 = vst [vmem:[#allocation276_spill] sm:$0xff] %v7316_v50  ;;  %v3423_v50 = vmul.f32 %v7318_v53, %v6813_v59  ;;  %v3390_v61 = vsel %vm590_vm0, %v3385_v12, %v3389_v29 }
 0x35b   :  { %v3442_v41 = vrot.slane %v3423_v50, 1  ;;  %v3426_v50 = vmul.f32 %v7318_v53, %v6854_v35 }
 0x35c   :  { %2917 = vrot.lane.b32.xlu1 %v2898_v15, %s5545_s14  ;;  %3399 = vrot.lane.b32.xlu2 %v3384_v8, %s5544_s25  ;;  %v7348_v15 = vmul.f32 %v7318_v53, %v6843_v2  ;;  %v7353_v8 = vmul.f32 %v7318_v53, %v6838_v0 }
 0x35d   :  { %3401 = vrot.lane.b32.xlu0 %v3386_v22, %s5544_s25  ;;  %v3443_v22 = vsel %vm590_vm0, %v3441_v10, %v3442_v41  ;;  %v3449_v18 = vrot.slane %v3426_v50, 1  ;;  %v7382_v50 = vmul.f32 %v7318_v53, %v6907_v60 }
 0x35e   :  { %v7337_v32 = vpop.permute.xlu1 %2737  ;;  %v7339_v23 = vpop.permute.xlu2 %3009  ;;  %v11619_v12 = vrot.slane %v7348_v15, 1  ;;  %v11620_v10 = vrot.slane %v7353_v8, 1 }
 0x35f   :  { %12073 = vst [vmem:[#allocation277_spill] sm:$0xff] %v7337_v32  ;;  %v7341_v6 = vpop.permute.xlu0 %2963 }
 0x360   :  { %12074 = vst [vmem:[#allocation278_spill] sm:$0xff] %v7339_v23  ;;  %v2942_v23 = vmul.f32 %v7009_v63, %v6822_v48 }
 0x361   :  { %12075 = vst [vmem:[#allocation279_spill] sm:$0xff] %v7341_v6 }
 0x364   :  { %2923 = vrot.lane.b32.xlu1 %v2901_v39, %s5545_s14  ;;  %3405 = vrot.lane.b32.xlu2 %v3390_v61, %s5544_s25  ;;  %v3448_v39 = vsel %vm590_vm0, %v3442_v41, %v11619_v12  ;;  %v7375_v61 = vmul.f32 %v7318_v53, %v6870_v4 }
 0x365   :  { %3459 = vrot.lane.b32.xlu0 %v3443_v22, %s5544_s25  ;;  %v3450_v22 = vsel %vm590_vm0, %v11620_v10, %v3449_v18  ;;  %v11622_v10 = vrot.slane %v7382_v50, 1 }
 0x366   :  { %v7361_v24 = vpop.permute.xlu1 %2739  ;;  %v7363_v57 = vpop.permute.xlu2 %3015  ;;  %v11621_v41 = vrot.slane %v7375_v61, 1 }
 0x367   :  { %12076 = vst [vmem:[#allocation280_spill] sm:$0xff] %v7363_v57  ;;  %v7366_v29 = vpop.permute.xlu0 %2969  ;;  %v3429_v57 = vmul.f32 %v7318_v53, %v7226_v16 }
 0x369   :  { %v3455_v6 = vrot.slane %v3429_v57, 1  ;;  %v3490_v57 = vmul.f32 %v3488_v36, %v7177_v34 }
 0x36b   :  { %v3512_v55 = vrot.slane %v3490_v57, 1  ;;  %v3495_v57 = vmul.f32 %v3488_v36, %v6907_v60 }
 0x36c   :  { %2959 = vrot.lane.b32.xlu1 %v2942_v23, %s5545_s14  ;;  %3463 = vrot.lane.b32.xlu2 %v3448_v39, %s5544_s25  ;;  %v3454_v23 = vsel %vm590_vm0, %v3449_v18, %v11621_v41  ;;  %v3489_v39 = vmul.f32 %v3488_v36, %v7170_v1 }
 0x36d   :  { %3465 = vrot.lane.b32.xlu0 %v3450_v22, %s5544_s25  ;;  %v7404_v22 = vmul.f32 %v3488_v36, %v6813_v59 }
 0x36e   :  { %v7390_v12 = vpop.permute.xlu1 %2741  ;;  %v7392_v32 = vpop.permute.xlu2 %3051  ;;  %v3509_v18 = vrot.slane %v3489_v39, 1  ;;  %v7431_v39 = vmul.f32 %v3488_v36, %v6843_v2 }
 0x36f   :  { %12077 = vst [vmem:[#allocation281_spill] sm:$0xff] %v7392_v32  ;;  %v7395_v26 = vpop.permute.xlu0 %3005  ;;  %v3456_v32 = vsel %vm590_vm0, %v11622_v10, %v3455_v6  ;;  %v11623_v41 = vrot.slane %v7404_v22, 1  ;;  %v2948_v10 = vmul.f32 %v7009_v63, %v6870_v4 }
 0x370   :  { %12078 = vst [vmem:[#allocation282_spill] sm:$0xff] %v7395_v26  ;;  %v3492_v26 = vmul.f32 %v3488_v36, %v6838_v0 }
 0x372   :  { %v3513_v31 = vrot.slane %v3492_v26, 1 }
 0x374   :  { %2965 = vrot.lane.b32.xlu1 %v2945_v43, %s5545_s14  ;;  %3469 = vrot.lane.b32.xlu2 %v3454_v23, %s5544_s25  ;;  %v3511_v43 = vsel %vm590_vm0, %v3509_v18, %v11623_v41  ;;  %v3514_v23 = vsel %vm590_vm0, %v3512_v55, %v3513_v31  ;;  %v11625_v41 = vrot.slane %v7431_v39, 1  ;;  %v3519_v55 = vrot.slane %v3495_v57, 1 }
 0x375   :  { %3471 = vrot.lane.b32.xlu0 %v3456_v32, %s5544_s25  ;;  %v7427_v32 = vmul.f32 %v3488_v36, %v6854_v35  ;;  %v3498_v57 = vmul.f32 %v3488_v36, %v7233_v9 }
 0x376   :  { %v7415_v30 = vpop.permute.xlu1 %2773  ;;  %v7417_v27 = vpop.permute.xlu2 %3057 }
 0x377   :  { %12079 = vst [vmem:[#allocation283_spill] sm:$0xff] %v7415_v30  ;;  %v7419_v6 = vpop.permute.xlu0 %3011  ;;  %v11624_v26 = vrot.slane %v7427_v32, 1  ;;  %v2989_v30 = vmul.f32 %v7052_v56, %v6813_v59 }
 0x378   :  { %12080 = vst [vmem:[#allocation284_spill] sm:$0xff] %v7417_v27 }
 0x379   :  { %12081 = vst [vmem:[#allocation285_spill] sm:$0xff] %v7419_v6  ;;  %v3525_v6 = vrot.slane %v3498_v57, 1 }
 0x37c   :  { %2971 = vrot.lane.b32.xlu1 %v2948_v10, %s5545_s14  ;;  %3527 = vrot.lane.b32.xlu2 %v3511_v43, %s5544_s25  ;;  %v3518_v10 = vsel %vm590_vm0, %v3513_v31, %v11624_v26  ;;  %v3497_v43 = vmul.f32 %v3488_v36, %v7226_v16 }
 0x37d   :  { %3529 = vrot.lane.b32.xlu0 %v3514_v23, %s5544_s25  ;;  %v3520_v23 = vsel %vm590_vm0, %v11625_v41, %v3519_v55  ;;  %v7466_v41 = vstv %s5280_s8  ;;  %s8667_s8 = sld [smem:[#allocation2 + $0x24]] }
 0x37e   :  { %v7438_v63 = vpop.permute.xlu1 %2775  ;;  %v7440_v18 = vpop.permute.xlu2 %3063  ;;  %v7484_v57 = vmul.f32 %v7466_v41, %v6813_v59 }
 0x37f   :  { %12082 = vst [vmem:[#allocation286_spill] sm:$0xff] %v7438_v63  ;;  %v7443_v27 = vpop.permute.xlu0 %3017 }
 0x380   :  { %12083 = vst [vmem:[#allocation287_spill] sm:$0xff] %v7440_v18  ;;  %v7455_v18 = vmul.f32 %v3488_v36, %v6870_v4  ;;  %v2992_v36 = vmul.f32 %v7052_v56, %v6854_v35  ;;  %v3561_v56 = vmul.f32 %v7466_v41, %v6843_v2 }
 0x381   :  { %12084 = vst [vmem:[#allocation288_spill] sm:$0xff] %v7443_v27  ;;  %v3523_v27 = vrot.slane %v3497_v43, 1  ;;  %v7477_v43 = vmul.f32 %v7466_v41, %v6838_v0 }
 0x382   :  { %v11626_v26 = vrot.slane %v7455_v18, 1 }
 0x384   :  { %3007 = vrot.lane.b32.xlu1 %v2989_v30, %s5545_s14  ;;  %3533 = vrot.lane.b32.xlu2 %v3518_v10, %s5544_s25  ;;  %v3524_v30 = vsel %vm590_vm0, %v3519_v55, %v3523_v27  ;;  %v3558_v10 = vmul.f32 %v7466_v41, %v7177_v34  ;;  %v11627_v55 = vrot.slane %v7477_v43, 1 }
 0x385   :  { %3535 = vrot.lane.b32.xlu0 %v3520_v23, %s5544_s25  ;;  %v3526_v23 = vsel %vm590_vm0, %v11626_v26, %v3525_v6  ;;  %v11628_v6 = vrot.slane %v7484_v57, 1  ;;  %v3583_v26 = vrot.slane %v3561_v56, 1  ;;  %v7513_v56 = vmul.f32 %v7466_v41, %v6854_v35 }
 0x386   :  { %v7461_v63 = vpop.permute.xlu1 %2777  ;;  %v7463_v31 = vpop.permute.xlu2 %3099  ;;  %v3580_v27 = vrot.slane %v3558_v10, 1  ;;  %v7506_v10 = vmul.f32 %v7466_v41, %v6907_v60 }
 0x387   :  { %12085 = vst [vmem:[#allocation289_spill] sm:$0xff] %v7461_v63  ;;  %v7468_v44 = vpop.permute.xlu0 %3053 }
 0x388   :  { %12086 = vst [vmem:[#allocation290_spill] sm:$0xff] %v7463_v31 }
 0x389   :  { %12087 = vst [vmem:[#allocation291_spill] sm:$0xff] %v7468_v44 }
 0x38c   :  { %3013 = vrot.lane.b32.xlu1 %v2992_v36, %s5545_s14  ;;  %3539 = vrot.lane.b32.xlu2 %v3524_v30, %s5544_s25  ;;  %v3033_v36 = vmul.f32 %v7099_v7, %v6806_v40  ;;  %v3582_v30 = vsel %vm590_vm0, %v3580_v27, %v11627_v55  ;;  %v11629_v40 = vrot.slane %v7506_v10, 1 }
 0x38d   :  { %3541 = vrot.lane.b32.xlu0 %v3526_v23, %s5544_s25  ;;  %v3584_v23 = vsel %vm590_vm0, %v11628_v6, %v3583_v26  ;;  %v11630_v6 = vrot.slane %v7513_v56, 1 }
 0x38e   :  { %v7492_v63 = vpop.permute.xlu1 %2779  ;;  %v7494_v31 = vpop.permute.xlu2 %3105 }
 0x38f   :  { %12088 = vst [vmem:[#allocation292_spill] sm:$0xff] %v7492_v63  ;;  %v7497_v44 = vpop.permute.xlu0 %3059  ;;  %v3564_v63 = vmul.f32 %v7466_v41, %v6870_v4 }
 0x390   :  { %12089 = vst [vmem:[#allocation293_spill] sm:$0xff] %v7494_v31 }
 0x391   :  { %12090 = vst [vmem:[#allocation294_spill] sm:$0xff] %v7497_v44  ;;  %v3589_v31 = vrot.slane %v3564_v63, 1  ;;  %v3625_v63 = vmul.f32 %v7528_v52, %v7170_v1 }
 0x393   :  { %v3645_v33 = vrot.slane %v3625_v63, 1 }
 0x394   :  { %3049 = vrot.lane.b32.xlu1 %v3033_v36, %s5545_s14  ;;  %3597 = vrot.lane.b32.xlu2 %v3582_v30, %s5544_s25  ;;  %v3036_v36 = vmul.f32 %v7099_v7, %v6838_v0  ;;  %v3588_v30 = vsel %vm590_vm0, %v3583_v26, %v11629_v40 }
 0x395   :  { %3599 = vrot.lane.b32.xlu0 %v3584_v23, %s5544_s25  ;;  %v3566_v23 = vmul.f32 %v7466_v41, %v7233_v9 }
 0x396   :  { %v7521_v27 = vpop.permute.xlu1 %2785  ;;  %v7523_v55 = vpop.permute.xlu2 %3323 }
 0x397   :  { %12091 = vst [vmem:[#allocation295_spill] sm:$0xff] %v7521_v27  ;;  %v7526_v44 = vpop.permute.xlu0 %3095  ;;  %v3627_v27 = vmul.f32 %v7528_v52, %v6813_v59  ;;  %v3593_v26 = vrot.slane %v3566_v23, 1 }
 0x398   :  { %12092 = vst [vmem:[#allocation296_spill] sm:$0xff] %v7523_v55  ;;  %v3590_v55 = vsel %vm590_vm0, %v11630_v6, %v3589_v31 }
 0x399   :  { %12093 = vst [vmem:[#allocation297_spill] sm:$0xff] %v7526_v44  ;;  %v3646_v47 = vrot.slane %v3627_v27, 1  ;;  %v3594_v38 = vsel %vm590_vm0, %v3589_v31, %v3593_v26  ;;  %v3630_v27 = vmul.f32 %v7528_v52, %v6854_v35 }
 0x39b   :  { %v3653_v63 = vrot.slane %v3630_v27, 1  ;;  %v7592_v27 = vmul.f32 %v7528_v52, %v6907_v60 }
 0x39c   :  { %3055 = vrot.lane.b32.xlu1 %v3036_v36, %s5545_s14  ;;  %3603 = vrot.lane.b32.xlu2 %v3588_v30, %s5544_s25  ;;  %v7558_v36 = vmul.f32 %v7528_v52, %v6843_v2  ;;  %v7563_v30 = vmul.f32 %v7528_v52, %v6838_v0 }
 0x39d   :  { %3605 = vrot.lane.b32.xlu0 %v3590_v55, %s5544_s25  ;;  %v3647_v55 = vsel %vm590_vm0, %v3645_v33, %v3646_v47 }
 0x39e   :  { %v7547_v40 = vpop.permute.xlu1 %2821  ;;  %v7549_v44 = vpop.permute.xlu2 %3329  ;;  %v11631_v7 = vrot.slane %v7558_v36, 1  ;;  %v11632_v33 = vrot.slane %v7563_v30, 1 }
 0x39f   :  { %12094 = vst [vmem:[#allocation298_spill] sm:$0xff] %v7547_v40  ;;  %v7551_v6 = vpop.permute.xlu0 %3101 }
 0x3a0   :  { %12095 = vst [vmem:[#allocation299_spill] sm:$0xff] %v7549_v44  ;;  %v3080_v44 = vmul.f32 %v7135_v42, %v6822_v48 }
 0x3a1   :  { %12096 = vst [vmem:[#allocation300_spill] sm:$0xff] %v7551_v6 }
 0x3a4   :  { %3061 = vrot.lane.b32.xlu1 %v3039_v45, %s5545_s14  ;;  %3609 = vrot.lane.b32.xlu2 %v3594_v38, %s5544_s25  ;;  %v3652_v38 = vsel %vm590_vm0, %v3646_v47, %v11631_v7  ;;  %v7585_v45 = vmul.f32 %v7528_v52, %v6870_v4 }
 0x3a5   :  { %3663 = vrot.lane.b32.xlu0 %v3647_v55, %s5545_s14  ;;  %v3654_v55 = vsel %vm590_vm0, %v11632_v33, %v3653_v63  ;;  %v11635_v33 = vrot.slane %v7592_v27, 1 }
 0x3a6   :  { %v7571_v31 = vpop.permute.xlu1 %2827  ;;  %v7573_v23 = vpop.permute.xlu2 %3335  ;;  %v11633_v47 = vrot.slane %v7585_v45, 1 }
 0x3a7   :  { %12097 = vst [vmem:[#allocation301_spill] sm:$0xff] %v7571_v31  ;;  %v7576_v26 = vpop.permute.xlu0 %3107  ;;  %v3692_v31 = vstv %s5282_s10  ;;  %s8307_s10 = sld [smem:[#allocation2 + $0x12]] }
 0x3a8   :  { %12098 = vst [vmem:[#allocation302_spill] sm:$0xff] %v7573_v23  ;;  %v3633_v23 = vmul.f32 %v7528_v52, %v7226_v16 }
 0x3a9   :  { %12099 = vst [vmem:[#allocation303_spill] sm:$0xff] %v7576_v26  ;;  %v3083_v26 = vmul.f32 %v7135_v42, %v6843_v2 }
 0x3aa   :  { %v3659_v6 = vrot.slane %v3633_v23, 1  ;;  %v3694_v23 = vmul.f32 %v3692_v31, %v7177_v34 }
 0x3ac   :  { %3097 = vrot.lane.b32.xlu1 %v3080_v44, %s5545_s14  ;;  %3667 = vrot.lane.b32.xlu2 %v3652_v38, %s5545_s14  ;;  %v3658_v44 = vsel %vm590_vm0, %v3653_v63, %v11633_v47  ;;  %v3693_v38 = vmul.f32 %v3692_v31, %v7170_v1  ;;  %v3716_v20 = vrot.slane %v3694_v23, 1  ;;  %v3699_v23 = vmul.f32 %v3692_v31, %v6907_v60 }
 0x3ad   :  { %3669 = vrot.lane.b32.xlu0 %v3654_v55, %s5545_s14  ;;  %v7614_v55 = vmul.f32 %v3692_v31, %v6813_v59 }
 0x3ae   :  { %v7600_v48 = vpop.permute.xlu1 %2833  ;;  %v7602_v7 = vpop.permute.xlu2 %3393  ;;  %v3713_v63 = vrot.slane %v3693_v38, 1  ;;  %v7641_v38 = vmul.f32 %v3692_v31, %v6843_v2 }
 0x3af   :  { %12100 = vst [vmem:[#allocation304_spill] sm:$0xff] %v7600_v48  ;;  %v7605_v40 = vpop.permute.xlu0 %3325  ;;  %v11634_v47 = vrot.slane %v7614_v55, 1 }
 0x3b0   :  { %12101 = vst [vmem:[#allocation305_spill] sm:$0xff] %v7602_v7  ;;  %v3660_v7 = vsel %vm590_vm0, %v11635_v33, %v3659_v6  ;;  %v3701_v33 = vmul.f32 %v3692_v31, %v7226_v16 }
 0x3b1   :  { %12102 = vst [vmem:[#allocation306_spill] sm:$0xff] %v7605_v40  ;;  %v3696_v40 = vmul.f32 %v3692_v31, %v6838_v0  ;;  %v3086_v0 = vmul.f32 %v7135_v42, %v6870_v4 }
 0x3b3   :  { %v3717_v21 = vrot.slane %v3696_v40, 1 }
 0x3b4   :  { %3103 = vrot.lane.b32.xlu1 %v3083_v26, %s5545_s14  ;;  %3673 = vrot.lane.b32.xlu2 %v3658_v44, %s5545_s14  ;;  %v3715_v26 = vsel %vm590_vm0, %v3713_v63, %v11634_v47  ;;  %v12109_v47 = vrot.slane %v7211_v17, 1 }
 0x3b5   :  { %3675 = vrot.lane.b32.xlu0 %v3660_v7, %s5545_s14  ;;  %v7637_v7 = vmul.f32 %v3692_v31, %v6854_v35  ;;  %v3718_v44 = vsel %vm590_vm0, %v3716_v20, %v3717_v21  ;;  %v11637_v35 = vrot.slane %v7641_v38, 1  ;;  %v3723_v20 = vrot.slane %v3699_v23, 1 }
 0x3b6   :  { %v7625_v48 = vpop.permute.xlu1 %2869  ;;  %v7627_v59 = vpop.permute.xlu2 %3399  ;;  %v7668_v23 = vmul.f32 %v3692_v31, %v6870_v4 }
 0x3b7   :  { %12103 = vst [vmem:[#allocation307_spill] sm:$0xff] %v7625_v48  ;;  %v7629_v6 = vpop.permute.xlu0 %3331  ;;  %v11636_v42 = vrot.slane %v7637_v7, 1 }
 0x3b8   :  { %12104 = vst [vmem:[#allocation308_spill] sm:$0xff] %v7627_v59 }
 0x3b9   :  { %12105 = vst [vmem:[#allocation309_spill] sm:$0xff] %v7629_v6 }
 0x3bc   :  { %3109 = vrot.lane.b32.xlu1 %v3086_v0, %s5545_s14  ;;  %3731 = vrot.lane.b32.xlu2 %v3715_v26, %s5545_s14  ;;  %v12110_v0 = vrot.slane %v7187_v58, 1  ;;  %v3727_v58 = vrot.slane %v3701_v33, 1  ;;  %v3353_v33 = vmul.f32 %v7256_v25, %v7170_v1 }
 0x3bd   :  { %3733 = vrot.lane.b32.xlu0 %v3718_v44, %s5545_s14  ;;  %v3722_v44 = vsel %vm590_vm0, %v3717_v21, %v11636_v42  ;;  %v7679_v42 = vstv %s5283_s11  ;;  %s8333_s11 = sld [smem:[#allocation2 + $0x2b]] }
 0x3be   :  { %v7648_v40 = vpop.permute.xlu1 %2875  ;;  %v7650_v63 = vpop.permute.xlu2 %3405  ;;  %v3312_v26 = vsel %vm590_vm0, %v12110_v0, %v12109_v47  ;;  %v11638_v47 = vrot.slane %v7668_v23, 1 }
 0x3bf   :  { %12106 = vst [vmem:[#allocation310_spill] sm:$0xff] %v7648_v40  ;;  %v7653_v2 = vpop.permute.xlu0 %3337  ;;  %v3724_v40 = vsel %vm590_vm0, %v11637_v35, %v3723_v20  ;;  %v3762_v35 = vmul.f32 %v7679_v42, %v7177_v34 }
 0x3c0   :  { %12107 = vst [vmem:[#allocation311_spill] sm:$0xff] %v7650_v63 }
 0x3c1   :  { %12108 = vst [vmem:[#allocation312_spill] sm:$0xff] %v7653_v2  ;;  %v3702_v2 = vmul.f32 %v3692_v31, %v7233_v9  ;;  %v12113_v31 = vrot.slane %v7245_v51, 1 }
 0x3c3   :  { %v3729_v0 = vrot.slane %v3702_v2, 1  ;;  %v7696_v2 = vld [vmem:[%s11610_s2 + $0x28] sm:$0xff] }
 0x3c4   :  { %3327 = vrot.lane.b32.xlu1 %v3312_v26, %s5544_s25  ;;  %3737 = vrot.lane.b32.xlu2 %v3722_v44, %s5545_s14  ;;  %v12114_v26 = vrot.slane %v7207_v37, 1  ;;  %v7700_v51 = vmul.f32 %v7696_v2, %v7679_v42 }
 0x3c5   :  { %3739 = vrot.lane.b32.xlu0 %v3724_v40, %s5545_s14  ;;  %v3728_v40 = vsel %vm590_vm0, %v3723_v20, %v3727_v58  ;;  %v3730_v37 = vsel %vm590_vm0, %v11638_v47, %v3729_v0  ;;  %v7708_v20 = vld [vmem:[%s11610_s2 + $0x20] sm:$0xff]  ;;  %v3373_v0 = vrot.slane %v3353_v33, 1  ;;  %v3784_v47 = vrot.slane %v3762_v35, 1 }
 0x3c6   :  { %v7674_v17 = vpop.permute.xlu1 %2911  ;;  %v7676_v21 = vpop.permute.xlu2 %3463  ;;  %v3318_v44 = vsel %vm590_vm0, %v12114_v26, %v12113_v31  ;;  %12115 = vst [vmem:[#allocation315_spill] sm:$0xff] %v7700_v51  ;;  %v7712_v58 = vmul.f32 %v7708_v20, %v7679_v42  ;;  %v7717_v31 = vld [vmem:[%s11610_s2 + $0x38] sm:$0xff]  ;;  %v7740_v33 = vmul.f32 %v7679_v42, %v6907_v60 }
 0x3c7   :  { %12111 = vst [vmem:[#allocation313_spill] sm:$0xff] %v7674_v17  ;;  %v7681_v4 = vpop.permute.xlu0 %3395  ;;  %v3765_v26 = vmul.f32 %v7717_v31, %v7679_v42  ;;  %v11639_v17 = vrot.slane %v7700_v51, 1  ;;  %v12124_v51 = vrot.slane %v7303_v28, 1 }
 0x3c8   :  { %12112 = vst [vmem:[#allocation314_spill] sm:$0xff] %v7681_v4  ;;  %v11640_v4 = vrot.slane %v7712_v58, 1 }
 0x3c9   :  { %v3787_v6 = vrot.slane %v3765_v26, 1  ;;  %v3786_v35 = vsel %vm590_vm0, %v3784_v47, %v11639_v17  ;;  %12120 = vst [vmem:[#allocation319_spill] sm:$0xff] %v7740_v33  ;;  %v7748_v26 = vld [vmem:[%s11610_s2 + $0x40] sm:$0xff]  ;;  %v7757_v47 = vld [vmem:[%s11610_s2 + $0x58] sm:$0xff] }
 0x3ca   :  { %v3768_v60 = vmul.f32 %v7757_v47, %v7679_v42 }
 0x3cc   :  { %3333 = vrot.lane.b32.xlu1 %v3318_v44, %s5544_s25  ;;  %3743 = vrot.lane.b32.xlu2 %v3728_v40, %s5545_s14  ;;  %v12119_v44 = vrot.slane %v7274_v46, 1  ;;  %v7752_v46 = vmul.f32 %v7748_v26, %v7679_v42 }
 0x3cd   :  { %3745 = vrot.lane.b32.xlu0 %v3730_v37, %s5545_s14  ;;  %v3788_v37 = vsel %vm590_vm0, %v11640_v4, %v3787_v6 }
 0x3ce   :  { %v7725_v48 = vpop.permute.xlu1 %2917  ;;  %v7727_v59 = vpop.permute.xlu2 %3469  ;;  %v3375_v40 = vsel %vm590_vm0, %v3373_v0, %v12119_v44  ;;  %12121 = vst [vmem:[#allocation320_spill] sm:$0xff] %v7752_v46  ;;  %v11642_v0 = vrot.slane %v7740_v33, 1  ;;  %v11643_v4 = vrot.slane %v7752_v46, 1 }
 0x3cf   :  { %12116 = vst [vmem:[#allocation316_spill] sm:$0xff] %v7725_v48  ;;  %v7730_v63 = vpop.permute.xlu0 %3401  ;;  %v3793_v48 = vrot.slane %v3768_v60, 1  ;;  %v3770_v60 = vmul.f32 %v7679_v42, %v7233_v9 }
 0x3d0   :  { %12117 = vst [vmem:[#allocation317_spill] sm:$0xff] %v7727_v59  ;;  %v7770_v59 = vstv %s5284_s19  ;;  %s8190_s19 = sld [smem:[#allocation2 + $0x12]] }
 0x3d1   :  { %12118 = vst [vmem:[#allocation318_spill] sm:$0xff] %v7730_v63  ;;  %v3829_v28 = vmul.f32 %v7770_v59, %v7170_v1 }
 0x3d4   :  { %3391 = vrot.lane.b32.xlu1 %v3375_v40, %s5544_s25  ;;  %3801 = vrot.lane.b32.xlu2 %v3786_v35, %s5545_s14  ;;  %v12125_v40 = vrot.slane %v7267_v13, 1  ;;  %v3831_v13 = vmul.f32 %v7708_v20, %v7770_v59 }
 0x3d5   :  { %3803 = vrot.lane.b32.xlu0 %v3788_v37, %s5545_s14  ;;  %v3792_v37 = vsel %vm590_vm0, %v3787_v6, %v11642_v0  ;;  %v3797_v6 = vrot.slane %v3770_v60, 1  ;;  %v3849_v0 = vrot.slane %v3829_v28, 1  ;;  %v7810_v60 = vmul.f32 %v7717_v31, %v7770_v59 }
 0x3d6   :  { %v7765_v44 = vpop.permute.xlu1 %2923  ;;  %v3528_v17 = vpop.permute.xlu2 %3527  ;;  %v3382_v35 = vsel %vm590_vm0, %v12125_v40, %v12124_v51 }
 0x3d7   :  { %12122 = vst [vmem:[#allocation321_spill] sm:$0xff] %v7765_v44  ;;  %v7768_v63 = vpop.permute.xlu0 %3459  ;;  %v3361_v44 = vmul.f32 %v7256_v25, %v7226_v16 }
 0x3d8   :  { %12123 = vst [vmem:[#allocation322_spill] sm:$0xff] %v7768_v63  ;;  %v3794_v63 = vsel %vm590_vm0, %v11643_v4, %v3793_v48  ;;  %v3850_v4 = vrot.slane %v3831_v13, 1  ;;  %v7815_v13 = vmul.f32 %v7696_v2, %v7770_v59 }
 0x3d9   :  { %v3387_v25 = vrot.slane %v3361_v44, 1  ;;  %v3422_v44 = vmul.f32 %v7318_v53, %v7177_v34  ;;  %12130 = vst [vmem:[#allocation326_spill] sm:$0xff] %v7810_v60 }
 0x3da   :  { %v3851_v28 = vsel %vm590_vm0, %v3849_v0, %v3850_v4  ;;  %v11647_v0 = vrot.slane %v7815_v13, 1 }
 0x3dc   :  { %3397 = vrot.lane.b32.xlu1 %v3382_v35, %s5544_s25  ;;  %3807 = vrot.lane.b32.xlu2 %v3792_v37, %s5545_s14  ;;  %v12129_v35 = vrot.slane %v7296_v5, 1  ;;  %v3834_v5 = vmul.f32 %v7748_v26, %v7770_v59 }
 0x3dd   :  { %3809 = vrot.lane.b32.xlu0 %v3794_v63, %s5545_s14  ;;  %v3798_v63 = vsel %vm590_vm0, %v3793_v48, %v3797_v6  ;;  %v3444_v48 = vrot.slane %v3422_v44, 1  ;;  %v7836_v44 = vmul.f32 %v7757_v47, %v7770_v59 }
 0x3de   :  { %v7794_v51 = vpop.permute.xlu1 %2959  ;;  %v7796_v40 = vpop.permute.xlu2 %3533  ;;  %v3388_v37 = vsel %vm590_vm0, %v12129_v35, %v3387_v25  ;;  %v3857_v6 = vrot.slane %v3834_v5, 1  ;;  %v7844_v5 = vld [vmem:[%s11610_s2 + $0x50] sm:$0xff] }
 0x3df   :  { %12126 = vst [vmem:[#allocation323_spill] sm:$0xff] %v7794_v51  ;;  %v3466_v33 = vpop.permute.xlu0 %3465 }
 0x3e0   :  { %12127 = vst [vmem:[#allocation324_spill] sm:$0xff] %v7796_v40  ;;  %v7800_v46 = vsel %vm145_vm2, %v7676_v21, %v3466_v33  ;;  %v11646_v21 = vrot.slane %v7810_v60, 1 }
 0x3e1   :  { %12128 = vst [vmem:[#allocation325_spill] sm:$0xff] %v7800_v46  ;;  %v12133_v46 = vrot.slane %v7353_v8, 1  ;;  %v7848_v8 = vmul.f32 %v7844_v5, %v7770_v59 }
 0x3e2   :  { %12134 = vst [vmem:[#allocation329_spill] sm:$0xff] %v7836_v44 }
 0x3e4   :  { %3403 = vrot.lane.b32.xlu1 %v3388_v37, %s5544_s25  ;;  %3813 = vrot.lane.b32.xlu2 %v3798_v63, %s5545_s14  ;;  %v3446_v37 = vsel %vm590_vm0, %v3444_v48, %v12133_v46  ;;  %v3856_v63 = vsel %vm590_vm0, %v3850_v4, %v11646_v21  ;;  %v3837_v4 = vmul.f32 %v7770_v59, %v7226_v16  ;;  %v11649_v46 = vrot.slane %v7836_v44, 1 }
 0x3e5   :  { %3867 = vrot.lane.b32.xlu0 %v3851_v28, %s5545_s14  ;;  %v3858_v28 = vsel %vm590_vm0, %v11647_v0, %v3857_v6 }
 0x3e6   :  { %v7823_v33 = vpop.permute.xlu1 %2965  ;;  %v3540_v25 = vpop.permute.xlu2 %3539  ;;  %v3863_v51 = vrot.slane %v3837_v4, 1  ;;  %v3862_v60 = vsel %vm590_vm0, %v3857_v6, %v11649_v46 }
 0x3e7   :  { %12131 = vst [vmem:[#allocation327_spill] sm:$0xff] %v7823_v33  ;;  %v7826_v35 = vpop.permute.xlu0 %3471 }
 0x3e8   :  { %12132 = vst [vmem:[#allocation328_spill] sm:$0xff] %v7826_v35  ;;  %v3896_v35 = vstv %s5285_s23  ;;  %s8857_s23 = sld [smem:[#allocation2 + $0x11]] }
 0x3e9   :  { %v3897_v4 = vmul.f32 %v3896_v35, %v7170_v1  ;;  %v7876_v0 = vmul.f32 %v7708_v20, %v3896_v35 }
 0x3eb   :  { %12139 = vst [vmem:[#allocation332_spill] sm:$0xff] %v7876_v0  ;;  %v3917_v6 = vrot.slane %v3897_v4, 1  ;;  %v7902_v4 = vmul.f32 %v7717_v31, %v3896_v35 }
 0x3ec   :  { %3461 = vrot.lane.b32.xlu1 %v3446_v37, %s5544_s25  ;;  %3871 = vrot.lane.b32.xlu2 %v3856_v63, %s5545_s14  ;;  %v12137_v37 = vrot.slane %v7382_v50, 1  ;;  %v12138_v63 = vrot.slane %v7348_v15, 1  ;;  %v3898_v15 = vmul.f32 %v3896_v35, %v7177_v34  ;;  %v12143_v34 = vrot.slane %v7375_v61, 1 }
 0x3ed   :  { %3873 = vrot.lane.b32.xlu0 %v3858_v28, %s5545_s14  ;;  %12145 = vst [vmem:[#allocation336_spill] sm:$0xff] %v7902_v4 }
 0x3ee   :  { %v7856_v48 = vpop.permute.xlu1 %2971  ;;  %v7858_v21 = vpop.permute.xlu2 %3597  ;;  %v3452_v28 = vsel %vm590_vm0, %v12138_v63, %v12137_v37  ;;  %v11651_v37 = vrot.slane %v7876_v0, 1  ;;  %v12245_v0 = vld [vmem:[#allocation27_spill] sm:$0xff] }
 0x3ef   :  { %12135 = vst [vmem:[#allocation330_spill] sm:$0xff] %v7858_v21  ;;  %v3530_v33 = vpop.permute.xlu0 %3529  ;;  %v3430_v21 = vmul.f32 %v7318_v53, %v7233_v9 }
 0x3f0   :  { %v7862_v40 = vsel %vm145_vm2, %v3528_v17, %v3530_v33  ;;  %v12140_v17 = vrot.slane %v7848_v8, 1  ;;  %v3900_v33 = vmul.f32 %v7696_v2, %v3896_v35 }
 0x3f1   :  { %12136 = vst [vmem:[#allocation331_spill] sm:$0xff] %v7862_v40  ;;  %v3457_v53 = vrot.slane %v3430_v21, 1  ;;  %v3920_v40 = vrot.slane %v3898_v15, 1  ;;  %v7898_v21 = vmul.f32 %v7748_v26, %v3896_v35 }
 0x3f2   :  { %v3864_v50 = vsel %vm590_vm0, %v12140_v17, %v3863_v51  ;;  %v3921_v44 = vrot.slane %v3900_v33, 1 }
 0x3f3   :  { %v3458_v17 = vsel %vm590_vm0, %v12143_v34, %v3457_v53  ;;  %12144 = vst [vmem:[#allocation335_spill] sm:$0xff] %v7898_v21  ;;  %v11652_v61 = vrot.slane %v7898_v21, 1  ;;  %v11653_v53 = vrot.slane %v7902_v4, 1  ;;  %v8290_v21 = vstv %s8219_s1  ;;  %s10394_s1 = sld [smem:[#allocation2 + $0x27]] }
 0x3f4   :  { %3467 = vrot.lane.b32.xlu1 %v3452_v28, %s5544_s25  ;;  %3877 = vrot.lane.b32.xlu2 %v3862_v60, %s5545_s14  ;;  %v3919_v60 = vsel %vm590_vm0, %v3917_v6, %v11651_v37  ;;  %v3922_v28 = vsel %vm590_vm0, %v3920_v40, %v3921_v44  ;;  %12212 = vst [vmem:[#allocation380_spill] sm:$0xff] %v8290_v21 }
 0x3f5   :  { %3879 = vrot.lane.b32.xlu0 %v3864_v50, %s5545_s14  ;;  %v3903_v50 = vmul.f32 %v7844_v5, %v3896_v35  ;;  %v3926_v37 = vsel %vm590_vm0, %v3921_v44, %v11652_v61 }
 0x3f6   :  { %v7887_v63 = vpop.permute.xlu1 %3007  ;;  %v3604_v46 = vpop.permute.xlu2 %3603 }
 0x3f7   :  { %12141 = vst [vmem:[#allocation333_spill] sm:$0xff] %v7887_v63  ;;  %v7889_v51 = vpop.permute.xlu0 %3535  ;;  %v3927_v40 = vrot.slane %v3903_v50, 1  ;;  %v3905_v63 = vmul.f32 %v3896_v35, %v7226_v16 }
 0x3f8   :  { %12142 = vst [vmem:[#allocation334_spill] sm:$0xff] %v7889_v51  ;;  %v7930_v51 = vmul.f32 %v7757_v47, %v3896_v35 }
 0x3f9   :  { %v3928_v50 = vsel %vm590_vm0, %v11653_v53, %v3927_v40 }
 0x3fa   :  { %12150 = vst [vmem:[#allocation339_spill] sm:$0xff] %v7930_v51 }
 0x3fc   :  { %3473 = vrot.lane.b32.xlu1 %v3458_v17, %s5544_s25  ;;  %3935 = vrot.lane.b32.xlu2 %v3919_v60, %s5545_s14  ;;  %v12148_v17 = vrot.slane %v7431_v39, 1  ;;  %v12149_v60 = vrot.slane %v7404_v22, 1  ;;  %v3931_v22 = vrot.slane %v3905_v63, 1  ;;  %v12155_v63 = vrot.slane %v7427_v32, 1 }
 0x3fd   :  { %3937 = vrot.lane.b32.xlu0 %v3922_v28, %s5545_s14 }
 0x3fe   :  { %v7909_v15 = vpop.permute.xlu1 %3013  ;;  %v7911_v33 = vpop.permute.xlu2 %3609  ;;  %v3516_v28 = vsel %vm590_vm0, %v12149_v60, %v12148_v17  ;;  %v7944_v60 = vld [vmem:[%s11610_s2 + $0x10] sm:$0xfc] }
 0x3ff   :  { %12146 = vst [vmem:[#allocation337_spill] sm:$0xff] %v7911_v33  ;;  %v3542_v6 = vpop.permute.xlu0 %3541 }
 0x400   :  { %v7915_v34 = vsel %vm145_vm2, %v3540_v25, %v3542_v6  ;;  %v3906_v25 = vmul.f32 %v3896_v35, %v7233_v9  ;;  %v11654_v6 = vrot.slane %v7930_v51, 1  ;;  %v7946_v9 = vstv %s5291_s26  ;;  %s8485_s26 = sld [smem:[#allocation2 + $0x1b]] }
 0x401   :  { %12147 = vst [vmem:[#allocation338_spill] sm:$0xff] %v7915_v34  ;;  %v4117_v61 = vmul.f32 %v7946_v9, %v7944_v60  ;;  %v7962_v53 = vmul.f32 %v7696_v2, %v7946_v9  ;;  %v7969_v32 = vmul.f32 %v7708_v20, %v7946_v9  ;;  %v2746_v51 = vsel %vm145_vm2, %v7361_v24, %v7390_v12 }
 0x402   :  { %v3933_v17 = vrot.slane %v3906_v25, 1  ;;  %12152 = vst [vmem:[#allocation341_spill] sm:$0xff] %v7946_v9  ;;  %v3557_v25 = vmul.f32 %v7466_v41, %v7170_v1  ;;  %v44_v24 = vstv %s8227_s27  ;;  %s8508_s27 = sld [smem:[#allocation2 + $0x15]] }
 0x403   :  { %12156 = vst [vmem:[#allocation343_spill] sm:$0xff] %v7962_v53 }
 0x404   :  { %3531 = vrot.lane.b32.xlu1 %v3516_v28, %s5544_s25  ;;  %3941 = vrot.lane.b32.xlu2 %v3926_v37, %s5545_s14  ;;  %v12154_v37 = vrot.slane %v7455_v18, 1  ;;  %v3934_v18 = vsel %vm590_vm0, %v11654_v6, %v3933_v17  ;;  %12157 = vst [vmem:[#allocation344_spill] sm:$0xff] %v7969_v32  ;;  %v3577_v1 = vrot.slane %v3557_v25, 1  ;;  %v11656_v6 = vrot.slane %v7969_v32, 2 }
 0x405   :  { %3943 = vrot.lane.b32.xlu0 %v3928_v50, %s5545_s14  ;;  %v3932_v50 = vsel %vm590_vm0, %v3927_v40, %v3931_v22  ;;  %v4120_v40 = vmul.f32 %v7717_v31, %v7946_v9  ;;  %v4139_v22 = vrot.slane %v4117_v61, 2  ;;  %v7993_v25 = vmul.f32 %v7844_v5, %v7946_v9 }
 0x406   :  { %v7936_v39 = vpop.permute.xlu1 %3049  ;;  %v7938_v44 = vpop.permute.xlu2 %3667  ;;  %v3522_v28 = vsel %vm590_vm0, %v12155_v63, %v12154_v37  ;;  %v11655_v37 = vrot.slane %v7962_v53, 2 }
 0x407   :  { %12151 = vst [vmem:[#allocation340_spill] sm:$0xff] %v7936_v39  ;;  %v7948_v35 = vpop.permute.xlu0 %3599 }
 0x408   :  { %12153 = vst [vmem:[#allocation342_spill] sm:$0xff] %v7948_v35  ;;  %v4142_v35 = vrot.slane %v4120_v40, 2  ;;  %v4141_v61 = vsel %vm1428_vm1, %v4139_v22, %v11655_v37  ;;  %v8016_v37 = vld [vmem:[%s11610_s2 + $0x70] sm:$0x3]  ;;  %v12169_v22 = vrot.slane %v7993_v25, 2 }
 0x409   :  { %12161 = vst [vmem:[#allocation347_spill] sm:$0xff] %v7993_v25 }
 0x40a   :  { %12164 = vst [vmem:[#allocation350_spill] sm:$0xff] %v8016_v37 }
 0x40c   :  { %3537 = vrot.lane.b32.xlu1 %v3522_v28, %s5544_s25  ;;  %3947 = vrot.lane.b32.xlu2 %v3932_v50, %s5545_s14  ;;  %v12160_v28 = vrot.slane %v7484_v57, 1  ;;  %v4123_v57 = vmul.f32 %v7757_v47, %v7946_v9 }
 0x40d   :  { %3949 = vrot.lane.b32.xlu0 %v3934_v18, %s5545_s14  ;;  %v4143_v18 = vsel %vm1428_vm1, %v11656_v6, %v4142_v35 }
 0x40e   :  { %v7977_v63 = vpop.permute.xlu1 %3055  ;;  %v7979_v17 = vpop.permute.xlu2 %3673  ;;  %v3579_v50 = vsel %vm590_vm0, %v3577_v1, %v12160_v28  ;;  %v4148_v28 = vrot.slane %v4123_v57, 2 }
 0x40f   :  { %12158 = vst [vmem:[#allocation345_spill] sm:$0xff] %v7979_v17  ;;  %v3606_v34 = vpop.permute.xlu0 %3605 }
 0x410   :  { %v7983_v39 = vsel %vm145_vm2, %v3604_v46, %v3606_v34  ;;  %v8000_v46 = vmul.f32 %v7748_v26, %v7946_v9  ;;  %v12168_v34 = vrot.slane %v7477_v43, 1 }
 0x411   :  { %12159 = vst [vmem:[#allocation346_spill] sm:$0xff] %v7983_v39  ;;  %v4147_v39 = vsel %vm1428_vm1, %v4142_v35, %v12169_v22 }
 0x412   :  { %12162 = vst [vmem:[#allocation348_spill] sm:$0xff] %v8000_v46  ;;  %v12170_v17 = vrot.slane %v8000_v46, 2  ;;  %v8234_v46 = vstv %s5294_s17  ;;  %s10336_s17 = sld [smem:[#allocation2 + $0x1e]] }
 0x413   :  { %12202 = vst [vmem:[#allocation373_spill] sm:$0xff] %v8234_v46 }
 0x414   :  { %3595 = vrot.lane.b32.xlu1 %v3579_v50, %s5544_s25  ;;  %4156 = vrot.lane.b32.xlu2 %v4141_v61, %s5544_s25  ;;  %v8023_v50 = vld [vmem:[%s11610_s2 + $0x8] sm:$0xfc]  ;;  %v8025_v61 = vstv %s5292_s29  ;;  %v4149_v53 = vsel %vm1428_vm1, %v12170_v17, %v4148_v28 }
 0x415   :  { %4158 = vrot.lane.b32.xlu0 %v4143_v18, %s5544_s25  ;;  %12166 = vst [vmem:[#allocation352_spill] sm:$0xff] %v8025_v61  ;;  %v12167_v18 = vrot.slane %v7513_v56, 1  ;;  %v4184_v56 = vmul.f32 %v8025_v61, %v8023_v50  ;;  %v4186_v43 = vmul.f32 %v7708_v20, %v8025_v61 }
 0x416   :  { %v8008_v40 = vpop.permute.xlu1 %3061  ;;  %v8010_v1 = vpop.permute.xlu2 %3731 }
 0x417   :  { %12163 = vst [vmem:[#allocation349_spill] sm:$0xff] %v8008_v40  ;;  %v8018_v6 = vpop.permute.xlu0 %3663  ;;  %v3586_v57 = vsel %vm590_vm0, %v12168_v34, %v12167_v18  ;;  %v4125_v40 = vmul.f32 %v7946_v9, %v8016_v37  ;;  %v4204_v22 = vrot.slane %v4184_v56, 2  ;;  %v4205_v17 = vrot.slane %v4186_v43, 2 }
 0x418   :  { %12165 = vst [vmem:[#allocation351_spill] sm:$0xff] %v8018_v6  ;;  %v3565_v6 = vmul.f32 %v7466_v41, %v7226_v16  ;;  %v8070_v56 = vmul.f32 %v7717_v31, %v8025_v61  ;;  %v74_v9 = vstv %s8190_s19  ;;  %s9269_s19 = sld [smem:[#allocation2 + $0xf]] }
 0x419   :  { %v4152_v41 = vrot.slane %v4125_v40, 2 }
 0x41a   :  { %v3591_v16 = vrot.slane %v3565_v6, 1  ;;  %v8064_v6 = vld [vmem:[%s11610_s2 + $0x10] sm:$0xfe]  ;;  %12174 = vst [vmem:[#allocation355_spill] sm:$0xff] %v8070_v56 }
 0x41b   :  { %v3626_v40 = vmul.f32 %v8064_v6, %v7528_v52 }
 0x41c   :  { %3601 = vrot.lane.b32.xlu1 %v3586_v57, %s5544_s25  ;;  %4162 = vrot.lane.b32.xlu2 %v4147_v39, %s5544_s25  ;;  %v12173_v57 = vrot.slane %v7506_v10, 1  ;;  %v8075_v10 = vmul.f32 %v7696_v2, %v8025_v61 }
 0x41d   :  { %4164 = vrot.lane.b32.xlu0 %v4149_v53, %s5544_s25  ;;  %v4153_v53 = vsel %vm1428_vm1, %v4148_v28, %v4152_v41  ;;  %v4189_v28 = vmul.f32 %v7748_v26, %v8025_v61  ;;  %v3648_v43 = vrot.slane %v3626_v40, 1 }
 0x41e   :  { %v8049_v35 = vpop.permute.xlu1 %3097  ;;  %v8051_v34 = vpop.permute.xlu2 %3737  ;;  %v3592_v39 = vsel %vm590_vm0, %v12173_v57, %v3591_v16  ;;  %12175 = vst [vmem:[#allocation356_spill] sm:$0xff] %v8075_v10  ;;  %v11659_v16 = vrot.slane %v8070_v56, 2 }
 0x41f   :  { %12171 = vst [vmem:[#allocation353_spill] sm:$0xff] %v8051_v34  ;;  %v3670_v18 = vpop.permute.xlu0 %3669  ;;  %v4212_v57 = vrot.slane %v4189_v28, 2  ;;  %v12180_v28 = vrot.slane %v8075_v10, 2  ;;  %v4251_v34 = vstv %s5293_s9  ;;  %s8691_s9 = sld [smem:[#allocation4 + $0x4]] }
 0x420   :  { %v8055_v25 = vsel %vm376_vm3, %v7938_v44, %v3670_v18  ;;  %v4206_v44 = vsel %vm1428_vm1, %v4204_v22, %v4205_v17  ;;  %v8103_v22 = vmul.f32 %v7757_v47, %v8025_v61 }
 0x421   :  { %12172 = vst [vmem:[#allocation354_spill] sm:$0xff] %v8055_v25 }
 0x422   :  { %12179 = vst [vmem:[#allocation359_spill] sm:$0xff] %v8103_v22 }
 0x424   :  { %3607 = vrot.lane.b32.xlu1 %v3592_v39, %s5544_s25  ;;  %4168 = vrot.lane.b32.xlu2 %v4153_v53, %s5544_s25  ;;  %v8093_v39 = vld [vmem:[%s11610_s2 + $0x68] sm:$0x3]  ;;  %v12178_v53 = vrot.slane %v7563_v30, 1 }
 0x425   :  { %4222 = vrot.lane.b32.xlu0 %v4206_v44, %s5544_s25  ;;  %v4211_v44 = vsel %vm1428_vm1, %v4205_v17, %v11659_v16  ;;  %v4192_v30 = vmul.f32 %v8025_v61, %v8093_v39  ;;  %v11664_v17 = vrot.slane %v8103_v22, 2 }
 0x426   :  { %v8083_v41 = vpop.permute.xlu1 %3103  ;;  %v8085_v18 = vpop.permute.xlu2 %3743  ;;  %v3650_v40 = vsel %vm590_vm0, %v3648_v43, %v12178_v53 }
 0x427   :  { %12176 = vst [vmem:[#allocation357_spill] sm:$0xff] %v8083_v41  ;;  %v8088_v25 = vpop.permute.xlu0 %3675  ;;  %v8110_v41 = vmul.f32 %v7844_v5, %v8025_v61  ;;  %v4218_v16 = vrot.slane %v4192_v30, 2  ;;  %v4217_v61 = vsel %vm1428_vm1, %v4212_v57, %v11664_v17  ;;  %v8138_v30 = vld [vmem:[%s11610_s2 + $0x70] sm:$0x1] }
 0x428   :  { %12177 = vst [vmem:[#allocation358_spill] sm:$0xff] %v8088_v25  ;;  %v4213_v25 = vsel %vm1428_vm1, %v12180_v28, %v4212_v57  ;;  %v3634_v28 = vmul.f32 %v8138_v30, %v7528_v52  ;;  %v4255_v57 = vmul.f32 %v7696_v2, %v4251_v34 }
 0x429   :  { %12181 = vst [vmem:[#allocation360_spill] sm:$0xff] %v8110_v41 }
 0x42a   :  { %v3661_v52 = vrot.slane %v3634_v28, 1  ;;  %v8168_v28 = vmul.f32 %v7748_v26, %v4251_v34 }
 0x42c   :  { %3665 = vrot.lane.b32.xlu1 %v3650_v40, %s5545_s14  ;;  %4226 = vrot.lane.b32.xlu2 %v4211_v44, %s5544_s25  ;;  %v12185_v40 = vrot.slane %v7592_v27, 1  ;;  %v12186_v44 = vrot.slane %v7558_v36, 1  ;;  %v8144_v27 = vmul.f32 %v7708_v20, %v4251_v34  ;;  %v12188_v36 = vrot.slane %v8110_v41, 2  ;;  %12192 = vst [vmem:[#allocation367_spill] sm:$0xff] %v8168_v28 }
 0x42d   :  { %4228 = vrot.lane.b32.xlu0 %v4213_v25, %s5544_s25  ;;  %v12191_v41 = vrot.slane %v7585_v45, 1 }
 0x42e   :  { %v8118_v43 = vpop.permute.xlu1 %3109  ;;  %v8120_v53 = vpop.permute.xlu2 %3801  ;;  %v3656_v25 = vsel %vm590_vm0, %v12186_v44, %v12185_v40  ;;  %12187 = vst [vmem:[#allocation364_spill] sm:$0xff] %v8144_v27  ;;  %v4253_v40 = vmul.f32 %v4251_v34, %v7944_v60  ;;  %v11667_v17 = vrot.slane %v8144_v27, 2 }
 0x42f   :  { %12182 = vst [vmem:[#allocation361_spill] sm:$0xff] %v8118_v43  ;;  %v3734_v56 = vpop.permute.xlu0 %3733 }
 0x430   :  { %12183 = vst [vmem:[#allocation362_spill] sm:$0xff] %v8120_v53  ;;  %v8125_v10 = vsel %vm376_vm3, %v8010_v1, %v3734_v56  ;;  %v4252_v1 = vmul.f32 %v4251_v34, %v8023_v50  ;;  %v4219_v56 = vsel %vm1428_vm1, %v12188_v36, %v4218_v16  ;;  %v4275_v22 = vrot.slane %v4253_v40, 2 }
 0x431   :  { %12184 = vst [vmem:[#allocation363_spill] sm:$0xff] %v8125_v10  ;;  %v4276_v16 = vrot.slane %v4255_v57, 2  ;;  %v4258_v40 = vmul.f32 %v7844_v5, %v4251_v34 }
 0x432   :  { %v4272_v44 = vrot.slane %v4252_v1, 2 }
 0x433   :  { %v4277_v1 = vsel %vm1428_vm1, %v4275_v22, %v4276_v16  ;;  %v12198_v22 = vrot.slane %v8168_v28, 2 }
 0x434   :  { %3671 = vrot.lane.b32.xlu1 %v3656_v25, %s5545_s14  ;;  %4232 = vrot.lane.b32.xlu2 %v4217_v61, %s5544_s25  ;;  %v3662_v25 = vsel %vm590_vm0, %v12191_v41, %v3661_v52  ;;  %v4274_v61 = vsel %vm1428_vm1, %v4272_v44, %v11667_v17  ;;  %v4282_v52 = vrot.slane %v4258_v40, 2  ;;  %v54_v17 = vstv %s53_s15 }
 0x435   :  { %4234 = vrot.lane.b32.xlu0 %v4219_v56, %s5544_s25  ;;  %v8172_v56 = vmul.f32 %v7717_v31, %v4251_v34  ;;  %v4281_v40 = vsel %vm1428_vm1, %v4276_v16, %v12198_v22  ;;  %v5471_v22 = vld [vmem:[%s11610_s2] sm:$0xff] }
 0x436   :  { %v8155_v10 = vpop.permute.xlu1 %3327  ;;  %v8157_v53 = vpop.permute.xlu2 %3807 }
 0x437   :  { %12189 = vst [vmem:[#allocation365_spill] sm:$0xff] %v8155_v10  ;;  %v8159_v36 = vpop.permute.xlu0 %3739  ;;  %v4260_v10 = vmul.f32 %v4251_v34, %v8093_v39 }
 0x438   :  { %12190 = vst [vmem:[#allocation366_spill] sm:$0xff] %v8159_v36 }
 0x439   :  { %12193 = vst [vmem:[#allocation368_spill] sm:$0xff] %v8172_v56  ;;  %v4286_v28 = vrot.slane %v4260_v10, 2 }
 0x43c   :  { %3677 = vrot.lane.b32.xlu1 %v3662_v25, %s5545_s14  ;;  %4290 = vrot.lane.b32.xlu2 %v4274_v61, %s5544_s25  ;;  %v12196_v61 = vrot.slane %v7641_v38, 1  ;;  %v4261_v38 = vmul.f32 %v4251_v34, %v8016_v37 }
 0x43d   :  { %4292 = vrot.lane.b32.xlu0 %v4277_v1, %s5544_s25  ;;  %v12197_v1 = vrot.slane %v7614_v55, 1  ;;  %v8213_v55 = vld [vmem:[%s11610_s2 + $0x30] sm:$0xff] }
 0x43e   :  { %v8179_v41 = vpop.permute.xlu1 %3333  ;;  %v8181_v57 = vpop.permute.xlu2 %3813  ;;  %v57_v16 = vmul.f32 %v8213_v55, %v54_v17 }
 0x43f   :  { %12194 = vst [vmem:[#allocation369_spill] sm:$0xff] %v8179_v41  ;;  %v3746_v44 = vpop.permute.xlu0 %3745  ;;  %v3720_v45 = vsel %vm590_vm0, %v12197_v1, %v12196_v61  ;;  %v55_v61 = vmul.f32 %v5471_v22, %v54_v17  ;;  %v4288_v41 = vrot.slane %v4261_v38, 2 }
 0x440   :  { %12195 = vst [vmem:[#allocation370_spill] sm:$0xff] %v8181_v57  ;;  %v8188_v25 = vsel %vm376_vm3, %v8085_v18, %v3746_v44  ;;  %v12199_v57 = vrot.slane %v8172_v56, 2  ;;  %v8207_v44 = vmul.f32 %v7757_v47, %v4251_v34  ;;  %v5472_v34 = vld [vmem:[%s11610_s2 + $0x18] sm:$0xff] }
 0x441   :  { %v56_v1 = vmul.f32 %v5472_v34, %v54_v17  ;;  %v76_v12 = vmul.f32 %v5472_v34, %v74_v9 }
 0x442   :  { %v4283_v18 = vsel %vm1428_vm1, %v12199_v57, %v4282_v52  ;;  %12200 = vst [vmem:[#allocation371_spill] sm:$0xff] %v8207_v44  ;;  %v40_v57 = vstv %s39_s16 }
 0x443   :  { %v61_v33 = vadd.f32 %v57_v16, %v40_v57  ;;  %v8236_v32 = vadd.f32 %v55_v61, %v40_v57  ;;  %v8243_v10 = vadd.f32 %v56_v1, %v40_v57  ;;  %v12205_v16 = vrot.slane %v7668_v23, 1  ;;  %v5474_v1 = vld [vmem:[%s11610_s2 + $0x8] sm:$0xfe] }
 0x444   :  { %3735 = vrot.lane.b32.xlu1 %v3720_v45, %s5545_s14  ;;  %4296 = vrot.lane.b32.xlu2 %v4281_v40, %s5544_s25  ;;  %v8239_v45 = vstv %s8184_s18  ;;  %v12206_v61 = vrot.slane %v7637_v7, 1  ;;  %v3761_v43 = vmul.f32 %v5474_v1, %v7679_v42  ;;  %v8269_v7 = vld [vmem:[%s11610_s2 + $0x68] sm:$0x1]  ;;  %v148_v1 = vsel %vm145_vm2, %v5684_v49, %v5692_v54 }
 0x445   :  { %4298 = vrot.lane.b32.xlu0 %v4283_v18, %s5544_s25  ;;  %12203 = vst [vmem:[#allocation374_spill] sm:$0xff] %v8239_v45  ;;  %v5473_v18 = vld [vmem:[%s11610_s2 + $0x48] sm:$0xff]  ;;  %v2620_v38 = vmul.f32 %v7844_v5, %v8239_v45  ;;  %v8264_v45 = vmul.f32 %v7696_v2, %v8234_v46  ;;  %v8272_v23 = vstv %s8201_s20  ;;  %v8303_v49 = vld [vmem:[%s11610_s2 + $0x50] sm:$0xff]  ;;  %s9276_s20 = sld [smem:[#allocation2 + $0x23]] }
 0x446   :  { %v8229_v27 = vpop.permute.xlu1 %3391  ;;  %v8231_v56 = vpop.permute.xlu2 %3871  ;;  %v58_v36 = vmul.f32 %v5473_v18, %v54_v17  ;;  %v4321_v17 = vmul.f32 %v8234_v46, %v7944_v60  ;;  %12208 = vst [vmem:[#allocation377_spill] sm:$0xff] %v8269_v7  ;;  %v8311_v54 = vmul.f32 %v8272_v23, %v8303_v49 }
 0x447   :  { %12201 = vst [vmem:[#allocation372_spill] sm:$0xff] %v8229_v27  ;;  %v8241_v40 = vpop.permute.xlu0 %3803  ;;  %v3726_v27 = vsel %vm590_vm0, %v12206_v61, %v12205_v16  ;;  %v8279_v16 = vmul.f32 %v7708_v20, %v8234_v46  ;;  %v8283_v61 = vmul.f32 %v7717_v31, %v8234_v46 }
 0x448   :  { %12204 = vst [vmem:[#allocation375_spill] sm:$0xff] %v8241_v40  ;;  %v4287_v40 = vsel %vm1428_vm1, %v4282_v52, %v4286_v28  ;;  %v12210_v28 = vrot.slane %v8207_v44, 2  ;;  %v3163_v44 = vmul.f32 %v8272_v23, %v8269_v7 }
 0x449   :  { %12207 = vst [vmem:[#allocation376_spill] sm:$0xff] %v8264_v45  ;;  %v12221_v34 = vrot.slane %v8279_v16, 2 }
 0x44a   :  { %12209 = vst [vmem:[#allocation378_spill] sm:$0xff] %v8272_v23  ;;  %v4289_v52 = vsel %vm1428_vm1, %v12210_v28, %v4288_v41  ;;  %v62_v41 = vadd.f32 %v58_v36, %v40_v57  ;;  %v2624_v28 = vadd.f32 %v2620_v38, %v8290_v21  ;;  %v3781_v36 = vrot.slane %v3761_v43, 1 }
 0x44b   :  { %12211 = vst [vmem:[#allocation379_spill] sm:$0xff] %v8279_v16  ;;  %v4343_v57 = vrot.slane %v4321_v17, 2  ;;  %v75_v38 = vmul.f32 %v5471_v22, %v74_v9  ;;  %v147_v23 = vsel %vm145_vm2, %v5708_v62, %v5720_v11  ;;  %v146_v43 = vsel %vm145_vm2, %v5712_v3, %v5724_v14 }
 0x44c   :  { %12213 = vst [vmem:[#allocation381_spill] sm:$0xff] %v8303_v49  ;;  %3741 = vrot.lane.b32.xlu1 %v3726_v27, %s5545_s14  ;;  %4302 = vrot.lane.b32.xlu2 %v4287_v40, %s5544_s25  ;;  %v4346_v40 = vrot.slane %v8283_v61, 2  ;;  %v2976_v22 = vsel %vm376_vm3, %v7366_v29, %v7856_v48  ;;  %v12217_v27 = vld [vmem:[#allocation12_spill] sm:$0xff]  ;;  %v2754_v62 = vadd.f32 %v2746_v51, %v2624_v28  ;;  %v11685_v3 = vrot.slane %v8311_v54, 1 }
 0x44d   :  { %12214 = vst [vmem:[#allocation382_spill] sm:$0xff] %v8311_v54  ;;  %4304 = vrot.lane.b32.xlu0 %v4289_v52, %s5544_s25  ;;  %v3176_v52 = vrot.slane %v3163_v44, 1  ;;  %v149_v61 = vsel %vm145_vm2, %v12217_v27, %v5732_v19  ;;  %v12218_v11 = vrot.slane %v7712_v58, 1  ;;  %v12219_v29 = vrot.slane %v8264_v45, 2  ;;  %v5475_v45 = vld [vmem:[%s11610_s2 + $0x68] sm:$0x1] }
 0x44e   :  { %v8316_v21 = vpop.permute.xlu1 %3397  ;;  %v8318_v7 = vpop.permute.xlu2 %3877  ;;  %v8349_v44 = vmul.f32 %v7844_v5, %v8234_v46  ;;  %v2984_v19 = vadd.f32 %v2976_v22, %v2754_v62  ;;  %v4347_v51 = vsel %vm1428_vm1, %v12221_v34, %v4346_v40  ;;  %v8356_v58 = vmul.f32 %v7748_v26, %v8234_v46 }
 0x44f   :  { %12215 = vst [vmem:[#allocation383_spill] sm:$0xff] %v8316_v21  ;;  %v8331_v17 = vpop.permute.xlu0 %3809  ;;  %v3783_v14 = vsel %vm590_vm0, %v3781_v36, %v12218_v11  ;;  %v4345_v48 = vsel %vm1428_vm1, %v4343_v57, %v12219_v29  ;;  %v8362_v28 = vadd.f32 %v148_v1, %v61_v33  ;;  %v8364_v36 = vadd.f32 %v75_v38, %v44_v24  ;;  %v12243_v21 = vld [vmem:[#allocation249_spill] sm:$0xff] }
 0x450   :  { %12216 = vst [vmem:[#allocation384_spill] sm:$0xff] %v8318_v7  ;;  %v78_v7 = vmul.f32 %v5473_v18, %v74_v9  ;;  %v8360_v18 = vmul.f32 %v7757_v47, %v8234_v46  ;;  %v77_v57 = vmul.f32 %v8213_v55, %v74_v9  ;;  %v3177_v27 = vsel %vm590_vm0, %v11685_v3, %v3176_v52  ;;  %v8387_v9 = vld [vmem:[%s11610_s2 + $0x18] sm:$0xff] }
 0x451   :  { %12220 = vst [vmem:[#allocation12_spill] sm:$0xff] %v8349_v44  ;;  %v8373_v22 = vadd.f32 %v147_v23, %v8243_v10  ;;  %v8376_v62 = vadd.f32 %v146_v43, %v8236_v32  ;;  %v8378_v11 = vadd.f32 %v76_v12, %v44_v24  ;;  %v8382_v33 = vadd.f32 %v149_v61, %v62_v41  ;;  %v12224_v52 = vld [vmem:[#allocation11_spill] sm:$0xff] }
 0x452   :  { %12222 = vst [vmem:[#allocation385_spill] sm:$0xff] %v8356_v58  ;;  %v8390_v55 = vstv %s8294_s7  ;;  %v8393_v10 = vstv %s8307_s10  ;;  %v11689_v32 = vrot.slane %v8349_v44, 2  ;;  %v8397_v23 = vadd.f32 %v78_v7, %v44_v24  ;;  %v12225_v61 = vld [vmem:[#allocation19_spill] sm:$0xff]  ;;  %v12241_v44 = vld [vmem:[#allocation17_spill] sm:$0xff]  ;;  %s8704_s10 = sld [smem:[#allocation2 + $0x27]] }
 0x453   :  { %12223 = vst [vmem:[#allocation386_spill] sm:$0xff] %v8393_v10  ;;  %v3185_v41 = vadd.f32 %v3177_v27, %v2984_v19  ;;  %v4352_v43 = vrot.slane %v8360_v18, 2  ;;  %v8408_v29 = vadd.f32 %v77_v57, %v44_v24  ;;  %v8420_v19 = vld [vmem:[%s11610_s2 + $0x30] sm:$0xff]  ;;  %v8424_v18 = vmul.f32 %v8390_v55, %v8387_v9  ;;  %v8429_v24 = vld [vmem:[%s11610_s2] sm:$0xfe]  ;;  %s9033_s7 = sld [smem:[#allocation2 + $0x1a]] }
 0x454   :  { %3799 = vrot.lane.b32.xlu1 %v3783_v14, %s5545_s14  ;;  %4360 = vrot.lane.b32.xlu2 %v4345_v48, %s5544_s25  ;;  %v8406_v14 = vsel %vm145_vm2, %v12225_v61, %v12224_v52  ;;  %v12226_v48 = vld [vmem:[#allocation311_spill] sm:$0xff]  ;;  %v8432_v57 = vstv %s8338_s12  ;;  %v2629_v27 = vmul.f32 %v7717_v31, %v8393_v10  ;;  %v12230_v52 = vld [vmem:[#allocation320_spill] sm:$0xff]  ;;  %v3769_v16 = vmul.f32 %v5475_v45, %v7679_v42 }
 0x455   :  { %4362 = vrot.lane.b32.xlu0 %v4347_v51, %s5544_s25  ;;  %v8415_v51 = vstv %s8333_s11  ;;  %12229 = vst [vmem:[#allocation311_spill] sm:$0xff] %v8432_v57  ;;  %v12231_v61 = vrot.slane %v12230_v52, 1  ;;  %v4329_v54 = vmul.f32 %v8234_v46, %v8016_v37  ;;  %v8467_v45 = vmul.f32 %v8390_v55, %v8420_v19  ;;  %s9107_s11 = sld [smem:[#allocation2 + $0x18]] }
 0x456   :  { %v3404_v1 = vpop.permute.xlu1 %3403  ;;  %v8399_v12 = vpop.permute.xlu2 %3935  ;;  %12228 = vst [vmem:[#allocation19_spill] sm:$0xff] %v8415_v51  ;;  %v4388_v52 = vmul.f32 %v8415_v51, %v8023_v50  ;;  %v3795_v10 = vrot.slane %v3769_v16, 1  ;;  %v592_v4 = vrot.slane %v8424_v18, 1 }
 0x457   :  { %v3410_v34 = vsel %vm145_vm2, %v3404_v1, %v12226_v48  ;;  %v8412_v7 = vpop.permute.xlu0 %3867  ;;  %v12232_v48 = vld [vmem:[#allocation315_spill] sm:$0xff]  ;;  %v4356_v37 = vrot.slane %v4329_v54, 2 }
 0x458   :  { %12227 = vst [vmem:[#allocation11_spill] sm:$0xff] %v8412_v7  ;;  %v3418_v1 = vadd.f32 %v3410_v34, %v3185_v41  ;;  %v12233_v3 = vrot.slane %v12232_v48, 1  ;;  %v4351_v7 = vsel %vm1428_vm1, %v4346_v40, %v11689_v32  ;;  %v12235_v34 = vrot.slane %v8356_v58, 2  ;;  %v12237_v48 = vld [vmem:[#allocation24_spill] sm:$0xff]  ;;  %v8482_v32 = vld [vmem:[%s11610_s2 + $0x48] sm:$0xff] }
 0x459   :  { %v8460_v40 = vmul.f32 %v7708_v20, %v8415_v51  ;;  %v12242_v58 = vld [vmem:[#allocation25_spill] sm:$0xff]  ;;  %v583_v16 = vmul.f32 %v8390_v55, %v8482_v32 }
 0x45a   :  { %v3790_v38 = vsel %vm590_vm0, %v12233_v3, %v12231_v61  ;;  %v8451_v41 = vadd.f32 %v8188_v25, %v3418_v1  ;;  %v4353_v3 = vsel %vm1428_vm1, %v12235_v34, %v4352_v43  ;;  %v12236_v61 = vld [vmem:[#allocation22_spill] sm:$0xff]  ;;  %v580_v25 = vmul.f32 %v8390_v55, %v8429_v24  ;;  %v8474_v1 = vld [vmem:[%s11610_s2 + $0x38] sm:$0xff] }
 0x45b   :  { %v239_v42 = vsel %vm145_vm2, %v12237_v48, %v12236_v61  ;;  %v8477_v34 = vstv %s8367_s13  ;;  %v2633_v61 = vadd.f32 %v2629_v27, %v8432_v57  ;;  %v241_v46 = vsel %vm145_vm2, %v12242_v58, %v12241_v44  ;;  %v12244_v27 = vld [vmem:[#allocation239_spill] sm:$0xff] }
 0x45c   :  { %12234 = vst [vmem:[#allocation320_spill] sm:$0xff] %v8451_v41  ;;  %v8489_v48 = vmul.f32 %v8477_v34, %v8474_v1  ;;  %3805 = vrot.lane.b32.xlu1 %v3790_v38, %s5545_s14  ;;  %4366 = vrot.lane.b32.xlu2 %v4351_v7, %s5544_s25  ;;  %v8495_v41 = vmul.f32 %v8477_v34, %v8303_v49  ;;  %v12246_v38 = vld [vmem:[#allocation14_spill] sm:$0xff]  ;;  %v4408_v44 = vrot.slane %v4388_v52, 2  ;;  %v4409_v58 = vrot.slane %v8460_v40, 2 }
 0x45d   :  { %12238 = vst [vmem:[#allocation315_spill] sm:$0xff] %v8477_v34  ;;  %v2791_v57 = vsel %vm145_vm2, %v12244_v27, %v12243_v21  ;;  %4368 = vrot.lane.b32.xlu0 %v4353_v3, %s5544_s25  ;;  %v240_v7 = vsel %vm145_vm2, %v12246_v38, %v12245_v0  ;;  %v594_v21 = vrot.slane %v8467_v45, 1  ;;  %v591_v3 = vrot.slane %v580_v25, 1  ;;  %v12248_v0 = vld [vmem:[#allocation285_spill] sm:$0xff]  ;;  %v8526_v27 = vld [vmem:[%s11610_s2 + $0x60] sm:$0x1] }
 0x45e   :  { %12239 = vst [vmem:[#allocation22_spill] sm:$0xff] %v8489_v48  ;;  %v8510_v34 = vpop.permute.xlu1 %3461  ;;  %v8512_v49 = vpop.permute.xlu2 %3941  ;;  %v3021_v54 = vsel %vm376_vm3, %v12248_v0, %v7909_v15  ;;  %v2799_v52 = vadd.f32 %v2791_v57, %v2633_v61  ;;  %v11707_v25 = vrot.slane %v8495_v41, 1  ;;  %v12249_v38 = vld [vmem:[#allocation319_spill] sm:$0xff]  ;;  %v4357_v0 = vsel %vm1428_vm1, %v4352_v43, %v4356_v37 }
 0x45f   :  { %12240 = vst [vmem:[#allocation24_spill] sm:$0xff] %v8495_v41  ;;  %v3874_v18 = vpop.permute.xlu0 %3873  ;;  %v3830_v57 = vmul.f32 %v8064_v6, %v7770_v59  ;;  %v8544_v61 = vmul.f32 %v7717_v31, %v8415_v51  ;;  %v8557_v37 = vadd.f32 %v8406_v14, %v8364_v36  ;;  %v8560_v6 = vadd.f32 %v239_v42, %v8378_v11  ;;  %v12254_v36 = vld [vmem:[#allocation35_spill] sm:$0xff] }
 0x460   :  { %12247 = vst [vmem:[#allocation17_spill] sm:$0xff] %v8512_v49  ;;  %v8533_v45 = vsel %vm376_vm3, %v8231_v56, %v3874_v18  ;;  %v12250_v49 = vrot.slane %v12249_v38, 1  ;;  %v3029_v40 = vadd.f32 %v3021_v54, %v2799_v52  ;;  %v4410_v56 = vsel %vm1428_vm1, %v4408_v44, %v4409_v58  ;;  %v12255_v43 = vld [vmem:[#allocation43_spill] sm:$0xff] }
 0x461   :  { %12251 = vst [vmem:[#allocation25_spill] sm:$0xff] %v8544_v61  ;;  %v8549_v18 = vmul.f32 %v7696_v2, %v8415_v51  ;;  %v8553_v38 = vmul.f32 %v7748_v26, %v8415_v51  ;;  %v584_v31 = vmul.f32 %v8390_v55, %v8526_v27  ;;  %v8573_v26 = vadd.f32 %v240_v7, %v8408_v29  ;;  %v12303_v41 = vld [vmem:[#allocation251_spill] sm:$0xff] }
 0x462   :  { %v3796_v15 = vsel %vm590_vm0, %v12250_v49, %v3795_v10  ;;  %v12253_v49 = vrot.slane %v8489_v48, 1  ;;  %v8570_v10 = vadd.f32 %v241_v46, %v8397_v23  ;;  %v377_v11 = vsel %vm376_vm3, %v12255_v43, %v12254_v36  ;;  %v12277_v48 = vld [vmem:[#allocation291_spill] sm:$0xff] }
 0x463   :  { %12252 = vst [vmem:[#allocation249_spill] sm:$0xff] %v8549_v18  ;;  %v8579_v14 = vstv %s8485_s26  ;;  %v8584_v55 = vsel %vm590_vm0, %v592_v4, %v594_v21  ;;  %v593_v42 = vsel %vm590_vm0, %v591_v3, %v592_v4  ;;  %v3852_v46 = vrot.slane %v3830_v57, 1  ;;  %v12257_v57 = vld [vmem:[#allocation317_spill] sm:$0xff]  ;;  %s8903_s26 = sld [smem:[#allocation2 + $0x6]] }
 0x464   :  { %v3204_v2 = vsel %vm590_vm0, %v12253_v49, %v11707_v25  ;;  %12256 = vst [vmem:[#allocation239_spill] sm:$0xff] %v8579_v14  ;;  %3811 = vrot.lane.b32.xlu1 %v3796_v15, %s5545_s14  ;;  %4372 = vrot.lane.b32.xlu2 %v4357_v0, %s5544_s25  ;;  %v11705_v23 = vrot.slane %v8544_v61, 2  ;;  %v596_v29 = vrot.slane %v583_v16, 1  ;;  %v11706_v52 = vrot.slane %v8549_v18, 2  ;;  %v12275_v25 = vld [vmem:[#allocation51_spill] sm:$0xff]  ;;  %v12297_v18 = vld [vmem:[#allocation50_spill] sm:$0xff] }
 0x465   :  { %4426 = vrot.lane.b32.xlu0 %v4410_v56, %s5544_s25  ;;  %v3213_v44 = vadd.f32 %v3204_v2, %v3029_v40  ;;  %v4416_v15 = vrot.slane %v8553_v38, 2  ;;  %v385_v4 = vadd.f32 %v377_v11, %v8376_v62  ;;  %v598_v3 = vrot.slane %v584_v31, 1 }
 0x466   :  { %v3468_v7 = vpop.permute.xlu1 %3467  ;;  %v8589_v54 = vpop.permute.xlu2 %3947  ;;  %v2638_v0 = vmul.f32 %v7708_v20, %v8579_v14  ;;  %v638_v40 = vstv %s8508_s27  ;;  %v8604_v49 = vstv %s8518_s28  ;;  %v8607_v2 = vstv %s8529_s4  ;;  %s8945_s27 = sld [smem:[#allocation2]] }
 0x467   :  { %v3477_v56 = vsel %vm145_vm2, %v3468_v7, %v12257_v57  ;;  %v8600_v16 = vpop.permute.xlu0 %3879  ;;  %12259 = vst [vmem:[#allocation14_spill] sm:$0xff] %v8604_v49  ;;  %v3817_v38 = vsel %vm376_vm3, %v8157_v53, %v8331_v17  ;;  %v12261_v62 = vrot.slane %v7815_v13, 1  ;;  %v4415_v20 = vsel %vm1428_vm1, %v4409_v58, %v11705_v23  ;;  %v12265_v57 = vld [vmem:[#allocation255_spill] sm:$0xff]  ;;  %v12274_v23 = vld [vmem:[#allocation49_spill] sm:$0xff] }
 0x468   :  { %12258 = vst [vmem:[#allocation27_spill] sm:$0xff] %v8600_v16  ;;  %v3485_v36 = vadd.f32 %v3477_v56, %v3213_v44  ;;  %v8620_v43 = vmul.f32 %v7757_v47, %v8415_v51  ;;  %v4417_v7 = vsel %vm1428_vm1, %v11706_v52, %v4416_v15  ;;  %v8629_v53 = vmul.f32 %v7844_v5, %v8415_v51  ;;  %v8645_v44 = vld [vmem:[%s11610_s2 + $0x20] sm:$0xff]  ;;  %v12266_v56 = vld [vmem:[#allocation245_spill] sm:$0xff] }
 0x469   :  { %12260 = vst [vmem:[#allocation285_spill] sm:$0xff] %v8607_v2  ;;  %v3854_v31 = vsel %vm590_vm0, %v3852_v46, %v12261_v62  ;;  %v4396_v13 = vmul.f32 %v8415_v51, %v8093_v39  ;;  %v8633_v17 = vadd.f32 %v593_v42, %v385_v4  ;;  %v8636_v58 = vsel %vm590_vm0, %v594_v21, %v596_v29  ;;  %v12270_v4 = vld [vmem:[#allocation48_spill] sm:$0xff] }
 0x46a   :  { %12262 = vst [vmem:[#allocation319_spill] sm:$0xff] %v8620_v43  ;;  %v8622_v11 = vadd.f32 %v3817_v38, %v3485_v36  ;;  %v8639_v47 = vsel %vm590_vm0, %v596_v29, %v598_v3  ;;  %v2642_v46 = vadd.f32 %v2638_v0, %v8604_v49  ;;  %v2836_v36 = vsel %vm145_vm2, %v12266_v56, %v12265_v57  ;;  %v12269_v29 = vld [vmem:[#allocation46_spill] sm:$0xff] }
 0x46b   :  { %12264 = vst [vmem:[#allocation43_spill] sm:$0xff] %v8629_v53  ;;  %v8652_v42 = vmul.f32 %v8607_v2, %v8645_v44  ;;  %v8658_v21 = vmul.f32 %v8607_v2, %v8474_v1  ;;  %v378_v3 = vsel %vm376_vm3, %v12270_v4, %v12269_v29  ;;  %v639_v0 = vmul.f32 %v638_v40, %v8429_v24  ;;  %v12273_v4 = vld [vmem:[#allocation41_spill] sm:$0xff] }
 0x46c   :  { %12263 = vst [vmem:[#allocation35_spill] sm:$0xff] %v8622_v11  ;;  %3869 = vrot.lane.b32.xlu1 %v3854_v31, %s5545_s14  ;;  %4430 = vrot.lane.b32.xlu2 %v4415_v20, %s5544_s25  ;;  %v8665_v38 = vmul.f32 %v638_v40, %v8387_v9  ;;  %v8672_v31 = vmul.f32 %v638_v40, %v8420_v19  ;;  %v4422_v29 = vrot.slane %v4396_v13, 2  ;;  %v8680_v24 = vstv %s8593_s5  ;;  %s9002_s5 = sld [smem:[#allocation2 + $0x3]] }
 0x46d   :  { %12267 = vst [vmem:[#allocation317_spill] sm:$0xff] %v8652_v42  ;;  %4432 = vrot.lane.b32.xlu0 %v4417_v7, %s5544_s25  ;;  %v380_v52 = vsel %vm376_vm3, %v12274_v23, %v12273_v4  ;;  %v12276_v7 = vld [vmem:[#allocation38_spill] sm:$0xff]  ;;  %v2844_v11 = vadd.f32 %v2836_v36, %v2642_v46  ;;  %v3066_v61 = vsel %vm376_vm3, %v12277_v48, %v7977_v63  ;;  %v11713_v13 = vrot.slane %v8652_v42, 1 }
 0x46e   :  { %12268 = vst [vmem:[#allocation255_spill] sm:$0xff] %v8658_v21  ;;  %v8674_v20 = vpop.permute.xlu1 %3473  ;;  %v8676_v57 = vpop.permute.xlu2 %4156  ;;  %v379_v62 = vsel %vm376_vm3, %v12276_v7, %v12275_v25  ;;  %v12278_v23 = vrot.slane %v7848_v8, 1  ;;  %v12279_v4 = vld [vmem:[#allocation326_spill] sm:$0xff]  ;;  %v11712_v46 = vrot.slane %v8658_v21, 1  ;;  %v12281_v63 = vrot.slane %v8620_v43, 2  ;;  %v8716_v8 = vld [vmem:[%s11610_s2 + $0x20] sm:$0xff] }
 0x46f   :  { %12271 = vst [vmem:[#allocation245_spill] sm:$0xff] %v8674_v20  ;;  %v3938_v16 = vpop.permute.xlu0 %3937  ;;  %v3838_v36 = vmul.f32 %v8138_v30, %v7770_v59  ;;  %v12283_v7 = vrot.slane %v8629_v53, 2  ;;  %v4457_v59 = vmul.f32 %v8680_v24, %v7944_v60  ;;  %v8730_v30 = vld [vmem:[%s11610_s2 + $0x28] sm:$0xff]  ;;  %v643_v43 = vmul.f32 %v638_v40, %v8526_v27  ;;  %v12298_v21 = vld [vmem:[#allocation64_spill] sm:$0xff]  ;;  %v12299_v42 = vld [vmem:[#allocation66_spill] sm:$0xff] }
 0x470   :  { %12272 = vst [vmem:[#allocation46_spill] sm:$0xff] %v8676_v57  ;;  %v8696_v56 = vsel %vm376_vm3, %v8399_v12, %v3938_v16  ;;  %v12280_v57 = vrot.slane %v12279_v4, 1  ;;  %v4421_v48 = vsel %vm1428_vm1, %v4416_v15, %v12281_v63  ;;  %v4456_v12 = vmul.f32 %v8680_v24, %v8023_v50 }
 0x471   :  { %v8720_v16 = vmul.f32 %v8716_v8, %v8680_v24  ;;  %v4423_v15 = vsel %vm1428_vm1, %v12283_v7, %v4422_v29  ;;  %v649_v4 = vrot.slane %v639_v0, 1  ;;  %v650_v63 = vrot.slane %v8665_v38, 1 }
 0x472   :  { %v3860_v25 = vsel %vm590_vm0, %v12280_v57, %v12278_v23  ;;  %v3074_v57 = vadd.f32 %v3066_v61, %v2844_v11  ;;  %v8734_v23 = vmul.f32 %v8730_v30, %v8680_v24  ;;  %v642_v61 = vmul.f32 %v638_v40, %v8482_v32 }
 0x473   :  { %12282 = vst [vmem:[#allocation48_spill] sm:$0xff] %v8720_v16  ;;  %v3231_v11 = vsel %vm590_vm0, %v11713_v13, %v11712_v46  ;;  %v8744_v29 = vadd.f32 %v378_v3, %v8373_v22  ;;  %v8747_v7 = vadd.f32 %v380_v52, %v8382_v33  ;;  %v8753_v0 = vstv %s8667_s8  ;;  %s10261_s8 = sld [smem:[#allocation4 + $0x4]] }
 0x474   :  { %3875 = vrot.lane.b32.xlu1 %v3860_v25, %s5545_s14  ;;  %4436 = vrot.lane.b32.xlu2 %v4421_v48, %s5544_s25  ;;  %12284 = vst [vmem:[#allocation41_spill] sm:$0xff] %v8753_v0  ;;  %v3865_v38 = vrot.slane %v3838_v36, 1  ;;  %v4476_v53 = vrot.slane %v4456_v12, 2  ;;  %v11714_v46 = vrot.slane %v8720_v16, 2  ;;  %v8758_v22 = vadd.f32 %v379_v62, %v8362_v28  ;;  %v12285_v12 = vld [vmem:[#allocation324_spill] sm:$0xff]  ;;  %v12295_v16 = vld [vmem:[#allocation61_spill] sm:$0xff] }
 0x475   :  { %4438 = vrot.lane.b32.xlu0 %v4423_v15, %s5544_s25  ;;  %v3241_v52 = vadd.f32 %v3231_v11, %v3074_v57  ;;  %v4479_v40 = vrot.slane %v4457_v59, 2  ;;  %v4480_v3 = vrot.slane %v8734_v23, 2  ;;  %v8764_v25 = vsel %vm590_vm0, %v649_v4, %v650_v63  ;;  %v8777_v57 = vld [vmem:[%s11610_s2 + $0x8] sm:$0xff] }
 0x476   :  { %v3532_v33 = vpop.permute.xlu1 %3531  ;;  %v8760_v27 = vpop.permute.xlu2 %4162  ;;  %v652_v48 = vrot.slane %v8672_v31, 1  ;;  %v654_v36 = vrot.slane %v642_v61, 1  ;;  %v656_v28 = vrot.slane %v643_v43, 1  ;;  %v8772_v62 = vstv %s8691_s9  ;;  %v12289_v31 = vld [vmem:[#allocation329_spill] sm:$0xff] }
 0x477   :  { %v3544_v15 = vsel %vm145_vm2, %v3532_v33, %v12285_v12  ;;  %v8769_v13 = vpop.permute.xlu0 %3943  ;;  %12287 = vst [vmem:[#allocation51_spill] sm:$0xff] %v8772_v62  ;;  %v2647_v59 = vmul.f32 %v8777_v57, %v8753_v0  ;;  %v8782_v4 = vstv %s8704_s10  ;;  %v12290_v61 = vrot.slane %v12289_v31, 1  ;;  %v8793_v33 = vld [vmem:[%s11610_s2 + $0x40] sm:$0xff]  ;;  %s9098_s10 = sld [smem:[#allocation2 + $0x6]] }
 0x478   :  { %12286 = vst [vmem:[#allocation49_spill] sm:$0xff] %v8769_v13  ;;  %v3552_v23 = vadd.f32 %v3544_v15, %v3241_v52  ;;  %v4478_v43 = vsel %vm1428_vm1, %v4476_v53, %v11714_v46  ;;  %v8797_v12 = vmul.f32 %v8793_v33, %v8680_v24  ;;  %v8802_v52 = vld [vmem:[%s11610_s2 + $0x8] sm:$0xfe]  ;;  %v4481_v15 = vsel %vm1428_vm1, %v4479_v40, %v4480_v3  ;;  %v8811_v53 = vld [vmem:[%s11610_s2 + $0x38] sm:$0xff] }
 0x479   :  { %12288 = vst [vmem:[#allocation38_spill] sm:$0xff] %v8782_v4  ;;  %v3866_v11 = vsel %vm590_vm0, %v12290_v61, %v3865_v38  ;;  %v8815_v31 = vmul.f32 %v8811_v53, %v8680_v24  ;;  %v8819_v61 = vmul.f32 %v7844_v5, %v8680_v24  ;;  %v12294_v46 = vld [vmem:[#allocation53_spill] sm:$0xff]  ;;  %v653_v40 = vsel %vm590_vm0, %v650_v63, %v652_v48  ;;  %v12296_v13 = vld [vmem:[#allocation63_spill] sm:$0xff] }
 0x47a   :  { %12291 = vst [vmem:[#allocation291_spill] sm:$0xff] %v8797_v12  ;;  %v8805_v38 = vadd.f32 %v8533_v45, %v3552_v23  ;;  %v470_v45 = vsel %vm376_vm3, %v12295_v16, %v12294_v46  ;;  %v655_v23 = vsel %vm590_vm0, %v652_v48, %v654_v36  ;;  %v469_v51 = vsel %vm376_vm3, %v12297_v18, %v12296_v13  ;;  %v12300_v46 = vld [vmem:[#allocation69_spill] sm:$0xff]  ;;  %v12301_v16 = vld [vmem:[#allocation56_spill] sm:$0xff] }
 0x47b   :  { %12293 = vst [vmem:[#allocation324_spill] sm:$0xff] %v8815_v31  ;;  %v471_v5 = vsel %vm376_vm3, %v12299_v42, %v12298_v21  ;;  %v2651_v20 = vadd.f32 %v2647_v59, %v8772_v62  ;;  %v472_v63 = vsel %vm376_vm3, %v12301_v16, %v12300_v46  ;;  %v12302_v48 = vld [vmem:[#allocation261_spill] sm:$0xff]  ;;  %v8847_v42 = vmul.f32 %v8782_v4, %v8645_v44 }
 0x47c   :  { %12292 = vst [vmem:[#allocation326_spill] sm:$0xff] %v8805_v38  ;;  %v3246_v38 = vmul.f32 %v8782_v4, %v8802_v52  ;;  %3881 = vrot.lane.b32.xlu1 %v3866_v11, %s5545_s14  ;;  %4494 = vrot.lane.b32.xlu2 %v4478_v43, %s5545_s14  ;;  %v2881_v49 = vsel %vm145_vm2, %v12303_v41, %v12302_v48  ;;  %v4486_v41 = vrot.slane %v8819_v61, 2  ;;  %v12307_v16 = vld [vmem:[#allocation297_spill] sm:$0xff] }
 0x47d   :  { %4496 = vrot.lane.b32.xlu0 %v4481_v15, %s5545_s14  ;;  %12304 = vst [vmem:[#allocation329_spill] sm:$0xff] %v8847_v42  ;;  %v478_v21 = vadd.f32 %v470_v45, %v8560_v6  ;;  %v657_v13 = vsel %vm590_vm0, %v654_v36, %v656_v28  ;;  %v477_v15 = vadd.f32 %v469_v51, %v8557_v37  ;;  %v12308_v48 = vld [vmem:[#allocation77_spill] sm:$0xff]  ;;  %v12310_v51 = vld [vmem:[#allocation336_spill] sm:$0xff] }
 0x47e   :  { %v8851_v59 = vpop.permute.xlu1 %3537  ;;  %v8853_v11 = vpop.permute.xlu2 %4168  ;;  %v479_v46 = vadd.f32 %v471_v5, %v8573_v26  ;;  %v3111_v6 = vsel %vm376_vm3, %v12307_v16, %v8049_v35  ;;  %v3256_v36 = vrot.slane %v3246_v38, 1  ;;  %v480_v28 = vadd.f32 %v472_v63, %v8570_v10  ;;  %v12309_v18 = vld [vmem:[#allocation85_spill] sm:$0xff]  ;;  %v12312_v26 = vld [vmem:[#allocation332_spill] sm:$0xff] }
 0x47f   :  { %12305 = vst [vmem:[#allocation53_spill] sm:$0xff] %v8851_v59  ;;  %v3950_v45 = vpop.permute.xlu0 %3949  ;;  %v791_v43 = vsel %vm145_vm2, %v12309_v18, %v12308_v48  ;;  %v12311_v37 = vrot.slane %v12310_v51, 1  ;;  %v12313_v5 = vrot.slane %v12312_v26, 1  ;;  %v12314_v35 = vrot.slane %v8797_v12, 2  ;;  %v8889_v18 = vld [vmem:[%s11610_s2 + $0x58] sm:$0xff]  ;;  %v12319_v26 = vld [vmem:[#allocation74_spill] sm:$0xff] }
 0x480   :  { %12306 = vst [vmem:[#allocation61_spill] sm:$0xff] %v8853_v11  ;;  %v2889_v11 = vadd.f32 %v2881_v49, %v2651_v20  ;;  %v8870_v61 = vsel %vm376_vm3, %v8589_v54, %v3950_v45  ;;  %v11725_v10 = vrot.slane %v8847_v42, 1  ;;  %v4464_v63 = vmul.f32 %v8680_v24, %v8093_v39 }
 0x481   :  { %v3924_v59 = vsel %vm590_vm0, %v12313_v5, %v12311_v37  ;;  %v4485_v38 = vsel %vm1428_vm1, %v4480_v3, %v12314_v35  ;;  %v12315_v20 = vrot.slane %v8815_v31, 2  ;;  %v8893_v16 = vmul.f32 %v8889_v18, %v8680_v24  ;;  %v12317_v3 = vld [vmem:[#allocation350_spill] sm:$0xff]  ;;  %v12318_v37 = vld [vmem:[#allocation87_spill] sm:$0xff] }
 0x482   :  { %v3119_v49 = vadd.f32 %v3111_v6, %v2889_v11  ;;  %v4465_v45 = vmul.f32 %v8680_v24, %v12317_v3  ;;  %v605_v48 = vadd.f32 %v8584_v55, %v8744_v29  ;;  %v606_v11 = vadd.f32 %v8636_v58, %v8758_v22 }
 0x483   :  { %v4487_v54 = vsel %vm1428_vm1, %v12315_v20, %v4486_v41  ;;  %12316 = vst [vmem:[#allocation63_spill] sm:$0xff] %v8893_v16  ;;  %v607_v6 = vadd.f32 %v8639_v47, %v8747_v7  ;;  %v3258_v51 = vsel %vm590_vm0, %v3256_v36, %v11725_v10  ;;  %v790_v24 = vsel %vm145_vm2, %v12319_v26, %v12318_v37  ;;  %v12327_v20 = vld [vmem:[#allocation100_spill] sm:$0xff]  ;;  %v12331_v26 = vld [vmem:[#allocation335_spill] sm:$0xff] }
 0x484   :  { %v662_v5 = vadd.f32 %v8764_v25, %v477_v15  ;;  %v8912_v55 = vadd.f32 %v653_v40, %v478_v21  ;;  %3939 = vrot.lane.b32.xlu1 %v3924_v59, %s5545_s14  ;;  %4500 = vrot.lane.b32.xlu2 %v4485_v38, %s5545_s14  ;;  %v8916_v58 = vadd.f32 %v791_v43, %v605_v48  ;;  %v4490_v7 = vrot.slane %v4464_v63, 2  ;;  %v12321_v43 = vld [vmem:[#allocation88_spill] sm:$0xff]  ;;  %v12323_v15 = vld [vmem:[#allocation93_spill] sm:$0xff]  ;;  %v12325_v38 = vld [vmem:[#allocation330_spill] sm:$0xff] }
 0x485   :  { %v8918_v47 = vadd.f32 %v655_v23, %v479_v46  ;;  %v8920_v29 = vadd.f32 %v657_v13, %v480_v28  ;;  %4502 = vrot.lane.b32.xlu0 %v4487_v54, %s5545_s14  ;;  %v3269_v36 = vadd.f32 %v3258_v51, %v3119_v49  ;;  %v11724_v25 = vrot.slane %v8893_v16, 2  ;;  %v12322_v23 = vld [vmem:[#allocation90_spill] sm:$0xff]  ;;  %v12324_v46 = vld [vmem:[#allocation80_spill] sm:$0xff]  ;;  %v12329_v51 = vld [vmem:[#allocation339_spill] sm:$0xff] }
 0x486   :  { %v3596_v22 = vpop.permute.xlu1 %3595  ;;  %v8923_v35 = vpop.permute.xlu2 %4226  ;;  %v4492_v40 = vrot.slane %v4465_v45, 2  ;;  %v8927_v21 = vstv %s8857_s23  ;;  %v8930_v59 = vadd.f32 %v790_v24, %v8633_v17  ;;  %v792_v13 = vsel %vm145_vm2, %v12322_v23, %v12321_v43  ;;  %v12328_v54 = vld [vmem:[#allocation102_spill] sm:$0xff]  ;;  %v12333_v23 = vld [vmem:[#allocation341_spill] sm:$0xff] }
 0x487   :  { %12320 = vst [vmem:[#allocation50_spill] sm:$0xff] %v8927_v21  ;;  %v793_v28 = vsel %vm145_vm2, %v12324_v46, %v12323_v15  ;;  %v3611_v63 = vsel %vm145_vm2, %v3596_v22, %v12325_v38  ;;  %v8940_v49 = vpop.permute.xlu0 %4158  ;;  %v926_v3 = vsel %vm145_vm2, %v12328_v54, %v12327_v20  ;;  %v8950_v17 = vld [vmem:[%s11610_s2 + $0x50] sm:$0xff]  ;;  %v12330_v37 = vrot.slane %v12329_v51, 1  ;;  %v12337_v54 = vld [vmem:[#allocation377_spill] sm:$0xff] }
 0x488   :  { %12326 = vst [vmem:[#allocation64_spill] sm:$0xff] %v8940_v49  ;;  %v2650_v45 = vmul.f32 %v8950_v17, %v8753_v0  ;;  %v3619_v48 = vadd.f32 %v3611_v63, %v3269_v36  ;;  %v12332_v24 = vrot.slane %v12331_v26, 1  ;;  %v4491_v43 = vsel %vm1428_vm1, %v4486_v41, %v4490_v7  ;;  %v12339_v26 = vld [vmem:[#allocation257_spill] sm:$0xff] }
 0x489   :  { %v4116_v15 = vmul.f32 %v12333_v23, %v8023_v50  ;;  %v4525_v46 = vmul.f32 %v8927_v21, %v7944_v60  ;;  %v8966_v38 = vmul.f32 %v8730_v30, %v8927_v21  ;;  %v4493_v63 = vsel %vm1428_vm1, %v11724_v25, %v4492_v40 }
 0x48a   :  { %v3930_v22 = vsel %vm590_vm0, %v12332_v24, %v12330_v37  ;;  %v8969_v36 = vadd.f32 %v8696_v56, %v3619_v48  ;;  %v8976_v41 = vmul.f32 %v8716_v8, %v8927_v21  ;;  %v8980_v50 = vmul.f32 %v8811_v53, %v8927_v21  ;;  %v8989_v56 = vld [vmem:[%s11610_s2] sm:$0xfc]  ;;  %v12338_v37 = vld [vmem:[#allocation267_spill] sm:$0xff] }
 0x48b   :  { %12334 = vst [vmem:[#allocation66_spill] sm:$0xff] %v8966_v38  ;;  %v8982_v60 = vadd.f32 %v792_v13, %v606_v11  ;;  %v8984_v7 = vadd.f32 %v793_v28, %v607_v6  ;;  %v1417_v20 = vstv %s8903_s26  ;;  %v3250_v40 = vmul.f32 %v8782_v4, %v12337_v54  ;;  %v12340_v6 = vld [vmem:[#allocation381_spill] sm:$0xff]  ;;  %v12343_v24 = vld [vmem:[#allocation103_spill] sm:$0xff]  ;;  %s5147_s26 = sld [smem:[#allocation2 + $0x1b]] }
 0x48c   :  { %12335 = vst [vmem:[#allocation69_spill] sm:$0xff] %v8969_v36  ;;  %v8994_v48 = vadd.f32 %v926_v3, %v662_v5  ;;  %v2654_v51 = vadd.f32 %v2650_v45, %v8772_v62  ;;  %v2884_v11 = vsel %vm145_vm2, %v12339_v26, %v12338_v37  ;;  %3945 = vrot.lane.b32.xlu1 %v3930_v22, %s5545_s14  ;;  %v4136_v5 = vrot.slane %v4116_v15, 2  ;;  %v12342_v45 = vld [vmem:[#allocation95_spill] sm:$0xff] }
 0x48d   :  { %12336 = vst [vmem:[#allocation56_spill] sm:$0xff] %v8976_v41  ;;  %4506 = vrot.lane.b32.xlu2 %v4491_v43, %s5545_s14  ;;  %v9006_v13 = vmul.f32 %v8782_v4, %v12340_v6  ;;  %4508 = vrot.lane.b32.xlu0 %v4493_v63, %s5545_s14  ;;  %v4547_v28 = vrot.slane %v4525_v46, 2  ;;  %v928_v54 = vsel %vm145_vm2, %v12343_v24, %v12342_v45  ;;  %v4550_v15 = vrot.slane %v8980_v50, 2  ;;  %v12346_v45 = vld [vmem:[#allocation361_spill] sm:$0xff]  ;;  %v12347_v24 = vld [vmem:[#allocation303_spill] sm:$0xff] }
 0x48e   :  { %v9014_v22 = vmul.f32 %v1417_v20, %v8989_v56  ;;  %v9018_v43 = vpop.permute.xlu1 %3601  ;;  %v9020_v37 = vpop.permute.xlu2 %4232  ;;  %v9025_v46 = vmul.f32 %v1417_v20, %v8387_v9  ;;  %v9028_v26 = vmul.f32 %v1417_v20, %v8420_v19  ;;  %v3114_v25 = vsel %vm376_vm3, %v12347_v24, %v12346_v45  ;;  %v9038_v63 = vld [vmem:[%s11610_s2 + $0x60] sm:$0x3] }
 0x48f   :  { %12341 = vst [vmem:[#allocation261_spill] sm:$0xff] %v9006_v13  ;;  %v4165_v10 = vpop.permute.xlu0 %4164  ;;  %v3263_v3 = vrot.slane %v3250_v40, 1  ;;  %v9041_v50 = vmul.f32 %v1417_v20, %v8482_v32  ;;  %v9044_v36 = vstv %s8945_s27  ;;  %v11732_v45 = vrot.slane %v9006_v13, 1  ;;  %v12349_v40 = vld [vmem:[#allocation344_spill] sm:$0xff]  ;;  %s10467_s27 = sld [smem:[#allocation2 + $0x21]] }
 0x490   :  { %12344 = vst [vmem:[#allocation251_spill] sm:$0xff] %v9018_v43  ;;  %v9048_v49 = vsel %vm145_vm2, %v8760_v27, %v4165_v10  ;;  %v12350_v24 = vrot.slane %v12349_v40, 2  ;;  %v12351_v16 = vrot.slane %v8966_v38, 2  ;;  %v9059_v43 = vmul.f32 %v8950_v17, %v8927_v21  ;;  %v12356_v40 = vld [vmem:[#allocation92_spill] sm:$0xff] }
 0x491   :  { %12345 = vst [vmem:[#allocation297_spill] sm:$0xff] %v9020_v37  ;;  %v2892_v37 = vadd.f32 %v2884_v11, %v2654_v51  ;;  %v12353_v51 = vrot.slane %v8976_v41, 2  ;;  %v9066_v10 = vmul.f32 %v8793_v33, %v8927_v21  ;;  %v9070_v11 = vmul.f32 %v8889_v18, %v8927_v21  ;;  %v12358_v38 = vld [vmem:[#allocation108_spill] sm:$0xff] }
 0x492   :  { %12348 = vst [vmem:[#allocation77_spill] sm:$0xff] %v9044_v36  ;;  %v4138_v12 = vsel %vm1428_vm1, %v4136_v5, %v12350_v24  ;;  %v4549_v31 = vsel %vm1428_vm1, %v4547_v28, %v12351_v16  ;;  %v9073_v16 = vadd.f32 %v928_v54, %v8918_v47  ;;  %v1422_v5 = vmul.f32 %v1417_v20, %v9038_v63 }
 0x493   :  { %12352 = vst [vmem:[#allocation85_spill] sm:$0xff] %v9059_v43  ;;  %v3122_v42 = vadd.f32 %v3114_v25, %v2892_v37  ;;  %v4551_v27 = vsel %vm1428_vm1, %v12353_v51, %v4550_v15  ;;  %v2609_v25 = vmul.f32 %v8811_v53, %v9044_v36  ;;  %v3264_v28 = vsel %vm590_vm0, %v11732_v45, %v3263_v3  ;;  %v12355_v37 = vld [vmem:[#allocation105_spill] sm:$0xff]  ;;  %v12357_v51 = vld [vmem:[#allocation106_spill] sm:$0xff] }
 0x494   :  { %12354 = vst [vmem:[#allocation336_spill] sm:$0xff] %v9066_v10  ;;  %v927_v24 = vsel %vm145_vm2, %v12356_v40, %v12355_v37  ;;  %v929_v41 = vsel %vm145_vm2, %v12358_v38, %v12357_v51  ;;  %v1429_v47 = vrot.slane %v9014_v22, 2  ;;  %v1430_v54 = vrot.slane %v9025_v46, 2  ;;  %4154 = vrot.lane.b32.xlu1 %v4138_v12, %s5544_s25  ;;  %v12364_v36 = vld [vmem:[#allocation253_spill] sm:$0xff] }
 0x495   :  { %4564 = vrot.lane.b32.xlu2 %v4549_v31, %s5545_s14  ;;  %v1432_v20 = vrot.slane %v9028_v26, 2  ;;  %v1434_v3 = vrot.slane %v9041_v50, 2  ;;  %v9094_v45 = vstv %s9002_s5  ;;  %4566 = vrot.lane.b32.xlu0 %v4551_v27, %s5545_s14  ;;  %v9101_v38 = vstv %s9016_s6  ;;  %v12361_v27 = vld [vmem:[#allocation337_spill] sm:$0xff]  ;;  %s9744_s5 = sld [smem:[#allocation2 + $0x21]] }
 0x496   :  { %12359 = vst [vmem:[#allocation332_spill] sm:$0xff] %v9094_v45  ;;  %v3608_v22 = vpop.permute.xlu1 %3607  ;;  %v3272_v46 = vadd.f32 %v3264_v28, %v3122_v42  ;;  %v9103_v12 = vpop.permute.xlu2 %4290  ;;  %v4556_v26 = vrot.slane %v9070_v11, 2  ;;  %v1436_v50 = vrot.slane %v1422_v5, 2  ;;  %v2613_v40 = vadd.f32 %v2609_v25, %v9101_v38  ;;  %v12365_v42 = vld [vmem:[#allocation250_spill] sm:$0xff]  ;;  %v12368_v25 = vld [vmem:[#allocation348_spill] sm:$0xff]  ;;  %s10248_s6 = sld [smem:[#allocation4 + $0x3]] }
 0x497   :  { %12360 = vst [vmem:[#allocation350_spill] sm:$0xff] %v9101_v38  ;;  %v3614_v51 = vsel %vm145_vm2, %v3608_v22, %v12361_v27  ;;  %v9112_v37 = vpop.permute.xlu0 %4222  ;;  %v9115_v13 = vstv %s9033_s7  ;;  %v2699_v28 = vsel %vm145_vm2, %v12365_v42, %v12364_v36  ;;  %v9122_v31 = vmul.f32 %v9094_v45, %v12340_v6  ;;  %v12370_v22 = vld [vmem:[#allocation343_spill] sm:$0xff]  ;;  %v9141_v42 = vld [vmem:[%s11610_s2 + $0x70] sm:$0x3]  ;;  %s10253_s7 = sld [smem:[#allocation2 + $0x24]] }
 0x498   :  { %12362 = vst [vmem:[#allocation87_spill] sm:$0xff] %v9112_v37  ;;  %v9126_v11 = vmul.f32 %v9094_v45, %v8474_v1  ;;  %v3622_v5 = vadd.f32 %v3614_v51, %v3272_v46  ;;  %v12369_v38 = vrot.slane %v12368_v25, 2  ;;  %v12371_v27 = vrot.slane %v12370_v22, 2 }
 0x499   :  { %12363 = vst [vmem:[#allocation74_spill] sm:$0xff] %v9115_v13  ;;  %v12372_v62 = vrot.slane %v9059_v43, 2  ;;  %v4124_v36 = vmul.f32 %v12333_v23, %v8093_v39  ;;  %v4533_v46 = vmul.f32 %v9141_v42, %v8927_v21  ;;  %v9160_v23 = vmul.f32 %v8716_v8, %v9115_v13 }
 0x49a   :  { %12366 = vst [vmem:[#allocation88_spill] sm:$0xff] %v9122_v31  ;;  %v4145_v37 = vsel %vm1428_vm1, %v12371_v27, %v12369_v38  ;;  %v9146_v51 = vadd.f32 %v8870_v61, %v3622_v5  ;;  %v12374_v38 = vrot.slane %v9066_v10, 2  ;;  %v9163_v61 = vadd.f32 %v927_v24, %v8912_v55  ;;  %v12375_v55 = vld [vmem:[#allocation273_spill] sm:$0xff]  ;;  %v12386_v10 = vld [vmem:[#allocation116_spill] sm:$0xff] }
 0x49b   :  { %12367 = vst [vmem:[#allocation90_spill] sm:$0xff] %v9126_v11  ;;  %v4555_v4 = vsel %vm1428_vm1, %v4550_v15, %v12372_v62  ;;  %v9154_v62 = vld [vmem:[%s11610_s2 + $0x8] sm:$0xfc]  ;;  %v9166_v15 = vadd.f32 %v929_v41, %v8920_v29  ;;  %v9169_v5 = vsel %vm1428_vm1, %v1429_v47, %v1430_v54  ;;  %v9172_v22 = vsel %vm1428_vm1, %v1430_v54, %v1432_v20  ;;  %v12376_v29 = vld [vmem:[#allocation263_spill] sm:$0xff] }
 0x49c   :  { %12373 = vst [vmem:[#allocation93_spill] sm:$0xff] %v9146_v51  ;;  %v4557_v25 = vsel %vm1428_vm1, %v12374_v38, %v4556_v26  ;;  %v4592_v39 = vmul.f32 %v9154_v62, %v9115_v13  ;;  %v9175_v27 = vsel %vm1428_vm1, %v1432_v20, %v1434_v3  ;;  %v2707_v38 = vadd.f32 %v2699_v28, %v2613_v40  ;;  %v12378_v20 = vld [vmem:[#allocation124_spill] sm:$0xff]  ;;  %v12379_v40 = vld [vmem:[#allocation126_spill] sm:$0xff] }
 0x49d   :  { %4160 = vrot.lane.b32.xlu1 %v4145_v37, %s5544_s25  ;;  %4570 = vrot.lane.b32.xlu2 %v4555_v4, %s5545_s14  ;;  %v2929_v41 = vsel %vm376_vm3, %v12376_v29, %v12375_v55  ;;  %v4150_v24 = vrot.slane %v4124_v36, 2  ;;  %v4560_v47 = vrot.slane %v4533_v46, 2  ;;  %v9186_v54 = vstv %s9098_s10  ;;  %v12383_v29 = vld [vmem:[#allocation119_spill] sm:$0xff]  ;;  %v12385_v46 = vld [vmem:[#allocation129_spill] sm:$0xff]  ;;  %s9882_s10 = sld [smem:[#allocation2 + $0x2a]] }
 0x49e   :  { %4572 = vrot.lane.b32.xlu0 %v4557_v25, %s5545_s14  ;;  %12377 = vst [vmem:[#allocation80_spill] sm:$0xff] %v9186_v54  ;;  %v1130_v28 = vsel %vm376_vm3, %v12379_v40, %v12378_v20  ;;  %v9192_v43 = vsel %vm1428_vm1, %v1434_v3, %v1436_v50  ;;  %v9194_v37 = vpop.permute.xlu1 %3665  ;;  %v9196_v4 = vpop.permute.xlu2 %4296  ;;  %v4612_v51 = vrot.slane %v4592_v39, 2  ;;  %v4613_v55 = vrot.slane %v9160_v23, 2  ;;  %v12384_v25 = vld [vmem:[#allocation127_spill] sm:$0xff] }
 0x49f   :  { %12380 = vst [vmem:[#allocation330_spill] sm:$0xff] %v9192_v43  ;;  %v1132_v36 = vsel %vm376_vm3, %v12384_v25, %v12383_v29  ;;  %v1131_v21 = vsel %vm376_vm3, %v12386_v10, %v12385_v46  ;;  %v9206_v45 = vstv %s9107_s11  ;;  %v4229_v20 = vpop.permute.xlu0 %4228  ;;  %v9210_v3 = vmul.f32 %v9186_v54, %v12340_v6  ;;  %v12391_v25 = vld [vmem:[#allocation347_spill] sm:$0xff]  ;;  %v12406_v43 = vld [vmem:[#allocation356_spill] sm:$0xff]  ;;  %s10270_s11 = sld [smem:[#allocation2 + $0xc]] }
 0x4a0   :  { %12381 = vst [vmem:[#allocation100_spill] sm:$0xff] %v9194_v37  ;;  %v2937_v50 = vadd.f32 %v2929_v41, %v2707_v38  ;;  %v12388_v39 = vrot.slane %v9122_v31, 1  ;;  %v12389_v23 = vrot.slane %v9126_v11, 1  ;;  %v9219_v29 = vsel %vm145_vm2, %v8923_v35, %v4229_v20  ;;  %v9232_v41 = vld [vmem:[%s11610_s2 + $0x10] sm:$0xfc]  ;;  %v12397_v31 = vld [vmem:[#allocation369_spill] sm:$0xff] }
 0x4a1   :  { %12382 = vst [vmem:[#allocation102_spill] sm:$0xff] %v9196_v4  ;;  %v9223_v10 = vmul.f32 %v9186_v54, %v8474_v1  ;;  %v12392_v46 = vrot.slane %v12391_v25, 2  ;;  %v4561_v38 = vsel %vm1428_vm1, %v4556_v26, %v4560_v47  ;;  %v9238_v35 = vmul.f32 %v8811_v53, %v9115_v13  ;;  %v12395_v20 = vld [vmem:[#allocation374_spill] sm:$0xff]  ;;  %v12398_v11 = vld [vmem:[#allocation309_spill] sm:$0xff] }
 0x4a2   :  { %12387 = vst [vmem:[#allocation339_spill] sm:$0xff] %v9210_v3  ;;  %v3146_v40 = vsel %vm590_vm0, %v12389_v23, %v12388_v39  ;;  %v12393_v39 = vld [vmem:[#allocation352_spill] sm:$0xff]  ;;  %v2618_v4 = vmul.f32 %v8716_v8, %v12395_v20  ;;  %v4614_v25 = vsel %vm1428_vm1, %v4612_v51, %v4613_v55  ;;  %v9245_v26 = vmul.f32 %v8730_v30, %v9115_v13 }
 0x4a3   :  { %12390 = vst [vmem:[#allocation335_spill] sm:$0xff] %v9223_v10  ;;  %v4151_v6 = vsel %vm1428_vm1, %v12392_v46, %v4150_v24  ;;  %v4185_v23 = vmul.f32 %v9232_v41, %v12393_v39  ;;  %v9249_v24 = vmul.f32 %v8793_v33, %v9115_v13  ;;  %v1138_v47 = vadd.f32 %v1130_v28, %v8930_v59 }
 0x4a4   :  { %12394 = vst [vmem:[#allocation341_spill] sm:$0xff] %v9238_v35  ;;  %v9254_v46 = vmul.f32 %v9206_v45, %v8387_v9  ;;  %v3341_v37 = vsel %vm145_vm2, %v12398_v11, %v12397_v31  ;;  %v11760_v51 = vrot.slane %v9210_v3, 2  ;;  %v1140_v54 = vadd.f32 %v1132_v36, %v8982_v60  ;;  %v12399_v60 = vld [vmem:[#allocation380_spill] sm:$0xff] }
 0x4a5   :  { %12396 = vst [vmem:[#allocation377_spill] sm:$0xff] %v9245_v26  ;;  %v1477_v0 = vmul.f32 %v9206_v45, %v8989_v56  ;;  %v3155_v2 = vadd.f32 %v3146_v40, %v2937_v50  ;;  %4166 = vrot.lane.b32.xlu1 %v4151_v6, %s5544_s25  ;;  %4576 = vrot.lane.b32.xlu2 %v4561_v38, %s5545_s14  ;;  %v11761_v9 = vrot.slane %v9223_v10, 2  ;;  %v4207_v28 = vrot.slane %v4185_v23, 2  ;;  %v12404_v40 = vld [vmem:[#allocation271_spill] sm:$0xff]  ;;  %v12405_v31 = vld [vmem:[#allocation268_spill] sm:$0xff] }
 0x4a6   :  { %v1139_v59 = vadd.f32 %v1131_v21, %v8916_v58  ;;  %4630 = vrot.lane.b32.xlu0 %v4614_v25, %s5545_s14  ;;  %v2622_v11 = vadd.f32 %v2618_v4, %v12399_v60  ;;  %v3672_v56 = vpop.permute.xlu1 %3671  ;;  %v9272_v50 = vpop.permute.xlu2 %4302  ;;  %v4620_v6 = vrot.slane %v9249_v24, 2  ;;  %v12400_v58 = vld [vmem:[#allocation378_spill] sm:$0xff]  ;;  %v2744_v14 = vsel %vm145_vm2, %v12405_v31, %v12404_v40 }
 0x4a7   :  { %v3349_v36 = vadd.f32 %v3341_v37, %v3155_v2  ;;  %v9280_v21 = vmul.f32 %v12400_v58, %v8474_v1  ;;  %v9284_v38 = vmul.f32 %v12400_v58, %v8645_v44  ;;  %v3983_v2 = vsel %vm1428_vm1, %v11761_v9, %v11760_v51  ;;  %v12402_v37 = vld [vmem:[#allocation345_spill] sm:$0xff]  ;;  %v9293_v23 = vpop.permute.xlu0 %4234 }
 0x4a8   :  { %v3681_v4 = vsel %vm376_vm3, %v3672_v56, %v12402_v37  ;;  %12403 = vst [vmem:[#allocation257_spill] sm:$0xff] %v9293_v23  ;;  %v1487_v24 = vrot.slane %v1477_v0, 2  ;;  %v2619_v3 = vmul.f32 %v8811_v53, %v12395_v20  ;;  %v12407_v10 = vrot.slane %v12406_v43, 2  ;;  %v9321_v43 = vld [vmem:[%s11610_s2 + $0x68] sm:$0x3] }
 0x4a9   :  { %12401 = vst [vmem:[#allocation267_spill] sm:$0xff] %v9284_v38  ;;  %v3689_v58 = vadd.f32 %v3681_v4, %v3349_v36  ;;  %v12408_v9 = vrot.slane %v9238_v35, 2  ;;  %v9309_v37 = vmul.f32 %v8889_v18, %v9115_v13  ;;  %v12410_v25 = vrot.slane %v9245_v26, 2  ;;  %v12413_v4 = vld [vmem:[#allocation269_spill] sm:$0xff] }
 0x4aa   :  { %v4209_v51 = vsel %vm1428_vm1, %v4207_v28, %v12407_v10  ;;  %v9316_v36 = vmul.f32 %v8950_v17, %v9115_v13  ;;  %v9326_v10 = vadd.f32 %v9169_v5, %v1138_v47  ;;  %v3172_v28 = vrot.slane %v9280_v21, 1 }
 0x4ab   :  { %v4619_v56 = vsel %vm1428_vm1, %v4613_v55, %v12408_v9  ;;  %12409 = vst [vmem:[#allocation381_spill] sm:$0xff] %v9309_v37  ;;  %v3992_v0 = vadd.f32 %v3983_v2, %v3689_v58  ;;  %v4621_v31 = vsel %vm1428_vm1, %v12410_v25, %v4620_v6  ;;  %v4600_v55 = vmul.f32 %v9321_v43, %v9115_v13  ;;  %v12412_v2 = vld [vmem:[#allocation279_spill] sm:$0xff] }
 0x4ac   :  { %12411 = vst [vmem:[#allocation95_spill] sm:$0xff] %v9316_v36  ;;  %v2752_v9 = vadd.f32 %v2744_v14, %v2622_v11  ;;  %v11762_v40 = vrot.slane %v9284_v38, 1  ;;  %v9331_v58 = vadd.f32 %v9175_v27, %v1140_v54  ;;  %v2974_v25 = vsel %vm376_vm3, %v12413_v4, %v12412_v2  ;;  %v12422_v27 = vld [vmem:[#allocation272_spill] sm:$0xff] }
 0x4ad   :  { %4224 = vrot.lane.b32.xlu1 %v4209_v51, %s5544_s25  ;;  %4634 = vrot.lane.b32.xlu2 %v4619_v56, %s5545_s14  ;;  %v9339_v5 = vadd.f32 %v9048_v49, %v3992_v0  ;;  %v9342_v14 = vadd.f32 %v9172_v22, %v1139_v59  ;;  %v12415_v47 = vrot.slane %v9254_v46, 2  ;;  %v9352_v54 = vstv %s9269_s19  ;;  %v12419_v0 = vld [vmem:[#allocation277_spill] sm:$0xff] }
 0x4ae   :  { %4636 = vrot.lane.b32.xlu0 %v4621_v31, %s5545_s14  ;;  %12416 = vst [vmem:[#allocation361_spill] sm:$0xff] %v9352_v54  ;;  %v2623_v51 = vadd.f32 %v2619_v3, %v12399_v60  ;;  %v9355_v21 = vpop.permute.xlu1 %3677  ;;  %v9357_v49 = vpop.permute.xlu2 %4360  ;;  %v4626_v59 = vrot.slane %v4600_v55, 2  ;;  %v9361_v56 = vstv %s9276_s20  ;;  %v2982_v31 = vadd.f32 %v2974_v25, %v2752_v9  ;;  %v12426_v9 = vld [vmem:[#allocation355_spill] sm:$0xff] }
 0x4af   :  { %12414 = vst [vmem:[#allocation103_spill] sm:$0xff] %v9339_v5  ;;  %v9347_v11 = vsel %vm1428_vm1, %v1487_v24, %v12415_v47  ;;  %v12420_v24 = vld [vmem:[#allocation274_spill] sm:$0xff]  ;;  %v3173_v4 = vsel %vm590_vm0, %v11762_v40, %v3172_v28  ;;  %v4293_v47 = vpop.permute.xlu0 %4292  ;;  %v9371_v3 = vmul.f32 %v9352_v54, %v8474_v1  ;;  %v12423_v5 = vld [vmem:[#allocation327_spill] sm:$0xff]  ;;  %v12427_v25 = vrot.slane %v12426_v9, 2 }
 0x4b0   :  { %12417 = vst [vmem:[#allocation303_spill] sm:$0xff] %v9355_v21  ;;  %v2745_v2 = vsel %vm145_vm2, %v12420_v24, %v12419_v0  ;;  %v2975_v55 = vsel %vm376_vm3, %v12423_v5, %v12422_v27  ;;  %v9378_v22 = vsel %vm145_vm2, %v9103_v12, %v4293_v47  ;;  %v9387_v40 = vmul.f32 %v9352_v54, %v8645_v44 }
 0x4b1   :  { %12418 = vst [vmem:[#allocation344_spill] sm:$0xff] %v9357_v49  ;;  %v12424_v49 = vld [vmem:[#allocation360_spill] sm:$0xff]  ;;  %v12429_v1 = vrot.slane %v9309_v37, 2  ;;  %v4193_v5 = vmul.f32 %v9141_v42, %v12393_v39  ;;  %v4660_v12 = vmul.f32 %v9154_v62, %v9361_v56  ;;  %v9398_v27 = vmul.f32 %v8716_v8, %v9361_v56  ;;  %v12433_v37 = vld [vmem:[#allocation383_spill] sm:$0xff] }
 0x4b2   :  { %12421 = vst [vmem:[#allocation105_spill] sm:$0xff] %v9371_v3  ;;  %v12425_v0 = vrot.slane %v12424_v49, 2  ;;  %v2753_v49 = vadd.f32 %v2745_v2, %v2623_v51  ;;  %v12431_v47 = vrot.slane %v9316_v36, 2  ;;  %v4661_v9 = vmul.f32 %v9232_v41, %v9361_v56  ;;  %v12434_v51 = vld [vmem:[#allocation314_spill] sm:$0xff]  ;;  %v12436_v36 = vld [vmem:[#allocation132_spill] sm:$0xff] }
 0x4b3   :  { %12428 = vst [vmem:[#allocation92_spill] sm:$0xff] %v9387_v40  ;;  %v4625_v35 = vsel %vm1428_vm1, %v4620_v6, %v12429_v1  ;;  %v9407_v6 = vmul.f32 %v8730_v30, %v9361_v56  ;;  %v9411_v39 = vmul.f32 %v9206_v45, %v8420_v19  ;;  %v3408_v2 = vsel %vm145_vm2, %v12434_v51, %v12433_v37  ;;  %v12437_v51 = vld [vmem:[#allocation382_spill] sm:$0xff]  ;;  %v12446_v37 = vld [vmem:[#allocation359_spill] sm:$0xff] }
 0x4b4   :  { %v4215_v24 = vsel %vm1428_vm1, %v12427_v25, %v12425_v0  ;;  %12430 = vst [vmem:[#allocation106_spill] sm:$0xff] %v9398_v27  ;;  %v4627_v0 = vsel %vm1428_vm1, %v12431_v47, %v4626_v59  ;;  %v12432_v25 = vld [vmem:[#allocation386_spill] sm:$0xff]  ;;  %v2983_v26 = vadd.f32 %v2975_v55, %v2753_v49  ;;  %v3183_v13 = vadd.f32 %v3173_v4, %v2982_v31 }
 0x4b5   :  { %v2627_v1 = vmul.f32 %v8777_v57, %v12432_v25  ;;  %v12435_v47 = vld [vmem:[#allocation130_spill] sm:$0xff]  ;;  %4230 = vrot.lane.b32.xlu1 %v4215_v24, %s5544_s25  ;;  %4640 = vrot.lane.b32.xlu2 %v4625_v35, %s5545_s14  ;;  %v11773_v19 = vrot.slane %v9387_v40, 2  ;;  %v4220_v54 = vrot.slane %v4193_v5, 2  ;;  %v4680_v38 = vrot.slane %v4660_v12, 2  ;;  %v12439_v24 = vld [vmem:[#allocation311_spill] sm:$0xff] }
 0x4b6   :  { %v1133_v23 = vsel %vm376_vm3, %v12436_v36, %v12435_v47  ;;  %4642 = vrot.lane.b32.xlu0 %v4627_v0, %s5545_s14  ;;  %v12438_v59 = vrot.slane %v12437_v51, 1  ;;  %v3416_v60 = vadd.f32 %v3408_v2, %v3183_v13  ;;  %v3736_v36 = vpop.permute.xlu1 %3735  ;;  %v9430_v55 = vpop.permute.xlu2 %4366  ;;  %v4683_v31 = vrot.slane %v4661_v9, 2  ;;  %v12443_v9 = vld [vmem:[#allocation286_spill] sm:$0xff]  ;;  %v12444_v2 = vld [vmem:[#allocation283_spill] sm:$0xff] }
 0x4b7   :  { %v4684_v4 = vrot.slane %v9407_v6, 2  ;;  %v2631_v5 = vadd.f32 %v2627_v1, %v12439_v24  ;;  %v12440_v12 = vrot.slane %v9371_v3, 2  ;;  %v9444_v0 = vpop.permute.xlu0 %4298  ;;  %v2789_v6 = vsel %vm145_vm2, %v12444_v2, %v12443_v9 }
 0x4b8   :  { %v3175_v21 = vsel %vm590_vm0, %v3172_v28, %v12438_v59  ;;  %v12441_v28 = vld [vmem:[#allocation353_spill] sm:$0xff]  ;;  %12442 = vst [vmem:[#allocation108_spill] sm:$0xff] %v9444_v0  ;;  %v12445_v59 = vld [vmem:[#allocation315_spill] sm:$0xff]  ;;  %v9463_v9 = vmul.f32 %v8793_v33, %v9361_v56  ;;  %v9468_v3 = vmul.f32 %v8811_v53, %v9361_v56 }
 0x4b9   :  { %v4010_v49 = vsel %vm1428_vm1, %v11773_v19, %v12440_v12  ;;  %v3748_v13 = vsel %vm376_vm3, %v3736_v36, %v12441_v28  ;;  %v9451_v47 = vmul.f32 %v12445_v59, %v8645_v44  ;;  %v3188_v1 = vmul.f32 %v12445_v59, %v8802_v52 }
 0x4ba   :  { %v3756_v51 = vadd.f32 %v3748_v13, %v3416_v60  ;;  %v3184_v35 = vadd.f32 %v3175_v21, %v2983_v26  ;;  %v12447_v12 = vrot.slane %v12446_v37, 2  ;;  %v12448_v36 = vrot.slane %v9398_v27, 2  ;;  %12449 = vst [vmem:[#allocation337_spill] sm:$0xff] %v9463_v9  ;;  %v12454_v13 = vld [vmem:[#allocation139_spill] sm:$0xff] }
 0x4bb   :  { %v4685_v0 = vsel %vm1428_vm1, %v4683_v31, %v4684_v4  ;;  %12450 = vst [vmem:[#allocation253_spill] sm:$0xff] %v9468_v3  ;;  %v9472_v26 = vmul.f32 %v8950_v17, %v9361_v56  ;;  %v9475_v60 = vadd.f32 %v1133_v23, %v8984_v7  ;;  %v9486_v37 = vmul.f32 %v9206_v45, %v8482_v32  ;;  %v12457_v32 = vld [vmem:[#allocation308_spill] sm:$0xff] }
 0x4bc   :  { %v4221_v19 = vsel %vm1428_vm1, %v12447_v12, %v4220_v54  ;;  %v4682_v28 = vsel %vm1428_vm1, %v4680_v38, %v12448_v36  ;;  %v4020_v2 = vadd.f32 %v4010_v49, %v3756_v51  ;;  %v12451_v38 = vrot.slane %v9411_v39, 2  ;;  %v12453_v49 = vld [vmem:[#allocation131_spill] sm:$0xff]  ;;  %v12456_v51 = vld [vmem:[#allocation318_spill] sm:$0xff] }
 0x4bd   :  { %v12452_v54 = vrot.slane %v9254_v46, 2  ;;  %v9490_v31 = vmul.f32 %v9206_v45, %v9038_v63  ;;  %v1266_v7 = vsel %vm376_vm3, %v12454_v13, %v12453_v49  ;;  %v2797_v23 = vadd.f32 %v2789_v6, %v2631_v5  ;;  %4236 = vrot.lane.b32.xlu1 %v4221_v19, %s5544_s25  ;;  %4698 = vrot.lane.b32.xlu2 %v4682_v28, %s5545_s14  ;;  %v9513_v28 = vld [vmem:[%s11610_s2 + $0x8] sm:$0xfc] }
 0x4be   :  { %v9498_v46 = vadd.f32 %v9219_v29, %v4020_v2  ;;  %v3409_v12 = vsel %vm145_vm2, %v12457_v32, %v12456_v51  ;;  %v3198_v45 = vrot.slane %v3188_v1, 1  ;;  %4700 = vrot.lane.b32.xlu0 %v4685_v0, %s5545_s14  ;;  %v9506_v6 = vpop.permute.xlu2 %4372  ;;  %v4690_v29 = vrot.slane %v9472_v26, 2  ;;  %v12459_v0 = vld [vmem:[#allocation282_spill] sm:$0xff]  ;;  %v12460_v1 = vld [vmem:[#allocation275_spill] sm:$0xff] }
 0x4bf   :  { %v9482_v21 = vsel %vm1428_vm1, %v12452_v54, %v12451_v38  ;;  %v3742_v38 = vpop.permute.xlu1 %3741  ;;  %v3417_v5 = vadd.f32 %v3409_v12, %v3184_v35  ;;  %12458 = vst [vmem:[#allocation348_spill] sm:$0xff] %v9506_v6  ;;  %v9516_v2 = vstv %s9433_s0  ;;  %v3019_v54 = vsel %vm376_vm3, %v12460_v1, %v12459_v0  ;;  %v12461_v35 = vld [vmem:[#allocation366_spill] sm:$0xff]  ;;  %v4305_v13 = vpop.permute.xlu0 %4304  ;;  %v12463_v12 = vld [vmem:[#allocation144_spill] sm:$0xff]  ;;  %s5145_s0 = sld [smem:[#allocation2 + $0x9]] }
 0x4c0   :  { %12455 = vst [vmem:[#allocation250_spill] sm:$0xff] %v9498_v46  ;;  %v3749_v49 = vsel %vm376_vm3, %v12461_v35, %v3742_v38  ;;  %v4025_v26 = vmul.f32 %v9516_v2, %v9513_v28  ;;  %v9529_v51 = vmul.f32 %v9516_v2, %v8645_v44  ;;  %v12462_v32 = vld [vmem:[#allocation142_spill] sm:$0xff]  ;;  %v3027_v36 = vadd.f32 %v3019_v54, %v2797_v23  ;;  %v12465_v35 = vld [vmem:[#allocation368_spill] sm:$0xff]  ;;  %v12470_v54 = vld [vmem:[#allocation137_spill] sm:$0xff] }
 0x4c1   :  { %v1267_v19 = vsel %vm376_vm3, %v12463_v12, %v12462_v32  ;;  %v9534_v63 = vadd.f32 %v3749_v49, %v3417_v5  ;;  %v9538_v0 = vsel %vm145_vm2, %v9272_v50, %v4305_v13  ;;  %v12464_v38 = vrot.slane %v9451_v47, 1  ;;  %v12467_v6 = vld [vmem:[#allocation364_spill] sm:$0xff]  ;;  %v12471_v50 = vld [vmem:[#allocation145_spill] sm:$0xff] }
 0x4c2   :  { %v12466_v46 = vrot.slane %v12465_v35, 2  ;;  %v12468_v44 = vrot.slane %v12467_v6, 2  ;;  %v12469_v40 = vrot.slane %v9463_v9, 2  ;;  %v4668_v5 = vmul.f32 %v9321_v43, %v9361_v56  ;;  %v12475_v35 = vld [vmem:[#allocation147_spill] sm:$0xff] }
 0x4c3   :  { %v3200_v1 = vsel %vm590_vm0, %v3198_v45, %v12464_v38  ;;  %v1269_v49 = vsel %vm376_vm3, %v12471_v50, %v12470_v54  ;;  %v12472_v13 = vrot.slane %v9468_v3, 2  ;;  %v9561_v6 = vmul.f32 %v8889_v18, %v9361_v56 }
 0x4c4   :  { %v4279_v27 = vsel %vm1428_vm1, %v12468_v44, %v12466_v46  ;;  %v4689_v23 = vsel %vm1428_vm1, %v4684_v4, %v12469_v40  ;;  %v4669_v46 = vmul.f32 %v9141_v42, %v9361_v56  ;;  %v2630_v40 = vmul.f32 %v8950_v17, %v12432_v25  ;;  %v12474_v4 = vld [vmem:[#allocation322_spill] sm:$0xff] }
 0x4c5   :  { %v4691_v45 = vsel %vm1428_vm1, %v12472_v13, %v4690_v29  ;;  %12473 = vst [vmem:[#allocation343_spill] sm:$0xff] %v9561_v6  ;;  %v3475_v32 = vsel %vm145_vm2, %v12474_v4, %v8510_v34  ;;  %v4035_v12 = vrot.slane %v4025_v26, 2  ;;  %v12476_v44 = vld [vmem:[#allocation134_spill] sm:$0xff]  ;;  %v1492_v50 = vrot.slane %v9486_v37, 2  ;;  %4294 = vrot.lane.b32.xlu1 %v4279_v27, %s5544_s25  ;;  %4704 = vrot.lane.b32.xlu2 %v4689_v23, %s5545_s14 }
 0x4c6   :  { %v1268_v54 = vsel %vm376_vm3, %v12476_v44, %v12475_v35  ;;  %v1494_v13 = vrot.slane %v9490_v31, 2  ;;  %v3211_v56 = vadd.f32 %v3200_v1, %v3027_v36  ;;  %v1274_v9 = vadd.f32 %v1266_v7, %v8994_v48  ;;  %4706 = vrot.lane.b32.xlu0 %v4691_v45, %s5545_s14  ;;  %v12479_v7 = vld [vmem:[#allocation362_spill] sm:$0xff] }
 0x4c7   :  { %v1275_v34 = vadd.f32 %v1267_v19, %v9163_v61  ;;  %v1277_v26 = vadd.f32 %v1269_v49, %v9166_v15  ;;  %v4694_v4 = vrot.slane %v4668_v5, 2  ;;  %v3800_v35 = vpop.permute.xlu1 %3799  ;;  %v11778_v37 = vrot.slane %v9561_v6, 2  ;;  %v9593_v19 = vpop.permute.xlu2 %4430  ;;  %v12481_v23 = vld [vmem:[#allocation242_spill] sm:$0xff]  ;;  %v12482_v5 = vld [vmem:[#allocation295_spill] sm:$0xff] }
 0x4c8   :  { %v3483_v38 = vadd.f32 %v3475_v32, %v3211_v56  ;;  %v4696_v44 = vrot.slane %v4669_v46, 2  ;;  %v9584_v31 = vstv %s9518_s24  ;;  %v1276_v27 = vadd.f32 %v1268_v54, %v9073_v16  ;;  %v9595_v1 = vpop.permute.xlu0 %4362  ;;  %v9603_v16 = vld [vmem:[%s11610_s2 + $0x68] sm:$0x1]  ;;  %s5141_s24 = sld [smem:[#allocation4 + $0x1]] }
 0x4c9   :  { %12477 = vst [vmem:[#allocation273_spill] sm:$0xff] %v9584_v31  ;;  %v2634_v36 = vadd.f32 %v2630_v40, %v12439_v24  ;;  %v12478_v48 = vrot.slane %v9529_v51, 2  ;;  %v3815_v15 = vsel %vm376_vm3, %v3800_v35, %v12479_v7  ;;  %v2792_v49 = vsel %vm145_vm2, %v12482_v5, %v12481_v23  ;;  %v12483_v40 = vld [vmem:[#allocation371_spill] sm:$0xff] }
 0x4ca   :  { %12480 = vst [vmem:[#allocation263_spill] sm:$0xff] %v9595_v1  ;;  %v3192_v45 = vmul.f32 %v9603_v16, %v12445_v59  ;;  %v3823_v46 = vadd.f32 %v3815_v15, %v3483_v38  ;;  %v12484_v32 = vrot.slane %v12483_v40, 2  ;;  %v4695_v35 = vsel %vm1428_vm1, %v4690_v29, %v4694_v4  ;;  %v12512_v1 = vld [vmem:[#allocation245_spill] sm:$0xff] }
 0x4cb   :  { %v4037_v61 = vsel %vm1428_vm1, %v4035_v12, %v12478_v48  ;;  %v12485_v12 = vld [vmem:[#allocation367_spill] sm:$0xff]  ;;  %v12487_v48 = vld [vmem:[#allocation373_spill] sm:$0xff]  ;;  %v4729_v23 = vmul.f32 %v9232_v41, %v9584_v31  ;;  %v9619_v5 = vmul.f32 %v8730_v30, %v9584_v31  ;;  %v4697_v38 = vsel %vm1428_vm1, %v11778_v37, %v4696_v44 }
 0x4cc   :  { %v12486_v54 = vrot.slane %v12485_v12, 2  ;;  %v4320_v7 = vmul.f32 %v9154_v62, %v12487_v48  ;;  %v4048_v59 = vadd.f32 %v4037_v61, %v3823_v46  ;;  %v9626_v15 = vmul.f32 %v8716_v8, %v9584_v31  ;;  %v12490_v62 = vld [vmem:[#allocation330_spill] sm:$0xff]  ;;  %v12492_v8 = vld [vmem:[#allocation239_spill] sm:$0xff] }
 0x4cd   :  { %12488 = vst [vmem:[#allocation124_spill] sm:$0xff] %v9619_v5  ;;  %v9630_v29 = vmul.f32 %v8811_v53, %v9584_v31  ;;  %v9634_v4 = vadd.f32 %v12490_v62, %v9475_v60  ;;  %v9637_v30 = vadd.f32 %v9347_v11, %v1274_v9  ;;  %v12491_v61 = vrot.slane %v9411_v39, 2  ;;  %4710 = vrot.lane.b32.xlu2 %v4695_v35, %s5545_s14  ;;  %v12498_v35 = vld [vmem:[#allocation285_spill] sm:$0xff] }
 0x4ce   :  { %v4285_v56 = vsel %vm1428_vm1, %v12486_v54, %v12484_v32  ;;  %12489 = vst [vmem:[#allocation126_spill] sm:$0xff] %v9626_v15  ;;  %v1495_v44 = vsel %vm1428_vm1, %v1492_v50, %v1494_v13  ;;  %v2800_v40 = vadd.f32 %v2792_v49, %v2634_v36  ;;  %v2637_v32 = vmul.f32 %v8777_v57, %v12492_v8 }
 0x4cf   :  { %v1493_v46 = vsel %vm1428_vm1, %v12491_v61, %v1492_v50  ;;  %v3205_v12 = vrot.slane %v3192_v45, 1  ;;  %4300 = vrot.lane.b32.xlu1 %v4285_v56, %s5544_s25  ;;  %v9648_v60 = vadd.f32 %v9378_v22, %v4048_v59  ;;  %v9651_v11 = vadd.f32 %v9482_v21, %v1275_v34  ;;  %4712 = vrot.lane.b32.xlu0 %v4697_v38, %s5545_s14  ;;  %v9659_v36 = vpop.permute.xlu1 %3805  ;;  %v9666_v21 = vld [vmem:[%s11610_s2 + $0x68] sm:$0x3]  ;;  %v12494_v34 = vld [vmem:[#allocation155_spill] sm:$0xff]  ;;  %v12496_v56 = vld [vmem:[#allocation288_spill] sm:$0xff] }
 0x4d0   :  { %v4340_v39 = vrot.slane %v4320_v7, 2  ;;  %v4751_v9 = vrot.slane %v4729_v23, 2  ;;  %v11779_v50 = vrot.slane %v9619_v5, 2  ;;  %v9655_v13 = vadd.f32 %v1493_v46, %v1276_v27  ;;  %v12495_v45 = vld [vmem:[#allocation163_spill] sm:$0xff]  ;;  %v12497_v27 = vld [vmem:[#allocation280_spill] sm:$0xff]  ;;  %v9676_v23 = vpop.permute.xlu0 %4368  ;;  %v12500_v61 = vld [vmem:[#allocation298_spill] sm:$0xff] }
 0x4d1   :  { %12493 = vst [vmem:[#allocation119_spill] sm:$0xff] %v9648_v60  ;;  %v9657_v57 = vadd.f32 %v1495_v44, %v1277_v26  ;;  %v4754_v22 = vrot.slane %v9630_v29, 2  ;;  %v1622_v54 = vsel %vm145_vm2, %v12495_v45, %v12494_v34  ;;  %v3022_v26 = vsel %vm376_vm3, %v12497_v27, %v12496_v56  ;;  %v12499_v29 = vld [vmem:[#allocation14_spill] sm:$0xff]  ;;  %v12501_v46 = vld [vmem:[#allocation252_spill] sm:$0xff]  ;;  %v9687_v56 = vpop.permute.xlu2 %4436  ;;  %v12505_v27 = vld [vmem:[#allocation379_spill] sm:$0xff] }
 0x4d2   :  { %v3217_v7 = vmul.f32 %v12498_v35, %v8802_v52  ;;  %v4029_v59 = vmul.f32 %v9516_v2, %v9666_v21  ;;  %v3030_v38 = vadd.f32 %v3022_v26, %v2800_v40  ;;  %v2641_v62 = vadd.f32 %v2637_v32, %v12499_v29  ;;  %v12502_v34 = vld [vmem:[#allocation24_spill] sm:$0xff]  ;;  %12504 = vst [vmem:[#allocation127_spill] sm:$0xff] %v9687_v56  ;;  %v9698_v32 = vld [vmem:[%s11610_s2 + $0x50] sm:$0xff] }
 0x4d3   :  { %v2835_v44 = vsel %vm145_vm2, %v12501_v46, %v12500_v61  ;;  %v12503_v45 = vrot.slane %v12502_v34, 1  ;;  %v12506_v52 = vrot.slane %v12505_v27, 2  ;;  %v4753_v40 = vsel %vm1428_vm1, %v4751_v9, %v11779_v50  ;;  %v12510_v27 = vld [vmem:[#allocation281_spill] sm:$0xff]  ;;  %v12513_v60 = vld [vmem:[#allocation328_spill] sm:$0xff] }
 0x4d4   :  { %v9702_v26 = vmul.f32 %v9698_v32, %v9516_v2  ;;  %v12508_v61 = vrot.slane %v9626_v15, 2  ;;  %v9715_v46 = vmul.f32 %v8793_v33, %v9584_v31  ;;  %v9719_v34 = vmul.f32 %v8889_v18, %v9584_v31  ;;  %v12514_v18 = vld [vmem:[#allocation166_spill] sm:$0xff] }
 0x4d5   :  { %v3206_v37 = vsel %vm590_vm0, %v12503_v45, %v3205_v12  ;;  %v4342_v49 = vsel %vm1428_vm1, %v4340_v39, %v12506_v52  ;;  %v9706_v12 = vmul.f32 %v8950_v17, %v9584_v31  ;;  %v2639_v39 = vmul.f32 %v8811_v53, %v12492_v8  ;;  %v12511_v52 = vld [vmem:[#allocation340_spill] sm:$0xff]  ;;  %4768 = vrot.lane.b32.xlu2 %v4753_v40, %s5545_s14  ;;  %v12519_v40 = vld [vmem:[#allocation194_spill] sm:$0xff] }
 0x4d6   :  { %v4755_v9 = vsel %vm1428_vm1, %v12508_v61, %v4754_v22  ;;  %12509 = vst [vmem:[#allocation116_spill] sm:$0xff] %v9715_v46  ;;  %v3227_v45 = vrot.slane %v3217_v7, 1  ;;  %v3065_v50 = vsel %vm376_vm3, %v12511_v52, %v12510_v27  ;;  %v3478_v53 = vsel %vm145_vm2, %v12513_v60, %v12512_v1  ;;  %v12515_v7 = vld [vmem:[#allocation168_spill] sm:$0xff]  ;;  %v12516_v27 = vld [vmem:[#allocation197_spill] sm:$0xff] }
 0x4d7   :  { %12507 = vst [vmem:[#allocation129_spill] sm:$0xff] %v9706_v12  ;;  %v4042_v56 = vrot.slane %v4029_v59, 2  ;;  %v2843_v5 = vadd.f32 %v2835_v44, %v2641_v62  ;;  %v9729_v61 = vmul.f32 %v9698_v32, %v12498_v35  ;;  %v3214_v33 = vadd.f32 %v3206_v37, %v3030_v38  ;;  %4358 = vrot.lane.b32.xlu1 %v4342_v49, %s5544_s25  ;;  %v12517_v52 = vld [vmem:[#allocation205_spill] sm:$0xff]  ;;  %v3812_v38 = vpop.permute.xlu1 %3811  ;;  %v12518_v44 = vld [vmem:[#allocation207_spill] sm:$0xff] }
 0x4d8   :  { %v1623_v15 = vsel %vm145_vm2, %v12515_v7, %v12514_v18  ;;  %v1963_v6 = vsel %vm376_vm3, %v12517_v52, %v12516_v27  ;;  %4770 = vrot.lane.b32.xlu0 %v4755_v9, %s5545_s14  ;;  %v11784_v1 = vrot.slane %v9702_v26, 2  ;;  %v4760_v62 = vrot.slane %v9719_v34, 2  ;;  %v12520_v7 = vld [vmem:[#allocation317_spill] sm:$0xff]  ;;  %v12524_v52 = vld [vmem:[#allocation248_spill] sm:$0xff] }
 0x4d9   :  { %v3073_v59 = vadd.f32 %v3065_v50, %v2843_v5  ;;  %v3486_v37 = vadd.f32 %v3478_v53, %v3214_v33  ;;  %v1962_v18 = vsel %vm376_vm3, %v12519_v40, %v12518_v44  ;;  %v12521_v27 = vrot.slane %v12520_v7, 1  ;;  %v12522_v50 = vld [vmem:[#allocation370_spill] sm:$0xff]  ;;  %v9757_v33 = vpop.permute.xlu0 %4426  ;;  %v12525_v49 = vld [vmem:[#allocation301_spill] sm:$0xff] }
 0x4da   :  { %v4043_v5 = vsel %vm1428_vm1, %v11784_v1, %v4042_v56  ;;  %v3818_v53 = vsel %vm376_vm3, %v3812_v38, %v12522_v50  ;;  %12523 = vst [vmem:[#allocation347_spill] sm:$0xff] %v9757_v33  ;;  %v2643_v34 = vadd.f32 %v2639_v39, %v12499_v29  ;;  %v2837_v60 = vsel %vm145_vm2, %v12525_v49, %v12524_v52  ;;  %v12526_v7 = vld [vmem:[#allocation385_spill] sm:$0xff]  ;;  %v12535_v44 = vld [vmem:[#allocation158_spill] sm:$0xff] }
 0x4db   :  { %v3229_v9 = vsel %vm590_vm0, %v3227_v45, %v12521_v27  ;;  %v3826_v40 = vadd.f32 %v3818_v53, %v3486_v37  ;;  %v12527_v45 = vrot.slane %v12526_v7, 2  ;;  %v12528_v27 = vld [vmem:[#allocation376_spill] sm:$0xff]  ;;  %v12530_v1 = vrot.slane %v9706_v12, 2  ;;  %v12576_v33 = vld [vmem:[#allocation254_spill] sm:$0xff] }
 0x4dc   :  { %v12529_v3 = vrot.slane %v12528_v27, 2  ;;  %v4328_v39 = vmul.f32 %v9321_v43, %v12487_v48  ;;  %v4737_v50 = vmul.f32 %v9141_v42, %v9584_v31  ;;  %v2640_v49 = vmul.f32 %v8950_v17, %v12492_v8  ;;  %v12534_v27 = vld [vmem:[#allocation171_spill] sm:$0xff]  ;;  %v9789_v17 = vpop.permute.xlu2 %4494  ;;  %v12536_v8 = vld [vmem:[#allocation173_spill] sm:$0xff]  ;;  %v12607_v31 = vld [vmem:[#allocation342_spill] sm:$0xff] }
 0x4dd   :  { %v4759_v38 = vsel %vm1428_vm1, %v4754_v22, %v12530_v1  ;;  %v3240_v37 = vadd.f32 %v3229_v9, %v3073_v59  ;;  %v4051_v53 = vadd.f32 %v4043_v5, %v3826_v40  ;;  %v12531_v52 = vrot.slane %v9715_v46, 2  ;;  %v12532_v22 = vld [vmem:[#allocation161_spill] sm:$0xff]  ;;  %v12602_v46 = vld [vmem:[#allocation246_spill] sm:$0xff] }
 0x4de   :  { %v4349_v56 = vsel %vm1428_vm1, %v12529_v3, %v12527_v45  ;;  %v1630_v3 = vadd.f32 %v1622_v54, %v9326_v10  ;;  %v1631_v45 = vadd.f32 %v1623_v15, %v9342_v14  ;;  %v12533_v1 = vld [vmem:[#allocation169_spill] sm:$0xff]  ;;  %v1624_v12 = vsel %vm145_vm2, %v12535_v44, %v12534_v27  ;;  %4774 = vrot.lane.b32.xlu2 %v4759_v38, %s5545_s14 }
 0x4df   :  { %v4761_v7 = vsel %vm1428_vm1, %v12531_v52, %v4760_v62  ;;  %v1625_v48 = vsel %vm145_vm2, %v12533_v1, %v12532_v22  ;;  %v12537_v59 = vld [vmem:[#allocation181_spill] sm:$0xff]  ;;  %v2845_v5 = vadd.f32 %v2837_v60, %v2643_v34  ;;  %4364 = vrot.lane.b32.xlu1 %v4349_v56, %s5544_s25  ;;  %v9797_v10 = vadd.f32 %v9538_v0, %v4051_v53  ;;  %v12540_v22 = vld [vmem:[#allocation255_spill] sm:$0xff]  ;;  %v3870_v34 = vpop.permute.xlu1 %3869  ;;  %v12544_v0 = vld [vmem:[#allocation294_spill] sm:$0xff] }
 0x4e0   :  { %v1759_v9 = vsel %vm145_vm2, %v12537_v59, %v12536_v8  ;;  %v1971_v14 = vadd.f32 %v1963_v6, %v1631_v45  ;;  %v1970_v15 = vadd.f32 %v1962_v18, %v1630_v3  ;;  %4776 = vrot.lane.b32.xlu0 %v4761_v7, %s5545_s14  ;;  %v4354_v54 = vrot.slane %v4328_v39, 2  ;;  %v12542_v56 = vld [vmem:[#allocation331_spill] sm:$0xff]  ;;  %v12545_v6 = vld [vmem:[#allocation284_spill] sm:$0xff] }
 0x4e1   :  { %12538 = vst [vmem:[#allocation352_spill] sm:$0xff] %v9797_v10  ;;  %v4764_v44 = vrot.slane %v4737_v50, 2  ;;  %v2644_v40 = vadd.f32 %v2640_v49, %v12499_v29  ;;  %v12539_v52 = vrot.slane %v9729_v61, 1  ;;  %v12541_v1 = vrot.slane %v12540_v22, 1  ;;  %v12546_v50 = vld [vmem:[#allocation11_spill] sm:$0xff]  ;;  %v4433_v49 = vpop.permute.xlu0 %4432  ;;  %v12548_v3 = vld [vmem:[#allocation304_spill] sm:$0xff] }
 0x4e2   :  { %v3551_v38 = vadd.f32 %v12542_v56, %v3240_v37  ;;  %v9808_v27 = vstv %s9744_s5  ;;  %v3067_v18 = vsel %vm376_vm3, %v12545_v6, %v12544_v0  ;;  %v3221_v39 = vmul.f32 %v9603_v16, %v12498_v35  ;;  %v12549_v37 = vld [vmem:[#allocation258_spill] sm:$0xff]  ;;  %v12551_v35 = vld [vmem:[#allocation12_spill] sm:$0xff]  ;;  %v12554_v56 = vld [vmem:[#allocation19_spill] sm:$0xff] }
 0x4e3   :  { %v3233_v60 = vsel %vm590_vm0, %v12541_v1, %v12539_v52  ;;  %12543 = vst [vmem:[#allocation374_spill] sm:$0xff] %v9808_v27  ;;  %v3883_v29 = vsel %vm376_vm3, %v12546_v50, %v3870_v34  ;;  %v9819_v53 = vmul.f32 %v9698_v32, %v9808_v27  ;;  %v3075_v7 = vadd.f32 %v3067_v18, %v2845_v5  ;;  %v9837_v5 = vld [vmem:[%s11610_s2 + $0x38] sm:$0xff]  ;;  %v12556_v18 = vld [vmem:[#allocation349_spill] sm:$0xff]  ;;  %v12572_v10 = vld [vmem:[#allocation220_spill] sm:$0xff] }
 0x4e4   :  { %v2838_v45 = vsel %vm145_vm2, %v12549_v37, %v12548_v3  ;;  %v9824_v8 = vadd.f32 %v3883_v29, %v3551_v38  ;;  %v9828_v59 = vsel %vm145_vm2, %v9593_v19, %v4433_v49  ;;  %v12552_v52 = vrot.slane %v12551_v35, 2  ;;  %v12555_v6 = vld [vmem:[#allocation287_spill] sm:$0xff]  ;;  %v12557_v29 = vld [vmem:[#allocation53_spill] sm:$0xff]  ;;  %v12558_v49 = vld [vmem:[#allocation334_spill] sm:$0xff] }
 0x4e5   :  { %12547 = vst [vmem:[#allocation369_spill] sm:$0xff] %v9819_v53  ;;  %v4765_v1 = vsel %vm1428_vm1, %v4760_v62, %v4764_v44  ;;  %v9841_v34 = vmul.f32 %v9837_v5, %v9808_v27  ;;  %v4389_v38 = vmul.f32 %v9232_v41, %v12554_v56  ;;  %v9846_v19 = vadd.f32 %v1625_v48, %v9634_v4  ;;  %v12559_v4 = vld [vmem:[#allocation41_spill] sm:$0xff]  ;;  %v12560_v48 = vld [vmem:[#allocation183_spill] sm:$0xff] }
 0x4e6   :  { %12550 = vst [vmem:[#allocation309_spill] sm:$0xff] %v9824_v8  ;;  %v4355_v22 = vsel %vm1428_vm1, %v12552_v52, %v4354_v54  ;;  %v1632_v0 = vadd.f32 %v1624_v12, %v9331_v58  ;;  %v1767_v54 = vadd.f32 %v1759_v9, %v9651_v11  ;;  %v2247_v62 = vmax.f32 %v1971_v14, 0.0  ;;  %v9860_v58 = vld [vmem:[%s11610_s2 + $0x20] sm:$0xff]  ;;  %4780 = vrot.lane.b32.xlu2 %v4765_v1, %s5545_s14  ;;  %v12561_v9 = vld [vmem:[#allocation170_spill] sm:$0xff] }
 0x4e7   :  { %12553 = vst [vmem:[#allocation345_spill] sm:$0xff] %v9841_v34  ;;  %v3234_v44 = vrot.slane %v3221_v39, 1  ;;  %v3068_v50 = vsel %vm376_vm3, %v12556_v18, %v12555_v6  ;;  %v3545_v3 = vsel %vm145_vm2, %v12558_v49, %v12557_v29  ;;  %v11788_v37 = vrot.slane %v9819_v53, 2  ;;  %4370 = vrot.lane.b32.xlu1 %v4355_v22, %s5544_s25  ;;  %v12562_v39 = vld [vmem:[#allocation208_spill] sm:$0xff]  ;;  %v12566_v29 = vld [vmem:[#allocation186_spill] sm:$0xff]  ;;  %v12606_v53 = vld [vmem:[#allocation251_spill] sm:$0xff] }
 0x4e8   :  { %v2246_v41 = vmax.f32 %v1970_v15, 0.0  ;;  %v2846_v35 = vadd.f32 %v2838_v45, %v2644_v40  ;;  %v2648_v11 = vmul.f32 %v9860_v58, %v12559_v4  ;;  %v3242_v12 = vadd.f32 %v3233_v60, %v3075_v7  ;;  %v12563_v15 = vld [vmem:[#allocation210_spill] sm:$0xff]  ;;  %v9872_v45 = vpop.permute.xlu2 %4500  ;;  %v12565_v18 = vld [vmem:[#allocation184_spill] sm:$0xff] }
 0x4e9   :  { %v1758_v14 = vsel %vm145_vm2, %v12561_v9, %v12560_v48  ;;  %v1964_v40 = vsel %vm376_vm3, %v12563_v15, %v12562_v39  ;;  %12564 = vst [vmem:[#allocation271_spill] sm:$0xff] %v9872_v45  ;;  %v11787_v52 = vrot.slane %v9841_v34, 2  ;;  %v4411_v6 = vrot.slane %v4389_v38, 2  ;;  %v12567_v22 = vld [vmem:[#allocation38_spill] sm:$0xff]  ;;  %v3876_v48 = vpop.permute.xlu1 %3875  ;;  %v12575_v45 = vld [vmem:[#allocation212_spill] sm:$0xff] }
 0x4ea   :  { %v1760_v60 = vsel %vm145_vm2, %v12566_v29, %v12565_v18  ;;  %v3076_v7 = vadd.f32 %v3068_v50, %v2846_v35  ;;  %v9880_v1 = vmul.f32 %v9837_v5, %v12567_v22  ;;  %v3553_v49 = vadd.f32 %v3545_v3, %v3242_v12  ;;  %v12569_v50 = vld [vmem:[#allocation384_spill] sm:$0xff]  ;;  %v9894_v18 = vpop.permute.xlu0 %4438  ;;  %v12571_v29 = vld [vmem:[#allocation51_spill] sm:$0xff] }
 0x4eb   :  { %v2251_v9 = vmul.f32 0.5, %v2247_v62  ;;  %v12568_v39 = vrot.slane %v9729_v61, 1  ;;  %v4070_v38 = vsel %vm1428_vm1, %v11787_v52, %v11788_v37  ;;  %v3885_v35 = vsel %vm376_vm3, %v3876_v48, %v12569_v50  ;;  %12570 = vst [vmem:[#allocation268_spill] sm:$0xff] %v9894_v18  ;;  %v12573_v61 = vld [vmem:[#allocation222_spill] sm:$0xff]  ;;  %v12577_v52 = vld [vmem:[#allocation307_spill] sm:$0xff]  ;;  %v12578_v48 = vld [vmem:[#allocation249_spill] sm:$0xff] }
 0x4ec   :  { %v2250_v3 = vmul.f32 0.5, %v2246_v41  ;;  %v1972_v12 = vadd.f32 %v1964_v40, %v1632_v0  ;;  %v2652_v22 = vadd.f32 %v2648_v11, %v12571_v29  ;;  %v3893_v62 = vadd.f32 %v3885_v35, %v3553_v49  ;;  %v5491_v0 = vld [vmem:[%s11610_s2 + $0x38] sm:$0xff] }
 0x4ed   :  { %v3235_v15 = vsel %vm590_vm0, %v12568_v39, %v3234_v44  ;;  %v2098_v44 = vsel %vm376_vm3, %v12573_v61, %v12572_v10  ;;  %v12574_v39 = vld [vmem:[#allocation225_spill] sm:$0xff]  ;;  %v2882_v37 = vsel %vm145_vm2, %v12577_v52, %v12576_v33  ;;  %v12579_v50 = vrot.slane %v12578_v48, 2 }
 0x4ee   :  { %v2099_v34 = vsel %vm376_vm3, %v12575_v45, %v12574_v39  ;;  %v2649_v11 = vmul.f32 %v5491_v0, %v12559_v4  ;;  %v3243_v40 = vadd.f32 %v3235_v15, %v3076_v7  ;;  %v11789_v10 = vrot.slane %v9880_v1, 1  ;;  %v12580_v52 = vld [vmem:[#allocation189_spill] sm:$0xff] }
 0x4ef   :  { %v4413_v41 = vsel %vm1428_vm1, %v4411_v6, %v12579_v50  ;;  %v4079_v49 = vadd.f32 %v4070_v38, %v3893_v62  ;;  %v1766_v45 = vadd.f32 %v1758_v14, %v9637_v30  ;;  %v9916_v35 = vadd.f32 %v1760_v60, %v9655_v13  ;;  %v12581_v6 = vld [vmem:[#allocation176_spill] sm:$0xff]  ;;  %v9932_v60 = vld [vmem:[%s11610_s2 + $0x8] sm:$0xff]  ;;  %v12589_v62 = vld [vmem:[#allocation290_spill] sm:$0xff] }
 0x4f0   :  { %5370 = vtanh.f32 %v2251_v9  ;;  %v4376_v33 = vsel %vm145_vm2, %v9430_v55, %v9676_v23  ;;  %v9924_v61 = vsel %vm145_vm2, %v12581_v6, %v12580_v52  ;;  %v2890_v4 = vadd.f32 %v2882_v37, %v2652_v22  ;;  %4428 = vrot.lane.b32.xlu1 %v4413_v41, %s5544_s25  ;;  %v12583_v55 = vld [vmem:[#allocation77_spill] sm:$0xff]  ;;  %v9956_v50 = vpop.permute.xlu2 %4506  ;;  %v12591_v41 = vld [vmem:[#allocation27_spill] sm:$0xff] }
 0x4f1   :  { %5372 = vtanh.f32 %v2250_v3  ;;  %v9927_v7 = vadd.f32 %v4376_v33, %v4079_v49  ;;  %v2248_v30 = vmax.f32 %v1972_v12, 0.0  ;;  %v2106_v13 = vadd.f32 %v2098_v44, %v1766_v45  ;;  %v12584_v37 = vld [vmem:[#allocation329_spill] sm:$0xff]  ;;  %v3882_v3 = vpop.permute.xlu1 %3881  ;;  %v12586_v12 = vld [vmem:[#allocation338_spill] sm:$0xff]  ;;  %v9967_v45 = vld [vmem:[%s11610_s2 + $0x20] sm:$0xff] }
 0x4f2   :  { %v2107_v14 = vadd.f32 %v2099_v34, %v1767_v54  ;;  %v2607_v23 = vmul.f32 %v9932_v60, %v12583_v55  ;;  %v2653_v9 = vadd.f32 %v2649_v11, %v12571_v29  ;;  %v12585_v15 = vrot.slane %v12584_v37, 1  ;;  %v12588_v54 = vld [vmem:[#allocation300_spill] sm:$0xff]  ;;  %v9952_v39 = vld [vmem:[%s11610_s2 + $0x8] sm:$0xfe]  ;;  %v4497_v11 = vpop.permute.xlu0 %4496 }
 0x4f3   :  { %12582 = vst [vmem:[#allocation356_spill] sm:$0xff] %v9927_v7  ;;  %v3554_v22 = vadd.f32 %v12586_v12, %v3243_v40  ;;  %v9944_v34 = vstv %s9882_s10  ;;  %v3112_v44 = vsel %vm376_vm3, %v12589_v62, %v12588_v54  ;;  %v12590_v29 = vld [vmem:[#allocation332_spill] sm:$0xff]  ;;  %v3886_v0 = vsel %vm376_vm3, %v12591_v41, %v3882_v3  ;;  %v12595_v12 = vld [vmem:[#allocation43_spill] sm:$0xff]  ;;  %v12597_v62 = vld [vmem:[#allocation25_spill] sm:$0xff]  ;;  %s10618_s10 = sld [smem:[#allocation2 + $0xf]] }
 0x4f4   :  { %v3260_v38 = vsel %vm590_vm0, %v12585_v15, %v11789_v10  ;;  %12587 = vst [vmem:[#allocation279_spill] sm:$0xff] %v9944_v34  ;;  %v3130_v48 = vmul.f32 %v9952_v39, %v12590_v29  ;;  %v9962_v40 = vmul.f32 %v9837_v5, %v9944_v34  ;;  %v3120_v49 = vadd.f32 %v3112_v44, %v2890_v4  ;;  %v12593_v15 = vld [vmem:[#allocation310_spill] sm:$0xff]  ;;  %v12594_v3 = vld [vmem:[#allocation264_spill] sm:$0xff] }
 0x4f5   :  { %v9971_v33 = vmul.f32 %v9967_v45, %v12590_v29  ;;  %v9973_v52 = vadd.f32 %v3886_v0, %v3554_v22  ;;  %v9977_v6 = vsel %vm376_vm3, %v9789_v17, %v4497_v11  ;;  %v2883_v4 = vsel %vm145_vm2, %v12594_v3, %v12593_v15  ;;  %v12599_v11 = vld [vmem:[#allocation213_spill] sm:$0xff]  ;;  %v12600_v7 = vld [vmem:[#allocation200_spill] sm:$0xff]  ;;  %v12601_v3 = vld [vmem:[#allocation350_spill] sm:$0xff] }
 0x4f6   :  { %v5371_v37 = vpop.eup %5370  ;;  %v12596_v54 = vrot.slane %v12595_v12, 2  ;;  %v12598_v44 = vrot.slane %v12597_v62, 2  ;;  %v9989_v10 = vmul.f32 %v9967_v45, %v9944_v34  ;;  %v4397_v22 = vmul.f32 %v9141_v42, %v12554_v56  ;;  %v12603_v62 = vld [vmem:[#allocation244_spill] sm:$0xff] }
 0x4f7   :  { %12592 = vst [vmem:[#allocation269_spill] sm:$0xff] %v9973_v52  ;;  %v5373_v17 = vpop.eup %5372  ;;  %v2252_v0 = vmul.f32 0.5, %v2248_v30  ;;  %v1965_v18 = vsel %vm376_vm3, %v12600_v7, %v12599_v11  ;;  %v2384_v15 = vmax.f32 %v2106_v13, 0.0  ;;  %v2611_v12 = vadd.f32 %v2607_v23, %v12601_v3  ;;  %v12605_v52 = vld [vmem:[#allocation357_spill] sm:$0xff]  ;;  %v12608_v11 = vld [vmem:[#allocation260_spill] sm:$0xff] }
 0x4f8   :  { %v4419_v41 = vsel %vm1428_vm1, %v12598_v44, %v12596_v54  ;;  %v2697_v54 = vsel %vm145_vm2, %v12603_v62, %v12602_v46  ;;  %v12604_v44 = vld [vmem:[#allocation293_spill] sm:$0xff]  ;;  %v3612_v42 = vsel %vm145_vm2, %v12607_v31, %v12606_v53  ;;  %v11798_v56 = vrot.slane %v9962_v40, 2 }
 0x4f9   :  { %v3113_v34 = vsel %vm376_vm3, %v12605_v52, %v12604_v44  ;;  %v2385_v30 = vmax.f32 %v2107_v14, 0.0  ;;  %v2891_v8 = vadd.f32 %v2883_v4, %v2653_v9  ;;  %v3140_v7 = vrot.slane %v3130_v48, 1  ;;  %4434 = vrot.lane.b32.xlu1 %v4419_v41, %s5544_s25  ;;  %v12609_v46 = vld [vmem:[#allocation313_spill] sm:$0xff]  ;;  %v3940_v9 = vpop.permute.xlu1 %3939 }
 0x4fa   :  { %v3270_v13 = vadd.f32 %v3260_v38, %v3120_v49  ;;  %v3141_v23 = vrot.slane %v9971_v33, 1  ;;  %v2927_v62 = vsel %vm376_vm3, %v12609_v46, %v12608_v11  ;;  %v11799_v52 = vrot.slane %v9989_v10, 2  ;;  %v12610_v38 = vld [vmem:[#allocation261_spill] sm:$0xff]  ;;  %v10031_v11 = vpop.permute.xlu2 %4564  ;;  %v12614_v46 = vld [vmem:[#allocation319_spill] sm:$0xff] }
 0x4fb   :  { %v4424_v44 = vrot.slane %v4397_v22, 2  ;;  %v2705_v27 = vadd.f32 %v2697_v54, %v2611_v12  ;;  %v2608_v31 = vmul.f32 %v9860_v58, %v12583_v55  ;;  %v3121_v53 = vadd.f32 %v3113_v34, %v2891_v8  ;;  %v12613_v22 = vld [vmem:[#allocation17_spill] sm:$0xff]  ;;  %v10027_v54 = vpop.permute.xlu0 %4502 }
 0x4fc   :  { %v3620_v14 = vadd.f32 %v3612_v42, %v3270_v13  ;;  %v2388_v48 = vmul.f32 0.5, %v2384_v15  ;;  %v12611_v49 = vrot.slane %v12610_v38, 1  ;;  %v12612_v4 = vrot.slane %v9880_v1, 1 }
 0x4fd   :  { %v4097_v41 = vsel %vm1428_vm1, %v11799_v52, %v11798_v56  ;;  %v3952_v12 = vsel %vm376_vm3, %v3940_v9, %v12613_v22  ;;  %v1973_v8 = vadd.f32 %v1965_v18, %v9846_v19  ;;  %v2935_v34 = vadd.f32 %v2927_v62, %v2705_v27  ;;  %v12617_v56 = vld [vmem:[#allocation223_spill] sm:$0xff] }
 0x4fe   :  { %v3262_v33 = vsel %vm590_vm0, %v12612_v4, %v12611_v49  ;;  %v3960_v15 = vadd.f32 %v3952_v12, %v3620_v14  ;;  %v2258_v42 = vmul.f32 0.5, %v5373_v17  ;;  %5374 = vtanh.f32 %v2252_v0  ;;  %v12616_v4 = vld [vmem:[#allocation215_spill] sm:$0xff]  ;;  %v12619_v17 = vld [vmem:[#allocation236_spill] sm:$0xff] }
 0x4ff   :  { %v2389_v1 = vmul.f32 0.5, %v2385_v30  ;;  %v3142_v13 = vsel %vm590_vm0, %v3140_v7, %v3141_v23  ;;  %v12615_v38 = vrot.slane %v12614_v46, 2  ;;  %v2100_v9 = vsel %vm376_vm3, %v12617_v56, %v12616_v4  ;;  %v12618_v18 = vld [vmem:[#allocation247_spill] sm:$0xff]  ;;  %v12620_v30 = vld [vmem:[#allocation80_spill] sm:$0xff] }
 0x500   :  { %v2612_v22 = vadd.f32 %v2608_v31, %v12601_v3  ;;  %v3271_v19 = vadd.f32 %v3262_v33, %v3121_v53  ;;  %v4107_v27 = vadd.f32 %v4097_v41, %v3960_v15  ;;  %5376 = vtanh.f32 %v2388_v48  ;;  %v12622_v53 = vld [vmem:[#allocation316_spill] sm:$0xff]  ;;  %v12623_v48 = vld [vmem:[#allocation270_spill] sm:$0xff] }
 0x501   :  { %v4425_v49 = vsel %vm1428_vm1, %v12615_v38, %v4424_v44  ;;  %v2698_v0 = vsel %vm145_vm2, %v12619_v17, %v12618_v18  ;;  %v3967_v7 = vmul.f32 %v12620_v30, %v9513_v28  ;;  %v2259_v62 = vmul.f32 0.5, %v5371_v37  ;;  %v12624_v37 = vld [vmem:[#allocation226_spill] sm:$0xff]  ;;  %v12631_v17 = vld [vmem:[#allocation49_spill] sm:$0xff] }
 0x502   :  { %v2249_v14 = vmax.f32 %v1973_v8, 0.0  ;;  %v3153_v12 = vadd.f32 %v3142_v13, %v2935_v34  ;;  %4440 = vrot.lane.b32.xlu1 %v4425_v49, %s5544_s25  ;;  %v2262_v44 = vadd.f32 0.5, %v2258_v42  ;;  %v10047_v56 = vadd.f32 %v9828_v59, %v4107_v27  ;;  %v12625_v8 = vld [vmem:[#allocation228_spill] sm:$0xff]  ;;  %v5495_v59 = vld [vmem:[%s11610_s2 + $0x50] sm:$0xff]  ;;  %v3946_v42 = vpop.permute.xlu1 %3945  ;;  %v12630_v27 = vld [vmem:[#allocation351_spill] sm:$0xff] }
 0x503   :  { %v2108_v31 = vadd.f32 %v2100_v9, %v9916_v35  ;;  %5378 = vtanh.f32 %v2389_v1  ;;  %v2928_v33 = vsel %vm376_vm3, %v12623_v48, %v12622_v53  ;;  %v10055_v41 = vmul.f32 %v9967_v45, %v12620_v30  ;;  %v12626_v1 = vld [vmem:[#allocation346_spill] sm:$0xff]  ;;  %v12628_v49 = vld [vmem:[#allocation296_spill] sm:$0xff] }
 0x504   :  { %12621 = vst [vmem:[#allocation277_spill] sm:$0xff] %v10047_v56  ;;  %v2101_v34 = vsel %vm376_vm3, %v12625_v8, %v12624_v37  ;;  %v2706_v15 = vadd.f32 %v2698_v0, %v2612_v22  ;;  %v2610_v35 = vmul.f32 %v5495_v59, %v12583_v55  ;;  %v3621_v13 = vadd.f32 %v12626_v1, %v3271_v19  ;;  %v5375_v46 = vpop.eup %5374  ;;  %v12627_v38 = vld [vmem:[#allocation306_spill] sm:$0xff]  ;;  %v12629_v9 = vld [vmem:[#allocation100_spill] sm:$0xff]  ;;  %v4509_v0 = vpop.permute.xlu0 %4508 }
 0x505   :  { %v3339_v4 = vsel %vm145_vm2, %v12628_v49, %v12627_v38  ;;  %v3679_v18 = vsel %vm376_vm3, %v12630_v27, %v12629_v9  ;;  %v3953_v22 = vsel %vm376_vm3, %v12631_v17, %v3946_v42  ;;  %2266 = vxpose.xlu0.b32.start [1/4] (short) %v2262_v44, 128  ;;  %v3977_v53 = vrot.slane %v3967_v7, 2  ;;  %v12632_v1 = vld [vmem:[#allocation90_spill] sm:$0xff]  ;;  %v12634_v42 = vld [vmem:[#allocation324_spill] sm:$0xff]  ;;  %v12638_v27 = vld [vmem:[#allocation259_spill] sm:$0xff] }
 0x506   :  { %v2936_v48 = vadd.f32 %v2928_v33, %v2706_v15  ;;  %v3347_v55 = vadd.f32 %v3339_v4, %v3153_v12  ;;  %v10073_v37 = vadd.f32 %v3953_v22, %v3621_v13  ;;  %v10077_v19 = vsel %vm376_vm3, %v9956_v50, %v4509_v0  ;;  %v5377_v8 = vpop.eup %5376  ;;  %v12636_v44 = vld [vmem:[#allocation48_spill] sm:$0xff]  ;;  %v12640_v22 = vld [vmem:[#allocation299_spill] sm:$0xff]  ;;  %v12641_v0 = vld [vmem:[#allocation365_spill] sm:$0xff] }
 0x507   :  { %v3134_v59 = vmul.f32 %v9603_v16, %v12590_v29  ;;  %v12633_v38 = vrot.slane %v12632_v1, 1  ;;  %v12635_v9 = vrot.slane %v12634_v42, 2  ;;  %v12637_v7 = vrot.slane %v12636_v44, 2  ;;  %v12639_v17 = vld [vmem:[#allocation256_spill] sm:$0xff] }
 0x508   :  { %v3978_v33 = vrot.slane %v10055_v41, 2  ;;  %v1769_v50 = vadd.f32 %v9924_v61, %v9657_v57  ;;  %v2253_v15 = vmul.f32 0.5, %v2249_v14  ;;  %v2614_v13 = vadd.f32 %v2610_v35, %v12601_v3  ;;  %v12642_v3 = vld [vmem:[#allocation266_spill] sm:$0xff]  ;;  %v12643_v14 = vld [vmem:[#allocation321_spill] sm:$0xff] }
 0x509   :  { %v3144_v49 = vsel %vm590_vm0, %v3141_v23, %v12633_v38  ;;  %v4483_v12 = vsel %vm1428_vm1, %v12637_v7, %v12635_v9  ;;  %v3687_v4 = vadd.f32 %v3679_v18, %v3347_v55  ;;  %v5379_v16 = vpop.eup %5378  ;;  %v2386_v29 = vmax.f32 %v2108_v31, 0.0  ;;  %v4571_v38 = vpop.permute.xlu2 %4570 }
 0x50a   :  { %v2700_v23 = vsel %vm145_vm2, %v12639_v17, %v12638_v27  ;;  %v3340_v1 = vsel %vm145_vm2, %v12641_v0, %v12640_v22  ;;  %v3979_v41 = vsel %vm1428_vm1, %v3977_v53, %v3978_v33  ;;  %v2109_v42 = vadd.f32 %v2101_v34, %v1769_v50  ;;  %4498 = vrot.lane.b32.xlu1 %v4483_v12, %s5545_s14  ;;  %v4155_v7 = vpop.permute.xlu1 %4154  ;;  %v12644_v34 = vld [vmem:[#allocation46_spill] sm:$0xff] }
 0x50b   :  { %v3154_v9 = vadd.f32 %v3144_v49, %v2936_v48  ;;  %v2396_v57 = vmul.f32 0.5, %v5377_v8  ;;  %v3147_v61 = vrot.slane %v3134_v59, 1  ;;  %v2930_v31 = vsel %vm376_vm3, %v12643_v14, %v12642_v3  ;;  %v12656_v14 = vld [vmem:[#allocation265_spill] sm:$0xff] }
 0x50c   :  { %v2263_v35 = vadd.f32 0.5, %v2259_v62  ;;  %v2708_v18 = vadd.f32 %v2700_v23, %v2614_v13  ;;  %v2617_v55 = vmul.f32 %v9932_v60, %v12395_v20  ;;  %v3990_v27 = vadd.f32 %v3979_v41, %v3687_v4  ;;  %v10108_v49 = vpop.permute.xlu0 %4566  ;;  %v12646_v13 = vld [vmem:[#allocation88_spill] sm:$0xff]  ;;  %v12648_v60 = vld [vmem:[#allocation378_spill] sm:$0xff]  ;;  %v12651_v23 = vld [vmem:[#allocation291_spill] sm:$0xff] }
 0x50d   :  { %v3348_v44 = vadd.f32 %v3340_v1, %v3154_v9  ;;  %5380 = vtanh.f32 %v2253_v15  ;;  %v2390_v53 = vmul.f32 0.5, %v2386_v29  ;;  %v4170_v48 = vsel %vm145_vm2, %v4155_v7, %v12644_v34  ;;  %12645 = vst [vmem:[#allocation274_spill] sm:$0xff] %v10108_v49  ;;  %v12649_v15 = vld [vmem:[#allocation63_spill] sm:$0xff]  ;;  %v12653_v1 = vld [vmem:[#allocation50_spill] sm:$0xff]  ;;  %v12753_v49 = vld [vmem:[#allocation32_spill] sm:$0xff] }
 0x50e   :  { %2267 = vxpose.xlu0.b32.cont [2/4] (short) %v2263_v35, 128  ;;  %v2260_v8 = vmul.f32 0.5, %v5375_v46  ;;  %v2387_v59 = vmax.f32 %v2109_v42, 0.0  ;;  %v2938_v12 = vadd.f32 %v2930_v31, %v2708_v18  ;;  %v4178_v50 = vadd.f32 %v4170_v48, %v3990_v27  ;;  %v10123_v46 = vld [vmem:[%s11610_s2 + $0x8] sm:$0xfc]  ;;  %v12654_v42 = vld [vmem:[#allocation380_spill] sm:$0xff]  ;;  %v12657_v31 = vld [vmem:[#allocation262_spill] sm:$0xff] }
 0x50f   :  { %v2400_v62 = vadd.f32 0.5, %v2396_v57  ;;  %v12647_v17 = vrot.slane %v12646_v13, 1  ;;  %v3159_v4 = vmul.f32 %v9952_v39, %v12648_v60  ;;  %v12650_v29 = vrot.slane %v12649_v15, 2  ;;  %v12655_v57 = vld [vmem:[#allocation354_spill] sm:$0xff]  ;;  %v12658_v18 = vld [vmem:[#allocation335_spill] sm:$0xff]  ;;  %v12661_v48 = vld [vmem:[#allocation276_spill] sm:$0xff] }
 0x510   :  { %v12652_v22 = vrot.slane %v12651_v23, 2  ;;  %v4524_v41 = vmul.f32 %v10123_v46, %v12653_v1  ;;  %v2621_v9 = vadd.f32 %v2617_v55, %v12654_v42  ;;  %v10130_v39 = vadd.f32 %v9977_v6, %v4178_v50  ;;  %v12660_v6 = vld [vmem:[#allocation323_spill] sm:$0xff]  ;;  %v12663_v23 = vld [vmem:[#allocation312_spill] sm:$0xff] }
 0x511   :  { %v3148_v20 = vsel %vm590_vm0, %v12647_v17, %v3147_v61  ;;  %v3688_v61 = vadd.f32 %v12655_v57, %v3348_v44  ;;  %2404 = vxpose.xlu2.b32.start [1/4] (short) %v2400_v62, 128  ;;  %v2397_v3 = vmul.f32 0.5, %v5379_v16  ;;  %5382 = vtanh.f32 %v2390_v53  ;;  %v10144_v50 = vpop.permute.xlu2 %4576  ;;  %v12667_v42 = vld [vmem:[#allocation64_spill] sm:$0xff] }
 0x512   :  { %v4489_v0 = vsel %vm1428_vm1, %v12652_v22, %v12650_v29  ;;  %v2743_v35 = vsel %vm145_vm2, %v12657_v31, %v12656_v14  ;;  %v12659_v7 = vrot.slane %v12658_v18, 2  ;;  %v3971_v34 = vmul.f32 %v12620_v30, %v9666_v21  ;;  %12662 = vst [vmem:[#allocation272_spill] sm:$0xff] %v10144_v50  ;;  %v4161_v15 = vpop.permute.xlu1 %4160  ;;  %v12664_v30 = vld [vmem:[#allocation302_spill] sm:$0xff]  ;;  %v12668_v14 = vld [vmem:[#allocation267_spill] sm:$0xff]  ;;  %v12670_v18 = vld [vmem:[#allocation56_spill] sm:$0xff] }
 0x513   :  { %v3156_v55 = vadd.f32 %v3148_v20, %v2938_v12  ;;  %4504 = vrot.lane.b32.xlu1 %v4489_v0, %s5545_s14  ;;  %v5381_v44 = vpop.eup %5380  ;;  %v2973_v16 = vsel %vm376_vm3, %v12661_v48, %v12660_v6  ;;  %v3169_v53 = vrot.slane %v3159_v4, 1  ;;  %v2264_v62 = vadd.f32 0.5, %v2260_v8  ;;  %v12665_v20 = vld [vmem:[#allocation303_spill] sm:$0xff]  ;;  %v12666_v22 = vld [vmem:[#allocation358_spill] sm:$0xff] }
 0x514   :  { %v3981_v27 = vsel %vm1428_vm1, %v3978_v33, %v12659_v7  ;;  %v4544_v13 = vrot.slane %v4524_v41, 2  ;;  %v2391_v17 = vmul.f32 0.5, %v2387_v59  ;;  %v2751_v60 = vadd.f32 %v2743_v35, %v2621_v9  ;;  %v4573_v57 = vpop.permute.xlu0 %4572 }
 0x515   :  { %v3991_v33 = vadd.f32 %v3981_v27, %v3688_v61  ;;  %v2401_v29 = vadd.f32 0.5, %v2397_v3  ;;  %v3342_v12 = vsel %vm145_vm2, %v12664_v30, %v12663_v23  ;;  %v3682_v0 = vsel %vm376_vm3, %v12666_v22, %v12665_v20 }
 0x516   :  { %v4171_v4 = vsel %vm145_vm2, %v12667_v42, %v4161_v15  ;;  %2268 = vxpose.xlu0.b32.cont [3/4] (short) %v2264_v62, 128  ;;  %v3984_v8 = vrot.slane %v3971_v34, 2  ;;  %v2981_v41 = vadd.f32 %v2973_v16, %v2751_v60  ;;  %v3350_v59 = vadd.f32 %v3342_v12, %v3156_v55  ;;  %v12672_v34 = vld [vmem:[#allocation305_spill] sm:$0xff]  ;;  %v12673_v55 = vld [vmem:[#allocation372_spill] sm:$0xff]  ;;  %v12674_v62 = vld [vmem:[#allocation339_spill] sm:$0xff] }
 0x517   :  { %v10154_v9 = vadd.f32 %v4171_v4, %v3991_v33  ;;  %v10157_v61 = vsel %vm376_vm3, %v4571_v38, %v4573_v57  ;;  %v5383_v3 = vpop.eup %5382  ;;  %v12669_v31 = vrot.slane %v12668_v14, 1  ;;  %v12671_v7 = vrot.slane %v12670_v18, 2  ;;  %v12676_v15 = vld [vmem:[#allocation361_spill] sm:$0xff] }
 0x518   :  { %v2261_v6 = vmul.f32 0.5, %v5381_v44  ;;  %v3690_v48 = vadd.f32 %v3682_v0, %v3350_v59  ;;  %5384 = vtanh.f32 %v2391_v17  ;;  %v3407_v16 = vsel %vm145_vm2, %v12673_v55, %v12672_v34  ;;  %v12677_v12 = vld [vmem:[#allocation61_spill] sm:$0xff] }
 0x519   :  { %v3171_v35 = vsel %vm590_vm0, %v3169_v53, %v12669_v31  ;;  %v4546_v27 = vsel %vm1428_vm1, %v4544_v13, %v12671_v7  ;;  %2405 = vxpose.xlu2.b32.cont [2/4] (short) %v2401_v29, 128  ;;  %v12675_v38 = vrot.slane %v12674_v62, 2  ;;  %v3996_v33 = vmul.f32 %v12676_v15, %v9513_v28  ;;  %v4635_v17 = vpop.permute.xlu2 %4634  ;;  %v12678_v28 = vld [vmem:[#allocation336_spill] sm:$0xff]  ;;  %v12682_v31 = vld [vmem:[#allocation363_spill] sm:$0xff] }
 0x51a   :  { %v3182_v53 = vadd.f32 %v3171_v35, %v2981_v41  ;;  %v2398_v23 = vmul.f32 0.5, %v5383_v3  ;;  %v2265_v13 = vadd.f32 0.5, %v2261_v6  ;;  %v4167_v30 = vpop.permute.xlu1 %4166  ;;  %v12680_v41 = vld [vmem:[#allocation66_spill] sm:$0xff]  ;;  %v4532_v14 = vmul.f32 %v9321_v43, %v12653_v1  ;;  %v12684_v7 = vld [vmem:[#allocation92_spill] sm:$0xff] }
 0x51b   :  { %v3985_v60 = vsel %vm1428_vm1, %v12675_v38, %v3984_v8  ;;  %4562 = vrot.lane.b32.xlu1 %v4546_v27, %s5545_s14  ;;  %v4173_v20 = vsel %vm145_vm2, %v4167_v30, %v12677_v12  ;;  %v4006_v0 = vrot.slane %v3996_v33, 2  ;;  %v12679_v8 = vrot.slane %v12678_v28, 2 }
 0x51c   :  { %v3415_v44 = vadd.f32 %v3407_v16, %v3182_v53  ;;  %v3993_v29 = vadd.f32 %v3985_v60, %v3690_v48  ;;  %v10176_v22 = vpop.permute.xlu0 %4630  ;;  %v2402_v4 = vadd.f32 0.5, %v2398_v23  ;;  %v12681_v59 = vrot.slane %v12680_v41, 2  ;;  %v12695_v41 = vld [vmem:[#allocation333_spill] sm:$0xff] }
 0x51d   :  { %v12685_v27 = vrot.slane %v12684_v7, 2  ;;  %v4558_v34 = vrot.slane %v4532_v14, 2  ;;  %v3999_v55 = vmul.f32 %v9698_v32, %v12676_v15  ;;  %v2628_v43 = vmul.f32 %v9860_v58, %v12432_v25  ;;  %v5497_v25 = vld [vmem:[%s11610_s2 + $0x10] sm:$0xfc]  ;;  %v12696_v7 = vld [vmem:[#allocation297_spill] sm:$0xff] }
 0x51e   :  { %2269 = vxpose.xlu0.b32.end [4/4] (short) %v2265_v13, 128  ;;  %v4181_v42 = vadd.f32 %v4173_v20, %v3993_v29  ;;  %v5385_v57 = vpop.eup %5384  ;;  %v4553_v3 = vsel %vm1428_vm1, %v12681_v59, %v12679_v8  ;;  %v3755_v35 = vadd.f32 %v12682_v31, %v3415_v44  ;;  %v12687_v13 = vld [vmem:[#allocation85_spill] sm:$0xff]  ;;  %v12689_v58 = vld [vmem:[#allocation74_spill] sm:$0xff]  ;;  %v4000_v28 = vmul.f32 %v12676_v15, %v9666_v21 }
 0x51f   :  { %v4008_v6 = vsel %vm1428_vm1, %v4006_v0, %v12685_v27  ;;  %v2399_v48 = vmul.f32 0.5, %v5385_v57  ;;  %v12688_v32 = vrot.slane %v12687_v13, 2  ;;  %v4011_v30 = vrot.slane %v3999_v55, 2  ;;  %v12691_v20 = vld [vmem:[#allocation289_spill] sm:$0xff]  ;;  %v12694_v8 = vld [vmem:[#allocation278_spill] sm:$0xff]  ;;  %v5499_v13 = vld [vmem:[%s11610_s2] sm:$0xff] }
 0x520   :  { %v10187_v18 = vadd.f32 %v10077_v19, %v4181_v42  ;;  %v4019_v16 = vadd.f32 %v4008_v6, %v3755_v35  ;;  %v12686_v19 = vld [vmem:[#allocation87_spill] sm:$0xff]  ;;  %v4593_v29 = vmul.f32 %v5497_v25, %v12689_v58  ;;  %v2632_v12 = vadd.f32 %v2628_v43, %v12439_v24  ;;  %v12692_v42 = vld [vmem:[#allocation105_spill] sm:$0xff]  ;;  %v12698_v43 = vld [vmem:[#allocation22_spill] sm:$0xff] }
 0x521   :  { %2406 = vxpose.xlu2.b32.cont [3/4] (short) %v2402_v4, 128  ;;  %v2403_v53 = vadd.f32 0.5, %v2399_v48  ;;  %v10204_v23 = vpop.permute.xlu2 %4640  ;;  %v4559_v44 = vsel %vm1428_vm1, %v12688_v32, %v4558_v34  ;;  %v12693_v4 = vrot.slane %v12692_v42, 2  ;;  %v3020_v59 = vsel %vm376_vm3, %v12695_v41, %v12694_v8  ;;  %v5498_v34 = vld [vmem:[%s11610_s2 + $0x18] sm:$0xff]  ;;  %v12705_v41 = vld [vmem:[#allocation9_spill] sm:$0xff] }
 0x522   :  { %12683 = vst [vmem:[#allocation327_spill] sm:$0xff] %v10187_v18  ;;  %v4225_v1 = vpop.permute.xlu1 %4224  ;;  %v64_v24 = vstv %s5145_s0  ;;  %v4013_v48 = vrot.slane %v4000_v28, 2  ;;  %v12704_v28 = vld [vmem:[#allocation320_spill] sm:$0xff] }
 0x523   :  { %4568 = vrot.lane.b32.xlu1 %v4553_v3, %s5545_s14  ;;  %v4238_v62 = vsel %vm145_vm2, %v12686_v19, %v4225_v1  ;;  %v4012_v57 = vsel %vm1428_vm1, %v12693_v4, %v4011_v30  ;;  %v4615_v3 = vrot.slane %v4593_v29, 2  ;;  %v66_v55 = vmul.f32 %v5498_v34, %v64_v24 }
 0x524   :  { %v4637_v38 = vpop.permute.xlu0 %4636  ;;  %v10199_v60 = vadd.f32 %v4238_v62, %v4019_v16  ;;  %v4021_v35 = vadd.f32 %v4012_v57, %v9534_v63  ;;  %v12699_v1 = vrot.slane %v12698_v43, 1  ;;  %v12700_v16 = vrot.slane %v9451_v47, 1  ;;  %v12701_v63 = vld [vmem:[#allocation377_spill] sm:$0xff] }
 0x525   :  { %v10202_v33 = vsel %vm376_vm3, %v4635_v17, %v4637_v38  ;;  %v12690_v17 = vld [vmem:[#allocation292_spill] sm:$0xff]  ;;  %v12702_v62 = vrot.slane %v12701_v63, 2  ;;  %v65_v32 = vmul.f32 %v5499_v13, %v64_v24  ;;  %v84_v57 = vstv %s5147_s26  ;;  %v12715_v63 = vld [vmem:[#allocation341_spill] sm:$0xff] }
 0x526   :  { %v2790_v0 = vsel %vm145_vm2, %v12691_v20, %v12690_v17  ;;  %v3202_v19 = vsel %vm590_vm0, %v12700_v16, %v12699_v1  ;;  %v85_v1 = vmul.f32 %v5499_v13, %v84_v57  ;;  %v12713_v16 = vld [vmem:[#allocation95_spill] sm:$0xff] }
 0x527   :  { %v2798_v14 = vadd.f32 %v2790_v0, %v2632_v12  ;;  %v4617_v38 = vsel %vm1428_vm1, %v4615_v3, %v12702_v62  ;;  %v4014_v12 = vsel %vm1428_vm1, %v4011_v30, %v4013_v48  ;;  %v10259_v0 = vmul.f32 %v9837_v5, %v9516_v2  ;;  %v5501_v3 = vld [vmem:[%s11610_s2 + $0x48] sm:$0xff]  ;;  %v12707_v2 = vld [vmem:[#allocation375_spill] sm:$0xff]  ;;  %v12710_v48 = vld [vmem:[#allocation8_spill] sm:$0xff] }
 0x528   :  { %v4022_v8 = vadd.f32 %v4014_v12, %v12704_v28  ;;  %v3816_v5 = vsel %vm376_vm3, %v12707_v2, %v9659_v36  ;;  %v12716_v36 = vrot.slane %v12715_v63, 2  ;;  %v12717_v12 = vld [vmem:[#allocation16_spill] sm:$0xff] }
 0x529   :  { %2407 = vxpose.xlu2.b32.end [4/4] (short) %v2403_v53, 128  ;;  %v3028_v21 = vadd.f32 %v3020_v59, %v2798_v14  ;;  %v42_v53 = vstv %s5141_s24  ;;  %v4699_v29 = vpop.permute.xlu2 %4698  ;;  %v12706_v59 = vld [vmem:[#allocation13_spill] sm:$0xff]  ;;  %v68_v14 = vmul.f32 %v5501_v3, %v64_v24 }
 0x52a   :  { %v4231_v31 = vpop.permute.xlu1 %4230  ;;  %v70_v20 = vadd.f32 %v66_v55, %v42_v53  ;;  %v69_v42 = vadd.f32 %v65_v32, %v42_v53  ;;  %v193_v30 = vsel %vm145_vm2, %v12706_v59, %v12705_v41  ;;  %v5502_v32 = vld [vmem:[%s11610_s2 + $0x70] sm:$0x3]  ;;  %v12719_v41 = vrot.slane %v9529_v51, 2  ;;  %v12721_v51 = vld [vmem:[#allocation21_spill] sm:$0xff] }
 0x52b   :  { %4574 = vrot.lane.b32.xlu1 %v4559_v44, %s5545_s14  ;;  %v4240_v27 = vsel %vm145_vm2, %v4231_v31, %v12696_v7  ;;  %v5500_v44 = vld [vmem:[%s11610_s2 + $0x30] sm:$0xff]  ;;  %v3212_v17 = vadd.f32 %v3202_v19, %v3028_v21  ;;  %v12708_v31 = vld [vmem:[#allocation257_spill] sm:$0xff]  ;;  %v12714_v19 = vrot.slane %v12713_v16, 2  ;;  %v48_v16 = vstv %s10261_s8 }
 0x52c   :  { %v10229_v6 = vpop.permute.xlu0 %4642  ;;  %v4248_v15 = vadd.f32 %v4240_v27, %v4021_v35  ;;  %v67_v25 = vmul.f32 %v5500_v44, %v64_v24  ;;  %v12709_v27 = vld [vmem:[#allocation15_spill] sm:$0xff]  ;;  %v10304_v2 = vadd.f32 %v193_v30, %v70_v20  ;;  %v88_v20 = vmul.f32 %v5501_v3, %v84_v57 }
 0x52d   :  { %12697 = vst [vmem:[#allocation360_spill] sm:$0xff] %v10229_v6  ;;  %v192_v21 = vsel %vm145_vm2, %v12710_v48, %v12709_v27  ;;  %v4623_v62 = vsel %vm1428_vm1, %v12716_v36, %v12714_v19  ;;  %v86_v27 = vmul.f32 %v5498_v34, %v84_v57  ;;  %v12723_v19 = vld [vmem:[#allocation102_spill] sm:$0xff] }
 0x52e   :  { %v10251_v47 = vadd.f32 %v10157_v61, %v4248_v15  ;;  %v71_v4 = vadd.f32 %v67_v25, %v42_v53  ;;  %v12711_v15 = vld [vmem:[#allocation325_spill] sm:$0xff]  ;;  %v4601_v25 = vmul.f32 %v5502_v32, %v12689_v58 }
 0x52f   :  { %v3484_v55 = vadd.f32 %v12711_v15, %v3212_v17  ;;  %v12718_v17 = vld [vmem:[#allocation18_spill] sm:$0xff] }
 0x530   :  { %12703 = vst [vmem:[#allocation355_spill] sm:$0xff] %v10251_v47  ;;  %v4628_v48 = vrot.slane %v4601_v25, 2  ;;  %v12722_v15 = vld [vmem:[#allocation10_spill] sm:$0xff]  ;;  %v12748_v47 = vld [vmem:[#allocation253_spill] sm:$0xff] }
 0x531   :  { %v3824_v28 = vadd.f32 %v3816_v5, %v3484_v55  ;;  %v10311_v5 = vpop.permute.xlu2 %4704  ;;  %v195_v55 = vsel %vm145_vm2, %v12722_v15, %v12721_v51  ;;  %v10353_v51 = vld [vmem:[%s11610_s2 + $0x8] sm:$0xfc]  ;;  %v12730_v15 = vld [vmem:[#allocation374_spill] sm:$0xff] }
 0x532   :  { %v4237_v61 = vpop.permute.xlu1 %4236  ;;  %12720 = vst [vmem:[#allocation383_spill] sm:$0xff] %v10311_v5 }
 0x533   :  { %4632 = vrot.lane.b32.xlu1 %v4617_v38, %s5545_s14  ;;  %v4241_v35 = vsel %vm145_vm2, %v12708_v31, %v4237_v61  ;;  %v4038_v38 = vrot.slane %v10259_v0, 2  ;;  %v46_v61 = vstv %s10248_s6  ;;  %v10306_v0 = vadd.f32 %v192_v21, %v69_v42 }
 0x534   :  { %v4701_v7 = vpop.permute.xlu0 %4700  ;;  %v10281_v43 = vadd.f32 %v4241_v35, %v4022_v8  ;;  %v94_v8 = vstv %s10253_s7  ;;  %v72_v31 = vadd.f32 %v68_v14, %v42_v53  ;;  %v87_v35 = vmul.f32 %v5500_v44, %v84_v57 }
 0x535   :  { %v10284_v24 = vsel %vm376_vm3, %v4699_v29, %v4701_v7  ;;  %v194_v29 = vsel %vm145_vm2, %v12718_v17, %v12717_v12  ;;  %v4039_v59 = vsel %vm1428_vm1, %v12719_v41, %v4038_v38  ;;  %v89_v7 = vadd.f32 %v85_v1, %v46_v61  ;;  %v12725_v12 = vld [vmem:[#allocation28_spill] sm:$0xff]  ;;  %v12726_v17 = vld [vmem:[#allocation30_spill] sm:$0xff] }
 0x536   :  { %12712 = vst [vmem:[#allocation386_spill] sm:$0xff] %v10281_v43  ;;  %v10309_v58 = vadd.f32 %v194_v29, %v71_v4  ;;  %v96_v30 = vmul.f32 %v5498_v34, %v94_v8  ;;  %v4049_v21 = vadd.f32 %v4039_v59, %v3824_v28  ;;  %v95_v53 = vmul.f32 %v5499_v13, %v94_v8  ;;  %v12727_v29 = vld [vmem:[#allocation381_spill] sm:$0xff]  ;;  %v12744_v43 = vld [vmem:[#allocation39_spill] sm:$0xff] }
 0x537   :  { %v609_v14 = vstv %s10270_s11  ;;  %v91_v1 = vadd.f32 %v87_v35, %v46_v61  ;;  %v97_v36 = vmul.f32 %v5500_v44, %v94_v8  ;;  %v10322_v25 = vadd.f32 %v195_v55, %v72_v31  ;;  %v10333_v35 = vld [vmem:[%s11610_s2] sm:$0xfe]  ;;  %v10344_v31 = vld [vmem:[%s11610_s2 + $0x18] sm:$0xff] }
 0x538   :  { %v284_v34 = vsel %vm145_vm2, %v12726_v17, %v12725_v12  ;;  %v90_v57 = vadd.f32 %v86_v27, %v46_v61  ;;  %v12728_v28 = vrot.slane %v12727_v29, 2  ;;  %v92_v41 = vadd.f32 %v88_v20, %v46_v61  ;;  %v12731_v20 = vld [vmem:[#allocation23_spill] sm:$0xff]  ;;  %v12737_v12 = vld [vmem:[#allocation36_spill] sm:$0xff]  ;;  %v12739_v29 = vld [vmem:[#allocation37_spill] sm:$0xff] }
 0x539   :  { %v100_v59 = vadd.f32 %v96_v30, %v48_v16  ;;  %v610_v44 = vmul.f32 %v10333_v35, %v609_v14  ;;  %v611_v61 = vmul.f32 %v10344_v31, %v609_v14  ;;  %v12729_v27 = vrot.slane %v9702_v26, 2  ;;  %v12732_v30 = vld [vmem:[#allocation31_spill] sm:$0xff]  ;;  %v12733_v26 = vld [vmem:[#allocation33_spill] sm:$0xff] }
 0x53a   :  { %v4295_v42 = vpop.permute.xlu1 %4294  ;;  %v4629_v13 = vsel %vm1428_vm1, %v12728_v28, %v4628_v48  ;;  %v10357_v55 = vadd.f32 %v284_v34, %v89_v7  ;;  %v12738_v34 = vld [vmem:[#allocation29_spill] sm:$0xff] }
 0x53b   :  { %4638 = vrot.lane.b32.xlu1 %v4623_v62, %s5545_s14  ;;  %v4307_v4 = vsel %vm145_vm2, %v4295_v42, %v12723_v19  ;;  %v98_v62 = vmul.f32 %v5501_v3, %v94_v8  ;;  %v99_v8 = vadd.f32 %v95_v53, %v48_v16  ;;  %v4041_v48 = vsel %vm1428_vm1, %v4038_v38, %v12729_v27  ;;  %v12734_v38 = vld [vmem:[#allocation20_spill] sm:$0xff] }
 0x53c   :  { %v10320_v63 = vpop.permute.xlu0 %4706  ;;  %v4315_v32 = vadd.f32 %v4307_v4, %v4049_v21  ;;  %v286_v42 = vsel %vm145_vm2, %v12732_v30, %v12731_v20  ;;  %v101_v21 = vadd.f32 %v97_v36, %v48_v16  ;;  %v285_v19 = vsel %vm145_vm2, %v12734_v38, %v12733_v26  ;;  %v10369_v4 = vld [vmem:[%s11610_s2 + $0x30] sm:$0xff]  ;;  %v12740_v20 = vld [vmem:[#allocation35_spill] sm:$0xff]  ;;  %v12741_v26 = vld [vmem:[#allocation52_spill] sm:$0xff] }
 0x53d   :  { %12724 = vst [vmem:[#allocation314_spill] sm:$0xff] %v10320_v63  ;;  %v102_v53 = vadd.f32 %v98_v62, %v48_v16  ;;  %v612_v7 = vmul.f32 %v10369_v4, %v609_v14  ;;  %v10382_v36 = vmul.f32 %v9967_v45, %v12730_v15  ;;  %v12736_v62 = vld [vmem:[#allocation34_spill] sm:$0xff]  ;;  %v331_v28 = vsel %vm145_vm2, %v12739_v29, %v12738_v34  ;;  %v4711_v45 = vpop.permute.xlu2 %4710  ;;  %v12743_v63 = vld [vmem:[#allocation108_spill] sm:$0xff] }
 0x53e   :  { %v10339_v3 = vadd.f32 %v10202_v33, %v4315_v32  ;;  %v4054_v33 = vmul.f32 %v10353_v51, %v12730_v15  ;;  %v10375_v32 = vld [vmem:[%s11610_s2 + $0x48] sm:$0xff]  ;;  %v287_v17 = vsel %vm145_vm2, %v12737_v12, %v12736_v62  ;;  %v4050_v30 = vadd.f32 %v4041_v48, %v12740_v20  ;;  %v12742_v38 = vld [vmem:[#allocation54_spill] sm:$0xff]  ;;  %v12746_v29 = vld [vmem:[#allocation40_spill] sm:$0xff] }
 0x53f   :  { %v10378_v16 = vmul.f32 %v10375_v32, %v609_v14  ;;  %12735 = vst [vmem:[#allocation130_spill] sm:$0xff] %v10382_v36  ;;  %v423_v52 = vsel %vm376_vm3, %v12742_v38, %v12741_v26  ;;  %v621_v56 = vrot.slane %v611_v61, 1  ;;  %v12745_v34 = vld [vmem:[#allocation26_spill] sm:$0xff]  ;;  %v623_v26 = vrot.slane %v612_v7, 1  ;;  %v5508_v7 = vld [vmem:[%s11610_s2 + $0x60] sm:$0x1] }
 0x540   :  { %v4064_v5 = vrot.slane %v4054_v33, 2  ;;  %v12747_v48 = vld [vmem:[#allocation42_spill] sm:$0xff] }
 0x541   :  { %v332_v20 = vsel %vm145_vm2, %v12747_v48, %v12746_v29  ;;  %v11801_v38 = vrot.slane %v10378_v16, 1 }
 0x542   :  { %v4301_v27 = vpop.permute.xlu1 %4300 }
 0x543   :  { %4644 = vrot.lane.b32.xlu1 %v4629_v13, %s5545_s14  ;;  %v620_v13 = vrot.slane %v610_v44, 1  ;;  %v4308_v62 = vsel %vm145_vm2, %v12743_v63, %v4301_v27  ;;  %v330_v44 = vsel %vm145_vm2, %v12745_v34, %v12744_v43  ;;  %v12749_v63 = vrot.slane %v12748_v47, 2  ;;  %v12750_v27 = vld [vmem:[#allocation106_spill] sm:$0xff]  ;;  %v12752_v34 = vld [vmem:[#allocation45_spill] sm:$0xff] }
 0x544   :  { %v4713_v12 = vpop.permute.xlu0 %4712  ;;  %v10404_v50 = vadd.f32 %v4308_v62, %v4050_v30  ;;  %v12751_v33 = vrot.slane %v12750_v27, 2  ;;  %v11800_v43 = vrot.slane %v10382_v36, 2  ;;  %v333_v29 = vsel %vm145_vm2, %v12753_v49, %v12752_v34  ;;  %v12772_v36 = vld [vmem:[#allocation73_spill] sm:$0xff] }
 0x545   :  { %v10407_v61 = vsel %vm376_vm3, %v4711_v45, %v4713_v12  ;;  %v431_v30 = vadd.f32 %v423_v52, %v10306_v0  ;;  %v10423_v45 = vmul.f32 %v5508_v7, %v609_v14  ;;  %v667_v62 = vstv %s10336_s17 }
 0x546   :  { %v4687_v6 = vsel %vm1428_vm1, %v12751_v33, %v12749_v63  ;;  %v10426_v47 = vadd.f32 %v286_v42, %v91_v1  ;;  %v293_v12 = vadd.f32 %v285_v19, %v90_v57  ;;  %v622_v48 = vsel %vm590_vm0, %v620_v13, %v621_v56  ;;  %v12757_v13 = vld [vmem:[#allocation344_spill] sm:$0xff] }
 0x547   :  { %v4066_v63 = vsel %vm1428_vm1, %v4064_v5, %v11800_v43  ;;  %v10432_v27 = vadd.f32 %v287_v17, %v92_v41  ;;  %v10434_v52 = vadd.f32 %v331_v28, %v100_v59  ;;  %v10436_v49 = vadd.f32 %v330_v44, %v99_v8  ;;  %v12754_v41 = vld [vmem:[#allocation57_spill] sm:$0xff]  ;;  %v12755_v59 = vld [vmem:[#allocation44_spill] sm:$0xff] }
 0x548   :  { %v10438_v0 = vadd.f32 %v332_v20, %v101_v21  ;;  %v10441_v14 = vadd.f32 %v333_v29, %v102_v53  ;;  %v624_v1 = vsel %vm590_vm0, %v621_v56, %v623_v26  ;;  %v10447_v57 = vsel %vm590_vm0, %v623_v26, %v11801_v38  ;;  %v12756_v53 = vld [vmem:[#allocation309_spill] sm:$0xff]  ;;  %v12758_v20 = vld [vmem:[#allocation47_spill] sm:$0xff] }
 0x549   :  { %v669_v5 = vmul.f32 %v10344_v31, %v667_v62  ;;  %v424_v8 = vsel %vm376_vm3, %v12755_v59, %v12754_v41  ;;  %v10453_v42 = vadd.f32 %v622_v48, %v431_v30  ;;  %v4077_v19 = vadd.f32 %v4066_v63, %v12756_v53  ;;  %v12759_v26 = vld [vmem:[#allocation55_spill] sm:$0xff]  ;;  %v12762_v53 = vld [vmem:[#allocation337_spill] sm:$0xff] }
 0x54a   :  { %v670_v56 = vmul.f32 %v10369_v4, %v667_v62  ;;  %v668_v17 = vmul.f32 %v10333_v35, %v667_v62  ;;  %v696_v28 = vstv %s10394_s1  ;;  %v425_v33 = vsel %vm376_vm3, %v12759_v26, %v12758_v20  ;;  %v12760_v63 = vld [vmem:[#allocation343_spill] sm:$0xff] }
 0x54b   :  { %4702 = vrot.lane.b32.xlu1 %v4687_v6, %s5545_s14  ;;  %v4359_v6 = vpop.permute.xlu1 %4358  ;;  %v671_v34 = vmul.f32 %v10375_v32, %v667_v62  ;;  %v672_v29 = vmul.f32 %v5508_v7, %v667_v62  ;;  %v432_v48 = vadd.f32 %v424_v8, %v10304_v2  ;;  %v679_v41 = vrot.slane %v669_v5, 1  ;;  %v12766_v5 = vld [vmem:[#allocation59_spill] sm:$0xff] }
 0x54c   :  { %v4374_v44 = vsel %vm145_vm2, %v4359_v6, %v12757_v13  ;;  %v12761_v59 = vrot.slane %v12760_v63, 2  ;;  %v12763_v43 = vrot.slane %v12762_v53, 2  ;;  %v12764_v6 = vld [vmem:[#allocation273_spill] sm:$0xff]  ;;  %v697_v20 = vmul.f32 %v10333_v35, %v696_v28  ;;  %v12767_v8 = vld [vmem:[#allocation67_spill] sm:$0xff]  ;;  %v12768_v53 = vld [vmem:[#allocation70_spill] sm:$0xff] }
 0x54d   :  { %v4382_v30 = vadd.f32 %v4374_v44, %v4077_v19  ;;  %v4728_v13 = vmul.f32 %v10123_v46, %v12764_v6  ;;  %v698_v26 = vmul.f32 %v10344_v31, %v696_v28  ;;  %v699_v62 = vmul.f32 %v10369_v4, %v696_v28 }
 0x54e   :  { %v4693_v38 = vsel %vm1428_vm1, %v12763_v43, %v12761_v59  ;;  %v515_v19 = vsel %vm376_vm3, %v12767_v8, %v12766_v5  ;;  %v681_v44 = vrot.slane %v670_v56, 1  ;;  %v678_v63 = vrot.slane %v668_v17, 1  ;;  %v10488_v43 = vld [vmem:[%s11610_s2 + $0x68] sm:$0x3]  ;;  %v12769_v56 = vld [vmem:[#allocation72_spill] sm:$0xff] }
 0x54f   :  { %v10480_v2 = vadd.f32 %v10284_v24, %v4382_v30  ;;  %v4058_v46 = vmul.f32 %v10488_v43, %v12730_v15  ;;  %v10493_v35 = vadd.f32 %v425_v33, %v10309_v58  ;;  %v683_v59 = vrot.slane %v671_v34, 1 }
 0x550   :  { %v685_v24 = vrot.slane %v672_v29, 1  ;;  %v700_v30 = vmul.f32 %v10375_v32, %v696_v28  ;;  %v516_v17 = vsel %vm376_vm3, %v12769_v56, %v12768_v53  ;;  %v10500_v5 = vadd.f32 %v624_v1, %v432_v48  ;;  %v12771_v29 = vld [vmem:[#allocation65_spill] sm:$0xff]  ;;  %v12775_v56 = vld [vmem:[#allocation126_spill] sm:$0xff] }
 0x551   :  { %12765 = vst [vmem:[#allocation132_spill] sm:$0xff] %v10480_v2  ;;  %v701_v8 = vmul.f32 %v5508_v7, %v696_v28  ;;  %v4748_v21 = vrot.slane %v4728_v13, 2  ;;  %v523_v15 = vadd.f32 %v515_v19, %v10357_v55  ;;  %v707_v2 = vrot.slane %v697_v20, 1  ;;  %v12773_v13 = vld [vmem:[#allocation75_spill] sm:$0xff]  ;;  %v12774_v20 = vld [vmem:[#allocation62_spill] sm:$0xff] }
 0x552   :  { %v708_v58 = vrot.slane %v698_v26, 1  ;;  %v710_v33 = vrot.slane %v699_v62, 1  ;;  %v682_v18 = vsel %vm590_vm0, %v679_v41, %v681_v44  ;;  %v680_v53 = vsel %vm590_vm0, %v678_v63, %v679_v41 }
 0x553   :  { %4708 = vrot.lane.b32.xlu1 %v4693_v38, %s5545_s14  ;;  %v10503_v34 = vpop.permute.xlu1 %4364  ;;  %v518_v38 = vsel %vm376_vm3, %v12772_v36, %v12771_v29  ;;  %v4071_v1 = vrot.slane %v4058_v46, 2  ;;  %v524_v48 = vadd.f32 %v516_v17, %v293_v12  ;;  %v684_v7 = vsel %vm590_vm0, %v681_v44, %v683_v59  ;;  %v12777_v46 = vld [vmem:[#allocation76_spill] sm:$0xff]  ;;  %v12780_v17 = vld [vmem:[#allocation79_spill] sm:$0xff] }
 0x554   :  { %12770 = vst [vmem:[#allocation382_spill] sm:$0xff] %v10503_v34  ;;  %v686_v28 = vsel %vm590_vm0, %v683_v59, %v685_v24  ;;  %v712_v55 = vrot.slane %v700_v30, 1  ;;  %v517_v26 = vsel %vm376_vm3, %v12774_v20, %v12773_v13  ;;  %v714_v62 = vrot.slane %v701_v8, 1  ;;  %v12778_v59 = vld [vmem:[#allocation78_spill] sm:$0xff]  ;;  %v12779_v30 = vld [vmem:[#allocation71_spill] sm:$0xff]  ;;  %v12781_v13 = vld [vmem:[#allocation369_spill] sm:$0xff] }
 0x555   :  { %v10516_v19 = vstv %s10467_s27  ;;  %v12776_v36 = vrot.slane %v12775_v56, 2  ;;  %v526_v41 = vadd.f32 %v518_v38, %v10432_v27  ;;  %v691_v63 = vadd.f32 %v680_v53, %v523_v15  ;;  %v12783_v27 = vld [vmem:[#allocation279_spill] sm:$0xff]  ;;  %v12785_v38 = vld [vmem:[#allocation68_spill] sm:$0xff] }
 0x556   :  { %v709_v12 = vsel %vm590_vm0, %v707_v2, %v708_v58  ;;  %v711_v44 = vsel %vm590_vm0, %v708_v58, %v710_v33  ;;  %v561_v24 = vsel %vm376_vm3, %v12778_v59, %v12777_v46  ;;  %v563_v8 = vsel %vm376_vm3, %v12780_v17, %v12779_v30  ;;  %v12784_v58 = vld [vmem:[#allocation81_spill] sm:$0xff]  ;;  %v12789_v34 = vld [vmem:[#allocation111_spill] sm:$0xff] }
 0x557   :  { %v4750_v29 = vsel %vm1428_vm1, %v4748_v21, %v12776_v36  ;;  %v12782_v20 = vrot.slane %v12781_v13, 2  ;;  %v4083_v15 = vmul.f32 %v10353_v51, %v12783_v27  ;;  %v525_v2 = vadd.f32 %v517_v26, %v10426_v47  ;;  %v10545_v36 = vld [vmem:[%s11610_s2] sm:$0xfc] }
 0x558   :  { %v562_v53 = vsel %vm376_vm3, %v12785_v38, %v12784_v58  ;;  %v713_v56 = vsel %vm590_vm0, %v710_v33, %v712_v55  ;;  %v1506_v46 = vmul.f32 %v10545_v36, %v10516_v19  ;;  %v12787_v51 = vld [vmem:[#allocation84_spill] sm:$0xff]  ;;  %v692_v26 = vadd.f32 %v682_v18, %v524_v48  ;;  %v12788_v58 = vld [vmem:[#allocation269_spill] sm:$0xff] }
 0x559   :  { %v4072_v21 = vsel %vm1428_vm1, %v12782_v20, %v4071_v1  ;;  %v12786_v1 = vld [vmem:[#allocation82_spill] sm:$0xff]  ;;  %v715_v59 = vsel %vm590_vm0, %v712_v55, %v714_v62  ;;  %v10556_v33 = vmul.f32 %v10344_v31, %v10516_v19  ;;  %v569_v30 = vadd.f32 %v561_v24, %v10436_v49  ;;  %v12791_v48 = vld [vmem:[#allocation348_spill] sm:$0xff] }
 0x55a   :  { %v564_v47 = vsel %vm376_vm3, %v12787_v51, %v12786_v1  ;;  %v571_v17 = vadd.f32 %v563_v8, %v10438_v0  ;;  %v10560_v13 = vadd.f32 %v686_v28, %v526_v41  ;;  %v570_v38 = vadd.f32 %v562_v53, %v10434_v52  ;;  %v12790_v1 = vld [vmem:[#allocation98_spill] sm:$0xff]  ;;  %v12792_v41 = vld [vmem:[#allocation148_spill] sm:$0xff] }
 0x55b   :  { %4766 = vrot.lane.b32.xlu1 %v4750_v29, %s5545_s14  ;;  %v4371_v20 = vpop.permute.xlu1 %4370  ;;  %v4080_v29 = vadd.f32 %v4072_v21, %v12788_v58  ;;  %v994_v18 = vsel %vm145_vm2, %v12790_v1, %v12789_v34  ;;  %v4093_v62 = vrot.slane %v4083_v15, 2  ;;  %v572_v49 = vadd.f32 %v564_v47, %v10441_v14  ;;  %v12793_v8 = vld [vmem:[#allocation150_spill] sm:$0xff]  ;;  %v12794_v53 = vld [vmem:[#allocation116_spill] sm:$0xff]  ;;  %v5511_v15 = vld [vmem:[%s11610_s2 + $0x68] sm:$0x3] }
 0x55c   :  { %v4377_v55 = vsel %vm145_vm2, %v4371_v20, %v12791_v48  ;;  %v693_v24 = vadd.f32 %v684_v7, %v525_v2  ;;  %v1516_v0 = vrot.slane %v1506_v46, 2  ;;  %v1334_v21 = vsel %vm376_vm3, %v12793_v8, %v12792_v41  ;;  %v12796_v58 = vld [vmem:[#allocation124_spill] sm:$0xff]  ;;  %v12798_v7 = vld [vmem:[#allocation83_spill] sm:$0xff] }
 0x55d   :  { %v4385_v28 = vadd.f32 %v4377_v55, %v4080_v29  ;;  %v1517_v52 = vrot.slane %v10556_v33, 2  ;;  %v12795_v51 = vrot.slane %v12794_v53, 2  ;;  %v12797_v34 = vrot.slane %v12796_v58, 2  ;;  %v12799_v2 = vld [vmem:[#allocation91_spill] sm:$0xff]  ;;  %v12801_v53 = vld [vmem:[#allocation101_spill] sm:$0xff] }
 0x55e   :  { %v4736_v14 = vmul.f32 %v5511_v15, %v12764_v6  ;;  %v858_v46 = vsel %vm145_vm2, %v12799_v2, %v12798_v7  ;;  %v1002_v47 = vadd.f32 %v994_v18, %v691_v63  ;;  %v720_v20 = vadd.f32 %v709_v12, %v569_v30  ;;  %v12802_v6 = vld [vmem:[#allocation109_spill] sm:$0xff]  ;;  %v12803_v30 = vld [vmem:[#allocation94_spill] sm:$0xff]  ;;  %v12808_v15 = vld [vmem:[#allocation179_spill] sm:$0xff] }
 0x55f   :  { %v4757_v1 = vsel %vm1428_vm1, %v12797_v34, %v12795_v51  ;;  %v10587_v33 = vadd.f32 %v10407_v61, %v4385_v28  ;;  %v721_v29 = vadd.f32 %v711_v44, %v570_v38  ;;  %v10589_v48 = vadd.f32 %v713_v56, %v571_v17  ;;  %v5512_v56 = vld [vmem:[%s11610_s2 + $0x50] sm:$0xff]  ;;  %v12804_v17 = vld [vmem:[#allocation96_spill] sm:$0xff]  ;;  %v12810_v2 = vld [vmem:[#allocation347_spill] sm:$0xff] }
 0x560   :  { %v10592_v55 = vstv %s10530_s30  ;;  %v12800_v41 = vrot.slane %v9989_v10, 2  ;;  %v995_v51 = vsel %vm145_vm2, %v12802_v6, %v12801_v53  ;;  %v10600_v58 = vadd.f32 %v715_v59, %v572_v49  ;;  %v12805_v49 = vld [vmem:[#allocation69_spill] sm:$0xff]  ;;  %v12807_v34 = vld [vmem:[#allocation114_spill] sm:$0xff] }
 0x561   :  { %v1342_v63 = vadd.f32 %v1334_v21, %v1002_v47  ;;  %v10604_v61 = vmul.f32 %v10369_v4, %v10516_v19  ;;  %v10608_v12 = vadd.f32 %v858_v46, %v10453_v42  ;;  %v1518_v10 = vsel %vm1428_vm1, %v1516_v0, %v1517_v52  ;;  %v12806_v21 = vld [vmem:[#allocation112_spill] sm:$0xff]  ;;  %v12811_v47 = vld [vmem:[#allocation107_spill] sm:$0xff] }
 0x562   :  { %v4095_v8 = vsel %vm1428_vm1, %v4093_v62, %v12800_v41  ;;  %v4762_v44 = vrot.slane %v4736_v14, 2  ;;  %v4086_v59 = vmul.f32 %v5512_v56, %v12783_v27  ;;  %v859_v38 = vsel %vm145_vm2, %v12804_v17, %v12803_v30  ;;  %v12809_v14 = vld [vmem:[#allocation187_spill] sm:$0xff] }
 0x563   :  { %4772 = vrot.lane.b32.xlu1 %v4757_v1, %s5545_s14  ;;  %v1535_v18 = vmul.f32 %v10545_v36, %v10592_v55  ;;  %v10624_v42 = vmul.f32 %v10344_v31, %v10592_v55  ;;  %v4429_v62 = vpop.permute.xlu1 %4428  ;;  %v4106_v0 = vadd.f32 %v4095_v8, %v12805_v49  ;;  %v1003_v28 = vadd.f32 %v995_v51, %v692_v26  ;;  %v12812_v41 = vld [vmem:[#allocation115_spill] sm:$0xff]  ;;  %v12813_v26 = vld [vmem:[#allocation153_spill] sm:$0xff]  ;;  %v12814_v51 = vld [vmem:[#allocation140_spill] sm:$0xff] }
 0x564   :  { %v996_v1 = vsel %vm145_vm2, %v12807_v34, %v12806_v21  ;;  %v1826_v7 = vsel %vm145_vm2, %v12809_v14, %v12808_v15  ;;  %v4442_v46 = vsel %vm145_vm2, %v12810_v2, %v4429_v62  ;;  %v1062_v53 = vsel %vm145_vm2, %v12812_v41, %v12811_v47  ;;  %v12815_v17 = vld [vmem:[#allocation231_spill] sm:$0xff]  ;;  %v12816_v49 = vld [vmem:[#allocation218_spill] sm:$0xff]  ;;  %v12817_v34 = vld [vmem:[#allocation129_spill] sm:$0xff] }
 0x565   :  { %v1529_v6 = vadd.f32 %v1518_v10, %v1342_v63  ;;  %v1519_v56 = vrot.slane %v10604_v61, 2  ;;  %v10639_v8 = vadd.f32 %v4442_v46, %v4106_v0  ;;  %v1335_v30 = vsel %vm376_vm3, %v12814_v51, %v12813_v26  ;;  %v12819_v2 = vld [vmem:[#allocation117_spill] sm:$0xff]  ;;  %v12820_v47 = vld [vmem:[#allocation104_spill] sm:$0xff] }
 0x566   :  { %v2166_v21 = vsel %vm376_vm3, %v12816_v49, %v12815_v17  ;;  %v12818_v15 = vrot.slane %v12817_v34, 2  ;;  %v4098_v14 = vrot.slane %v4086_v59, 2  ;;  %v997_v63 = vsel %vm145_vm2, %v12820_v47, %v12819_v2  ;;  %v12822_v49 = vld [vmem:[#allocation159_spill] sm:$0xff]  ;;  %v12823_v34 = vld [vmem:[#allocation146_spill] sm:$0xff] }
 0x567   :  { %v1834_v61 = vadd.f32 %v1826_v7, %v1529_v6  ;;  %v1545_v10 = vrot.slane %v1535_v18, 2  ;;  %v1546_v0 = vrot.slane %v10624_v42, 2  ;;  %v10655_v46 = vadd.f32 %v859_v38, %v10500_v5  ;;  %v12825_v38 = vld [vmem:[#allocation120_spill] sm:$0xff]  ;;  %v12826_v6 = vld [vmem:[#allocation190_spill] sm:$0xff]  ;;  %v12829_v2 = vld [vmem:[#allocation143_spill] sm:$0xff] }
 0x568   :  { %v4763_v62 = vsel %vm1428_vm1, %v12818_v15, %v4762_v44  ;;  %v1004_v41 = vadd.f32 %v996_v1, %v693_v24  ;;  %v12821_v26 = vrot.slane %v9962_v40, 2  ;;  %v4087_v44 = vmul.f32 %v10488_v43, %v12783_v27  ;;  %v12824_v24 = vld [vmem:[#allocation118_spill] sm:$0xff]  ;;  %v12830_v47 = vld [vmem:[#allocation151_spill] sm:$0xff] }
 0x569   :  { %v1070_v59 = vadd.f32 %v1062_v53, %v720_v20  ;;  %v1343_v17 = vadd.f32 %v1335_v30, %v1003_v28  ;;  %v1402_v7 = vsel %vm376_vm3, %v12823_v34, %v12822_v49  ;;  %v2174_v18 = vadd.f32 %v2166_v21, %v1834_v61  ;;  %v12827_v30 = vld [vmem:[#allocation192_spill] sm:$0xff]  ;;  %v12828_v21 = vld [vmem:[#allocation127_spill] sm:$0xff]  ;;  %v12832_v34 = vld [vmem:[#allocation229_spill] sm:$0xff] }
 0x56a   :  { %v4099_v51 = vsel %vm1428_vm1, %v12821_v26, %v4098_v14  ;;  %v10667_v5 = vadd.f32 %v997_v63, %v10560_v13  ;;  %v1063_v40 = vsel %vm145_vm2, %v12825_v38, %v12824_v24  ;;  %v1520_v42 = vsel %vm1428_vm1, %v1517_v52, %v1519_v56  ;;  %v12833_v38 = vld [vmem:[#allocation196_spill] sm:$0xff] }
 0x56b   :  { %4778 = vrot.lane.b32.xlu1 %v4763_v62, %s5545_s14  ;;  %v10675_v43 = vmul.f32 %v10375_v32, %v10516_v19  ;;  %v10678_v27 = vstv %s10618_s10  ;;  %v1547_v20 = vsel %vm1428_vm1, %v1545_v10, %v1546_v0  ;;  %v10683_v28 = vmul.f32 %v10369_v4, %v10592_v55  ;;  %v4435_v13 = vpop.permute.xlu1 %4434 }
 0x56c   :  { %v4108_v1 = vadd.f32 %v4099_v51, %v10073_v37  ;;  %v1410_v53 = vadd.f32 %v1402_v7, %v1070_v59  ;;  %v1827_v52 = vsel %vm145_vm2, %v12827_v30, %v12826_v6  ;;  %v4444_v15 = vsel %vm145_vm2, %v4435_v13, %v12828_v21  ;;  %v12831_v59 = vld [vmem:[#allocation221_spill] sm:$0xff] }
 0x56d   :  { %v4100_v62 = vrot.slane %v4087_v44, 2  ;;  %v1336_v63 = vsel %vm376_vm3, %v12830_v47, %v12829_v2  ;;  %v1530_v61 = vadd.f32 %v1520_v42, %v1343_v17  ;;  %v2453_v10 = vmax.f32 %v2174_v18, 0.0  ;;  %v12834_v17 = vld [vmem:[#allocation198_spill] sm:$0xff]  ;;  %v12837_v6 = vld [vmem:[#allocation149_spill] sm:$0xff]  ;;  %v12840_v2 = vld [vmem:[#allocation235_spill] sm:$0xff] }
 0x56e   :  { %v10694_v26 = vadd.f32 %v4444_v15, %v4108_v1  ;;  %v1071_v49 = vadd.f32 %v1063_v40, %v721_v29  ;;  %v1448_v37 = vmul.f32 %v10545_v36, %v10678_v27  ;;  %v1521_v51 = vrot.slane %v10675_v43, 2  ;;  %v12835_v40 = vld [vmem:[#allocation123_spill] sm:$0xff]  ;;  %v12836_v42 = vld [vmem:[#allocation110_spill] sm:$0xff]  ;;  %v12838_v30 = vld [vmem:[#allocation157_spill] sm:$0xff] }
 0x56f   :  { %v2167_v7 = vsel %vm376_vm3, %v12832_v34, %v12831_v59  ;;  %v10704_v44 = vmul.f32 %v10344_v31, %v10678_v27  ;;  %v1835_v24 = vadd.f32 %v1827_v52, %v1530_v61  ;;  %v1894_v18 = vsel %vm145_vm2, %v12834_v17, %v12833_v38  ;;  %v12839_v15 = vld [vmem:[#allocation227_spill] sm:$0xff]  ;;  %v12844_v17 = vld [vmem:[#allocation268_spill] sm:$0xff] }
 0x570   :  { %v1548_v29 = vrot.slane %v10683_v28, 2  ;;  %v1064_v36 = vsel %vm145_vm2, %v12836_v42, %v12835_v40  ;;  %v1344_v43 = vadd.f32 %v1336_v63, %v1004_v41  ;;  %v1558_v13 = vadd.f32 %v1547_v20, %v1410_v53  ;;  %v10727_v41 = vld [vmem:[%s11610_s2 + $0x60] sm:$0x3]  ;;  %v12845_v42 = vld [vmem:[#allocation154_spill] sm:$0xff] }
 0x571   :  { %v4101_v1 = vsel %vm1428_vm1, %v4098_v14, %v4100_v62  ;;  %v1403_v31 = vsel %vm376_vm3, %v12838_v30, %v12837_v6  ;;  %v2175_v21 = vadd.f32 %v2167_v7, %v1835_v24  ;;  %v2457_v52 = vmul.f32 0.5, %v2453_v10  ;;  %v12841_v10 = vld [vmem:[#allocation93_spill] sm:$0xff]  ;;  %v12842_v7 = vld [vmem:[#allocation195_spill] sm:$0xff]  ;;  %v12843_v24 = vld [vmem:[#allocation182_spill] sm:$0xff] }
 0x572   :  { %v2234_v47 = vsel %vm376_vm3, %v12840_v2, %v12839_v15  ;;  %v10722_v28 = vmul.f32 %v10369_v4, %v10678_v27  ;;  %v1510_v14 = vmul.f32 %v10727_v41, %v10516_v19  ;;  %v1522_v20 = vsel %vm1428_vm1, %v1519_v56, %v1521_v51  ;;  %v12848_v6 = vld [vmem:[#allocation234_spill] sm:$0xff] }
 0x573   :  { %v1902_v53 = vadd.f32 %v1894_v18, %v1558_v13  ;;  %v1072_v62 = vadd.f32 %v1064_v36, %v10589_v48  ;;  %v10735_v63 = vmul.f32 %v10375_v32, %v10592_v55  ;;  %v1549_v4 = vsel %vm1428_vm1, %v1546_v0, %v1548_v29  ;;  %v12846_v36 = vld [vmem:[#allocation156_spill] sm:$0xff]  ;;  %v12850_v15 = vld [vmem:[#allocation122_spill] sm:$0xff] }
 0x574   :  { %v4441_v61 = vpop.permute.xlu1 %4440  ;;  %v4109_v59 = vadd.f32 %v4101_v1, %v12841_v10  ;;  %v1411_v34 = vadd.f32 %v1403_v31, %v1071_v49  ;;  %v1828_v38 = vsel %vm145_vm2, %v12843_v24, %v12842_v7  ;;  %v1531_v18 = vadd.f32 %v1522_v20, %v1344_v43  ;;  %v12847_v49 = vld [vmem:[#allocation232_spill] sm:$0xff]  ;;  %v12849_v31 = vld [vmem:[#allocation135_spill] sm:$0xff] }
 0x575   :  { %v2242_v19 = vadd.f32 %v2234_v47, %v1902_v53  ;;  %v4445_v56 = vsel %vm145_vm2, %v12844_v17, %v4441_v61  ;;  %v2454_v48 = vmax.f32 %v2175_v21, 0.0  ;;  %5386 = vtanh.f32 %v2457_v52  ;;  %v12851_v52 = vld [vmem:[#allocation201_spill] sm:$0xff]  ;;  %v12852_v47 = vld [vmem:[#allocation188_spill] sm:$0xff]  ;;  %v12854_v61 = vld [vmem:[#allocation162_spill] sm:$0xff] }
 0x576   :  { %v10744_v40 = vadd.f32 %v4445_v56, %v4109_v59  ;;  %v1337_v0 = vsel %vm376_vm3, %v12846_v36, %v12845_v42  ;;  %v1458_v13 = vrot.slane %v1448_v37, 2  ;;  %v1523_v1 = vrot.slane %v1510_v14, 2  ;;  %v12853_v53 = vld [vmem:[#allocation160_spill] sm:$0xff]  ;;  %v12855_v56 = vld [vmem:[#allocation238_spill] sm:$0xff] }
 0x577   :  { %v2168_v30 = vsel %vm376_vm3, %v12848_v6, %v12847_v49  ;;  %v1198_v2 = vsel %vm376_vm3, %v12850_v15, %v12849_v31  ;;  %v1459_v43 = vrot.slane %v10704_v44, 2  ;;  %v1836_v21 = vadd.f32 %v1828_v38, %v1531_v18  ;;  %v12856_v42 = vld [vmem:[#allocation240_spill] sm:$0xff]  ;;  %v12857_v38 = vld [vmem:[#allocation113_spill] sm:$0xff] }
 0x578   :  { %v1895_v20 = vsel %vm145_vm2, %v12852_v47, %v12851_v52  ;;  %v1404_v37 = vsel %vm376_vm3, %v12854_v61, %v12853_v53  ;;  %v1550_v14 = vrot.slane %v10735_v63, 2  ;;  %v1559_v10 = vadd.f32 %v1549_v4, %v1411_v34  ;;  %v12858_v18 = vld [vmem:[#allocation121_spill] sm:$0xff] }
 0x579   :  { %v2522_v59 = vmax.f32 %v2242_v19, 0.0  ;;  %v1345_v7 = vadd.f32 %v1337_v0, %v10667_v5  ;;  %v2458_v24 = vmul.f32 0.5, %v2454_v48  ;;  %v2176_v17 = vadd.f32 %v2168_v30, %v1836_v21  ;;  %v12859_v0 = vld [vmem:[#allocation185_spill] sm:$0xff] }
 0x57a   :  { %v2235_v44 = vsel %vm376_vm3, %v12856_v42, %v12855_v56  ;;  %v1065_v36 = vsel %vm145_vm2, %v12858_v18, %v12857_v38  ;;  %v1206_v49 = vadd.f32 %v1198_v2, %v10608_v12  ;;  %v1524_v6 = vsel %vm1428_vm1, %v1521_v51, %v1523_v1  ;;  %v12860_v30 = vld [vmem:[#allocation193_spill] sm:$0xff]  ;;  %v12867_v42 = vld [vmem:[#allocation191_spill] sm:$0xff] }
 0x57b   :  { %v1903_v31 = vadd.f32 %v1895_v20, %v1559_v10  ;;  %v5387_v63 = vpop.eup %5386  ;;  %v1412_v4 = vadd.f32 %v1404_v37, %v1072_v62  ;;  %v1460_v34 = vsel %vm1428_vm1, %v1458_v13, %v1459_v43  ;;  %v1461_v5 = vrot.slane %v10722_v28, 2  ;;  %v12861_v1 = vld [vmem:[#allocation125_spill] sm:$0xff]  ;;  %v12863_v20 = vld [vmem:[#allocation172_spill] sm:$0xff] }
 0x57c   :  { %v1539_v19 = vmul.f32 %v10727_v41, %v10592_v55  ;;  %v10776_v48 = vpop.permute.xlu1 %4498  ;;  %v1829_v15 = vsel %vm145_vm2, %v12860_v30, %v12859_v0  ;;  %v1551_v12 = vsel %vm1428_vm1, %v1548_v29, %v1550_v14  ;;  %v2526_v2 = vmul.f32 0.5, %v2522_v59  ;;  %v12862_v21 = vld [vmem:[#allocation133_spill] sm:$0xff]  ;;  %v12864_v55 = vld [vmem:[#allocation174_spill] sm:$0xff]  ;;  %v12866_v37 = vld [vmem:[#allocation224_spill] sm:$0xff] }
 0x57d   :  { %v2243_v51 = vadd.f32 %v2235_v44, %v1903_v31  ;;  %v1199_v62 = vsel %vm376_vm3, %v12862_v21, %v12861_v1  ;;  %v1532_v13 = vadd.f32 %v1524_v6, %v1345_v7  ;;  %5388 = vtanh.f32 %v2458_v24  ;;  %v12865_v61 = vld [vmem:[#allocation237_spill] sm:$0xff]  ;;  %v12868_v44 = vld [vmem:[#allocation199_spill] sm:$0xff]  ;;  %v12870_v24 = vld [vmem:[#allocation152_spill] sm:$0xff] }
 0x57e   :  { %v2455_v52 = vmax.f32 %v2176_v17, 0.0  ;;  %v1471_v47 = vadd.f32 %v1460_v34, %v1206_v49  ;;  %v1690_v53 = vsel %vm145_vm2, %v12864_v55, %v12863_v20  ;;  %v2169_v10 = vsel %vm376_vm3, %v12866_v37, %v12865_v61  ;;  %v12869_v7 = vld [vmem:[#allocation165_spill] sm:$0xff]  ;;  %v12871_v49 = vld [vmem:[#allocation203_spill] sm:$0xff] }
 0x57f   :  { %v2465_v56 = vmul.f32 0.5, %v5387_v63  ;;  %v1837_v29 = vadd.f32 %v1829_v15, %v1532_v13  ;;  %v1560_v59 = vadd.f32 %v1551_v12, %v1412_v4  ;;  %v1896_v38 = vsel %vm145_vm2, %v12868_v44, %v12867_v42  ;;  %v12872_v6 = vld [vmem:[#allocation211_spill] sm:$0xff]  ;;  %v12874_v4 = vld [vmem:[#allocation230_spill] sm:$0xff]  ;;  %v12879_v42 = vld [vmem:[#allocation177_spill] sm:$0xff] }
 0x580   :  { %v1552_v18 = vrot.slane %v1539_v19, 2  ;;  %v1405_v17 = vsel %vm376_vm3, %v12870_v24, %v12869_v7  ;;  %v2030_v31 = vsel %vm376_vm3, %v12872_v6, %v12871_v49  ;;  %5390 = vtanh.f32 %v2526_v2  ;;  %v12873_v15 = vld [vmem:[#allocation243_spill] sm:$0xff]  ;;  %v12880_v44 = vld [vmem:[#allocation164_spill] sm:$0xff]  ;;  %v12882_v24 = vld [vmem:[#allocation138_spill] sm:$0xff] }
 0x581   :  { %v2523_v34 = vmax.f32 %v2243_v51, 0.0  ;;  %v1698_v0 = vadd.f32 %v1690_v53, %v1471_v47  ;;  %v2459_v30 = vmul.f32 0.5, %v2455_v52  ;;  %v2177_v63 = vadd.f32 %v2169_v10, %v1837_v29  ;;  %v12875_v51 = vld [vmem:[#allocation99_spill] sm:$0xff]  ;;  %v12876_v47 = vld [vmem:[#allocation86_spill] sm:$0xff]  ;;  %v12881_v7 = vld [vmem:[#allocation136_spill] sm:$0xff] }
 0x582   :  { %v2236_v12 = vsel %vm376_vm3, %v12874_v4, %v12873_v15  ;;  %v1073_v1 = vadd.f32 %v1065_v36, %v10600_v58  ;;  %v10806_v19 = vmul.f32 %v10375_v32, %v10678_v27  ;;  %v1904_v21 = vadd.f32 %v1896_v38, %v1560_v59  ;;  %v12877_v10 = vld [vmem:[#allocation58_spill] sm:$0xff] }
 0x583   :  { %v2469_v13 = vadd.f32 0.5, %v2465_v56  ;;  %v5389_v20 = vpop.eup %5388  ;;  %v635_v2 = vadd.f32 %v10447_v57, %v10493_v35  ;;  %v860_v52 = vsel %vm145_vm2, %v12876_v47, %v12875_v51  ;;  %v1207_v55 = vadd.f32 %v1199_v62, %v10655_v46  ;;  %v12878_v56 = vld [vmem:[#allocation60_spill] sm:$0xff]  ;;  %v12883_v6 = vld [vmem:[#allocation202_spill] sm:$0xff] }
 0x584   :  { %v2038_v53 = vadd.f32 %v2030_v31, %v1698_v0  ;;  %v1413_v58 = vadd.f32 %v1405_v17, %v1073_v1  ;;  %v1462_v32 = vsel %vm1428_vm1, %v1459_v43, %v1461_v5  ;;  %v2527_v36 = vmul.f32 0.5, %v2523_v34  ;;  %v12884_v31 = vld [vmem:[#allocation204_spill] sm:$0xff]  ;;  %v12885_v0 = vld [vmem:[#allocation214_spill] sm:$0xff]  ;;  %v12887_v1 = vld [vmem:[#allocation233_spill] sm:$0xff] }
 0x585   :  { %v10814_v61 = vpop.permute.xlu1 %4504  ;;  %v2244_v37 = vadd.f32 %v2236_v12, %v1904_v21  ;;  %v426_v57 = vsel %vm376_vm3, %v12878_v56, %v12877_v10  ;;  %v1553_v35 = vsel %vm1428_vm1, %v1550_v14, %v1552_v18  ;;  %5392 = vtanh.f32 %v2459_v30  ;;  %v12886_v30 = vld [vmem:[#allocation216_spill] sm:$0xff] }
 0x586   :  { %2473 = vxpose.xlu0.b32.start [1/4] (short) %v2469_v13, 128  ;;  %v2456_v29 = vmax.f32 %v2177_v63, 0.0  ;;  %v5391_v46 = vpop.eup %5390  ;;  %v868_v62 = vadd.f32 %v860_v52, %v635_v2  ;;  %v1463_v59 = vrot.slane %v10806_v19, 2  ;;  %v1691_v38 = vsel %vm145_vm2, %v12880_v44, %v12879_v42  ;;  %v12888_v19 = vld [vmem:[#allocation241_spill] sm:$0xff]  ;;  %v12894_v42 = vld [vmem:[#allocation175_spill] sm:$0xff] }
 0x587   :  { %v2466_v43 = vmul.f32 0.5, %v5389_v20  ;;  %v1200_v17 = vsel %vm376_vm3, %v12882_v24, %v12881_v7  ;;  %v1472_v49 = vadd.f32 %v1462_v32, %v1207_v55  ;;  %v1897_v14 = vsel %vm145_vm2, %v12884_v31, %v12883_v6  ;;  %v12895_v7 = vld [vmem:[#allocation141_spill] sm:$0xff]  ;;  %v12896_v24 = vld [vmem:[#allocation128_spill] sm:$0xff]  ;;  %v12898_v6 = vld [vmem:[#allocation206_spill] sm:$0xff] }
 0x588   :  { %v2315_v18 = vmax.f32 %v2038_v53, 0.0  ;;  %v1561_v34 = vadd.f32 %v1553_v35, %v1413_v58  ;;  %v2031_v63 = vsel %vm376_vm3, %v12886_v30, %v12885_v0  ;;  %5394 = vtanh.f32 %v2527_v36 }
 0x589   :  { %v2524_v15 = vmax.f32 %v2244_v37, 0.0  ;;  %v1699_v4 = vadd.f32 %v1691_v38, %v1472_v49  ;;  %v2460_v12 = vmul.f32 0.5, %v2456_v29  ;;  %v2237_v21 = vsel %vm376_vm3, %v12888_v19, %v12887_v1  ;;  %v12897_v49 = vld [vmem:[#allocation219_spill] sm:$0xff] }
 0x58a   :  { %v2534_v13 = vmul.f32 0.5, %v5391_v46  ;;  %v434_v20 = vadd.f32 %v426_v57, %v10322_v25  ;;  %v12889_v2 = vrot.slane %v10423_v45, 1  ;;  %v12890_v51 = vrot.slane %v10378_v16, 1  ;;  %v10852_v16 = vpop.permute.xlu2 %4768  ;;  %v12891_v46 = vld [vmem:[#allocation89_spill] sm:$0xff] }
 0x58b   :  { %v1905_v52 = vadd.f32 %v1897_v14, %v1561_v34  ;;  %v2470_v55 = vadd.f32 0.5, %v2466_v43  ;;  %v5393_v53 = vpop.eup %5392  ;;  %v1208_v58 = vadd.f32 %v1200_v17, %v868_v62  ;;  %v1452_v32 = vmul.f32 %v10727_v41, %v10678_v27  ;;  %v12892_v62 = vld [vmem:[#allocation97_spill] sm:$0xff]  ;;  %v12893_v41 = vld [vmem:[#allocation167_spill] sm:$0xff] }
 0x58c   :  { %v628_v47 = vsel %vm590_vm0, %v12890_v51, %v12889_v2  ;;  %v2319_v36 = vmul.f32 0.5, %v2315_v18  ;;  %v2039_v37 = vadd.f32 %v2031_v63, %v1699_v4  ;;  %v1464_v25 = vsel %vm1428_vm1, %v1461_v5, %v1463_v59  ;;  %v12899_v51 = vld [vmem:[#allocation178_spill] sm:$0xff] }
 0x58d   :  { %v10847_v10 = vpop.permute.xlu1 %4562  ;;  %v2245_v45 = vadd.f32 %v2237_v21, %v1905_v52  ;;  %v2528_v56 = vmul.f32 0.5, %v2524_v15  ;;  %5396 = vtanh.f32 %v2460_v12  ;;  %v2538_v57 = vadd.f32 0.5, %v2534_v13 }
 0x58e   :  { %2474 = vxpose.xlu0.b32.cont [2/4] (short) %v2470_v55, 128  ;;  %v5395_v35 = vpop.eup %5394  ;;  %v636_v29 = vadd.f32 %v628_v47, %v434_v20  ;;  %v861_v27 = vsel %vm145_vm2, %v12892_v62, %v12891_v46  ;;  %v1692_v44 = vsel %vm145_vm2, %v12894_v42, %v12893_v41  ;;  %v2467_v28 = vmul.f32 0.5, %v5393_v53  ;;  %v12900_v47 = vld [vmem:[#allocation180_spill] sm:$0xff]  ;;  %v10874_v53 = vpop.permute.xlu0 %4770 }
 0x58f   :  { %v1473_v38 = vadd.f32 %v1464_v25, %v1208_v58  ;;  %v1465_v5 = vrot.slane %v1452_v32, 2  ;;  %5398 = vtanh.f32 %v2319_v36  ;;  %v2316_v43 = vmax.f32 %v2039_v37, 0.0  ;;  %v12901_v37 = vld [vmem:[#allocation209_spill] sm:$0xff] }
 0x590   :  { %v1201_v17 = vsel %vm376_vm3, %v12896_v24, %v12895_v7  ;;  %v2032_v31 = vsel %vm376_vm3, %v12898_v6, %v12897_v49  ;;  %v2525_v14 = vmax.f32 %v2245_v45, 0.0  ;;  %5400 = vtanh.f32 %v2528_v56 }
 0x591   :  { %2542 = vxpose.xlu2.b32.start [1/4] (short) %v2538_v57, 128  ;;  %v869_v18 = vadd.f32 %v861_v27, %v636_v29  ;;  %v1700_v34 = vadd.f32 %v1692_v44, %v1473_v38  ;;  %v2535_v0 = vmul.f32 0.5, %v5395_v35  ;;  %v2471_v30 = vadd.f32 0.5, %v2467_v28 }
 0x592   :  { %v2320_v4 = vmul.f32 0.5, %v2316_v43  ;;  %v1466_v19 = vsel %vm1428_vm1, %v1463_v59, %v1465_v5  ;;  %v2529_v21 = vmul.f32 0.5, %v2525_v14  ;;  %v1693_v52 = vsel %vm145_vm2, %v12900_v47, %v12899_v51  ;;  %v10872_v55 = vpop.permute.xlu2 %4774  ;;  %v12902_v59 = vld [vmem:[#allocation217_spill] sm:$0xff] }
 0x593   :  { %v5397_v63 = vpop.eup %5396  ;;  %v1209_v15 = vadd.f32 %v1201_v17, %v869_v18  ;;  %v2040_v12 = vadd.f32 %v2032_v31, %v1700_v34  ;;  %v2539_v20 = vadd.f32 0.5, %v2535_v0  ;;  %v2033_v25 = vsel %vm376_vm3, %v12902_v59, %v12901_v37 }
 0x594   :  { %v2468_v58 = vmul.f32 0.5, %v5397_v63  ;;  %5402 = vtanh.f32 %v2320_v4 }
 0x595   :  { %v10866_v1 = vpop.permute.xlu1 %4568  ;;  %v5399_v13 = vpop.eup %5398  ;;  %v1474_v32 = vadd.f32 %v1466_v19, %v1209_v15  ;;  %v2317_v36 = vmax.f32 %v2040_v12, 0.0  ;;  %5404 = vtanh.f32 %v2529_v21 }
 0x596   :  { %2475 = vxpose.xlu0.b32.cont [3/4] (short) %v2471_v30, 128  ;;  %v5401_v2 = vpop.eup %5400  ;;  %v2327_v45 = vmul.f32 0.5, %v5399_v13  ;;  %v2472_v35 = vadd.f32 0.5, %v2468_v58  ;;  %v10881_v5 = vpop.permute.xlu0 %4776 }
 0x597   :  { %v1701_v56 = vadd.f32 %v1693_v52, %v1474_v32  ;;  %v2536_v57 = vmul.f32 0.5, %v5401_v2  ;;  %v2321_v46 = vmul.f32 0.5, %v2317_v36 }
 0x598   :  { %v2331_v27 = vadd.f32 0.5, %v2327_v45 }
 0x599   :  { %2543 = vxpose.xlu2.b32.cont [2/4] (short) %v2539_v20, 128  ;;  %v2041_v29 = vadd.f32 %v2033_v25, %v1701_v56  ;;  %v2540_v42 = vadd.f32 0.5, %v2536_v57  ;;  %5406 = vtanh.f32 %v2321_v46 }
 0x59a   :  { %v5403_v41 = vpop.eup %5402  ;;  %v4781_v38 = vpop.permute.xlu2 %4780 }
 0x59b   :  { %v5405_v44 = vpop.eup %5404  ;;  %v2318_v28 = vmax.f32 %v2041_v29, 0.0  ;;  %v2328_v43 = vmul.f32 0.5, %v5403_v41 }
 0x59c   :  { %v2537_v7 = vmul.f32 0.5, %v5405_v44  ;;  %v12903_v44 = vld [vmem:[#allocation271_spill] sm:$0xff] }
 0x59d   :  { %v10879_v62 = vpop.permute.xlu1 %4574  ;;  %v2322_v24 = vmul.f32 0.5, %v2318_v28  ;;  %v2332_v49 = vadd.f32 0.5, %v2328_v43  ;;  %v4511_v28 = vsel %vm376_vm3, %v10776_v48, %v12903_v44 }
 0x59e   :  { %2476 = vxpose.xlu0.b32.end [4/4] (short) %v2472_v35, 128  ;;  %v2541_v31 = vadd.f32 0.5, %v2537_v7 }
 0x59f   :  { %v5407_v6 = vpop.eup %5406  ;;  %5408 = vtanh.f32 %v2322_v24  ;;  %v4519_v24 = vadd.f32 %v4511_v28, %v10154_v9  ;;  %v4512_v9 = vsel %vm376_vm3, %v10027_v54, %v10814_v61 }
 0x5a0   :  { %2335 = vxpose.xlu1.b32.start [1/4] (short) %v2331_v27, 128  ;;  %v2329_v34 = vmul.f32 0.5, %v5407_v6 }
 0x5a1   :  { %2544 = vxpose.xlu2.b32.cont [3/4] (short) %v2540_v42, 128  ;;  %v4795_v6 = vmax.f32 %v4519_v24, 0.0 }
 0x5a2   :  { %v2333_v30 = vadd.f32 0.5, %v2329_v34 }
 0x5a5   :  { %v10883_v17 = vpop.permute.xlu1 %4632  ;;  %v5409_v63 = vpop.eup %5408 }
 0x5a6   :  { %v2330_v12 = vmul.f32 0.5, %v5409_v63 }
 0x5a8   :  { %2336 = vxpose.xlu1.b32.cont [2/4] (short) %v2332_v49, 128  ;;  %v2334_v21 = vadd.f32 0.5, %v2330_v12  ;;  %v4646_v49 = vsel %vm376_vm3, %v10176_v22, %v10883_v17 }
 0x5a9   :  { %2545 = vxpose.xlu2.b32.end [4/4] (short) %v2541_v31, 128 }
 0x5aa   :  { %v2420_v14 = vpop.trf.xlu2  ;;  %v2282_v18 = vpop.trf.xlu0 }
 0x5ab   :  { %5205 = vst.msk [vmem:[%s11611_s3 + $0x200] sm:$0xff] %vm2298_vm4, %v2420_v14  ;;  %v4799_v14 = vmul.f32 0.5, %v4795_v6 }
 0x5ac   :  { %2299 = vst.msk [vmem:[%s11611_s3] sm:$0xff] %vm2298_vm4, %v2282_v18  ;;  %v12905_v18 = vld [vmem:[#allocation103_spill] sm:$0xff] }
 0x5ad   :  { %v10893_v0 = vpop.permute.xlu1 %4638  ;;  %v4520_v34 = vadd.f32 %v4512_v9, %v12905_v18 }
 0x5af   :  { %v4796_v54 = vmax.f32 %v4520_v34, 0.0 }
 0x5b0   :  { %2337 = vxpose.xlu1.b32.cont [3/4] (short) %v2333_v30, 128 }
 0x5b2   :  { %v2421_v15 = vpop.trf.xlu2  ;;  %v2283_v4 = vpop.trf.xlu0 }
 0x5b3   :  { %5206 = vst.msk [vmem:[%s11611_s3 + $0x208] sm:$0xff] %vm2298_vm4, %v2421_v15  ;;  %v4932_v15 = vmax.f32 %v10339_v3, 0.0 }
 0x5b4   :  { %2300 = vst.msk [vmem:[%s11611_s3 + $0x8] sm:$0xff] %vm2298_vm4, %v2283_v4  ;;  %v4578_v4 = vsel %vm376_vm3, %v10847_v10, %v10031_v11 }
 0x5b5   :  { %v10903_v19 = vpop.permute.xlu1 %4644  ;;  %v4586_v10 = vadd.f32 %v4578_v4, %v10199_v60  ;;  %v12908_v60 = vld [vmem:[#allocation360_spill] sm:$0xff] }
 0x5b8   :  { %2338 = vxpose.xlu1.b32.end [4/4] (short) %v2334_v21, 128 }
 0x5ba   :  { %v2422_v13 = vpop.trf.xlu2  ;;  %v2284_v20 = vpop.trf.xlu0 }
 0x5bb   :  { %5207 = vst.msk [vmem:[%s11611_s3 + $0x210] sm:$0xff] %vm2298_vm4, %v2422_v13  ;;  %v4800_v13 = vmul.f32 0.5, %v4796_v54  ;;  %v12911_v54 = vld [vmem:[#allocation355_spill] sm:$0xff] }
 0x5bc   :  { %2301 = vst.msk [vmem:[%s11611_s3 + $0x10] sm:$0xff] %vm2298_vm4, %v2284_v20  ;;  %v4648_v20 = vsel %vm376_vm3, %v10893_v0, %v10204_v23 }
 0x5bd   :  { %v10913_v2 = vpop.permute.xlu1 %4702 }
 0x5c2   :  { %v2423_v51 = vpop.trf.xlu2  ;;  %v2285_v47 = vpop.trf.xlu0 }
 0x5c3   :  { %5208 = vst.msk [vmem:[%s11611_s3 + $0x218] sm:$0xff] %vm2298_vm4, %v2423_v51  ;;  %v4936_v51 = vmul.f32 0.5, %v4932_v15  ;;  %v12912_v15 = vld [vmem:[#allocation272_spill] sm:$0xff] }
 0x5c4   :  { %2302 = vst.msk [vmem:[%s11611_s3 + $0x18] sm:$0xff] %vm2298_vm4, %v2285_v47  ;;  %v4656_v47 = vadd.f32 %v4648_v20, %v10404_v50  ;;  %v4649_v50 = vsel %vm376_vm3, %v12908_v60, %v10903_v19  ;;  %v4581_v4 = vsel %vm376_vm3, %v10879_v62, %v12912_v15  ;;  %v12919_v15 = vld [vmem:[#allocation263_spill] sm:$0xff] }
 0x5c5   :  { %v10923_v52 = vpop.permute.xlu1 %4708 }
 0x5ca   :  { %v2424_v58 = vpop.trf.xlu2  ;;  %v2286_v32 = vpop.trf.xlu0 }
 0x5cb   :  { %5209 = vst.msk [vmem:[%s11611_s3 + $0x220] sm:$0xff] %vm2298_vm4, %v2424_v58  ;;  %v12906_v58 = vld [vmem:[#allocation327_spill] sm:$0xff] }
 0x5cc   :  { %2303 = vst.msk [vmem:[%s11611_s3 + $0x20] sm:$0xff] %vm2298_vm4, %v2286_v32  ;;  %v4797_v23 = vmax.f32 %v12906_v58, 0.0 }
 0x5cd   :  { %v10933_v36 = vpop.permute.xlu1 %4766 }
 0x5d2   :  { %v2425_v37 = vpop.trf.xlu2  ;;  %v2287_v59 = vpop.trf.xlu0 }
 0x5d3   :  { %5210 = vst.msk [vmem:[%s11611_s3 + $0x228] sm:$0xff] %vm2298_vm4, %v2425_v37  ;;  %v4863_v37 = vmax.f32 %v4586_v10, 0.0  ;;  %v12913_v10 = vld [vmem:[#allocation386_spill] sm:$0xff] }
 0x5d4   :  { %2304 = vst.msk [vmem:[%s11611_s3 + $0x28] sm:$0xff] %vm2298_vm4, %v2287_v59  ;;  %v12907_v59 = vld [vmem:[#allocation274_spill] sm:$0xff] }
 0x5d5   :  { %v10943_v25 = vpop.permute.xlu1 %4772 }
 0x5da   :  { %v2426_v45 = vpop.trf.xlu2  ;;  %v2288_v56 = vpop.trf.xlu0 }
 0x5db   :  { %5211 = vst.msk [vmem:[%s11611_s3 + $0x230] sm:$0xff] %vm2298_vm4, %v2426_v45  ;;  %v4579_v45 = vsel %vm376_vm3, %v12907_v59, %v10866_v1 }
 0x5dc   :  { %2305 = vst.msk [vmem:[%s11611_s3 + $0x30] sm:$0xff] %vm2298_vm4, %v2288_v56  ;;  %v4933_v56 = vmax.f32 %v4656_v47, 0.0 }
 0x5dd   :  { %v4779_v57 = vpop.permute.xlu1 %4778 }
 0x5de   :  { %v4785_v35 = vsel %vm376_vm3, %v4779_v57, %v4781_v38  ;;  %v4937_v28 = vmul.f32 0.5, %v4933_v56 }
 0x5df   :  { %v10955_v29 = vadd.f32 %v4785_v35, %v10744_v40  ;;  %v4794_v40 = vmax.f32 %v10130_v39, 0.0  ;;  %v12904_v39 = vld [vmem:[#allocation119_spill] sm:$0xff] }
 0x5e0   :  { %v4654_v48 = vadd.f32 %v4646_v49, %v12904_v39 }
 0x5e1   :  { %v4798_v7 = vmul.f32 0.5, %v4794_v40  ;;  %v12909_v40 = vld [vmem:[#allocation250_spill] sm:$0xff] }
 0x5e2   :  { %v2427_v46 = vpop.trf.xlu2  ;;  %v2289_v27 = vpop.trf.xlu0  ;;  %v4931_v31 = vmax.f32 %v4654_v48, 0.0  ;;  %v4587_v44 = vadd.f32 %v4579_v45, %v12909_v40 }
 0x5e3   :  { %5212 = vst.msk [vmem:[%s11611_s3 + $0x238] sm:$0xff] %vm2298_vm4, %v2427_v46  ;;  %5410 = vtanh.f32 %v4798_v7  ;;  %v4801_v46 = vmul.f32 0.5, %v4797_v23 }
 0x5e4   :  { %2306 = vst.msk [vmem:[%s11611_s3 + $0x38] sm:$0xff] %vm2298_vm4, %v2289_v27  ;;  %v4935_v63 = vmul.f32 0.5, %v4931_v31  ;;  %5412 = vtanh.f32 %v4799_v14  ;;  %v4864_v49 = vmax.f32 %v4587_v44, 0.0 }
 0x5e6   :  { %5414 = vtanh.f32 %v4935_v63 }
 0x5e7   :  { %5416 = vtanh.f32 %v4800_v13 }
 0x5e8   :  { %5418 = vtanh.f32 %v4936_v51  ;;  %v4589_v51 = vadd.f32 %v4581_v4, %v12913_v10 }
 0x5e9   :  { %v5411_v30 = vpop.eup %5410  ;;  %5420 = vtanh.f32 %v4801_v46 }
 0x5ea   :  { %v2428_v41 = vpop.trf.xlu2  ;;  %v2290_v42 = vpop.trf.xlu0  ;;  %v4806_v61 = vmul.f32 0.5, %v5411_v30 }
 0x5eb   :  { %5213 = vst.msk [vmem:[%s11611_s3 + $0x240] sm:$0xff] %vm2298_vm4, %v2428_v41  ;;  %v5413_v11 = vpop.eup %5412 }
 0x5ec   :  { %2307 = vst.msk [vmem:[%s11611_s3 + $0x40] sm:$0xff] %vm2298_vm4, %v2290_v42  ;;  %v4810_v3 = vadd.f32 0.5, %v4806_v61  ;;  %v5415_v0 = vpop.eup %5414  ;;  %v4807_v32 = vmul.f32 0.5, %v5413_v11  ;;  %v4867_v42 = vmul.f32 0.5, %v4863_v37  ;;  %v4865_v61 = vmax.f32 %v12911_v54, 0.0 }
 0x5ed   :  { %v4943_v27 = vmul.f32 0.5, %v5415_v0  ;;  %v5417_v41 = vpop.eup %5416  ;;  %v4866_v0 = vmax.f32 %v4589_v51, 0.0 }
 0x5ee   :  { %v4811_v1 = vadd.f32 0.5, %v4807_v32  ;;  %v5419_v7 = vpop.eup %5418  ;;  %v4808_v24 = vmul.f32 0.5, %v5417_v41  ;;  %5422 = vtanh.f32 %v4867_v42  ;;  %v4869_v11 = vmul.f32 0.5, %v4865_v61  ;;  %v12918_v61 = vld [vmem:[#allocation382_spill] sm:$0xff] }
 0x5ef   :  { %v4947_v19 = vadd.f32 0.5, %v4943_v27  ;;  %5424 = vtanh.f32 %v4937_v28  ;;  %v4944_v9 = vmul.f32 0.5, %v5419_v7  ;;  %v4870_v56 = vmul.f32 0.5, %v4866_v0 }
 0x5f0   :  { %v4812_v31 = vadd.f32 0.5, %v4808_v24  ;;  %v4375_v4 = vsel %vm145_vm2, %v12919_v15, %v12918_v61 }
 0x5f1   :  { %v4948_v34 = vadd.f32 0.5, %v4944_v9 }
 0x5f2   :  { %v2429_v38 = vpop.trf.xlu2  ;;  %v2291_v43 = vpop.trf.xlu0 }
 0x5f3   :  { %5214 = vst.msk [vmem:[%s11611_s3 + $0x248] sm:$0xff] %vm2298_vm4, %v2429_v38  ;;  %v12910_v38 = vld [vmem:[#allocation352_spill] sm:$0xff] }
 0x5f4   :  { %2308 = vst.msk [vmem:[%s11611_s3 + $0x48] sm:$0xff] %vm2298_vm4, %v2291_v43  ;;  %v4657_v43 = vadd.f32 %v4649_v50, %v12910_v38 }
 0x5f6   :  { %v4934_v39 = vmax.f32 %v4657_v43, 0.0 }
 0x5f8   :  { %v4938_v14 = vmul.f32 0.5, %v4934_v39 }
 0x5fa   :  { %v2430_v22 = vpop.trf.xlu2  ;;  %v2292_v17 = vpop.trf.xlu0 }
 0x5fb   :  { %5215 = vst.msk [vmem:[%s11611_s3 + $0x250] sm:$0xff] %vm2298_vm4, %v2430_v22  ;;  %v5421_v22 = vpop.eup %5420 }
 0x5fc   :  { %2309 = vst.msk [vmem:[%s11611_s3 + $0x50] sm:$0xff] %vm2298_vm4, %v2292_v17  ;;  %v4868_v17 = vmul.f32 0.5, %v4864_v49  ;;  %v5423_v18 = vpop.eup %5422  ;;  %v4809_v63 = vmul.f32 0.5, %v5421_v22 }
 0x5fd   :  { %v5425_v30 = vpop.eup %5424  ;;  %v4875_v13 = vmul.f32 0.5, %v5423_v18  ;;  %v12914_v18 = vld [vmem:[#allocation345_spill] sm:$0xff] }
 0x5fe   :  { %5426 = vtanh.f32 %v4868_v17  ;;  %v4945_v20 = vmul.f32 0.5, %v5425_v30  ;;  %v12916_v30 = vld [vmem:[#allocation130_spill] sm:$0xff] }
 0x5ff   :  { %5428 = vtanh.f32 %v4938_v14  ;;  %v4879_v62 = vadd.f32 0.5, %v4875_v13  ;;  %v12921_v13 = vld [vmem:[#allocation326_spill] sm:$0xff] }
 0x600   :  { %v4949_v58 = vadd.f32 0.5, %v4945_v20  ;;  %5430 = vtanh.f32 %v4869_v11 }
 0x601   :  { %5432 = vtanh.f32 %v4870_v56  ;;  %v12924_v56 = vld [vmem:[#allocation356_spill] sm:$0xff] }
 0x602   :  { %v2431_v12 = vpop.trf.xlu2  ;;  %v2293_v21 = vpop.trf.xlu0 }
 0x603   :  { %5216 = vst.msk [vmem:[%s11611_s3 + $0x258] sm:$0xff] %vm2298_vm4, %v2431_v12 }
 0x604   :  { %2310 = vst.msk [vmem:[%s11611_s3 + $0x58] sm:$0xff] %vm2298_vm4, %v2293_v21  ;;  %v5427_v47 = vpop.eup %5426 }
 0x605   :  { %v5429_v23 = vpop.eup %5428  ;;  %v4876_v59 = vmul.f32 0.5, %v5427_v47 }
 0x606   :  { %4814 = vxpose.xlu0.b32.start [1/4] (short) %v4810_v3, 128  ;;  %v4813_v3 = vadd.f32 0.5, %v4809_v63  ;;  %v4946_v45 = vmul.f32 0.5, %v5429_v23  ;;  %v12917_v63 = vrot.slane %v12916_v30, 2  ;;  %v4782_v23 = vsel %vm376_vm3, %v10933_v36, %v10852_v16 }
 0x608   :  { %v4950_v46 = vadd.f32 0.5, %v4946_v45 }
 0x60a   :  { %v2432_v57 = vpop.trf.xlu2  ;;  %v2294_v35 = vpop.trf.xlu0 }
 0x60b   :  { %5217 = vst.msk [vmem:[%s11611_s3 + $0x260] sm:$0xff] %vm2298_vm4, %v2432_v57  ;;  %v4880_v57 = vadd.f32 0.5, %v4876_v59 }
 0x60c   :  { %2311 = vst.msk [vmem:[%s11611_s3 + $0x60] sm:$0xff] %vm2298_vm4, %v2294_v35  ;;  %v5431_v35 = vpop.eup %5430 }
 0x60d   :  { %v4877_v27 = vmul.f32 0.5, %v5431_v35  ;;  %v5433_v41 = vpop.eup %5432  ;;  %v4783_v35 = vsel %vm376_vm3, %v10874_v53, %v10943_v25 }
 0x60e   :  { %4815 = vxpose.xlu0.b32.cont [2/4] (short) %v4811_v1, 128  ;;  %v4878_v44 = vmul.f32 0.5, %v5433_v41 }
 0x60f   :  { %v4881_v1 = vadd.f32 0.5, %v4877_v27 }
 0x610   :  { %v4882_v28 = vadd.f32 0.5, %v4878_v44  ;;  %v4784_v44 = vsel %vm376_vm3, %v10872_v55, %v10881_v5 }
 0x611   :  { %4951 = vxpose.xlu2.b32.start [1/4] (short) %v4947_v19, 128 }
 0x612   :  { %v2433_v48 = vpop.trf.xlu2  ;;  %v2295_v6 = vpop.trf.xlu0 }
 0x613   :  { %5218 = vst.msk [vmem:[%s11611_s3 + $0x268] sm:$0xff] %vm2298_vm4, %v2433_v48 }
 0x614   :  { %2312 = vst.msk [vmem:[%s11611_s3 + $0x68] sm:$0xff] %vm2298_vm4, %v2295_v6 }
 0x616   :  { %4816 = vxpose.xlu0.b32.cont [3/4] (short) %v4812_v31, 128 }
 0x619   :  { %4952 = vxpose.xlu2.b32.cont [2/4] (short) %v4948_v34, 128  ;;  %v12915_v34 = vrot.slane %v12914_v18, 2 }
 0x61a   :  { %v2434_v12 = vpop.trf.xlu2  ;;  %v2296_v21 = vpop.trf.xlu0 }
 0x61b   :  { %5219 = vst.msk [vmem:[%s11611_s3 + $0x270] sm:$0xff] %vm2298_vm4, %v2434_v12  ;;  %v4068_v54 = vsel %vm1428_vm1, %v12917_v63, %v12915_v34  ;;  %v12920_v12 = vld [vmem:[#allocation132_spill] sm:$0xff] }
 0x61c   :  { %2313 = vst.msk [vmem:[%s11611_s3 + $0x70] sm:$0xff] %vm2298_vm4, %v2296_v21  ;;  %v4999_v21 = vmax.f32 %v12920_v12, 0.0  ;;  %v4078_v20 = vadd.f32 %v4068_v54, %v12921_v13 }
 0x61e   :  { %4817 = vxpose.xlu0.b32.end [4/4] (short) %v4813_v3, 128  ;;  %v12922_v3 = vld [vmem:[#allocation383_spill] sm:$0xff]  ;;  %v4383_v10 = vadd.f32 %v4375_v4, %v4078_v20  ;;  %v5003_v47 = vmul.f32 0.5, %v4999_v21 }
 0x61f   :  { %v4715_v11 = vsel %vm376_vm3, %v10913_v2, %v12922_v3  ;;  %v4790_v2 = vadd.f32 %v4782_v23, %v10639_v8 }
 0x620   :  { %4883 = vxpose.xlu1.b32.start [1/4] (short) %v4879_v62, 128  ;;  %5434 = vtanh.f32 %v5003_v47 }
 0x621   :  { %4953 = vxpose.xlu2.b32.cont [3/4] (short) %v4949_v58, 128  ;;  %v4723_v58 = vadd.f32 %v4715_v11, %v4383_v10  ;;  %v5067_v59 = vmax.f32 %v4790_v2, 0.0 }
 0x622   :  { %v2435_v32 = vpop.trf.xlu2  ;;  %v2297_v37 = vpop.trf.xlu0 }
 0x623   :  { %5220 = vst.msk [vmem:[%s11611_s3 + $0x278] sm:$0xff] %vm2298_vm4, %v2435_v32  ;;  %v5000_v0 = vmax.f32 %v4723_v58, 0.0  ;;  %v12923_v32 = vld [vmem:[#allocation314_spill] sm:$0xff] }
 0x624   :  { %2314 = vst.msk [vmem:[%s11611_s3 + $0x78] sm:$0xff] %vm2298_vm4, %v2297_v37  ;;  %v4716_v37 = vsel %vm376_vm3, %v12923_v32, %v10923_v52  ;;  %v5071_v52 = vmul.f32 0.5, %v5067_v59 }
 0x625   :  { %v5004_v45 = vmul.f32 0.5, %v5000_v0 }
 0x626   :  { %v5435_v8 = vpop.eup %5434 }
 0x627   :  { %5436 = vtanh.f32 %v5004_v45  ;;  %v5011_v27 = vmul.f32 0.5, %v5435_v8 }
 0x628   :  { %4884 = vxpose.xlu1.b32.cont [2/4] (short) %v4880_v57, 128  ;;  %v4724_v57 = vadd.f32 %v4716_v37, %v12924_v56  ;;  %5438 = vtanh.f32 %v5071_v52 }
 0x629   :  { %4954 = vxpose.xlu2.b32.end [4/4] (short) %v4950_v46, 128  ;;  %v12925_v46 = vld [vmem:[#allocation277_spill] sm:$0xff] }
 0x62a   :  { %v2558_v60 = vpop.trf.xlu2  ;;  %v2489_v50 = vpop.trf.xlu0 }
 0x62b   :  { %5237 = vst.msk [vmem:[%s11611_s3 + $0x400] sm:$0xff] %vm2298_vm4, %v2558_v60  ;;  %v4791_v60 = vadd.f32 %v4783_v35, %v12925_v46 }
 0x62c   :  { %5221 = vst.msk [vmem:[%s11611_s3 + $0x300] sm:$0xff] %vm2298_vm4, %v2489_v50  ;;  %v5001_v50 = vmax.f32 %v4724_v57, 0.0 }
 0x62e   :  { %v5005_v41 = vmul.f32 0.5, %v5001_v50 }
 0x630   :  { %4885 = vxpose.xlu1.b32.cont [3/4] (short) %v4881_v1, 128  ;;  %v5068_v1 = vmax.f32 %v4791_v60, 0.0  ;;  %5440 = vtanh.f32 %v5005_v41 }
 0x632   :  { %v2559_v42 = vpop.trf.xlu2  ;;  %v2490_v40 = vpop.trf.xlu0 }
 0x633   :  { %5238 = vst.msk [vmem:[%s11611_s3 + $0x408] sm:$0xff] %vm2298_vm4, %v2559_v42  ;;  %v5015_v42 = vadd.f32 0.5, %v5011_v27 }
 0x634   :  { %5222 = vst.msk [vmem:[%s11611_s3 + $0x308] sm:$0xff] %vm2298_vm4, %v2490_v40  ;;  %v5437_v40 = vpop.eup %5436 }
 0x638   :  { %4886 = vxpose.xlu1.b32.end [4/4] (short) %v4882_v28, 128  ;;  %v4792_v28 = vadd.f32 %v4784_v44, %v10694_v26 }
 0x63a   :  { %v2560_v38 = vpop.trf.xlu2  ;;  %v2491_v43 = vpop.trf.xlu0 }
 0x63b   :  { %5239 = vst.msk [vmem:[%s11611_s3 + $0x410] sm:$0xff] %vm2298_vm4, %v2560_v38  ;;  %v5072_v38 = vmul.f32 0.5, %v5068_v1 }
 0x63c   :  { %5223 = vst.msk [vmem:[%s11611_s3 + $0x310] sm:$0xff] %vm2298_vm4, %v2491_v43  ;;  %v5002_v43 = vmax.f32 %v10587_v33, 0.0 }
 0x63d   :  { %5442 = vtanh.f32 %v5072_v38 }
 0x642   :  { %v2561_v19 = vpop.trf.xlu2  ;;  %v2492_v7 = vpop.trf.xlu0 }
 0x643   :  { %5240 = vst.msk [vmem:[%s11611_s3 + $0x418] sm:$0xff] %vm2298_vm4, %v2561_v19  ;;  %v5439_v19 = vpop.eup %5438 }
 0x644   :  { %5224 = vst.msk [vmem:[%s11611_s3 + $0x318] sm:$0xff] %vm2298_vm4, %v2492_v7  ;;  %v5012_v7 = vmul.f32 0.5, %v5437_v40  ;;  %v5079_v55 = vmul.f32 0.5, %v5439_v19  ;;  %v2351_v5 = vpop.trf.xlu1  ;;  %v5441_v26 = vpop.eup %5440 }
 0x645   :  { %5189 = vst.msk [vmem:[%s11611_s3 + $0x100] sm:$0xff] %vm2298_vm4, %v2351_v5 }
 0x646   :  { %v5016_v33 = vadd.f32 0.5, %v5012_v7 }
 0x64a   :  { %v2562_v24 = vpop.trf.xlu2  ;;  %v2493_v49 = vpop.trf.xlu0 }
 0x64b   :  { %5241 = vst.msk [vmem:[%s11611_s3 + $0x420] sm:$0xff] %vm2298_vm4, %v2562_v24  ;;  %v5069_v24 = vmax.f32 %v4792_v28, 0.0 }
 0x64c   :  { %5225 = vst.msk [vmem:[%s11611_s3 + $0x320] sm:$0xff] %vm2298_vm4, %v2493_v49  ;;  %v2352_v30 = vpop.trf.xlu1 }
 0x64d   :  { %5190 = vst.msk [vmem:[%s11611_s3 + $0x108] sm:$0xff] %vm2298_vm4, %v2352_v30 }
 0x652   :  { %v2563_v39 = vpop.trf.xlu2  ;;  %v2494_v48 = vpop.trf.xlu0 }
 0x653   :  { %5242 = vst.msk [vmem:[%s11611_s3 + $0x428] sm:$0xff] %vm2298_vm4, %v2563_v39 }
 0x654   :  { %5226 = vst.msk [vmem:[%s11611_s3 + $0x328] sm:$0xff] %vm2298_vm4, %v2494_v48  ;;  %v5006_v48 = vmul.f32 0.5, %v5002_v43  ;;  %v2353_v20 = vpop.trf.xlu1 }
 0x655   :  { %5191 = vst.msk [vmem:[%s11611_s3 + $0x110] sm:$0xff] %vm2298_vm4, %v2353_v20 }
 0x656   :  { %5444 = vtanh.f32 %v5006_v48 }
 0x65a   :  { %v2564_v6 = vpop.trf.xlu2  ;;  %v2495_v9 = vpop.trf.xlu0 }
 0x65b   :  { %5243 = vst.msk [vmem:[%s11611_s3 + $0x430] sm:$0xff] %vm2298_vm4, %v2564_v6  ;;  %v5073_v6 = vmul.f32 0.5, %v5069_v24 }
 0x65c   :  { %5227 = vst.msk [vmem:[%s11611_s3 + $0x330] sm:$0xff] %vm2298_vm4, %v2495_v9  ;;  %v5083_v9 = vadd.f32 0.5, %v5079_v55  ;;  %v2354_v58 = vpop.trf.xlu1 }
 0x65d   :  { %5446 = vtanh.f32 %v5073_v6  ;;  %5192 = vst.msk [vmem:[%s11611_s3 + $0x118] sm:$0xff] %vm2298_vm4, %v2354_v58 }
 0x662   :  { %v2565_v31 = vpop.trf.xlu2  ;;  %v2496_v22 = vpop.trf.xlu0 }
 0x663   :  { %5244 = vst.msk [vmem:[%s11611_s3 + $0x438] sm:$0xff] %vm2298_vm4, %v2565_v31  ;;  %v5443_v31 = vpop.eup %5442 }
 0x664   :  { %5228 = vst.msk [vmem:[%s11611_s3 + $0x338] sm:$0xff] %vm2298_vm4, %v2496_v22  ;;  %v5013_v22 = vmul.f32 0.5, %v5441_v26  ;;  %v5080_v34 = vmul.f32 0.5, %v5443_v31  ;;  %v5445_v54 = vpop.eup %5444  ;;  %v2355_v32 = vpop.trf.xlu1 }
 0x665   :  { %v5447_v15 = vpop.eup %5446  ;;  %v5014_v4 = vmul.f32 0.5, %v5445_v54  ;;  %5193 = vst.msk [vmem:[%s11611_s3 + $0x120] sm:$0xff] %vm2298_vm4, %v2355_v32 }
 0x666   :  { %v5017_v63 = vadd.f32 0.5, %v5013_v22  ;;  %v5084_v61 = vadd.f32 0.5, %v5080_v34  ;;  %v5081_v13 = vmul.f32 0.5, %v5447_v15 }
 0x667   :  { %v5018_v3 = vadd.f32 0.5, %v5014_v4 }
 0x668   :  { %v5085_v11 = vadd.f32 0.5, %v5081_v13 }
 0x66a   :  { %v2566_v17 = vpop.trf.xlu2  ;;  %v2497_v14 = vpop.trf.xlu0 }
 0x66b   :  { %5245 = vst.msk [vmem:[%s11611_s3 + $0x440] sm:$0xff] %vm2298_vm4, %v2566_v17  ;;  %v5070_v17 = vmax.f32 %v10955_v29, 0.0 }
 0x66c   :  { %5229 = vst.msk [vmem:[%s11611_s3 + $0x340] sm:$0xff] %vm2298_vm4, %v2497_v14 }
 0x66d   :  { %v5074_v29 = vmul.f32 0.5, %v5070_v17 }
 0x66f   :  { %5448 = vtanh.f32 %v5074_v29 }
 0x672   :  { %v2567_v51 = vpop.trf.xlu2  ;;  %v2498_v62 = vpop.trf.xlu0 }
 0x673   :  { %5246 = vst.msk [vmem:[%s11611_s3 + $0x448] sm:$0xff] %vm2298_vm4, %v2567_v51 }
 0x674   :  { %5230 = vst.msk [vmem:[%s11611_s3 + $0x348] sm:$0xff] %vm2298_vm4, %v2498_v62 }
 0x675   :  { %v5449_v10 = vpop.eup %5448 }
 0x676   :  { %v5082_v47 = vmul.f32 0.5, %v5449_v10 }
 0x678   :  { %v5086_v23 = vadd.f32 0.5, %v5082_v47 }
 0x67a   :  { %v2568_v16 = vpop.trf.xlu2  ;;  %v2499_v36 = vpop.trf.xlu0 }
 0x67b   :  { %5247 = vst.msk [vmem:[%s11611_s3 + $0x450] sm:$0xff] %vm2298_vm4, %v2568_v16  ;;  %v2356_v16 = vpop.trf.xlu1 }
 0x67c   :  { %5231 = vst.msk [vmem:[%s11611_s3 + $0x350] sm:$0xff] %vm2298_vm4, %v2499_v36 }
 0x67d   :  { %5194 = vst.msk [vmem:[%s11611_s3 + $0x128] sm:$0xff] %vm2298_vm4, %v2356_v16 }
 0x682   :  { %v2569_v53 = vpop.trf.xlu2  ;;  %v2500_v25 = vpop.trf.xlu0 }
 0x683   :  { %5248 = vst.msk [vmem:[%s11611_s3 + $0x458] sm:$0xff] %vm2298_vm4, %v2569_v53  ;;  %v2357_v56 = vpop.trf.xlu1 }
 0x684   :  { %5232 = vst.msk [vmem:[%s11611_s3 + $0x358] sm:$0xff] %vm2298_vm4, %v2500_v25 }
 0x685   :  { %5195 = vst.msk [vmem:[%s11611_s3 + $0x130] sm:$0xff] %vm2298_vm4, %v2357_v56 }
 0x686   :  { %5019 = vxpose.xlu0.b32.start [1/4] (short) %v5015_v42, 128 }
 0x68a   :  { %v2570_v49 = vpop.trf.xlu2  ;;  %v2501_v39 = vpop.trf.xlu0 }
 0x68b   :  { %5249 = vst.msk [vmem:[%s11611_s3 + $0x460] sm:$0xff] %vm2298_vm4, %v2570_v49  ;;  %v2358_v8 = vpop.trf.xlu1 }
 0x68c   :  { %5233 = vst.msk [vmem:[%s11611_s3 + $0x360] sm:$0xff] %vm2298_vm4, %v2501_v39 }
 0x68d   :  { %5196 = vst.msk [vmem:[%s11611_s3 + $0x138] sm:$0xff] %vm2298_vm4, %v2358_v8 }
 0x68e   :  { %5020 = vxpose.xlu0.b32.cont [2/4] (short) %v5016_v33, 128 }
 0x691   :  { %5087 = vxpose.xlu2.b32.start [1/4] (short) %v5083_v9, 128 }
 0x692   :  { %v2571_v14 = vpop.trf.xlu2  ;;  %v2502_v18 = vpop.trf.xlu0 }
 0x693   :  { %5250 = vst.msk [vmem:[%s11611_s3 + $0x468] sm:$0xff] %vm2298_vm4, %v2571_v14  ;;  %v2359_v60 = vpop.trf.xlu1 }
 0x694   :  { %5234 = vst.msk [vmem:[%s11611_s3 + $0x368] sm:$0xff] %vm2298_vm4, %v2502_v18 }
 0x695   :  { %5197 = vst.msk [vmem:[%s11611_s3 + $0x140] sm:$0xff] %vm2298_vm4, %v2359_v60 }
 0x696   :  { %5021 = vxpose.xlu0.b32.cont [3/4] (short) %v5017_v63, 128 }
 0x699   :  { %5088 = vxpose.xlu2.b32.cont [2/4] (short) %v5084_v61, 128 }
 0x69a   :  { %v2572_v12 = vpop.trf.xlu2  ;;  %v2503_v21 = vpop.trf.xlu0 }
 0x69b   :  { %5251 = vst.msk [vmem:[%s11611_s3 + $0x470] sm:$0xff] %vm2298_vm4, %v2572_v12  ;;  %v2360_v1 = vpop.trf.xlu1 }
 0x69c   :  { %5235 = vst.msk [vmem:[%s11611_s3 + $0x370] sm:$0xff] %vm2298_vm4, %v2503_v21 }
 0x69d   :  { %5198 = vst.msk [vmem:[%s11611_s3 + $0x148] sm:$0xff] %vm2298_vm4, %v2360_v1 }
 0x69e   :  { %5022 = vxpose.xlu0.b32.end [4/4] (short) %v5018_v3, 128 }
 0x6a1   :  { %5089 = vxpose.xlu2.b32.cont [3/4] (short) %v5085_v11, 128 }
 0x6a2   :  { %v2573_v51 = vpop.trf.xlu2  ;;  %v2504_v62 = vpop.trf.xlu0 }
 0x6a3   :  { %5252 = vst.msk [vmem:[%s11611_s3 + $0x478] sm:$0xff] %vm2298_vm4, %v2573_v51  ;;  %v2361_v41 = vpop.trf.xlu1 }
 0x6a4   :  { %5236 = vst.msk [vmem:[%s11611_s3 + $0x378] sm:$0xff] %vm2298_vm4, %v2504_v62 }
 0x6a5   :  { %5199 = vst.msk [vmem:[%s11611_s3 + $0x150] sm:$0xff] %vm2298_vm4, %v2361_v41 }
 0x6a9   :  { %5090 = vxpose.xlu2.b32.end [4/4] (short) %v5086_v23, 128 }
 0x6aa   :  { %v4967_v2 = vpop.trf.xlu2  ;;  %v4830_v0 = vpop.trf.xlu0 }
 0x6ab   :  { %5317 = vst.msk [vmem:[%s11611_s3 + $0x280] sm:$0xff] %vm2298_vm4, %v4967_v2  ;;  %v2362_v44 = vpop.trf.xlu1 }
 0x6ac   :  { %4846 = vst.msk [vmem:[%s11611_s3 + $0x80] sm:$0xff] %vm2298_vm4, %v4830_v0 }
 0x6ad   :  { %5200 = vst.msk [vmem:[%s11611_s3 + $0x158] sm:$0xff] %vm2298_vm4, %v2362_v44 }
 0x6b2   :  { %v4968_v37 = vpop.trf.xlu2  ;;  %v4831_v59 = vpop.trf.xlu0 }
 0x6b3   :  { %5318 = vst.msk [vmem:[%s11611_s3 + $0x288] sm:$0xff] %vm2298_vm4, %v4968_v37  ;;  %v2363_v43 = vpop.trf.xlu1 }
 0x6b4   :  { %4847 = vst.msk [vmem:[%s11611_s3 + $0x88] sm:$0xff] %vm2298_vm4, %v4831_v59 }
 0x6b5   :  { %5201 = vst.msk [vmem:[%s11611_s3 + $0x160] sm:$0xff] %vm2298_vm4, %v2363_v43 }
 0x6ba   :  { %v4969_v36 = vpop.trf.xlu2  ;;  %v4832_v45 = vpop.trf.xlu0 }
 0x6bb   :  { %5319 = vst.msk [vmem:[%s11611_s3 + $0x290] sm:$0xff] %vm2298_vm4, %v4969_v36  ;;  %v2364_v24 = vpop.trf.xlu1 }
 0x6bc   :  { %4848 = vst.msk [vmem:[%s11611_s3 + $0x90] sm:$0xff] %vm2298_vm4, %v4832_v45 }
 0x6bd   :  { %5202 = vst.msk [vmem:[%s11611_s3 + $0x168] sm:$0xff] %vm2298_vm4, %v2364_v24 }
 0x6c2   :  { %v4970_v57 = vpop.trf.xlu2  ;;  %v4833_v35 = vpop.trf.xlu0 }
 0x6c3   :  { %5320 = vst.msk [vmem:[%s11611_s3 + $0x298] sm:$0xff] %vm2298_vm4, %v4970_v57  ;;  %v2365_v48 = vpop.trf.xlu1 }
 0x6c4   :  { %4849 = vst.msk [vmem:[%s11611_s3 + $0x98] sm:$0xff] %vm2298_vm4, %v4833_v35 }
 0x6c5   :  { %5203 = vst.msk [vmem:[%s11611_s3 + $0x170] sm:$0xff] %vm2298_vm4, %v2365_v48 }
 0x6ca   :  { %v4971_v52 = vpop.trf.xlu2  ;;  %v4834_v46 = vpop.trf.xlu0 }
 0x6cb   :  { %5321 = vst.msk [vmem:[%s11611_s3 + $0x2a0] sm:$0xff] %vm2298_vm4, %v4971_v52  ;;  %v2366_v33 = vpop.trf.xlu1 }
 0x6cc   :  { %4850 = vst.msk [vmem:[%s11611_s3 + $0xa0] sm:$0xff] %vm2298_vm4, %v4834_v46 }
 0x6cd   :  { %5204 = vst.msk [vmem:[%s11611_s3 + $0x178] sm:$0xff] %vm2298_vm4, %v2366_v33 }
 0x6d2   :  { %v4972_v50 = vpop.trf.xlu2  ;;  %v4835_v27 = vpop.trf.xlu0 }
 0x6d3   :  { %5322 = vst.msk [vmem:[%s11611_s3 + $0x2a8] sm:$0xff] %vm2298_vm4, %v4972_v50  ;;  %v4899_v9 = vpop.trf.xlu1 }
 0x6d4   :  { %4851 = vst.msk [vmem:[%s11611_s3 + $0xa8] sm:$0xff] %vm2298_vm4, %v4835_v27 }
 0x6d5   :  { %5301 = vst.msk [vmem:[%s11611_s3 + $0x180] sm:$0xff] %vm2298_vm4, %v4899_v9 }
 0x6da   :  { %v4973_v53 = vpop.trf.xlu2  ;;  %v4836_v25 = vpop.trf.xlu0 }
 0x6db   :  { %5323 = vst.msk [vmem:[%s11611_s3 + $0x2b0] sm:$0xff] %vm2298_vm4, %v4973_v53  ;;  %v4900_v17 = vpop.trf.xlu1 }
 0x6dc   :  { %4852 = vst.msk [vmem:[%s11611_s3 + $0xb0] sm:$0xff] %vm2298_vm4, %v4836_v25 }
 0x6dd   :  { %5302 = vst.msk [vmem:[%s11611_s3 + $0x188] sm:$0xff] %vm2298_vm4, %v4900_v17 }
 0x6e2   :  { %v4974_v42 = vpop.trf.xlu2  ;;  %v4837_v40 = vpop.trf.xlu0 }
 0x6e3   :  { %5324 = vst.msk [vmem:[%s11611_s3 + $0x2b8] sm:$0xff] %vm2298_vm4, %v4974_v42  ;;  %v4901_v34 = vpop.trf.xlu1 }
 0x6e4   :  { %4853 = vst.msk [vmem:[%s11611_s3 + $0xb8] sm:$0xff] %vm2298_vm4, %v4837_v40 }
 0x6e5   :  { %5303 = vst.msk [vmem:[%s11611_s3 + $0x190] sm:$0xff] %vm2298_vm4, %v4901_v34 }
 0x6ea   :  { %v4975_v28 = vpop.trf.xlu2  ;;  %v4838_v38 = vpop.trf.xlu0 }
 0x6eb   :  { %5325 = vst.msk [vmem:[%s11611_s3 + $0x2c0] sm:$0xff] %vm2298_vm4, %v4975_v28  ;;  %v4902_v54 = vpop.trf.xlu1 }
 0x6ec   :  { %4854 = vst.msk [vmem:[%s11611_s3 + $0xc0] sm:$0xff] %vm2298_vm4, %v4838_v38 }
 0x6ed   :  { %5304 = vst.msk [vmem:[%s11611_s3 + $0x198] sm:$0xff] %vm2298_vm4, %v4902_v54 }
 0x6f2   :  { %v4976_v19 = vpop.trf.xlu2  ;;  %v4839_v7 = vpop.trf.xlu0 }
 0x6f3   :  { %5326 = vst.msk [vmem:[%s11611_s3 + $0x2c8] sm:$0xff] %vm2298_vm4, %v4976_v19  ;;  %v4903_v15 = vpop.trf.xlu1 }
 0x6f4   :  { %4855 = vst.msk [vmem:[%s11611_s3 + $0xc8] sm:$0xff] %vm2298_vm4, %v4839_v7 }
 0x6f5   :  { %5305 = vst.msk [vmem:[%s11611_s3 + $0x1a0] sm:$0xff] %vm2298_vm4, %v4903_v15 }
 0x6fa   :  { %v4977_v49 = vpop.trf.xlu2  ;;  %v4840_v39 = vpop.trf.xlu0 }
 0x6fb   :  { %5327 = vst.msk [vmem:[%s11611_s3 + $0x2d0] sm:$0xff] %vm2298_vm4, %v4977_v49  ;;  %v4904_v21 = vpop.trf.xlu1 }
 0x6fc   :  { %4856 = vst.msk [vmem:[%s11611_s3 + $0xd0] sm:$0xff] %vm2298_vm4, %v4840_v39 }
 0x6fd   :  { %5306 = vst.msk [vmem:[%s11611_s3 + $0x1a8] sm:$0xff] %vm2298_vm4, %v4904_v21 }
 0x702   :  { %v4978_v55 = vpop.trf.xlu2  ;;  %v4841_v5 = vpop.trf.xlu0 }
 0x703   :  { %5328 = vst.msk [vmem:[%s11611_s3 + $0x2d8] sm:$0xff] %vm2298_vm4, %v4978_v55  ;;  %v4905_v3 = vpop.trf.xlu1 }
 0x704   :  { %4857 = vst.msk [vmem:[%s11611_s3 + $0xd8] sm:$0xff] %vm2298_vm4, %v4841_v5 }
 0x705   :  { %5307 = vst.msk [vmem:[%s11611_s3 + $0x1b0] sm:$0xff] %vm2298_vm4, %v4905_v3 }
 0x70a   :  { %v4979_v26 = vpop.trf.xlu2  ;;  %v4842_v6 = vpop.trf.xlu0 }
 0x70b   :  { %5329 = vst.msk [vmem:[%s11611_s3 + $0x2e0] sm:$0xff] %vm2298_vm4, %v4979_v26  ;;  %v4906_v51 = vpop.trf.xlu1 }
 0x70c   :  { %4858 = vst.msk [vmem:[%s11611_s3 + $0xe0] sm:$0xff] %vm2298_vm4, %v4842_v6 }
 0x70d   :  { %5308 = vst.msk [vmem:[%s11611_s3 + $0x1b8] sm:$0xff] %vm2298_vm4, %v4906_v51 }
 0x712   :  { %v4980_v31 = vpop.trf.xlu2  ;;  %v4843_v22 = vpop.trf.xlu0 }
 0x713   :  { %5330 = vst.msk [vmem:[%s11611_s3 + $0x2e8] sm:$0xff] %vm2298_vm4, %v4980_v31  ;;  %v4907_v58 = vpop.trf.xlu1 }
 0x714   :  { %4859 = vst.msk [vmem:[%s11611_s3 + $0xe8] sm:$0xff] %vm2298_vm4, %v4843_v22 }
 0x715   :  { %5309 = vst.msk [vmem:[%s11611_s3 + $0x1c0] sm:$0xff] %vm2298_vm4, %v4907_v58 }
 0x71a   :  { %v4981_v14 = vpop.trf.xlu2  ;;  %v4844_v18 = vpop.trf.xlu0 }
 0x71b   :  { %5331 = vst.msk [vmem:[%s11611_s3 + $0x2f0] sm:$0xff] %vm2298_vm4, %v4981_v14  ;;  %v4908_v0 = vpop.trf.xlu1 }
 0x71c   :  { %4860 = vst.msk [vmem:[%s11611_s3 + $0xf0] sm:$0xff] %vm2298_vm4, %v4844_v18 }
 0x71d   :  { %5310 = vst.msk [vmem:[%s11611_s3 + $0x1c8] sm:$0xff] %vm2298_vm4, %v4908_v0 }
 0x722   :  { %v4982_v30 = vpop.trf.xlu2  ;;  %v4845_v63 = vpop.trf.xlu0 }
 0x723   :  { %5332 = vst.msk [vmem:[%s11611_s3 + $0x2f8] sm:$0x7f] %vm4861_vm5, %v4982_v30  ;;  %v4909_v59 = vpop.trf.xlu1 }
 0x724   :  { %4862 = vst.msk [vmem:[%s11611_s3 + $0xf8] sm:$0x7f] %vm4861_vm5, %v4845_v63 }
 0x725   :  { %5311 = vst.msk [vmem:[%s11611_s3 + $0x1d0] sm:$0xff] %vm2298_vm4, %v4909_v59 }
 0x72a   :  { %v5103_v29 = vpop.trf.xlu2  ;;  %v5035_v61 = vpop.trf.xlu0 }
 0x72b   :  { %5349 = vst.msk [vmem:[%s11611_s3 + $0x480] sm:$0xff] %vm2298_vm4, %v5103_v29  ;;  %v4910_v45 = vpop.trf.xlu1 }
 0x72c   :  { %5333 = vst.msk [vmem:[%s11611_s3 + $0x380] sm:$0xff] %vm2298_vm4, %v5035_v61 }
 0x72d   :  { %5312 = vst.msk [vmem:[%s11611_s3 + $0x1d8] sm:$0xff] %vm2298_vm4, %v4910_v45 }
 0x732   :  { %v5104_v4 = vpop.trf.xlu2  ;;  %v5036_v12 = vpop.trf.xlu0 }
 0x733   :  { %5350 = vst.msk [vmem:[%s11611_s3 + $0x488] sm:$0xff] %vm2298_vm4, %v5104_v4  ;;  %v4911_v35 = vpop.trf.xlu1 }
 0x734   :  { %5334 = vst.msk [vmem:[%s11611_s3 + $0x388] sm:$0xff] %vm2298_vm4, %v5036_v12 }
 0x735   :  { %5313 = vst.msk [vmem:[%s11611_s3 + $0x1e0] sm:$0xff] %vm2298_vm4, %v4911_v35 }
 0x73a   :  { %v5105_v13 = vpop.trf.xlu2  ;;  %v5037_v20 = vpop.trf.xlu0 }
 0x73b   :  { %5351 = vst.msk [vmem:[%s11611_s3 + $0x490] sm:$0xff] %vm2298_vm4, %v5105_v13  ;;  %v4912_v46 = vpop.trf.xlu1 }
 0x73c   :  { %5335 = vst.msk [vmem:[%s11611_s3 + $0x390] sm:$0xff] %vm2298_vm4, %v5037_v20 }
 0x73d   :  { %5314 = vst.msk [vmem:[%s11611_s3 + $0x1e8] sm:$0xff] %vm2298_vm4, %v4912_v46 }
 0x742   :  { %v5106_v11 = vpop.trf.xlu2  ;;  %v5038_v10 = vpop.trf.xlu0 }
 0x743   :  { %5352 = vst.msk [vmem:[%s11611_s3 + $0x498] sm:$0xff] %vm2298_vm4, %v5106_v11  ;;  %v4913_v27 = vpop.trf.xlu1 }
 0x744   :  { %5336 = vst.msk [vmem:[%s11611_s3 + $0x398] sm:$0xff] %vm2298_vm4, %v5038_v10 }
 0x745   :  { %5315 = vst.msk [vmem:[%s11611_s3 + $0x1f0] sm:$0xff] %vm2298_vm4, %v4913_v27 }
 0x74a   :  { %v5107_v62 = vpop.trf.xlu2  ;;  %v5039_v47 = vpop.trf.xlu0 }
 0x74b   :  { %5353 = vst.msk [vmem:[%s11611_s3 + $0x4a0] sm:$0xff] %vm2298_vm4, %v5107_v62  ;;  %v4914_v25 = vpop.trf.xlu1 }
 0x74c   :  { %5337 = vst.msk [vmem:[%s11611_s3 + $0x3a0] sm:$0xff] %vm2298_vm4, %v5039_v47 }
 0x74d   :  { %5316 = vst.msk [vmem:[%s11611_s3 + $0x1f8] sm:$0x7f] %vm4861_vm5, %v4914_v25 }
 0x752   :  { %v5108_v23 = vpop.trf.xlu2  ;;  %v5040_v2 = vpop.trf.xlu0 }
 0x753   :  { %5354 = vst.msk [vmem:[%s11611_s3 + $0x4a8] sm:$0xff] %vm2298_vm4, %v5108_v23 }
 0x754   :  { %5338 = vst.msk [vmem:[%s11611_s3 + $0x3a8] sm:$0xff] %vm2298_vm4, %v5040_v2 }
 0x75a   :  { %v5109_v32 = vpop.trf.xlu2  ;;  %v5041_v37 = vpop.trf.xlu0 }
 0x75b   :  { %5355 = vst.msk [vmem:[%s11611_s3 + $0x4b0] sm:$0xff] %vm2298_vm4, %v5109_v32 }
 0x75c   :  { %5339 = vst.msk [vmem:[%s11611_s3 + $0x3b0] sm:$0xff] %vm2298_vm4, %v5041_v37 }
 0x762   :  { %v5110_v16 = vpop.trf.xlu2  ;;  %v5042_v36 = vpop.trf.xlu0 }
 0x763   :  { %5356 = vst.msk [vmem:[%s11611_s3 + $0x4b8] sm:$0xff] %vm2298_vm4, %v5110_v16 }
 0x764   :  { %5340 = vst.msk [vmem:[%s11611_s3 + $0x3b8] sm:$0xff] %vm2298_vm4, %v5042_v36 }
 0x76a   :  { %v5111_v56 = vpop.trf.xlu2  ;;  %v5043_v57 = vpop.trf.xlu0 }
 0x76b   :  { %5357 = vst.msk [vmem:[%s11611_s3 + $0x4c0] sm:$0xff] %vm2298_vm4, %v5111_v56 }
 0x76c   :  { %5341 = vst.msk [vmem:[%s11611_s3 + $0x3c0] sm:$0xff] %vm2298_vm4, %v5043_v57 }
 0x772   :  { %v5112_v8 = vpop.trf.xlu2  ;;  %v5044_v52 = vpop.trf.xlu0 }
 0x773   :  { %5358 = vst.msk [vmem:[%s11611_s3 + $0x4c8] sm:$0xff] %vm2298_vm4, %v5112_v8 }
 0x774   :  { %5342 = vst.msk [vmem:[%s11611_s3 + $0x3c8] sm:$0xff] %vm2298_vm4, %v5044_v52 }
 0x77a   :  { %v5113_v60 = vpop.trf.xlu2  ;;  %v5045_v50 = vpop.trf.xlu0 }
 0x77b   :  { %5359 = vst.msk [vmem:[%s11611_s3 + $0x4d0] sm:$0xff] %vm2298_vm4, %v5113_v60 }
 0x77c   :  { %5343 = vst.msk [vmem:[%s11611_s3 + $0x3d0] sm:$0xff] %vm2298_vm4, %v5045_v50 }
 0x782   :  { %v5114_v1 = vpop.trf.xlu2  ;;  %v5046_v53 = vpop.trf.xlu0 }
 0x783   :  { %5360 = vst.msk [vmem:[%s11611_s3 + $0x4d8] sm:$0xff] %vm2298_vm4, %v5114_v1 }
 0x784   :  { %5344 = vst.msk [vmem:[%s11611_s3 + $0x3d8] sm:$0xff] %vm2298_vm4, %v5046_v53 }
 0x78a   :  { %v5115_v41 = vpop.trf.xlu2  ;;  %v5047_v42 = vpop.trf.xlu0 }
 0x78b   :  { %5361 = vst.msk [vmem:[%s11611_s3 + $0x4e0] sm:$0xff] %vm2298_vm4, %v5115_v41 }
 0x78c   :  { %5345 = vst.msk [vmem:[%s11611_s3 + $0x3e0] sm:$0xff] %vm2298_vm4, %v5047_v42 }
 0x792   :  { %v5116_v40 = vpop.trf.xlu2  ;;  %v5048_v44 = vpop.trf.xlu0 }
 0x793   :  { %5362 = vst.msk [vmem:[%s11611_s3 + $0x4e8] sm:$0xff] %vm2298_vm4, %v5116_v40 }
 0x794   :  { %5346 = vst.msk [vmem:[%s11611_s3 + $0x3e8] sm:$0xff] %vm2298_vm4, %v5048_v44 }
 0x79a   :  { %v5117_v28 = vpop.trf.xlu2  ;;  %v5049_v38 = vpop.trf.xlu0 }
 0x79b   :  { %5363 = vst.msk [vmem:[%s11611_s3 + $0x4f0] sm:$0xff] %vm2298_vm4, %v5117_v28 }
 0x79c   :  { %5347 = vst.msk [vmem:[%s11611_s3 + $0x3f0] sm:$0xff] %vm2298_vm4, %v5049_v38 }
 0x7a2   :  { %v5118_v43 = vpop.trf.xlu2  ;;  %v5050_v19 = vpop.trf.xlu0 }
 0x7a3   :  { %5364 = vst.msk [vmem:[%s11611_s3 + $0x4f8] sm:$0x7f] %vm4861_vm5, %v5118_v43 }
 0x7a4   :  { %5348 = vst.msk [vmem:[%s11611_s3 + $0x3f8] sm:$0x7f] %vm4861_vm5, %v5050_v19 }
 0x7a5   :  { %5139 = vsyncpa [#allocation3], 1 }
 0x7a6   :  { %5140 = vsyncpa [#allocation5], 1 }

</bundles_post_ra>
